<compile_context>
chip_gen: v5e
topology: v5e:2x2
jax: 0.10.0
libtpu: 0.0.40
codegen_flags: <defaults>
</compile_context>

<pallas_src>
import functools

import jax
import jax.numpy as jnp
from jax.experimental import pallas as pl
from jax.experimental.pallas import tpu as pltpu

EPS = 1e-5
EXPANSION = 4
LANE = 128


# ------------------------------ small helpers -------------------------------

def _round_up(x, m):
    return ((x + m - 1) // m) * m


def _pad_to(a, shape):
    return jnp.pad(a, [(0, s - d) for d, s in zip(a.shape, shape)])


def _vmem_limit_bytes():
    """Scoped-VMEM budget: ~3/4 of physical VMEM, capped at 100 MiB.

    v5e/v6e (128 MiB physical) -> 96 MiB; v7x (64 MiB physical) -> 48 MiB.
    """
    try:
        cap = int(pltpu.get_tpu_info().vmem_capacity_bytes)
    except Exception:
        cap = 64 * 1024 * 1024          # conservative fallback (v7x-sized)
    return min(100 * 1024 * 1024, (cap * 3) // 4)


def _pick_row_tile(m, bytes_per_row, budget_bytes):
    """Largest multiple-of-8 row tile whose block bytes fit the budget.

    Grids use cdiv; rows past `m` are masked in-kernel for stats and dropped on
    store, so the tile does not have to divide m exactly.
    """
    cap_rows = max(8, budget_bytes // max(bytes_per_row, 1))
    t = min(_round_up(m, 8), (cap_rows // 8) * 8)
    return max(8, t)


def _pick_image_block(n, rows_per_image, per_image_bytes, budget_bytes,
                      target_rows=512):
    """Largest divisor of n keeping the conv2 matmul M near the MXU sweet spot
    and the per-step footprint inside the VMEM budget."""
    best = 1
    for b in range(1, n + 1):
        if n % b:
            continue
        if b * per_image_bytes > budget_bytes:
            continue
        if b * rows_per_image > target_rows:
            continue
        best = b
    return best


def _scale_shift(partial_stats, gamma, beta, count):
    """(tiles, 2, C) partial sums -> fused (2, C) = [scale; shift] for BN+affine."""
    # TODO(synk): tiny per-channel finalize (a few hundred floats) stays in JAX.
    tot = jnp.sum(partial_stats, axis=0)                       # (2, C)
    mean = tot[0] / count
    var = jnp.maximum(tot[1] / count - mean * mean, 0.0)       # clamp fp cancellation
    inv = jax.lax.rsqrt(var + EPS)
    scale = gamma * inv
    shift = beta - mean * scale
    return jnp.stack([scale, shift], axis=0)                   # (2, C)


def _row_mask(tm, m_total):
    """(tm, 1) validity mask for the current row tile (rows >= m_total are padding)."""
    row = pl.program_id(0) * tm + jax.lax.broadcasted_iota(jnp.int32, (tm, 1), 0)
    return row < m_total


# ----------------------------- Pallas kernels --------------------------------

def _row_stats_kernel(x_ref, st_ref, *, m_total):
    """Per-channel masked partial sum / sum-of-squares for one row tile."""
    x = x_ref[...]
    xm = jnp.where(_row_mask(x.shape[0], m_total), x, 0.0)
    st_ref[0, 0:1, :] = jnp.sum(xm, axis=0, keepdims=True)
    st_ref[0, 1:2, :] = jnp.sum(xm * xm, axis=0, keepdims=True)


def _stage1_kernel(x_ref, s1_ref, w1_ref, y1_ref, st2_ref, *, m_total):
    """y1 = conv1(relu(bn1(x))) for one row tile (bf16 store) + masked stats of y1."""
    x = x_ref[...]
    xr = jnp.maximum(x * s1_ref[0:1, :] + s1_ref[1:2, :], 0.0)
    y1 = jnp.dot(xr.astype(jnp.bfloat16), w1_ref[...],
                 preferred_element_type=jnp.float32)
    y1_ref[...] = y1.astype(y1_ref.dtype)                      # bf16 HBM traffic
    y1m = jnp.where(_row_mask(x.shape[0], m_total), y1, 0.0)
    st2_ref[0, 0:1, :] = jnp.sum(y1m, axis=0, keepdims=True)
    st2_ref[0, 1:2, :] = jnp.sum(y1m * y1m, axis=0, keepdims=True)


def _stage2_kernel(y1_ref, s2_ref, w2_ref, y3_ref, st3_ref, pad_ref, *,
                   H, W, H2, W2, stride):
    """y3 = conv2(relu(bn2(y1))) for a block of B images; 3x3 conv = 9 shifted matmuls."""
    B = y1_ref.shape[0]
    Pp = w2_ref.shape[-1]

    # Zero only the halo ring; interior is fully overwritten below.  Re-zeroing
    # every grid step keeps the grid axis safe under "parallel" scheduling.
    pad_ref[:, 0:1, :, :] = jnp.zeros((B, 1, W + 2, Pp), jnp.float32)
    pad_ref[:, H + 1:H + 2, :, :] = jnp.zeros((B, 1, W + 2, Pp), jnp.float32)
    pad_ref[:, :, 0:1, :] = jnp.zeros((B, H + 2, 1, Pp), jnp.float32)
    pad_ref[:, :, W + 1:W + 2, :] = jnp.zeros((B, H + 2, 1, Pp), jnp.float32)

    y1 = y1_ref[...].astype(jnp.float32)                       # (B, H, W, Pp)
    xr = jnp.maximum(y1 * s2_ref[0:1, :] + s2_ref[1:2, :], 0.0)
    pad_ref[:, 1:1 + H, 1:1 + W, :] = xr

    if stride == 1:
        def window(kh, kw):
            return pad_ref[:, kh:kh + H2, kw:kw + W2, :]
    else:
        # TODO(synk): the stride>1 path still materializes the whole padded slab
        # and takes 9 strided value slices; a per-tap strided read would cut
        # vreg/XLU pressure (untested path: the demo configs use stride=1).
        xp = pad_ref[...]

        def window(kh, kw):
            return xp[:, kh:kh + (H2 - 1) * stride + 1:stride,
                      kw:kw + (W2 - 1) * stride + 1:stride, :]

    acc = jnp.zeros((B * H2 * W2, Pp), jnp.float32)
    for kh in range(3):
        for kw in range(3):
            win = window(kh, kw).reshape(B * H2 * W2, Pp).astype(jnp.bfloat16)
            acc = acc + jnp.dot(win, w2_ref[kh * 3 + kw],
                                preferred_element_type=jnp.float32)

    y3_ref[...] = acc.reshape(B, H2, W2, Pp).astype(y3_ref.dtype)   # bf16 store
    st3_ref[0, 0:1, :] = jnp.sum(acc, axis=0, keepdims=True)
    st3_ref[0, 1:2, :] = jnp.sum(acc * acc, axis=0, keepdims=True)


def _stage3_conv_shortcut_kernel(y3_ref, s3_ref, w3_ref, xs_ref, s1_ref, ws_ref,
                                 o_ref):
    """out = conv3(relu(bn3(y3))) + conv_shortcut(relu(bn1(x_strided)))."""
    z = jnp.maximum(y3_ref[...].astype(jnp.float32) * s3_ref[0:1, :]
                    + s3_ref[1:2, :], 0.0)
    out = jnp.dot(z.astype(jnp.bfloat16), w3_ref[...],
                  preferred_element_type=jnp.float32)
    xr = jnp.maximum(xs_ref[...] * s1_ref[0:1, :] + s1_ref[1:2, :], 0.0)
    out = out + jnp.dot(xr.astype(jnp.bfloat16), ws_ref[...],
                        preferred_element_type=jnp.float32)
    o_ref[...] = out


def _stage3_identity_kernel(y3_ref, s3_ref, w3_ref, xs_ref, o_ref):
    """out = conv3(relu(bn3(y3))) + x (identity shortcut)."""
    z = jnp.maximum(y3_ref[...].astype(jnp.float32) * s3_ref[0:1, :]
                    + s3_ref[1:2, :], 0.0)
    out = jnp.dot(z.astype(jnp.bfloat16), w3_ref[...],
                  preferred_element_type=jnp.float32)
    o_ref[...] = out + xs_ref[...]


# --------------------------------- wrapper -----------------------------------

def preact_bottleneck_pallas(x_nchw, params, stride=1, nchw_out=True):
    N, Cin, H, W = x_nchw.shape
    P = params["w1"].shape[1]
    Cout = EXPANSION * P
    has_shortcut = (stride != 1) or (Cin != Cout)

    Cinp = _round_up(Cin, LANE)
    Pp = _round_up(P, LANE)
    Coutp = _round_up(Cout, LANE)
    H2 = (H - 1) // stride + 1
    W2 = (W - 1) // stride + 1
    M = N * H * W
    M2 = N * H2 * W2

    vmem_limit = _vmem_limit_bytes()
    block_budget = vmem_limit // 4          # per-step bytes for row-tiled operands
    cp = pltpu.CompilerParams(dimension_semantics=("parallel",),
                              vmem_limit_bytes=vmem_limit)

    # ---- layout glue: NCHW -> NHWC, lane-pad channels, flatten rows ----
    # TODO(synk): in a full network the NCHW<->NHWC relayout (and the BN1 stats
    # pass over x) would be done once at the model boundary / fused with it, so
    # each block reads x from HBM only once.
    x_nhwc = jnp.transpose(x_nchw, (0, 2, 3, 1)).astype(jnp.float32)
    x_nhwc = jnp.pad(x_nhwc, ((0, 0), (0, 0), (0, 0), (0, Cinp - Cin)))
    x2d = x_nhwc.reshape(M, Cinp)

    # lane-padded params: weights in bf16 (MXU-native), BN params in f32.
    # TODO(synk): resident weights are still double-buffered by default
    # (pipeline_mode=pl.Buffered(1) would reclaim a little VMEM on v7x).
    w1 = _pad_to(params["w1"], (Cinp, Pp)).astype(jnp.bfloat16)
    w2 = _pad_to(params["w2"].reshape(9, P, P), (9, Pp, Pp)).astype(jnp.bfloat16)
    w3 = _pad_to(params["w3"], (Pp, Coutp)).astype(jnp.bfloat16)
    g1 = _pad_to(params["g1"].reshape(-1), (Cinp,))
    b1 = _pad_to(params["b1"].reshape(-1), (Cinp,))
    g2 = _pad_to(params["g2"].reshape(-1), (Pp,))
    b2 = _pad_to(params["b2"].reshape(-1), (Pp,))
    g3 = _pad_to(params["g3"].reshape(-1), (Pp,))
    b3 = _pad_to(params["b3"].reshape(-1), (Pp,))

    # ---- pass 0: BN1 batch statistics of x (row-tiled masked partial sums) ----
    tm0 = _pick_row_tile(M, Cinp * 4, block_budget)
    nt0 = pl.cdiv(M, tm0)
    st1 = pl.pallas_call(
        functools.partial(_row_stats_kernel, m_total=M),
        out_shape=jax.ShapeDtypeStruct((nt0, 2, Cinp), jnp.float32),
        grid=(nt0,),
        in_specs=[pl.BlockSpec((tm0, Cinp), lambda i: (i, 0))],
        out_specs=pl.BlockSpec((1, 2, Cinp), lambda i: (i, 0, 0)),
        compiler_params=cp,
    )(x2d)
    s1 = _scale_shift(st1, g1, b1, M)

    # ---- pass 1: y1 = conv1(relu(bn1(x))), bf16 store (+ partial stats for BN2) ----
    tm1 = _pick_row_tile(M, Cinp * 4 + Pp * 2, block_budget)
    nt1 = pl.cdiv(M, tm1)
    y1_2d, st2 = pl.pallas_call(
        functools.partial(_stage1_kernel, m_total=M),
        out_shape=(jax.ShapeDtypeStruct((M, Pp), jnp.bfloat16),
                   jax.ShapeDtypeStruct((nt1, 2, Pp), jnp.float32)),
        grid=(nt1,),
        in_specs=[pl.BlockSpec((tm1, Cinp), lambda i: (i, 0)),
                  pl.BlockSpec((2, Cinp), lambda i: (0, 0)),      # s1 resident
                  pl.BlockSpec((Cinp, Pp), lambda i: (0, 0))],    # w1 resident
        out_specs=(pl.BlockSpec((tm1, Pp), lambda i: (i, 0)),
                   pl.BlockSpec((1, 2, Pp), lambda i: (i, 0, 0))),
        compiler_params=cp,
    )(x2d, s1, w1)
    s2 = _scale_shift(st2, g2, b2, M)

    # ---- pass 2: conv2 (3x3, pad=1, stride) over image blocks (+ BN3 stats) ----
    y1_4d = y1_2d.reshape(N, H, W, Pp)
    per_img_bytes = (H * W * Pp * 2                     # y1 in (bf16)
                     + H2 * W2 * Pp * 2                 # y3 out (bf16)
                     + (H + 2) * (W + 2) * Pp * 4)      # halo scratch (f32)
    B_IMG = _pick_image_block(N, H2 * W2, per_img_bytes, block_budget)
    n_steps2 = N // B_IMG
    stage2 = functools.partial(_stage2_kernel, H=H, W=W, H2=H2, W2=W2,
                               stride=stride)
    y3_4d, st3 = pl.pallas_call(
        stage2,
        out_shape=(jax.ShapeDtypeStruct((N, H2, W2, Pp), jnp.bfloat16),
                   jax.ShapeDtypeStruct((n_steps2, 2, Pp), jnp.float32)),
        grid=(n_steps2,),
        in_specs=[pl.BlockSpec((B_IMG, H, W, Pp), lambda n: (n, 0, 0, 0)),
                  pl.BlockSpec((2, Pp), lambda n: (0, 0)),        # s2 resident
                  pl.BlockSpec((9, Pp, Pp), lambda n: (0, 0, 0))],# w2 resident
        out_specs=(pl.BlockSpec((B_IMG, H2, W2, Pp), lambda n: (n, 0, 0, 0)),
                   pl.BlockSpec((1, 2, Pp), lambda n: (n, 0, 0))),
        scratch_shapes=[pltpu.VMEM((B_IMG, H + 2, W + 2, Pp), jnp.float32)],
        compiler_params=cp,
    )(y1_4d, s2, w2)
    s3 = _scale_shift(st3, g3, b3, M2)

    # ---- pass 3: conv3(relu(bn3(y3))) + shortcut, row-tiled over M2 ----
    y3_2d = y3_4d.reshape(M2, Pp)
    if stride == 1:
        xs2d = x2d
    else:
        # TODO(synk): for stride>1 the shortcut input is gathered JAX-side; picking
        # strided rows via the BlockSpec index_map would save one HBM pass.
        xs2d = x_nhwc[:, ::stride, ::stride, :].reshape(M2, Cinp)

    tm3 = _pick_row_tile(M2, Pp * 2 + Cinp * 4 + Coutp * 4, block_budget)
    nt3 = pl.cdiv(M2, tm3)
    if has_shortcut:
        ws = _pad_to(params["ws"], (Cinp, Coutp)).astype(jnp.bfloat16)
        out2d = pl.pallas_call(
            _stage3_conv_shortcut_kernel,
            out_shape=jax.ShapeDtypeStruct((M2, Coutp), jnp.float32),
            grid=(nt3,),
            in_specs=[pl.BlockSpec((tm3, Pp), lambda i: (i, 0)),
                      pl.BlockSpec((2, Pp), lambda i: (0, 0)),
                      pl.BlockSpec((Pp, Coutp), lambda i: (0, 0)),
                      pl.BlockSpec((tm3, Cinp), lambda i: (i, 0)),
                      pl.BlockSpec((2, Cinp), lambda i: (0, 0)),
                      pl.BlockSpec((Cinp, Coutp), lambda i: (0, 0))],
            out_specs=pl.BlockSpec((tm3, Coutp), lambda i: (i, 0)),
            compiler_params=cp,
        )(y3_2d, s3, w3, xs2d, s1, ws)
    else:
        out2d = pl.pallas_call(
            _stage3_identity_kernel,
            out_shape=jax.ShapeDtypeStruct((M2, Coutp), jnp.float32),
            grid=(nt3,),
            in_specs=[pl.BlockSpec((tm3, Pp), lambda i: (i, 0)),
                      pl.BlockSpec((2, Pp), lambda i: (0, 0)),
                      pl.BlockSpec((Pp, Coutp), lambda i: (0, 0)),
                      pl.BlockSpec((tm3, Coutp), lambda i: (i, 0))],
            out_specs=pl.BlockSpec((tm3, Coutp), lambda i: (i, 0)),
            compiler_params=cp,
        )(y3_2d, s3, w3, xs2d)

    out = out2d.reshape(N, H2, W2, Coutp)[:, :, :, :Cout]
    if nchw_out:
        # TODO(synk): per perf review, a full network should keep NHWC end-to-end
        # and transpose once at the model boundary, not per block.
        out = jnp.transpose(out, (0, 3, 1, 2))
    return out


# ------------------------- deterministic parameters --------------------------

def init_params(key, in_planes, planes):
    cout = EXPANSION * planes
    ks = jax.random.split(key, 10)

    def w(k, shape, fan_in):
        return jax.random.normal(k, shape, jnp.float32) / jnp.sqrt(float(fan_in))

    return {
        "g1": jax.random.uniform(ks[0], (1, in_planes), jnp.float32, 0.8, 1.2),
        "b1": 0.1 * jax.random.normal(ks[1], (1, in_planes), jnp.float32),
        "w1": w(ks[2], (in_planes, planes), in_planes),           # conv1 1x1
        "g2": jax.random.uniform(ks[3], (1, planes), jnp.float32, 0.8, 1.2),
        "b2": 0.1 * jax.random.normal(ks[4], (1, planes), jnp.float32),
        "w2": w(ks[5], (3, 3, planes, planes), 9 * planes),       # conv2 3x3 (kh,kw,cin,cout)
        "g3": jax.random.uniform(ks[6], (1, planes), jnp.float32, 0.8, 1.2),
        "b3": 0.1 * jax.random.normal(ks[7], (1, planes), jnp.float32),
        "w3": w(ks[8], (planes, cout), planes),                   # conv3 1x1
        "ws": w(ks[9], (in_planes, cout), in_planes),             # shortcut 1x1
    }


# ----------------------------- pure-JAX reference ----------------------------

def _ref_bn_relu_nchw(x, g, b):
    mean = jnp.mean(x, axis=(0, 2, 3), keepdims=True)
    var = jnp.mean(jnp.square(x), axis=(0, 2, 3), keepdims=True) - jnp.square(mean)
    y = (x - mean) * jax.lax.rsqrt(var + EPS) * g.reshape(1, -1, 1, 1) \
        + b.reshape(1, -1, 1, 1)
    return jnp.maximum(y, 0.0)


def preact_bottleneck_reference(x, params, stride=1):
    _, Cin, _, _ = x.shape
    P = params["w1"].shape[1]
    Cout = EXPANSION * P
    has_shortcut = (stride != 1) or (Cin != Cout)

    def conv(inp, w_oihw, s=1, pad=0):
        return jax.lax.conv_general_dilated(
            inp, w_oihw, (s, s), [(pad, pad), (pad, pad)],
            dimension_numbers=("NCHW", "OIHW", "NCHW"),
            precision=jax.lax.Precision.HIGHEST)

    w1 = jnp.transpose(params["w1"])[:, :, None, None]
    w2 = jnp.transpose(params["w2"], (3, 2, 0, 1))
    w3 = jnp.transpose(params["w3"])[:, :, None, None]

    out = _ref_bn_relu_nchw(x, params["g1"], params["b1"])
    if has_shortcut:
        ws = jnp.transpose(params["ws"])[:, :, None, None]
        shortcut = conv(out, ws, s=stride)
    else:
        shortcut = x
    out = conv(out, w1)
    out = conv(_ref_bn_relu_nchw(out, params["g2"], params["b2"]), w2, s=stride, pad=1)
    out = conv(_ref_bn_relu_nchw(out, params["g3"], params["b3"]), w3)
    return out + shortcut


# ----------------------------------- main -------------------------------------

if __name__ == "__main__":
    key = jax.random.PRNGKey(0)

    configs = [
        # (name, in_planes, planes, stride)
        ("conv_shortcut", 8, 4, 1),    # in_planes != 4*planes -> 1x1 shortcut conv
        ("identity", 16, 4, 1),        # in_planes == 4*planes -> identity shortcut
    ]

    N, H, W = 2, 16, 16
    for idx, (name, in_planes, planes, stride) in enumerate(configs):
        kx, kp = jax.random.split(jax.random.fold_in(key, idx))
        x = jax.random.normal(kx, (N, in_planes, H, W), jnp.float32)
        params = init_params(kp, in_planes, planes)

        fn = jax.jit(functools.partial(preact_bottleneck_pallas,
                                       params=params, stride=stride))
        out = jax.block_until_ready(fn(x))

        ref = preact_bottleneck_reference(x, params, stride)
        assert out.shape == ref.shape == (N, EXPANSION * planes, H, W), \
            (name, out.shape, ref.shape)
        err = jnp.abs(out - ref)
        max_err = float(jnp.max(err))
        mean_err = float(jnp.mean(err))
        # Tolerances account for bf16 inter-stage activations + bf16 MXU operands
        # vs. the f32 HIGHEST-precision reference.
        assert max_err < 1e-1, f"{name}: max abs error {max_err}"
        assert mean_err < 2e-2, f"{name}: mean abs error {mean_err}"

    print("KERNEL_OK")
</pallas_src>

<mosaic_0001>
module attributes {stable_mosaic.version = 11 : i64} {
  func.func @_row_stats_kernel(%arg0: i32, %arg1: memref<512x128xf32, #tpu.memory_space<vmem>>, %arg2: memref<1x2x128xf32, #tpu.memory_space<vmem>>) attributes {dimension_semantics = [#tpu.dimension_semantics<parallel>], iteration_bounds = array<i64: 1>, scalar_prefetch = 0 : i64, scratch_operands = 0 : i64, tpu.core_type = #tpu.core_type<tc>, window_params = [{transform_indices = @transform_0, window_bounds = array<i64: 512, 128>}, {transform_indices = @transform_1, window_bounds = array<i64: 1, 2, 128>}]} {
    %c0 = arith.constant 0 : index
    %c0_0 = arith.constant 0 : index
    %0 = vector.load %arg1[%c0, %c0_0] : memref<512x128xf32, #tpu.memory_space<vmem>>, vector<512x128xf32>
    %c512_i32 = arith.constant 512 : i32
    %1 = arith.muli %arg0, %c512_i32 : i32
    %2 = tpu.iota {dimensions = array<i32: 0>} : vector<512x1xi32>
    %3 = vector.broadcast %1 : i32 to vector<512x1xi32>
    %4 = arith.addi %3, %2 : vector<512x1xi32>
    %c512_i32_1 = arith.constant 512 : i32
    %5 = vector.broadcast %c512_i32_1 : i32 to vector<512x1xi32>
    %6 = arith.cmpi slt, %4, %5 : vector<512x1xi32>
    %cst = arith.constant 0.000000e+00 : f32
    %7 = vector.shape_cast %6 : vector<512x1xi1> to vector<512x1xi1>
    %8 = vector.broadcast %7 : vector<512x1xi1> to vector<512x128xi1>
    %9 = vector.broadcast %cst : f32 to vector<512x128xf32>
    %10 = arith.select %8, %0, %9 : vector<512x128xi1>, vector<512x128xf32>
    %cst_2 = arith.constant dense<0.000000e+00> : vector<128xf32>
    %11 = vector.multi_reduction <add>, %10, %cst_2 [0] : vector<512x128xf32> to vector<128xf32>
    %12 = vector.shape_cast %11 : vector<128xf32> to vector<1x128xf32>
    %c0_3 = arith.constant 0 : index
    %c0_4 = arith.constant 0 : index
    %c0_5 = arith.constant 0 : index
    %13 = vector.load %arg2[%c0_3, %c0_4, %c0_5] : memref<1x2x128xf32, #tpu.memory_space<vmem>>, vector<1x1x128xf32>
    %14 = vector.shape_cast %13 : vector<1x1x128xf32> to vector<1x128xf32>
    %15 = vector.shape_cast %12 : vector<1x128xf32> to vector<1x1x128xf32>
    tpu.vector_store %arg2[%c0_3, %c0_4, %c0_5], %15 {strides = array<i32>} : memref<1x2x128xf32, #tpu.memory_space<vmem>>, vector<1x1x128xf32>,
    %16 = arith.mulf %10, %10 : vector<512x128xf32>
    %cst_6 = arith.constant dense<0.000000e+00> : vector<128xf32>
    %17 = vector.multi_reduction <add>, %16, %cst_6 [0] : vector<512x128xf32> to vector<128xf32>
    %18 = vector.shape_cast %17 : vector<128xf32> to vector<1x128xf32>
    %c0_7 = arith.constant 0 : index
    %c1 = arith.constant 1 : index
    %c0_8 = arith.constant 0 : index
    %19 = vector.load %arg2[%c0_7, %c1, %c0_8] : memref<1x2x128xf32, #tpu.memory_space<vmem>>, vector<1x1x128xf32>
    %20 = vector.shape_cast %19 : vector<1x1x128xf32> to vector<1x128xf32>
    %21 = vector.shape_cast %18 : vector<1x128xf32> to vector<1x1x128xf32>
    tpu.vector_store %arg2[%c0_7, %c1, %c0_8], %21 {strides = array<i32>} : memref<1x2x128xf32, #tpu.memory_space<vmem>>, vector<1x1x128xf32>,
    return
  }
  func.func @transform_0(%arg0: i32) -> (i32, i32) {
    %c0_i32 = arith.constant 0 : i32
    %c0_i32_0 = arith.constant 0 : i32
    return %arg0, %c0_i32 : i32, i32
  }
  func.func @transform_1(%arg0: i32) -> (i32, i32, i32) {
    %c0_i32 = arith.constant 0 : i32
    %c0_i32_0 = arith.constant 0 : i32
    %c0_i32_1 = arith.constant 0 : i32
    return %arg0, %c0_i32, %c0_i32_0 : i32, i32, i32
  }
}

module attributes {stable_mosaic.version = 11 : i64} {
  func.func @_stage1_kernel(%arg0: i32, %arg1: memref<512x128xf32, #tpu.memory_space<vmem>>, %arg2: memref<2x128xf32, #tpu.memory_space<vmem>>, %arg3: memref<128x128xbf16, #tpu.memory_space<vmem>>, %arg4: memref<512x128xbf16, #tpu.memory_space<vmem>>, %arg5: memref<1x2x128xf32, #tpu.memory_space<vmem>>) attributes {dimension_semantics = [#tpu.dimension_semantics<parallel>], iteration_bounds = array<i64: 1>, scalar_prefetch = 0 : i64, scratch_operands = 0 : i64, tpu.core_type = #tpu.core_type<tc>, window_params = [{transform_indices = @transform_0, window_bounds = array<i64: 512, 128>}, {pipeline_mode = #tpu.pipeline_mode<synchronous>, transform_indices = @transform_1, window_bounds = array<i64: 2, 128>}, {pipeline_mode = #tpu.pipeline_mode<synchronous>, transform_indices = @transform_2, window_bounds = array<i64: 128, 128>}, {transform_indices = @transform_3, window_bounds = array<i64: 512, 128>}, {transform_indices = @transform_4, window_bounds = array<i64: 1, 2, 128>}]} {
    %c0 = arith.constant 0 : index
    %c0_0 = arith.constant 0 : index
    %0 = vector.load %arg1[%c0, %c0_0] : memref<512x128xf32, #tpu.memory_space<vmem>>, vector<512x128xf32>
    %c0_1 = arith.constant 0 : index
    %c0_2 = arith.constant 0 : index
    %1 = vector.load %arg2[%c0_1, %c0_2] : memref<2x128xf32, #tpu.memory_space<vmem>>, vector<1x128xf32>
    %2 = vector.broadcast %1 : vector<1x128xf32> to vector<512x128xf32>
    %3 = arith.mulf %0, %2 : vector<512x128xf32>
    %c1 = arith.constant 1 : index
    %c0_3 = arith.constant 0 : index
    %4 = vector.load %arg2[%c1, %c0_3] : memref<2x128xf32, #tpu.memory_space<vmem>>, vector<1x128xf32>
    %5 = vector.broadcast %4 : vector<1x128xf32> to vector<512x128xf32>
    %6 = arith.addf %3, %5 : vector<512x128xf32>
    %cst = arith.constant 0.000000e+00 : f32
    %7 = vector.broadcast %cst : f32 to vector<512x128xf32>
    %8 = arith.maximumf %6, %7 : vector<512x128xf32>
    %9 = arith.truncf %8 : vector<512x128xf32> to vector<512x128xbf16>
    %c0_4 = arith.constant 0 : index
    %c0_5 = arith.constant 0 : index
    %10 = vector.load %arg3[%c0_4, %c0_5] : memref<128x128xbf16, #tpu.memory_space<vmem>>, vector<128x128xbf16>
    %cst_6 = arith.constant dense<0.000000e+00> : vector<512x128xf32>
    %11 = tpu.matmul %9, %10, %cst_6 {dimension_numbers = #tpu.dot_dimension_numbers<[1], [0], [0], [1], [0, 0, 1, 1], [], []>} : vector<512x128xbf16>, vector<128x128xbf16>, vector<512x128xf32> -> vector<512x128xf32>
    %12 = arith.truncf %11 : vector<512x128xf32> to vector<512x128xbf16>
    %c0_7 = arith.constant 0 : index
    %c0_8 = arith.constant 0 : index
    %13 = vector.load %arg4[%c0_7, %c0_8] : memref<512x128xbf16, #tpu.memory_space<vmem>>, vector<512x128xbf16>
    tpu.vector_store %arg4[%c0_7, %c0_8], %12 {strides = array<i32>} : memref<512x128xbf16, #tpu.memory_space<vmem>>, vector<512x128xbf16>,
    %c512_i32 = arith.constant 512 : i32
    %14 = arith.muli %arg0, %c512_i32 : i32
    %15 = tpu.iota {dimensions = array<i32: 0>} : vector<512x1xi32>
    %16 = vector.broadcast %14 : i32 to vector<512x1xi32>
    %17 = arith.addi %16, %15 : vector<512x1xi32>
    %c512_i32_9 = arith.constant 512 : i32
    %18 = vector.broadcast %c512_i32_9 : i32 to vector<512x1xi32>
    %19 = arith.cmpi slt, %17, %18 : vector<512x1xi32>
    %cst_10 = arith.constant 0.000000e+00 : f32
    %20 = vector.shape_cast %19 : vector<512x1xi1> to vector<512x1xi1>
    %21 = vector.broadcast %20 : vector<512x1xi1> to vector<512x128xi1>
    %22 = vector.broadcast %cst_10 : f32 to vector<512x128xf32>
    %23 = arith.select %21, %11, %22 : vector<512x128xi1>, vector<512x128xf32>
    %cst_11 = arith.constant dense<0.000000e+00> : vector<128xf32>
    %24 = vector.multi_reduction <add>, %23, %cst_11 [0] : vector<512x128xf32> to vector<128xf32>
    %25 = vector.shape_cast %24 : vector<128xf32> to vector<1x128xf32>
    %c0_12 = arith.constant 0 : index
    %c0_13 = arith.constant 0 : index
    %c0_14 = arith.constant 0 : index
    %26 = vector.load %arg5[%c0_12, %c0_13, %c0_14] : memref<1x2x128xf32, #tpu.memory_space<vmem>>, vector<1x1x128xf32>
    %27 = vector.shape_cast %26 : vector<1x1x128xf32> to vector<1x128xf32>
    %28 = vector.shape_cast %25 : vector<1x128xf32> to vector<1x1x128xf32>
    tpu.vector_store %arg5[%c0_12, %c0_13, %c0_14], %28 {strides = array<i32>} : memref<1x2x128xf32, #tpu.memory_space<vmem>>, vector<1x1x128xf32>,
    %29 = arith.mulf %23, %23 : vector<512x128xf32>
    %cst_15 = arith.constant dense<0.000000e+00> : vector<128xf32>
    %30 = vector.multi_reduction <add>, %29, %cst_15 [0] : vector<512x128xf32> to vector<128xf32>
    %31 = vector.shape_cast %30 : vector<128xf32> to vector<1x128xf32>
    %c0_16 = arith.constant 0 : index
    %c1_17 = arith.constant 1 : index
    %c0_18 = arith.constant 0 : index
    %32 = vector.load %arg5[%c0_16, %c1_17, %c0_18] : memref<1x2x128xf32, #tpu.memory_space<vmem>>, vector<1x1x128xf32>
    %33 = vector.shape_cast %32 : vector<1x1x128xf32> to vector<1x128xf32>
    %34 = vector.shape_cast %31 : vector<1x128xf32> to vector<1x1x128xf32>
    tpu.vector_store %arg5[%c0_16, %c1_17, %c0_18], %34 {strides = array<i32>} : memref<1x2x128xf32, #tpu.memory_space<vmem>>, vector<1x1x128xf32>,
    return
  }
  func.func @transform_0(%arg0: i32) -> (i32, i32) {
    %c0_i32 = arith.constant 0 : i32
    %c0_i32_0 = arith.constant 0 : i32
    return %arg0, %c0_i32 : i32, i32
  }
  func.func @transform_1(%arg0: i32) -> (i32, i32) {
    %c0_i32 = arith.constant 0 : i32
    %c0_i32_0 = arith.constant 0 : i32
    %c0_i32_1 = arith.constant 0 : i32
    return %c0_i32, %c0_i32_0 : i32, i32
  }
  func.func @transform_2(%arg0: i32) -> (i32, i32) {
    %c0_i32 = arith.constant 0 : i32
    %c0_i32_0 = arith.constant 0 : i32
    %c0_i32_1 = arith.constant 0 : i32
    return %c0_i32, %c0_i32_0 : i32, i32
  }
  func.func @transform_3(%arg0: i32) -> (i32, i32) {
    %c0_i32 = arith.constant 0 : i32
    %c0_i32_0 = arith.constant 0 : i32
    return %arg0, %c0_i32 : i32, i32
  }
  func.func @transform_4(%arg0: i32) -> (i32, i32, i32) {
    %c0_i32 = arith.constant 0 : i32
    %c0_i32_0 = arith.constant 0 : i32
    %c0_i32_1 = arith.constant 0 : i32
    return %arg0, %c0_i32, %c0_i32_0 : i32, i32, i32
  }
}

module attributes {stable_mosaic.version = 11 : i64} {
  func.func @_stage3_conv_shortcut_kernel(%arg0: i32, %arg1: memref<512x128xbf16, #tpu.memory_space<vmem>>, %arg2: memref<2x128xf32, #tpu.memory_space<vmem>>, %arg3: memref<128x128xbf16, #tpu.memory_space<vmem>>, %arg4: memref<512x128xf32, #tpu.memory_space<vmem>>, %arg5: memref<2x128xf32, #tpu.memory_space<vmem>>, %arg6: memref<128x128xbf16, #tpu.memory_space<vmem>>, %arg7: memref<512x128xf32, #tpu.memory_space<vmem>>) attributes {dimension_semantics = [#tpu.dimension_semantics<parallel>], iteration_bounds = array<i64: 1>, scalar_prefetch = 0 : i64, scratch_operands = 0 : i64, tpu.core_type = #tpu.core_type<tc>, window_params = [{transform_indices = @transform_0, window_bounds = array<i64: 512, 128>}, {pipeline_mode = #tpu.pipeline_mode<synchronous>, transform_indices = @transform_1, window_bounds = array<i64: 2, 128>}, {pipeline_mode = #tpu.pipeline_mode<synchronous>, transform_indices = @transform_2, window_bounds = array<i64: 128, 128>}, {transform_indices = @transform_3, window_bounds = array<i64: 512, 128>}, {pipeline_mode = #tpu.pipeline_mode<synchronous>, transform_indices = @transform_4, window_bounds = array<i64: 2, 128>}, {pipeline_mode = #tpu.pipeline_mode<synchronous>, transform_indices = @transform_5, window_bounds = array<i64: 128, 128>}, {transform_indices = @transform_6, window_bounds = array<i64: 512, 128>}]} {
    %c0 = arith.constant 0 : index
    %c0_0 = arith.constant 0 : index
    %0 = vector.load %arg1[%c0, %c0_0] : memref<512x128xbf16, #tpu.memory_space<vmem>>, vector<512x128xbf16>
    %1 = arith.extf %0 : vector<512x128xbf16> to vector<512x128xf32>
    %c0_1 = arith.constant 0 : index
    %c0_2 = arith.constant 0 : index
    %2 = vector.load %arg2[%c0_1, %c0_2] : memref<2x128xf32, #tpu.memory_space<vmem>>, vector<1x128xf32>
    %3 = vector.broadcast %2 : vector<1x128xf32> to vector<512x128xf32>
    %4 = arith.mulf %1, %3 : vector<512x128xf32>
    %c1 = arith.constant 1 : index
    %c0_3 = arith.constant 0 : index
    %5 = vector.load %arg2[%c1, %c0_3] : memref<2x128xf32, #tpu.memory_space<vmem>>, vector<1x128xf32>
    %6 = vector.broadcast %5 : vector<1x128xf32> to vector<512x128xf32>
    %7 = arith.addf %4, %6 : vector<512x128xf32>
    %cst = arith.constant 0.000000e+00 : f32
    %8 = vector.broadcast %cst : f32 to vector<512x128xf32>
    %9 = arith.maximumf %7, %8 : vector<512x128xf32>
    %10 = arith.truncf %9 : vector<512x128xf32> to vector<512x128xbf16>
    %c0_4 = arith.constant 0 : index
    %c0_5 = arith.constant 0 : index
    %11 = vector.load %arg3[%c0_4, %c0_5] : memref<128x128xbf16, #tpu.memory_space<vmem>>, vector<128x128xbf16>
    %cst_6 = arith.constant dense<0.000000e+00> : vector<512x128xf32>
    %12 = tpu.matmul %10, %11, %cst_6 {dimension_numbers = #tpu.dot_dimension_numbers<[1], [0], [0], [1], [0, 0, 1, 1], [], []>} : vector<512x128xbf16>, vector<128x128xbf16>, vector<512x128xf32> -> vector<512x128xf32>
    %c0_7 = arith.constant 0 : index
    %c0_8 = arith.constant 0 : index
    %13 = vector.load %arg4[%c0_7, %c0_8] : memref<512x128xf32, #tpu.memory_space<vmem>>, vector<512x128xf32>
    %c0_9 = arith.constant 0 : index
    %c0_10 = arith.constant 0 : index
    %14 = vector.load %arg5[%c0_9, %c0_10] : memref<2x128xf32, #tpu.memory_space<vmem>>, vector<1x128xf32>
    %15 = vector.broadcast %14 : vector<1x128xf32> to vector<512x128xf32>
    %16 = arith.mulf %13, %15 : vector<512x128xf32>
    %c1_11 = arith.constant 1 : index
    %c0_12 = arith.constant 0 : index
    %17 = vector.load %arg5[%c1_11, %c0_12] : memref<2x128xf32, #tpu.memory_space<vmem>>, vector<1x128xf32>
    %18 = vector.broadcast %17 : vector<1x128xf32> to vector<512x128xf32>
    %19 = arith.addf %16, %18 : vector<512x128xf32>
    %cst_13 = arith.constant 0.000000e+00 : f32
    %20 = vector.broadcast %cst_13 : f32 to vector<512x128xf32>
    %21 = arith.maximumf %19, %20 : vector<512x128xf32>
    %22 = arith.truncf %21 : vector<512x128xf32> to vector<512x128xbf16>
    %c0_14 = arith.constant 0 : index
    %c0_15 = arith.constant 0 : index
    %23 = vector.load %arg6[%c0_14, %c0_15] : memref<128x128xbf16, #tpu.memory_space<vmem>>, vector<128x128xbf16>
    %cst_16 = arith.constant dense<0.000000e+00> : vector<512x128xf32>
    %24 = tpu.matmul %22, %23, %cst_16 {dimension_numbers = #tpu.dot_dimension_numbers<[1], [0], [0], [1], [0, 0, 1, 1], [], []>} : vector<512x128xbf16>, vector<128x128xbf16>, vector<512x128xf32> -> vector<512x128xf32>
    %25 = arith.addf %12, %24 : vector<512x128xf32>
    %c0_17 = arith.constant 0 : index
    %c0_18 = arith.constant 0 : index
    %26 = vector.load %arg7[%c0_17, %c0_18] : memref<512x128xf32, #tpu.memory_space<vmem>>, vector<512x128xf32>
    tpu.vector_store %arg7[%c0_17, %c0_18], %25 {strides = array<i32>} : memref<512x128xf32, #tpu.memory_space<vmem>>, vector<512x128xf32>,
    return
  }
  func.func @transform_0(%arg0: i32) -> (i32, i32) {
    %c0_i32 = arith.constant 0 : i32
    %c0_i32_0 = arith.constant 0 : i32
    return %arg0, %c0_i32 : i32, i32
  }
  func.func @transform_1(%arg0: i32) -> (i32, i32) {
    %c0_i32 = arith.constant 0 : i32
    %c0_i32_0 = arith.constant 0 : i32
    %c0_i32_1 = arith.constant 0 : i32
    return %c0_i32, %c0_i32_0 : i32, i32
  }
  func.func @transform_2(%arg0: i32) -> (i32, i32) {
    %c0_i32 = arith.constant 0 : i32
    %c0_i32_0 = arith.constant 0 : i32
    %c0_i32_1 = arith.constant 0 : i32
    return %c0_i32, %c0_i32_0 : i32, i32
  }
  func.func @transform_3(%arg0: i32) -> (i32, i32) {
    %c0_i32 = arith.constant 0 : i32
    %c0_i32_0 = arith.constant 0 : i32
    return %arg0, %c0_i32 : i32, i32
  }
  func.func @transform_4(%arg0: i32) -> (i32, i32) {
    %c0_i32 = arith.constant 0 : i32
    %c0_i32_0 = arith.constant 0 : i32
    %c0_i32_1 = arith.constant 0 : i32
    return %c0_i32, %c0_i32_0 : i32, i32
  }
  func.func @transform_5(%arg0: i32) -> (i32, i32) {
    %c0_i32 = arith.constant 0 : i32
    %c0_i32_0 = arith.constant 0 : i32
    %c0_i32_1 = arith.constant 0 : i32
    return %c0_i32, %c0_i32_0 : i32, i32
  }
  func.func @transform_6(%arg0: i32) -> (i32, i32) {
    %c0_i32 = arith.constant 0 : i32
    %c0_i32_0 = arith.constant 0 : i32
    return %arg0, %c0_i32 : i32, i32
  }
}

module attributes {stable_mosaic.version = 11 : i64} {
  func.func @_stage2_kernel(%arg0: i32, %arg1: memref<2x16x16x128xbf16, #tpu.memory_space<vmem>>, %arg2: memref<2x128xf32, #tpu.memory_space<vmem>>, %arg3: memref<9x128x128xbf16, #tpu.memory_space<vmem>>, %arg4: memref<2x16x16x128xbf16, #tpu.memory_space<vmem>>, %arg5: memref<1x2x128xf32, #tpu.memory_space<vmem>>, %arg6: memref<2x18x18x128xf32, #tpu.memory_space<vmem>>) attributes {dimension_semantics = [#tpu.dimension_semantics<parallel>], iteration_bounds = array<i64: 1>, scalar_prefetch = 0 : i64, scratch_operands = 1 : i64, tpu.core_type = #tpu.core_type<tc>, window_params = [{transform_indices = @transform_0, window_bounds = array<i64: 2, 16, 16, 128>}, {pipeline_mode = #tpu.pipeline_mode<synchronous>, transform_indices = @transform_1, window_bounds = array<i64: 2, 128>}, {pipeline_mode = #tpu.pipeline_mode<synchronous>, transform_indices = @transform_2, window_bounds = array<i64: 9, 128, 128>}, {transform_indices = @transform_3, window_bounds = array<i64: 2, 16, 16, 128>}, {transform_indices = @transform_4, window_bounds = array<i64: 1, 2, 128>}]} {
    %cst = arith.constant 0.000000e+00 : f32
    %0 = vector.broadcast %cst : f32 to vector<2x1x18x128xf32>
    %c0 = arith.constant 0 : index
    %c0_0 = arith.constant 0 : index
    %c0_1 = arith.constant 0 : index
    %c0_2 = arith.constant 0 : index
    %1 = vector.load %arg6[%c0, %c0_0, %c0_1, %c0_2] : memref<2x18x18x128xf32, #tpu.memory_space<vmem>>, vector<2x1x18x128xf32>
    tpu.vector_store %arg6[%c0, %c0_0, %c0_1, %c0_2], %0 {strides = array<i32>} : memref<2x18x18x128xf32, #tpu.memory_space<vmem>>, vector<2x1x18x128xf32>,
    %cst_3 = arith.constant 0.000000e+00 : f32
    %2 = vector.broadcast %cst_3 : f32 to vector<2x1x18x128xf32>
    %c0_4 = arith.constant 0 : index
    %c17 = arith.constant 17 : index
    %c0_5 = arith.constant 0 : index
    %c0_6 = arith.constant 0 : index
    %3 = vector.load %arg6[%c0_4, %c17, %c0_5, %c0_6] : memref<2x18x18x128xf32, #tpu.memory_space<vmem>>, vector<2x1x18x128xf32>
    tpu.vector_store %arg6[%c0_4, %c17, %c0_5, %c0_6], %2 {strides = array<i32>} : memref<2x18x18x128xf32, #tpu.memory_space<vmem>>, vector<2x1x18x128xf32>,
    %cst_7 = arith.constant 0.000000e+00 : f32
    %4 = vector.broadcast %cst_7 : f32 to vector<2x18x1x128xf32>
    %c0_8 = arith.constant 0 : index
    %c0_9 = arith.constant 0 : index
    %c0_10 = arith.constant 0 : index
    %c0_11 = arith.constant 0 : index
    %5 = vector.load %arg6[%c0_8, %c0_9, %c0_10, %c0_11] : memref<2x18x18x128xf32, #tpu.memory_space<vmem>>, vector<2x18x1x128xf32>
    tpu.vector_store %arg6[%c0_8, %c0_9, %c0_10, %c0_11], %4 {strides = array<i32>} : memref<2x18x18x128xf32, #tpu.memory_space<vmem>>, vector<2x18x1x128xf32>,
    %cst_12 = arith.constant 0.000000e+00 : f32
    %6 = vector.broadcast %cst_12 : f32 to vector<2x18x1x128xf32>
    %c0_13 = arith.constant 0 : index
    %c0_14 = arith.constant 0 : index
    %c17_15 = arith.constant 17 : index
    %c0_16 = arith.constant 0 : index
    %7 = vector.load %arg6[%c0_13, %c0_14, %c17_15, %c0_16] : memref<2x18x18x128xf32, #tpu.memory_space<vmem>>, vector<2x18x1x128xf32>
    tpu.vector_store %arg6[%c0_13, %c0_14, %c17_15, %c0_16], %6 {strides = array<i32>} : memref<2x18x18x128xf32, #tpu.memory_space<vmem>>, vector<2x18x1x128xf32>,
    %c0_17 = arith.constant 0 : index
    %c0_18 = arith.constant 0 : index
    %c0_19 = arith.constant 0 : index
    %c0_20 = arith.constant 0 : index
    %8 = vector.load %arg1[%c0_17, %c0_18, %c0_19, %c0_20] : memref<2x16x16x128xbf16, #tpu.memory_space<vmem>>, vector<2x16x16x128xbf16>
    %9 = arith.extf %8 : vector<2x16x16x128xbf16> to vector<2x16x16x128xf32>
    %c0_21 = arith.constant 0 : index
    %c0_22 = arith.constant 0 : index
    %10 = vector.load %arg2[%c0_21, %c0_22] : memref<2x128xf32, #tpu.memory_space<vmem>>, vector<1x128xf32>
    %11 = vector.shape_cast %10 : vector<1x128xf32> to vector<1x1x1x128xf32>
    %12 = vector.broadcast %11 : vector<1x1x1x128xf32> to vector<2x16x16x128xf32>
    %13 = arith.mulf %9, %12 : vector<2x16x16x128xf32>
    %c1 = arith.constant 1 : index
    %c0_23 = arith.constant 0 : index
    %14 = vector.load %arg2[%c1, %c0_23] : memref<2x128xf32, #tpu.memory_space<vmem>>, vector<1x128xf32>
    %15 = vector.shape_cast %14 : vector<1x128xf32> to vector<1x1x1x128xf32>
    %16 = vector.broadcast %15 : vector<1x1x1x128xf32> to vector<2x16x16x128xf32>
    %17 = arith.addf %13, %16 : vector<2x16x16x128xf32>
    %cst_24 = arith.constant 0.000000e+00 : f32
    %18 = vector.broadcast %cst_24 : f32 to vector<2x16x16x128xf32>
    %19 = arith.maximumf %17, %18 : vector<2x16x16x128xf32>
    %c0_25 = arith.constant 0 : index
    %c1_26 = arith.constant 1 : index
    %c1_27 = arith.constant 1 : index
    %c0_28 = arith.constant 0 : index
    %20 = vector.load %arg6[%c0_25, %c1_26, %c1_27, %c0_28] : memref<2x18x18x128xf32, #tpu.memory_space<vmem>>, vector<2x16x16x128xf32>
    tpu.vector_store %arg6[%c0_25, %c1_26, %c1_27, %c0_28], %19 {strides = array<i32>} : memref<2x18x18x128xf32, #tpu.memory_space<vmem>>, vector<2x16x16x128xf32>,
    %cst_29 = arith.constant 0.000000e+00 : f32
    %21 = vector.broadcast %cst_29 : f32 to vector<512x128xf32>
    %c0_30 = arith.constant 0 : index
    %c0_31 = arith.constant 0 : index
    %c0_32 = arith.constant 0 : index
    %c0_33 = arith.constant 0 : index
    %22 = vector.load %arg6[%c0_30, %c0_31, %c0_32, %c0_33] : memref<2x18x18x128xf32, #tpu.memory_space<vmem>>, vector<2x16x16x128xf32>
    %23 = vector.shape_cast %22 : vector<2x16x16x128xf32> to vector<512x128xf32>
    %24 = arith.truncf %23 : vector<512x128xf32> to vector<512x128xbf16>
    %c0_34 = arith.constant 0 : index
    %c0_35 = arith.constant 0 : index
    %c0_36 = arith.constant 0 : index
    %25 = vector.load %arg3[%c0_34, %c0_35, %c0_36] : memref<9x128x128xbf16, #tpu.memory_space<vmem>>, vector<1x128x128xbf16>
    %26 = vector.shape_cast %25 : vector<1x128x128xbf16> to vector<128x128xbf16>
    %cst_37 = arith.constant dense<0.000000e+00> : vector<512x128xf32>
    %27 = tpu.matmul %24, %26, %cst_37 {dimension_numbers = #tpu.dot_dimension_numbers<[1], [0], [0], [1], [0, 0, 1, 1], [], []>} : vector<512x128xbf16>, vector<128x128xbf16>, vector<512x128xf32> -> vector<512x128xf32>
    %28 = arith.addf %21, %27 : vector<512x128xf32>
    %c0_38 = arith.constant 0 : index
    %c0_39 = arith.constant 0 : index
    %c1_40 = arith.constant 1 : index
    %c0_41 = arith.constant 0 : index
    %29 = vector.load %arg6[%c0_38, %c0_39, %c1_40, %c0_41] : memref<2x18x18x128xf32, #tpu.memory_space<vmem>>, vector<2x16x16x128xf32>
    %30 = vector.shape_cast %29 : vector<2x16x16x128xf32> to vector<512x128xf32>
    %31 = arith.truncf %30 : vector<512x128xf32> to vector<512x128xbf16>
    %c1_42 = arith.constant 1 : index
    %c0_43 = arith.constant 0 : index
    %c0_44 = arith.constant 0 : index
    %32 = vector.load %arg3[%c1_42, %c0_43, %c0_44] : memref<9x128x128xbf16, #tpu.memory_space<vmem>>, vector<1x128x128xbf16>
    %33 = vector.shape_cast %32 : vector<1x128x128xbf16> to vector<128x128xbf16>
    %cst_45 = arith.constant dense<0.000000e+00> : vector<512x128xf32>
    %34 = tpu.matmul %31, %33, %cst_45 {dimension_numbers = #tpu.dot_dimension_numbers<[1], [0], [0], [1], [0, 0, 1, 1], [], []>} : vector<512x128xbf16>, vector<128x128xbf16>, vector<512x128xf32> -> vector<512x128xf32>
    %35 = arith.addf %28, %34 : vector<512x128xf32>
    %c0_46 = arith.constant 0 : index
    %c0_47 = arith.constant 0 : index
    %c2 = arith.constant 2 : index
    %c0_48 = arith.constant 0 : index
    %36 = vector.load %arg6[%c0_46, %c0_47, %c2, %c0_48] : memref<2x18x18x128xf32, #tpu.memory_space<vmem>>, vector<2x16x16x128xf32>
    %37 = vector.shape_cast %36 : vector<2x16x16x128xf32> to vector<512x128xf32>
    %38 = arith.truncf %37 : vector<512x128xf32> to vector<512x128xbf16>
    %c2_49 = arith.constant 2 : index
    %c0_50 = arith.constant 0 : index
    %c0_51 = arith.constant 0 : index
    %39 = vector.load %arg3[%c2_49, %c0_50, %c0_51] : memref<9x128x128xbf16, #tpu.memory_space<vmem>>, vector<1x128x128xbf16>
    %40 = vector.shape_cast %39 : vector<1x128x128xbf16> to vector<128x128xbf16>
    %cst_52 = arith.constant dense<0.000000e+00> : vector<512x128xf32>
    %41 = tpu.matmul %38, %40, %cst_52 {dimension_numbers = #tpu.dot_dimension_numbers<[1], [0], [0], [1], [0, 0, 1, 1], [], []>} : vector<512x128xbf16>, vector<128x128xbf16>, vector<512x128xf32> -> vector<512x128xf32>
    %42 = arith.addf %35, %41 : vector<512x128xf32>
    %c0_53 = arith.constant 0 : index
    %c1_54 = arith.constant 1 : index
    %c0_55 = arith.constant 0 : index
    %c0_56 = arith.constant 0 : index
    %43 = vector.load %arg6[%c0_53, %c1_54, %c0_55, %c0_56] : memref<2x18x18x128xf32, #tpu.memory_space<vmem>>, vector<2x16x16x128xf32>
    %44 = vector.shape_cast %43 : vector<2x16x16x128xf32> to vector<512x128xf32>
    %45 = arith.truncf %44 : vector<512x128xf32> to vector<512x128xbf16>
    %c3 = arith.constant 3 : index
    %c0_57 = arith.constant 0 : index
    %c0_58 = arith.constant 0 : index
    %46 = vector.load %arg3[%c3, %c0_57, %c0_58] : memref<9x128x128xbf16, #tpu.memory_space<vmem>>, vector<1x128x128xbf16>
    %47 = vector.shape_cast %46 : vector<1x128x128xbf16> to vector<128x128xbf16>
    %cst_59 = arith.constant dense<0.000000e+00> : vector<512x128xf32>
    %48 = tpu.matmul %45, %47, %cst_59 {dimension_numbers = #tpu.dot_dimension_numbers<[1], [0], [0], [1], [0, 0, 1, 1], [], []>} : vector<512x128xbf16>, vector<128x128xbf16>, vector<512x128xf32> -> vector<512x128xf32>
    %49 = arith.addf %42, %48 : vector<512x128xf32>
    %c0_60 = arith.constant 0 : index
    %c1_61 = arith.constant 1 : index
    %c1_62 = arith.constant 1 : index
    %c0_63 = arith.constant 0 : index
    %50 = vector.load %arg6[%c0_60, %c1_61, %c1_62, %c0_63] : memref<2x18x18x128xf32, #tpu.memory_space<vmem>>, vector<2x16x16x128xf32>
    %51 = vector.shape_cast %50 : vector<2x16x16x128xf32> to vector<512x128xf32>
    %52 = arith.truncf %51 : vector<512x128xf32> to vector<512x128xbf16>
    %c4 = arith.constant 4 : index
    %c0_64 = arith.constant 0 : index
    %c0_65 = arith.constant 0 : index
    %53 = vector.load %arg3[%c4, %c0_64, %c0_65] : memref<9x128x128xbf16, #tpu.memory_space<vmem>>, vector<1x128x128xbf16>
    %54 = vector.shape_cast %53 : vector<1x128x128xbf16> to vector<128x128xbf16>
    %cst_66 = arith.constant dense<0.000000e+00> : vector<512x128xf32>
    %55 = tpu.matmul %52, %54, %cst_66 {dimension_numbers = #tpu.dot_dimension_numbers<[1], [0], [0], [1], [0, 0, 1, 1], [], []>} : vector<512x128xbf16>, vector<128x128xbf16>, vector<512x128xf32> -> vector<512x128xf32>
    %56 = arith.addf %49, %55 : vector<512x128xf32>
    %c0_67 = arith.constant 0 : index
    %c1_68 = arith.constant 1 : index
    %c2_69 = arith.constant 2 : index
    %c0_70 = arith.constant 0 : index
    %57 = vector.load %arg6[%c0_67, %c1_68, %c2_69, %c0_70] : memref<2x18x18x128xf32, #tpu.memory_space<vmem>>, vector<2x16x16x128xf32>
    %58 = vector.shape_cast %57 : vector<2x16x16x128xf32> to vector<512x128xf32>
    %59 = arith.truncf %58 : vector<512x128xf32> to vector<512x128xbf16>
    %c5 = arith.constant 5 : index
    %c0_71 = arith.constant 0 : index
    %c0_72 = arith.constant 0 : index
    %60 = vector.load %arg3[%c5, %c0_71, %c0_72] : memref<9x128x128xbf16, #tpu.memory_space<vmem>>, vector<1x128x128xbf16>
    %61 = vector.shape_cast %60 : vector<1x128x128xbf16> to vector<128x128xbf16>
    %cst_73 = arith.constant dense<0.000000e+00> : vector<512x128xf32>
    %62 = tpu.matmul %59, %61, %cst_73 {dimension_numbers = #tpu.dot_dimension_numbers<[1], [0], [0], [1], [0, 0, 1, 1], [], []>} : vector<512x128xbf16>, vector<128x128xbf16>, vector<512x128xf32> -> vector<512x128xf32>
    %63 = arith.addf %56, %62 : vector<512x128xf32>
    %c0_74 = arith.constant 0 : index
    %c2_75 = arith.constant 2 : index
    %c0_76 = arith.constant 0 : index
    %c0_77 = arith.constant 0 : index
    %64 = vector.load %arg6[%c0_74, %c2_75, %c0_76, %c0_77] : memref<2x18x18x128xf32, #tpu.memory_space<vmem>>, vector<2x16x16x128xf32>
    %65 = vector.shape_cast %64 : vector<2x16x16x128xf32> to vector<512x128xf32>
    %66 = arith.truncf %65 : vector<512x128xf32> to vector<512x128xbf16>
    %c6 = arith.constant 6 : index
    %c0_78 = arith.constant 0 : index
    %c0_79 = arith.constant 0 : index
    %67 = vector.load %arg3[%c6, %c0_78, %c0_79] : memref<9x128x128xbf16, #tpu.memory_space<vmem>>, vector<1x128x128xbf16>
    %68 = vector.shape_cast %67 : vector<1x128x128xbf16> to vector<128x128xbf16>
    %cst_80 = arith.constant dense<0.000000e+00> : vector<512x128xf32>
    %69 = tpu.matmul %66, %68, %cst_80 {dimension_numbers = #tpu.dot_dimension_numbers<[1], [0], [0], [1], [0, 0, 1, 1], [], []>} : vector<512x128xbf16>, vector<128x128xbf16>, vector<512x128xf32> -> vector<512x128xf32>
    %70 = arith.addf %63, %69 : vector<512x128xf32>
    %c0_81 = arith.constant 0 : index
    %c2_82 = arith.constant 2 : index
    %c1_83 = arith.constant 1 : index
    %c0_84 = arith.constant 0 : index
    %71 = vector.load %arg6[%c0_81, %c2_82, %c1_83, %c0_84] : memref<2x18x18x128xf32, #tpu.memory_space<vmem>>, vector<2x16x16x128xf32>
    %72 = vector.shape_cast %71 : vector<2x16x16x128xf32> to vector<512x128xf32>
    %73 = arith.truncf %72 : vector<512x128xf32> to vector<512x128xbf16>
    %c7 = arith.constant 7 : index
    %c0_85 = arith.constant 0 : index
    %c0_86 = arith.constant 0 : index
    %74 = vector.load %arg3[%c7, %c0_85, %c0_86] : memref<9x128x128xbf16, #tpu.memory_space<vmem>>, vector<1x128x128xbf16>
    %75 = vector.shape_cast %74 : vector<1x128x128xbf16> to vector<128x128xbf16>
    %cst_87 = arith.constant dense<0.000000e+00> : vector<512x128xf32>
    %76 = tpu.matmul %73, %75, %cst_87 {dimension_numbers = #tpu.dot_dimension_numbers<[1], [0], [0], [1], [0, 0, 1, 1], [], []>} : vector<512x128xbf16>, vector<128x128xbf16>, vector<512x128xf32> -> vector<512x128xf32>
    %77 = arith.addf %70, %76 : vector<512x128xf32>
    %c0_88 = arith.constant 0 : index
    %c2_89 = arith.constant 2 : index
    %c2_90 = arith.constant 2 : index
    %c0_91 = arith.constant 0 : index
    %78 = vector.load %arg6[%c0_88, %c2_89, %c2_90, %c0_91] : memref<2x18x18x128xf32, #tpu.memory_space<vmem>>, vector<2x16x16x128xf32>
    %79 = vector.shape_cast %78 : vector<2x16x16x128xf32> to vector<512x128xf32>
    %80 = arith.truncf %79 : vector<512x128xf32> to vector<512x128xbf16>
    %c8 = arith.constant 8 : index
    %c0_92 = arith.constant 0 : index
    %c0_93 = arith.constant 0 : index
    %81 = vector.load %arg3[%c8, %c0_92, %c0_93] : memref<9x128x128xbf16, #tpu.memory_space<vmem>>, vector<1x128x128xbf16>
    %82 = vector.shape_cast %81 : vector<1x128x128xbf16> to vector<128x128xbf16>
    %cst_94 = arith.constant dense<0.000000e+00> : vector<512x128xf32>
    %83 = tpu.matmul %80, %82, %cst_94 {dimension_numbers = #tpu.dot_dimension_numbers<[1], [0], [0], [1], [0, 0, 1, 1], [], []>} : vector<512x128xbf16>, vector<128x128xbf16>, vector<512x128xf32> -> vector<512x128xf32>
    %84 = arith.addf %77, %83 : vector<512x128xf32>
    %85 = vector.shape_cast %84 : vector<512x128xf32> to vector<2x16x16x128xf32>
    %86 = arith.truncf %85 : vector<2x16x16x128xf32> to vector<2x16x16x128xbf16>
    %c0_95 = arith.constant 0 : index
    %c0_96 = arith.constant 0 : index
    %c0_97 = arith.constant 0 : index
    %c0_98 = arith.constant 0 : index
    %87 = vector.load %arg4[%c0_95, %c0_96, %c0_97, %c0_98] : memref<2x16x16x128xbf16, #tpu.memory_space<vmem>>, vector<2x16x16x128xbf16>
    tpu.vector_store %arg4[%c0_95, %c0_96, %c0_97, %c0_98], %86 {strides = array<i32>} : memref<2x16x16x128xbf16, #tpu.memory_space<vmem>>, vector<2x16x16x128xbf16>,
    %cst_99 = arith.constant dense<0.000000e+00> : vector<128xf32>
    %88 = vector.multi_reduction <add>, %84, %cst_99 [0] : vector<512x128xf32> to vector<128xf32>
    %89 = vector.shape_cast %88 : vector<128xf32> to vector<1x128xf32>
    %c0_100 = arith.constant 0 : index
    %c0_101 = arith.constant 0 : index
    %c0_102 = arith.constant 0 : index
    %90 = vector.load %arg5[%c0_100, %c0_101, %c0_102] : memref<1x2x128xf32, #tpu.memory_space<vmem>>, vector<1x1x128xf32>
    %91 = vector.shape_cast %90 : vector<1x1x128xf32> to vector<1x128xf32>
    %92 = vector.shape_cast %89 : vector<1x128xf32> to vector<1x1x128xf32>
    tpu.vector_store %arg5[%c0_100, %c0_101, %c0_102], %92 {strides = array<i32>} : memref<1x2x128xf32, #tpu.memory_space<vmem>>, vector<1x1x128xf32>,
    %93 = arith.mulf %84, %84 : vector<512x128xf32>
    %cst_103 = arith.constant dense<0.000000e+00> : vector<128xf32>
    %94 = vector.multi_reduction <add>, %93, %cst_103 [0] : vector<512x128xf32> to vector<128xf32>
    %95 = vector.shape_cast %94 : vector<128xf32> to vector<1x128xf32>
    %c0_104 = arith.constant 0 : index
    %c1_105 = arith.constant 1 : index
    %c0_106 = arith.constant 0 : index
    %96 = vector.load %arg5[%c0_104, %c1_105, %c0_106] : memref<1x2x128xf32, #tpu.memory_space<vmem>>, vector<1x1x128xf32>
    %97 = vector.shape_cast %96 : vector<1x1x128xf32> to vector<1x128xf32>
    %98 = vector.shape_cast %95 : vector<1x128xf32> to vector<1x1x128xf32>
    tpu.vector_store %arg5[%c0_104, %c1_105, %c0_106], %98 {strides = array<i32>} : memref<1x2x128xf32, #tpu.memory_space<vmem>>, vector<1x1x128xf32>,
    return
  }
  func.func @transform_0(%arg0: i32) -> (i32, i32, i32, i32) {
    %c0_i32 = arith.constant 0 : i32
    %c0_i32_0 = arith.constant 0 : i32
    %c0_i32_1 = arith.constant 0 : i32
    %c0_i32_2 = arith.constant 0 : i32
    return %arg0, %c0_i32, %c0_i32_0, %c0_i32_1 : i32, i32, i32, i32
  }
  func.func @transform_1(%arg0: i32) -> (i32, i32) {
    %c0_i32 = arith.constant 0 : i32
    %c0_i32_0 = arith.constant 0 : i32
    %c0_i32_1 = arith.constant 0 : i32
    return %c0_i32, %c0_i32_0 : i32, i32
  }
  func.func @transform_2(%arg0: i32) -> (i32, i32, i32) {
    %c0_i32 = arith.constant 0 : i32
    %c0_i32_0 = arith.constant 0 : i32
    %c0_i32_1 = arith.constant 0 : i32
    %c0_i32_2 = arith.constant 0 : i32
    return %c0_i32, %c0_i32_0, %c0_i32_1 : i32, i32, i32
  }
  func.func @transform_3(%arg0: i32) -> (i32, i32, i32, i32) {
    %c0_i32 = arith.constant 0 : i32
    %c0_i32_0 = arith.constant 0 : i32
    %c0_i32_1 = arith.constant 0 : i32
    %c0_i32_2 = arith.constant 0 : i32
    return %arg0, %c0_i32, %c0_i32_0, %c0_i32_1 : i32, i32, i32, i32
  }
  func.func @transform_4(%arg0: i32) -> (i32, i32, i32) {
    %c0_i32 = arith.constant 0 : i32
    %c0_i32_0 = arith.constant 0 : i32
    %c0_i32_1 = arith.constant 0 : i32
    return %arg0, %c0_i32, %c0_i32_0 : i32, i32, i32
  }
}

</mosaic_0001>

<bundles_post_ra>
// kernel: preact_bottleneck_pallas.4
= control target key start
LH: loop header
LB: loop body
LE: loop exit
PB: predicated region body
PF: predicated region fallthrough
CT: control target
= control target key end

     0   :  { %s875_s0 = inlined_call_operand.vmem [shape: f32[512,128], index: 0, kind: input, shape index: {}]   ;;  %s876_s1 = inlined_call_operand.vmem [shape: f32[1,2,128], index: 1, kind: output, shape index: {}]  }
   0x1   :  { %v8_v0 = vld [vmem:[%s875_s0] sm:$0xff]  ;;  %v9_v1 = vld [vmem:[%s875_s0 + $0x8] sm:$0xff]  ;;  %v10_v2 = vld [vmem:[%s875_s0 + $0x10] sm:$0xff] }
   0x2   :  { %v11_v3 = vld [vmem:[%s875_s0 + $0x18] sm:$0xff]  ;;  %v459_v4 = vadd.f32 %v9_v1, %v8_v0  ;;  %v529_v5 = vmul.f32 %v8_v0, %v8_v0  ;;  %v530_v6 = vmul.f32 %v9_v1, %v9_v1  ;;  %v531_v7 = vmul.f32 %v10_v2, %v10_v2  ;;  %v12_v8 = vld [vmem:[%s875_s0 + $0x20] sm:$0xff]  ;;  %v13_v12 = vld [vmem:[%s875_s0 + $0x28] sm:$0xff] }
   0x3   :  { %v532_v10 = vmul.f32 %v11_v3, %v11_v3  ;;  %v533_v14 = vmul.f32 %v12_v8, %v12_v8  ;;  %v14_v16 = vld [vmem:[%s875_s0 + $0x30] sm:$0xff]  ;;  %v534_v18 = vmul.f32 %v13_v12, %v13_v12  ;;  %v15_v20 = vld [vmem:[%s875_s0 + $0x38] sm:$0xff]  ;;  %v16_v24 = vld [vmem:[%s875_s0 + $0x40] sm:$0xff] }
   0x4   :  { %v460_v9 = vadd.f32 %v459_v4, %v10_v2  ;;  %v593_v11 = vadd.f32 %v530_v6, %v529_v5  ;;  %v535_v22 = vmul.f32 %v14_v16, %v14_v16  ;;  %v536_v26 = vmul.f32 %v15_v20, %v15_v20  ;;  %v17_v28 = vld [vmem:[%s875_s0 + $0x48] sm:$0xff]  ;;  %v18_v32 = vld [vmem:[%s875_s0 + $0x50] sm:$0xff]  ;;  %v19_v36 = vld [vmem:[%s875_s0 + $0x58] sm:$0xff] }
   0x5   :  { %v537_v30 = vmul.f32 %v16_v24, %v16_v24  ;;  %v538_v34 = vmul.f32 %v17_v28, %v17_v28  ;;  %v539_v38 = vmul.f32 %v18_v32, %v18_v32  ;;  %v20_v40 = vld [vmem:[%s875_s0 + $0x60] sm:$0xff]  ;;  %v540_v42 = vmul.f32 %v19_v36, %v19_v36  ;;  %v21_v44 = vld [vmem:[%s875_s0 + $0x68] sm:$0xff]  ;;  %v22_v48 = vld [vmem:[%s875_s0 + $0x70] sm:$0xff] }
   0x6   :  { %v461_v13 = vadd.f32 %v460_v9, %v11_v3  ;;  %v594_v15 = vadd.f32 %v593_v11, %v531_v7  ;;  %v541_v46 = vmul.f32 %v20_v40, %v20_v40  ;;  %v542_v50 = vmul.f32 %v21_v44, %v21_v44  ;;  %v23_v52 = vld [vmem:[%s875_s0 + $0x78] sm:$0xff]  ;;  %v24_v56 = vld [vmem:[%s875_s0 + $0x80] sm:$0xff]  ;;  %v25_v60 = vld [vmem:[%s875_s0 + $0x88] sm:$0xff] }
   0x7   :  { %v543_v54 = vmul.f32 %v22_v48, %v22_v48  ;;  %v544_v58 = vmul.f32 %v23_v52, %v23_v52  ;;  %v545_v62 = vmul.f32 %v24_v56, %v24_v56  ;;  %v26_v0 = vld [vmem:[%s875_s0 + $0x90] sm:$0xff]  ;;  %v546_v2 = vmul.f32 %v25_v60, %v25_v60  ;;  %v27_v4 = vld [vmem:[%s875_s0 + $0x98] sm:$0xff] }
   0x8   :  { %v462_v17 = vadd.f32 %v461_v13, %v12_v8  ;;  %v595_v19 = vadd.f32 %v594_v15, %v532_v10  ;;  %v547_v6 = vmul.f32 %v26_v0, %v26_v0  ;;  %v28_v8 = vld [vmem:[%s875_s0 + $0xa0] sm:$0xff]  ;;  %v548_v10 = vmul.f32 %v27_v4, %v27_v4 }
   0xa   :  { %v463_v21 = vadd.f32 %v462_v17, %v13_v12  ;;  %v596_v23 = vadd.f32 %v595_v19, %v533_v14  ;;  %v29_v12 = vld [vmem:[%s875_s0 + $0xa8] sm:$0xff]  ;;  %v549_v14 = vmul.f32 %v28_v8, %v28_v8 }
   0xc   :  { %v464_v25 = vadd.f32 %v463_v21, %v14_v16  ;;  %v597_v27 = vadd.f32 %v596_v23, %v534_v18  ;;  %v30_v16 = vld [vmem:[%s875_s0 + $0xb0] sm:$0xff]  ;;  %v550_v18 = vmul.f32 %v29_v12, %v29_v12 }
   0xe   :  { %v465_v29 = vadd.f32 %v464_v25, %v15_v20  ;;  %v598_v31 = vadd.f32 %v597_v27, %v535_v22  ;;  %v31_v20 = vld [vmem:[%s875_s0 + $0xb8] sm:$0xff]  ;;  %v551_v22 = vmul.f32 %v30_v16, %v30_v16 }
  0x10   :  { %v466_v33 = vadd.f32 %v465_v29, %v16_v24  ;;  %v599_v35 = vadd.f32 %v598_v31, %v536_v26  ;;  %v32_v24 = vld [vmem:[%s875_s0 + $0xc0] sm:$0xff]  ;;  %v552_v26 = vmul.f32 %v31_v20, %v31_v20 }
  0x12   :  { %v467_v37 = vadd.f32 %v466_v33, %v17_v28  ;;  %v600_v39 = vadd.f32 %v599_v35, %v537_v30  ;;  %v33_v28 = vld [vmem:[%s875_s0 + $0xc8] sm:$0xff]  ;;  %v553_v30 = vmul.f32 %v32_v24, %v32_v24 }
  0x14   :  { %v468_v41 = vadd.f32 %v467_v37, %v18_v32  ;;  %v601_v43 = vadd.f32 %v600_v39, %v538_v34  ;;  %v34_v32 = vld [vmem:[%s875_s0 + $0xd0] sm:$0xff]  ;;  %v554_v34 = vmul.f32 %v33_v28, %v33_v28 }
  0x16   :  { %v469_v45 = vadd.f32 %v468_v41, %v19_v36  ;;  %v602_v47 = vadd.f32 %v601_v43, %v539_v38  ;;  %v35_v36 = vld [vmem:[%s875_s0 + $0xd8] sm:$0xff]  ;;  %v555_v38 = vmul.f32 %v34_v32, %v34_v32 }
  0x18   :  { %v470_v49 = vadd.f32 %v469_v45, %v20_v40  ;;  %v603_v51 = vadd.f32 %v602_v47, %v540_v42  ;;  %v36_v40 = vld [vmem:[%s875_s0 + $0xe0] sm:$0xff]  ;;  %v556_v42 = vmul.f32 %v35_v36, %v35_v36 }
  0x1a   :  { %v471_v53 = vadd.f32 %v470_v49, %v21_v44  ;;  %v604_v55 = vadd.f32 %v603_v51, %v541_v46  ;;  %v37_v44 = vld [vmem:[%s875_s0 + $0xe8] sm:$0xff]  ;;  %v557_v46 = vmul.f32 %v36_v40, %v36_v40 }
  0x1c   :  { %v472_v57 = vadd.f32 %v471_v53, %v22_v48  ;;  %v605_v59 = vadd.f32 %v604_v55, %v542_v50  ;;  %v38_v48 = vld [vmem:[%s875_s0 + $0xf0] sm:$0xff]  ;;  %v558_v50 = vmul.f32 %v37_v44, %v37_v44 }
  0x1e   :  { %v473_v61 = vadd.f32 %v472_v57, %v23_v52  ;;  %v606_v63 = vadd.f32 %v605_v59, %v543_v54  ;;  %v39_v52 = vld [vmem:[%s875_s0 + $0xf8] sm:$0xff]  ;;  %v559_v54 = vmul.f32 %v38_v48, %v38_v48 }
  0x20   :  { %v474_v1 = vadd.f32 %v473_v61, %v24_v56  ;;  %v607_v3 = vadd.f32 %v606_v63, %v544_v58  ;;  %v40_v56 = vld [vmem:[%s875_s0 + $0x100] sm:$0xff]  ;;  %v560_v58 = vmul.f32 %v39_v52, %v39_v52 }
  0x22   :  { %v475_v5 = vadd.f32 %v474_v1, %v25_v60  ;;  %v608_v7 = vadd.f32 %v607_v3, %v545_v62  ;;  %v41_v60 = vld [vmem:[%s875_s0 + $0x108] sm:$0xff]  ;;  %v561_v62 = vmul.f32 %v40_v56, %v40_v56 }
  0x24   :  { %v476_v9 = vadd.f32 %v475_v5, %v26_v0  ;;  %v609_v11 = vadd.f32 %v608_v7, %v546_v2  ;;  %v42_v0 = vld [vmem:[%s875_s0 + $0x110] sm:$0xff]  ;;  %v562_v2 = vmul.f32 %v41_v60, %v41_v60 }
  0x26   :  { %v477_v13 = vadd.f32 %v476_v9, %v27_v4  ;;  %v610_v15 = vadd.f32 %v609_v11, %v547_v6  ;;  %v43_v4 = vld [vmem:[%s875_s0 + $0x118] sm:$0xff]  ;;  %v563_v6 = vmul.f32 %v42_v0, %v42_v0 }
  0x28   :  { %v478_v17 = vadd.f32 %v477_v13, %v28_v8  ;;  %v611_v19 = vadd.f32 %v610_v15, %v548_v10  ;;  %v44_v8 = vld [vmem:[%s875_s0 + $0x120] sm:$0xff]  ;;  %v564_v10 = vmul.f32 %v43_v4, %v43_v4 }
  0x2a   :  { %v479_v21 = vadd.f32 %v478_v17, %v29_v12  ;;  %v612_v23 = vadd.f32 %v611_v19, %v549_v14  ;;  %v45_v12 = vld [vmem:[%s875_s0 + $0x128] sm:$0xff]  ;;  %v565_v14 = vmul.f32 %v44_v8, %v44_v8 }
  0x2c   :  { %v480_v25 = vadd.f32 %v479_v21, %v30_v16  ;;  %v613_v27 = vadd.f32 %v612_v23, %v550_v18  ;;  %v46_v16 = vld [vmem:[%s875_s0 + $0x130] sm:$0xff]  ;;  %v566_v18 = vmul.f32 %v45_v12, %v45_v12 }
  0x2e   :  { %v481_v29 = vadd.f32 %v480_v25, %v31_v20  ;;  %v614_v31 = vadd.f32 %v613_v27, %v551_v22  ;;  %v47_v20 = vld [vmem:[%s875_s0 + $0x138] sm:$0xff]  ;;  %v567_v22 = vmul.f32 %v46_v16, %v46_v16 }
  0x30   :  { %v482_v33 = vadd.f32 %v481_v29, %v32_v24  ;;  %v615_v35 = vadd.f32 %v614_v31, %v552_v26  ;;  %v48_v24 = vld [vmem:[%s875_s0 + $0x140] sm:$0xff]  ;;  %v568_v26 = vmul.f32 %v47_v20, %v47_v20 }
  0x32   :  { %v483_v37 = vadd.f32 %v482_v33, %v33_v28  ;;  %v616_v39 = vadd.f32 %v615_v35, %v553_v30  ;;  %v49_v28 = vld [vmem:[%s875_s0 + $0x148] sm:$0xff]  ;;  %v569_v30 = vmul.f32 %v48_v24, %v48_v24 }
  0x34   :  { %v484_v41 = vadd.f32 %v483_v37, %v34_v32  ;;  %v617_v43 = vadd.f32 %v616_v39, %v554_v34  ;;  %v50_v32 = vld [vmem:[%s875_s0 + $0x150] sm:$0xff]  ;;  %v570_v34 = vmul.f32 %v49_v28, %v49_v28 }
  0x36   :  { %v485_v45 = vadd.f32 %v484_v41, %v35_v36  ;;  %v618_v47 = vadd.f32 %v617_v43, %v555_v38  ;;  %v51_v36 = vld [vmem:[%s875_s0 + $0x158] sm:$0xff]  ;;  %v571_v38 = vmul.f32 %v50_v32, %v50_v32 }
  0x38   :  { %v486_v49 = vadd.f32 %v485_v45, %v36_v40  ;;  %v619_v51 = vadd.f32 %v618_v47, %v556_v42  ;;  %v52_v40 = vld [vmem:[%s875_s0 + $0x160] sm:$0xff]  ;;  %v572_v42 = vmul.f32 %v51_v36, %v51_v36 }
  0x3a   :  { %v487_v53 = vadd.f32 %v486_v49, %v37_v44  ;;  %v620_v55 = vadd.f32 %v619_v51, %v557_v46  ;;  %v53_v44 = vld [vmem:[%s875_s0 + $0x168] sm:$0xff]  ;;  %v573_v46 = vmul.f32 %v52_v40, %v52_v40 }
  0x3c   :  { %v488_v57 = vadd.f32 %v487_v53, %v38_v48  ;;  %v621_v59 = vadd.f32 %v620_v55, %v558_v50  ;;  %v54_v48 = vld [vmem:[%s875_s0 + $0x170] sm:$0xff]  ;;  %v574_v50 = vmul.f32 %v53_v44, %v53_v44 }
  0x3e   :  { %v489_v61 = vadd.f32 %v488_v57, %v39_v52  ;;  %v622_v63 = vadd.f32 %v621_v59, %v559_v54  ;;  %v55_v52 = vld [vmem:[%s875_s0 + $0x178] sm:$0xff]  ;;  %v575_v54 = vmul.f32 %v54_v48, %v54_v48 }
  0x40   :  { %v490_v1 = vadd.f32 %v489_v61, %v40_v56  ;;  %v623_v3 = vadd.f32 %v622_v63, %v560_v58  ;;  %v56_v56 = vld [vmem:[%s875_s0 + $0x180] sm:$0xff]  ;;  %v576_v58 = vmul.f32 %v55_v52, %v55_v52 }
  0x42   :  { %v491_v5 = vadd.f32 %v490_v1, %v41_v60  ;;  %v624_v7 = vadd.f32 %v623_v3, %v561_v62  ;;  %v57_v60 = vld [vmem:[%s875_s0 + $0x188] sm:$0xff]  ;;  %v577_v62 = vmul.f32 %v56_v56, %v56_v56 }
  0x44   :  { %v492_v9 = vadd.f32 %v491_v5, %v42_v0  ;;  %v625_v11 = vadd.f32 %v624_v7, %v562_v2  ;;  %v58_v0 = vld [vmem:[%s875_s0 + $0x190] sm:$0xff]  ;;  %v578_v2 = vmul.f32 %v57_v60, %v57_v60 }
  0x46   :  { %v493_v13 = vadd.f32 %v492_v9, %v43_v4  ;;  %v626_v15 = vadd.f32 %v625_v11, %v563_v6  ;;  %v59_v4 = vld [vmem:[%s875_s0 + $0x198] sm:$0xff]  ;;  %v579_v6 = vmul.f32 %v58_v0, %v58_v0 }
  0x48   :  { %v494_v17 = vadd.f32 %v493_v13, %v44_v8  ;;  %v627_v19 = vadd.f32 %v626_v15, %v564_v10  ;;  %v60_v8 = vld [vmem:[%s875_s0 + $0x1a0] sm:$0xff]  ;;  %v580_v10 = vmul.f32 %v59_v4, %v59_v4 }
  0x4a   :  { %v495_v21 = vadd.f32 %v494_v17, %v45_v12  ;;  %v628_v23 = vadd.f32 %v627_v19, %v565_v14  ;;  %v61_v12 = vld [vmem:[%s875_s0 + $0x1a8] sm:$0xff]  ;;  %v581_v14 = vmul.f32 %v60_v8, %v60_v8 }
  0x4c   :  { %v496_v25 = vadd.f32 %v495_v21, %v46_v16  ;;  %v629_v27 = vadd.f32 %v628_v23, %v566_v18  ;;  %v62_v16 = vld [vmem:[%s875_s0 + $0x1b0] sm:$0xff]  ;;  %v582_v18 = vmul.f32 %v61_v12, %v61_v12 }
  0x4e   :  { %v497_v29 = vadd.f32 %v496_v25, %v47_v20  ;;  %v630_v31 = vadd.f32 %v629_v27, %v567_v22  ;;  %v63_v20 = vld [vmem:[%s875_s0 + $0x1b8] sm:$0xff]  ;;  %v583_v22 = vmul.f32 %v62_v16, %v62_v16 }
  0x50   :  { %v498_v33 = vadd.f32 %v497_v29, %v48_v24  ;;  %v631_v35 = vadd.f32 %v630_v31, %v568_v26  ;;  %v64_v24 = vld [vmem:[%s875_s0 + $0x1c0] sm:$0xff]  ;;  %v584_v26 = vmul.f32 %v63_v20, %v63_v20 }
  0x52   :  { %v499_v37 = vadd.f32 %v498_v33, %v49_v28  ;;  %v632_v39 = vadd.f32 %v631_v35, %v569_v30  ;;  %v65_v28 = vld [vmem:[%s875_s0 + $0x1c8] sm:$0xff]  ;;  %v585_v30 = vmul.f32 %v64_v24, %v64_v24 }
  0x54   :  { %v500_v41 = vadd.f32 %v499_v37, %v50_v32  ;;  %v633_v43 = vadd.f32 %v632_v39, %v570_v34  ;;  %v66_v32 = vld [vmem:[%s875_s0 + $0x1d0] sm:$0xff]  ;;  %v586_v34 = vmul.f32 %v65_v28, %v65_v28 }
  0x56   :  { %v501_v45 = vadd.f32 %v500_v41, %v51_v36  ;;  %v634_v47 = vadd.f32 %v633_v43, %v571_v38  ;;  %v67_v36 = vld [vmem:[%s875_s0 + $0x1d8] sm:$0xff]  ;;  %v587_v38 = vmul.f32 %v66_v32, %v66_v32 }
  0x58   :  { %v502_v49 = vadd.f32 %v501_v45, %v52_v40  ;;  %v635_v51 = vadd.f32 %v634_v47, %v572_v42  ;;  %v68_v40 = vld [vmem:[%s875_s0 + $0x1e0] sm:$0xff]  ;;  %v588_v42 = vmul.f32 %v67_v36, %v67_v36 }
  0x5a   :  { %v503_v53 = vadd.f32 %v502_v49, %v53_v44  ;;  %v636_v55 = vadd.f32 %v635_v51, %v573_v46  ;;  %v69_v44 = vld [vmem:[%s875_s0 + $0x1e8] sm:$0xff]  ;;  %v589_v46 = vmul.f32 %v68_v40, %v68_v40 }
  0x5c   :  { %v504_v57 = vadd.f32 %v503_v53, %v54_v48  ;;  %v637_v59 = vadd.f32 %v636_v55, %v574_v50  ;;  %v70_v48 = vld [vmem:[%s875_s0 + $0x1f0] sm:$0xff]  ;;  %v590_v50 = vmul.f32 %v69_v44, %v69_v44 }
  0x5e   :  { %v505_v61 = vadd.f32 %v504_v57, %v55_v52  ;;  %v638_v63 = vadd.f32 %v637_v59, %v575_v54  ;;  %v71_v52 = vld [vmem:[%s875_s0 + $0x1f8] sm:$0xff]  ;;  %v591_v54 = vmul.f32 %v70_v48, %v70_v48 }
  0x5f   :  { %v592_v57 = vmul.f32 %v71_v52, %v71_v52 }
  0x60   :  { %v506_v1 = vadd.f32 %v505_v61, %v56_v56  ;;  %v639_v3 = vadd.f32 %v638_v63, %v576_v58 }
  0x62   :  { %v507_v5 = vadd.f32 %v506_v1, %v57_v60  ;;  %v640_v7 = vadd.f32 %v639_v3, %v577_v62 }
  0x64   :  { %v508_v9 = vadd.f32 %v507_v5, %v58_v0  ;;  %v641_v11 = vadd.f32 %v640_v7, %v578_v2 }
  0x66   :  { %v509_v13 = vadd.f32 %v508_v9, %v59_v4  ;;  %v642_v15 = vadd.f32 %v641_v11, %v579_v6 }
  0x68   :  { %v510_v17 = vadd.f32 %v509_v13, %v60_v8  ;;  %v643_v19 = vadd.f32 %v642_v15, %v580_v10 }
  0x6a   :  { %v511_v21 = vadd.f32 %v510_v17, %v61_v12  ;;  %v644_v23 = vadd.f32 %v643_v19, %v581_v14 }
  0x6c   :  { %v512_v25 = vadd.f32 %v511_v21, %v62_v16  ;;  %v645_v27 = vadd.f32 %v644_v23, %v582_v18 }
  0x6e   :  { %v513_v29 = vadd.f32 %v512_v25, %v63_v20  ;;  %v646_v31 = vadd.f32 %v645_v27, %v583_v22 }
  0x70   :  { %v514_v33 = vadd.f32 %v513_v29, %v64_v24  ;;  %v647_v35 = vadd.f32 %v646_v31, %v584_v26 }
  0x72   :  { %v515_v37 = vadd.f32 %v514_v33, %v65_v28  ;;  %v648_v39 = vadd.f32 %v647_v35, %v585_v30 }
  0x74   :  { %v516_v41 = vadd.f32 %v515_v37, %v66_v32  ;;  %v649_v43 = vadd.f32 %v648_v39, %v586_v34 }
  0x76   :  { %v517_v45 = vadd.f32 %v516_v41, %v67_v36  ;;  %v650_v47 = vadd.f32 %v649_v43, %v587_v38 }
  0x78   :  { %v518_v49 = vadd.f32 %v517_v45, %v68_v40  ;;  %v651_v51 = vadd.f32 %v650_v47, %v588_v42 }
  0x7a   :  { %v519_v53 = vadd.f32 %v518_v49, %v69_v44  ;;  %v652_v55 = vadd.f32 %v651_v51, %v589_v46 }
  0x7c   :  { %v520_v56 = vadd.f32 %v519_v53, %v70_v48  ;;  %v653_v58 = vadd.f32 %v652_v55, %v590_v50 }
  0x7e   :  { %v521_v59 = vadd.f32 %v520_v56, %v71_v52  ;;  %v654_v60 = vadd.f32 %v653_v58, %v591_v54 }
  0x80   :  { %v522_v61 = vrot.slane %v521_v59, 4  ;;  %v655_v62 = vadd.f32 %v654_v60, %v592_v57 }
  0x82   :  { %v523_v63 = vadd.f32 %v522_v61, %v521_v59  ;;  %v656_v0 = vrot.slane %v655_v62, 4 }
  0x84   :  { %v524_v1 = vrot.slane %v523_v63, 2  ;;  %v657_v2 = vadd.f32 %v656_v0, %v655_v62 }
  0x86   :  { %v525_v3 = vadd.f32 %v524_v1, %v523_v63  ;;  %v658_v4 = vrot.slane %v657_v2, 2 }
  0x88   :  { %v526_v5 = vrot.slane %v525_v3, 1  ;;  %v659_v6 = vadd.f32 %v658_v4, %v657_v2 }
  0x8a   :  { %v527_v7 = vadd.f32 %v526_v5, %v525_v3  ;;  %v660_v8 = vrot.slane %v659_v6, 1 }
  0x8c   :  { %528 = vst [vmem:[%s876_s1] sm:$0x1] %v527_v7  ;;  %v661_v9 = vadd.f32 %v660_v8, %v659_v6 }
  0x8e   :  { %662 = vst [vmem:[%s876_s1 + $0x1] sm:$0x1] %v661_v9 }

// kernel: preact_bottleneck_pallas.5
= control target key start
LH: loop header
LB: loop body
LE: loop exit
PB: predicated region body
PF: predicated region fallthrough
CT: control target
= control target key end

     0   :  { %s2294_s2 = inlined_call_operand.vmem [shape: bf16[128,128], index: 2, kind: input, shape index: {}]   ;;  %s2295_s1 = inlined_call_operand.vmem [shape: f32[2,128], index: 1, kind: input, shape index: {}]   ;;  %s2296_s0 = inlined_call_operand.vmem [shape: f32[512,128], index: 0, kind: input, shape index: {}]   ;;  %s2297_s3 = inlined_call_operand.vmem [shape: bf16[512,128], index: 3, kind: output, shape index: {0}]   ;;  %s2298_s4 = inlined_call_operand.vmem [shape: f32[1,2,128], index: 4, kind: output, shape index: {1}]  }
   0x1   :  { %v1307_v0 = vld [vmem:[%s2294_s2 + $0x38] sm:$0xff]  ;;  %v1306_v1 = vld [vmem:[%s2294_s2 + $0x30] sm:$0xff]  ;;  %v1305_v2 = vld [vmem:[%s2294_s2 + $0x28] sm:$0xff] }
   0x2   :  { %372 = vmatpush.bf16.msra.mxu0 %v1307_v0  ;;  %1499 = vmatpush.bf16.msra.mxu1 %v1307_v0  ;;  %v1304_v3 = vld [vmem:[%s2294_s2 + $0x20] sm:$0xff]  ;;  %v1303_v5 = vld [vmem:[%s2294_s2 + $0x18] sm:$0xff]  ;;  %v17_v7 = vld [vmem:[%s2296_s0 + $0x8] sm:$0xff] }
   0x3   :  { %1500 = vmatpush.bf16.msra.mxu2 %v1307_v0  ;;  %1501 = vmatpush.bf16.msra.mxu3 %v1307_v0  ;;  %v1565_v4 = vld [vmem:[%s2295_s1] ss:$0 sm:$0xff]  ;;  %v33_v9 = vld [vmem:[%s2296_s0 + $0x88] sm:$0xff]  ;;  %v1587_v12 = vld [vmem:[%s2295_s1 + $0x1] ss:$0 sm:$0xff] }
   0x4   :  { %v16_v6 = vld [vmem:[%s2296_s0] sm:$0xff]  ;;  %v83_v11 = vmul.f32 %v1565_v4, %v17_v7  ;;  %v99_v14 = vmul.f32 %v1565_v4, %v33_v9  ;;  %v1302_v15 = vld [vmem:[%s2294_s2 + $0x10] sm:$0xff]  ;;  %v1301_v20 = vld [vmem:[%s2294_s2 + $0x8] sm:$0xff] }
   0x5   :  { %v32_v8 = vld [vmem:[%s2296_s0 + $0x80] sm:$0xff]  ;;  %v82_v10 = vmul.f32 %v1565_v4, %v16_v6  ;;  %v18_v27 = vld [vmem:[%s2296_s0 + $0x10] sm:$0xff]  ;;  %v19_v29 = vld [vmem:[%s2296_s0 + $0x18] sm:$0xff] }
   0x6   :  { %373 = vmatpush.bf16.msra.mxu0 %v1306_v1  ;;  %1502 = vmatpush.bf16.msra.mxu1 %v1306_v1  ;;  %v98_v13 = vmul.f32 %v1565_v4, %v32_v8  ;;  %v149_v17 = vadd.f32 %v1587_v12, %v83_v11  ;;  %v165_v19 = vadd.f32 %v1587_v12, %v99_v14  ;;  %v1300_v25 = vld [vmem:[%s2294_s2] sm:$0xff]  ;;  %v34_v31 = vld [vmem:[%s2296_s0 + $0x90] sm:$0xff]  ;;  %v35_v32 = vld [vmem:[%s2296_s0 + $0x98] sm:$0xff] }
   0x7   :  { %1503 = vmatpush.bf16.msra.mxu2 %v1306_v1  ;;  %1504 = vmatpush.bf16.msra.mxu3 %v1306_v1  ;;  %v148_v16 = vadd.f32 %v1587_v12, %v82_v10  ;;  %v84_v30 = vmul.f32 %v1565_v4, %v18_v27  ;;  %v85_v33 = vmul.f32 %v1565_v4, %v19_v29  ;;  %v48_v44 = vld [vmem:[%s2296_s0 + $0x100] sm:$0xff]  ;;  %v49_v45 = vld [vmem:[%s2296_s0 + $0x108] sm:$0xff]  ;;  %v50_v8 = vld [vmem:[%s2296_s0 + $0x110] sm:$0xff] }
   0x8   :  { %v164_v18 = vadd.f32 %v1587_v12, %v98_v13  ;;  %v213_v22 = vmax.f32 %v149_v17, 0.0  ;;  %v229_v24 = vmax.f32 %v165_v19, 0.0  ;;  %v100_v34 = vmul.f32 %v1565_v4, %v34_v31  ;;  %v20_v49 = vld [vmem:[%s2296_s0 + $0x20] sm:$0xff]  ;;  %v21_v50 = vld [vmem:[%s2296_s0 + $0x28] sm:$0xff]  ;;  %v51_v9 = vld [vmem:[%s2296_s0 + $0x118] sm:$0xff] }
   0x9   :  { %v212_v21 = vmax.f32 %v148_v16, 0.0  ;;  %v101_v35 = vmul.f32 %v1565_v4, %v35_v32  ;;  %v150_v36 = vadd.f32 %v1587_v12, %v84_v30  ;;  %v151_v37 = vadd.f32 %v1587_v12, %v85_v33  ;;  %v36_v58 = vld [vmem:[%s2296_s0 + $0xa0] sm:$0xff]  ;;  %v37_v59 = vld [vmem:[%s2296_s0 + $0xa8] sm:$0xff]  ;;  %v22_v14 = vld [vmem:[%s2296_s0 + $0x30] sm:$0xff] }
   0xa   :  { %374 = vmatpush.bf16.msra.mxu0 %v1305_v2  ;;  %1505 = vmatpush.bf16.msra.mxu1 %v1305_v2  ;;  %v228_v23 = vmax.f32 %v164_v18, 0.0  ;;  %v166_v38 = vadd.f32 %v1587_v12, %v100_v34  ;;  %v114_v46 = vmul.f32 %v1565_v4, %v48_v44  ;;  %v115_v47 = vmul.f32 %v1565_v4, %v49_v45  ;;  %v24_v45 = vld [vmem:[%s2296_s0 + $0x40] sm:$0xff] }
   0xb   :  { %1506 = vmatpush.bf16.msra.mxu2 %v1305_v2  ;;  %1507 = vmatpush.bf16.msra.mxu3 %v1305_v2  ;;  %v276_v26 = vpack.c.bf16 %v213_v22, %v212_v21  ;;  %v167_v39 = vadd.f32 %v1587_v12, %v101_v35  ;;  %v214_v40 = vmax.f32 %v150_v36, 0.0  ;;  %v215_v41 = vmax.f32 %v151_v37, 0.0  ;;  %v52_v36 = vld [vmem:[%s2296_s0 + $0x120] sm:$0xff]  ;;  %v53_v37 = vld [vmem:[%s2296_s0 + $0x128] sm:$0xff] }
   0xc   :  { %v284_v28 = vpack.c.bf16 %v229_v24, %v228_v23  ;;  %v230_v42 = vmax.f32 %v166_v38, 0.0  ;;  %v180_v52 = vadd.f32 %v1587_v12, %v114_v46  ;;  %v181_v53 = vadd.f32 %v1587_v12, %v115_v47  ;;  %v38_v23 = vld [vmem:[%s2296_s0 + $0xb0] sm:$0xff]  ;;  %v39_v24 = vld [vmem:[%s2296_s0 + $0xb8] sm:$0xff]  ;;  %v64_v38 = vld [vmem:[%s2296_s0 + $0x180] sm:$0xff] }
   0xd   :  { %v231_v43 = vmax.f32 %v167_v39, 0.0  ;;  %v277_v48 = vpack.c.bf16 %v215_v41, %v214_v40  ;;  %v86_v56 = vmul.f32 %v1565_v4, %v20_v49  ;;  %v87_v57 = vmul.f32 %v1565_v4, %v21_v50  ;;  %v65_v41 = vld [vmem:[%s2296_s0 + $0x188] sm:$0xff] }
   0xe   :  { %375 = vmatpush.bf16.msra.mxu0 %v1304_v3  ;;  %1508 = vmatpush.bf16.msra.mxu1 %v1304_v3  ;;  %v244_v54 = vmax.f32 %v180_v52, 0.0  ;;  %v245_v55 = vmax.f32 %v181_v53, 0.0  ;;  %v102_v61 = vmul.f32 %v1565_v4, %v36_v58  ;;  %v103_v62 = vmul.f32 %v1565_v4, %v37_v59  ;;  %v25_v46 = vld [vmem:[%s2296_s0 + $0x48] sm:$0xff]  ;;  %v40_v58 = vld [vmem:[%s2296_s0 + $0xc0] sm:$0xff] }
   0xf   :  { %1509 = vmatpush.bf16.msra.mxu2 %v1304_v3  ;;  %1510 = vmatpush.bf16.msra.mxu3 %v1304_v3  ;;  %v285_v51 = vpack.c.bf16 %v231_v43, %v230_v42  ;;  %v152_v63 = vadd.f32 %v1587_v12, %v86_v56  ;;  %v153_v0 = vadd.f32 %v1587_v12, %v87_v57  ;;  %v41_v59 = vld [vmem:[%s2296_s0 + $0xc8] sm:$0xff] }
  0x10   :  { %v292_v60 = vpack.c.bf16 %v245_v55, %v244_v54  ;;  %v168_v1 = vadd.f32 %v1587_v12, %v102_v61  ;;  %v169_v2 = vadd.f32 %v1587_v12, %v103_v62  ;;  %v116_v10 = vmul.f32 %v1565_v4, %v50_v8 }
  0x11   :  { %v216_v3 = vmax.f32 %v152_v63, 0.0  ;;  %v117_v11 = vmul.f32 %v1565_v4, %v51_v9  ;;  %v88_v21 = vmul.f32 %v1565_v4, %v22_v14  ;;  %v105_v27 = vmul.f32 %v1565_v4, %v39_v24  ;;  %v54_v9 = vld [vmem:[%s2296_s0 + $0x130] sm:$0xff] }
  0x12   :  { %376 = vmatpush.bf16.msra.mxu0 %v1303_v5  ;;  %1511 = vmatpush.bf16.msra.mxu1 %v1303_v5  ;;  %v232_v6 = vmax.f32 %v168_v1, 0.0  ;;  %v233_v7 = vmax.f32 %v169_v2, 0.0  ;;  %v182_v17 = vadd.f32 %v1587_v12, %v116_v10  ;;  %v118_v39 = vmul.f32 %v1565_v4, %v52_v36  ;;  %v55_v10 = vld [vmem:[%s2296_s0 + $0x138] sm:$0xff] }
  0x13   :  { %1512 = vmatpush.bf16.msra.mxu2 %v1303_v5  ;;  %1513 = vmatpush.bf16.msra.mxu3 %v1303_v5  ;;  %v217_v5 = vmax.f32 %v153_v0, 0.0  ;;  %v183_v18 = vadd.f32 %v1587_v12, %v117_v11  ;;  %v171_v31 = vadd.f32 %v1587_v12, %v105_v27  ;;  %v119_v40 = vmul.f32 %v1565_v4, %v53_v37  ;;  %v66_v11 = vld [vmem:[%s2296_s0 + $0x190] sm:$0xff] }
  0x14   :  { %v286_v16 = vpack.c.bf16 %v233_v7, %v232_v6  ;;  %v246_v19 = vmax.f32 %v182_v17, 0.0  ;;  %v130_v42 = vmul.f32 %v1565_v4, %v64_v38  ;;  %v131_v44 = vmul.f32 %v1565_v4, %v65_v41 }
  0x15   :  { %v278_v13 = vpack.c.bf16 %v217_v5, %v216_v3  ;;  %v235_v35 = vmax.f32 %v171_v31, 0.0  ;;  %v185_v49 = vadd.f32 %v1587_v12, %v119_v40  ;;  %v90_v55 = vmul.f32 %v1565_v4, %v24_v45 }
  0x16   :  { %377 = vmatpush.bf16.msra.mxu0 %v1302_v15  ;;  %1514 = vmatpush.bf16.msra.mxu1 %v1302_v15  ;;  %v196_v50 = vadd.f32 %v1587_v12, %v130_v42  ;;  %v91_v56 = vmul.f32 %v1565_v4, %v25_v46  ;;  %v106_v61 = vmul.f32 %v1565_v4, %v40_v58  ;;  %v56_v46 = vld [vmem:[%s2296_s0 + $0x140] sm:$0xff] }
  0x17   :  { %1515 = vmatpush.bf16.msra.mxu2 %v1302_v15  ;;  %1516 = vmatpush.bf16.msra.mxu3 %v1302_v15  ;;  %v23_v15 = vld [vmem:[%s2296_s0 + $0x38] sm:$0xff]  ;;  %v249_v53 = vmax.f32 %v185_v49, 0.0  ;;  %v107_v62 = vmul.f32 %v1565_v4, %v41_v59  ;;  %v156_v0 = vadd.f32 %v1587_v12, %v90_v55  ;;  %v121_v14 = vmul.f32 %v1565_v4, %v55_v10  ;;  %v28_v55 = vld [vmem:[%s2296_s0 + $0x60] sm:$0xff] }
  0x18   :  { %v89_v22 = vmul.f32 %v1565_v4, %v23_v15  ;;  %v260_v54 = vmax.f32 %v196_v50, 0.0  ;;  %v157_v1 = vadd.f32 %v1587_v12, %v91_v56  ;;  %v172_v2 = vadd.f32 %v1587_v12, %v106_v61  ;;  %v67_v15 = vld [vmem:[%s2296_s0 + $0x198] sm:$0xff]  ;;  %v29_v56 = vld [vmem:[%s2296_s0 + $0x68] sm:$0xff] }
  0x19   :  { %v173_v3 = vadd.f32 %v1587_v12, %v107_v62  ;;  %v220_v5 = vmax.f32 %v156_v0, 0.0  ;;  %v122_v49 = vmul.f32 %v1565_v4, %v56_v46 }
  0x1a   :  { %378 = vmatpush.bf16.msra.mxu0 %v1301_v20  ;;  %1517 = vmatpush.bf16.msra.mxu1 %v1301_v20  ;;  %v155_v29 = vadd.f32 %v1587_v12, %v89_v22  ;;  %v221_v6 = vmax.f32 %v157_v1, 0.0  ;;  %v236_v7 = vmax.f32 %v172_v2, 0.0  ;;  %v94_v1 = vmul.f32 %v1565_v4, %v28_v55 }
  0x1b   :  { %1518 = vmatpush.bf16.msra.mxu2 %v1301_v20  ;;  %1519 = vmatpush.bf16.msra.mxu3 %v1301_v20  ;;  %v247_v20 = vmax.f32 %v183_v18, 0.0  ;;  %v237_v8 = vmax.f32 %v173_v3, 0.0  ;;  %v133_v18 = vmul.f32 %v1565_v4, %v67_v15  ;;  %v188_v58 = vadd.f32 %v1587_v12, %v122_v49 }
  0x1c   :  { %v219_v33 = vmax.f32 %v155_v29, 0.0  ;;  %v280_v17 = vpack.c.bf16 %v221_v6, %v220_v5  ;;  %v95_v2 = vmul.f32 %v1565_v4, %v29_v56  ;;  %v44_v5 = vld [vmem:[%s2296_s0 + $0xe0] sm:$0xff]  ;;  %v45_v6 = vld [vmem:[%s2296_s0 + $0xe8] sm:$0xff] }
  0x1d   :  { %v252_v62 = vmax.f32 %v188_v58, 0.0  ;;  %v60_v56 = vld [vmem:[%s2296_s0 + $0x160] sm:$0xff] }
  0x1e   :  { %379 = vmatpush.bf16.msra.mxu0 %v1300_v25  ;;  %1520 = vmatpush.bf16.msra.mxu1 %v1300_v25  ;;  %v72_v58 = vld [vmem:[%s2296_s0 + $0x1c0] sm:$0xff] }
  0x1f   :  { %1521 = vmatpush.bf16.msra.mxu2 %v1300_v25  ;;  %1522 = vmatpush.bf16.msra.mxu3 %v1300_v25  ;;  %v293_v25 = vpack.c.bf16 %v247_v20, %v246_v19  ;;  %v26_v19 = vld [vmem:[%s2296_s0 + $0x50] sm:$0xff]  ;;  %v27_v20 = vld [vmem:[%s2296_s0 + $0x58] sm:$0xff] }
  0x20   :  { %v92_v29 = vmul.f32 %v1565_v4, %v26_v19 }
  0x21   :  { %380 = vmatmul.bf16.vlgmr.msra.gmra.mxu0 %v276_v26  ;;  %420 = vmatmul.bf16.vlgmr.msra.gmra.mxu1 %v284_v28  ;;  %v104_v26 = vmul.f32 %v1565_v4, %v38_v23  ;;  %v154_v28 = vadd.f32 %v1587_v12, %v88_v21  ;;  %v288_v21 = vpack.c.bf16 %v237_v8, %v236_v7 }
  0x22   :  { %460 = vmatmul.bf16.vlgmr.msra.gmra.mxu2 %v292_v60  ;;  %v187_v23 = vadd.f32 %v1587_v12, %v121_v14  ;;  %v158_v38 = vadd.f32 %v1587_v12, %v92_v29  ;;  %v110_v8 = vmul.f32 %v1565_v4, %v44_v5  ;;  %v30_v29 = vld [vmem:[%s2296_s0 + $0x70] sm:$0xff] }
  0x23   :  { %v170_v30 = vadd.f32 %v1587_v12, %v104_v26  ;;  %v218_v32 = vmax.f32 %v154_v28, 0.0 }
  0x24   :  { %v251_v27 = vmax.f32 %v187_v23, 0.0  ;;  %v222_v42 = vmax.f32 %v158_v38, 0.0  ;;  %v176_v14 = vadd.f32 %v1587_v12, %v110_v8 }
  0x25   :  { %v234_v34 = vmax.f32 %v170_v30, 0.0  ;;  %v279_v43 = vpack.c.bf16 %v219_v33, %v218_v32  ;;  %v93_v30 = vmul.f32 %v1565_v4, %v27_v20  ;;  %v42_v32 = vld [vmem:[%s2296_s0 + $0xd0] sm:$0xff]  ;;  %v43_v33 = vld [vmem:[%s2296_s0 + $0xd8] sm:$0xff] }
  0x26   :  { %v109_v36 = vmul.f32 %v1565_v4, %v43_v33  ;;  %v58_v20 = vld [vmem:[%s2296_s0 + $0x150] sm:$0xff] }
  0x27   :  { %v287_v47 = vpack.c.bf16 %v235_v35, %v234_v34  ;;  %v108_v35 = vmul.f32 %v1565_v4, %v42_v32  ;;  %v124_v23 = vmul.f32 %v1565_v4, %v58_v20 }
  0x28   :  { %v175_v41 = vadd.f32 %v1587_v12, %v109_v36 }
  0x29   :  { %v174_v40 = vadd.f32 %v1587_v12, %v108_v35  ;;  %v190_v32 = vadd.f32 %v1587_v12, %v124_v23 }
  0x2a   :  { %v239_v45 = vmax.f32 %v175_v41, 0.0 }
  0x2b   :  { %v254_v36 = vmax.f32 %v190_v32, 0.0 }
  0x31   :  { %385 = vmatmul.bf16.gmra.mxu0 %v277_v48  ;;  %425 = vmatmul.bf16.gmra.mxu1 %v285_v51  ;;  %v184_v48 = vadd.f32 %v1587_v12, %v118_v39  ;;  %v197_v51 = vadd.f32 %v1587_v12, %v131_v44  ;;  %v159_v39 = vadd.f32 %v1587_v12, %v93_v30  ;;  %v238_v44 = vmax.f32 %v174_v40, 0.0  ;;  %v31_v30 = vld [vmem:[%s2296_s0 + $0x78] sm:$0xff] }
  0x32   :  { %465 = vmatmul.bf16.gmra.mxu2 %v293_v25  ;;  %v199_v25 = vadd.f32 %v1587_v12, %v133_v18  ;;  %v240_v18 = vmax.f32 %v176_v14, 0.0  ;;  %v97_v40 = vmul.f32 %v1565_v4, %v31_v30  ;;  %v62_v14 = vld [vmem:[%s2296_s0 + $0x170] sm:$0xff] }
  0x33   :  { %v248_v52 = vmax.f32 %v184_v48, 0.0  ;;  %v261_v57 = vmax.f32 %v197_v51, 0.0  ;;  %v68_v48 = vld [vmem:[%s2296_s0 + $0x1a0] sm:$0xff]  ;;  %v69_v51 = vld [vmem:[%s2296_s0 + $0x1a8] sm:$0xff] }
  0x34   :  { %v263_v31 = vmax.f32 %v199_v25, 0.0  ;;  %v71_v25 = vld [vmem:[%s2296_s0 + $0x1b8] sm:$0xff]  ;;  %v163_v49 = vadd.f32 %v1587_v12, %v97_v40 }
  0x35   :  { %v294_v60 = vpack.c.bf16 %v249_v53, %v248_v52  ;;  %v300_v63 = vpack.c.bf16 %v261_v57, %v260_v54  ;;  %v134_v52 = vmul.f32 %v1565_v4, %v68_v48  ;;  %v135_v54 = vmul.f32 %v1565_v4, %v69_v51 }
  0x36   :  { %v289_v57 = vpack.c.bf16 %v239_v45, %v238_v44 }
  0x37   :  { %500 = vmatmul.bf16.vlgmr.msra.gmra.mxu3 %v300_v63  ;;  %v201_v61 = vadd.f32 %v1587_v12, %v135_v54 }
  0x39   :  { %v265_v3 = vmax.f32 %v201_v61, 0.0  ;;  %v73_v61 = vld [vmem:[%s2296_s0 + $0x1c8] sm:$0xff] }
  0x41   :  { %390 = vmatmul.bf16.gmra.mxu0 %v278_v13  ;;  %430 = vmatmul.bf16.gmra.mxu1 %v286_v16  ;;  %v120_v13 = vmul.f32 %v1565_v4, %v54_v9  ;;  %v132_v16 = vmul.f32 %v1565_v4, %v66_v11  ;;  %v111_v9 = vmul.f32 %v1565_v4, %v45_v6 }
  0x42   :  { %470 = vmatmul.bf16.gmra.mxu2 %v294_v60  ;;  %v200_v60 = vadd.f32 %v1587_v12, %v134_v52  ;;  %v160_v11 = vadd.f32 %v1587_v12, %v94_v1 }
  0x43   :  { %v186_v22 = vadd.f32 %v1587_v12, %v120_v13  ;;  %v198_v24 = vadd.f32 %v1587_v12, %v132_v16  ;;  %v161_v13 = vadd.f32 %v1587_v12, %v95_v2  ;;  %v177_v15 = vadd.f32 %v1587_v12, %v111_v9 }
  0x44   :  { %v264_v0 = vmax.f32 %v200_v60, 0.0  ;;  %v224_v16 = vmax.f32 %v160_v11, 0.0 }
  0x45   :  { %v250_v26 = vmax.f32 %v186_v22, 0.0  ;;  %v262_v28 = vmax.f32 %v198_v24, 0.0  ;;  %v241_v19 = vmax.f32 %v177_v15, 0.0  ;;  %v70_v22 = vld [vmem:[%s2296_s0 + $0x1b0] sm:$0xff]  ;;  %v63_v15 = vld [vmem:[%s2296_s0 + $0x178] sm:$0xff] }
  0x46   :  { %v302_v10 = vpack.c.bf16 %v265_v3, %v264_v0  ;;  %v139_v0 = vmul.f32 %v1565_v4, %v73_v61 }
  0x47   :  { %v295_v34 = vpack.c.bf16 %v251_v27, %v250_v26  ;;  %v301_v37 = vpack.c.bf16 %v263_v31, %v262_v28  ;;  %v136_v26 = vmul.f32 %v1565_v4, %v70_v22  ;;  %v137_v28 = vmul.f32 %v1565_v4, %v71_v25 }
  0x48   :  { %v290_v31 = vpack.c.bf16 %v241_v19, %v240_v18  ;;  %v205_v6 = vadd.f32 %v1587_v12, %v139_v0  ;;  %v129_v18 = vmul.f32 %v1565_v4, %v63_v15  ;;  %v75_v19 = vld [vmem:[%s2296_s0 + $0x1d8] sm:$0xff]  ;;  %v78_v0 = vld [vmem:[%s2296_s0 + $0x1f0] sm:$0xff] }
  0x49   :  { %505 = vmatmul.bf16.gmra.mxu3 %v301_v37  ;;  %v203_v35 = vadd.f32 %v1587_v12, %v137_v28 }
  0x4a   :  { %v195_v23 = vadd.f32 %v1587_v12, %v129_v18 }
  0x4b   :  { %v267_v41 = vmax.f32 %v203_v35, 0.0 }
  0x51   :  { %395 = vmatmul.bf16.gmra.mxu0 %v279_v43  ;;  %435 = vmatmul.bf16.gmra.mxu1 %v287_v47  ;;  %v223_v43 = vmax.f32 %v159_v39, 0.0  ;;  %v57_v47 = vld [vmem:[%s2296_s0 + $0x148] sm:$0xff]  ;;  %v96_v39 = vmul.f32 %v1565_v4, %v30_v29  ;;  %v259_v29 = vmax.f32 %v195_v23, 0.0 }
  0x52   :  { %475 = vmatmul.bf16.gmra.mxu2 %v295_v34  ;;  %v123_v50 = vmul.f32 %v1565_v4, %v57_v47  ;;  %v202_v34 = vadd.f32 %v1587_v12, %v136_v26 }
  0x53   :  { %v281_v53 = vpack.c.bf16 %v223_v43, %v222_v42  ;;  %v46_v42 = vld [vmem:[%s2296_s0 + $0xf0] sm:$0xff]  ;;  %v47_v43 = vld [vmem:[%s2296_s0 + $0xf8] sm:$0xff]  ;;  %v162_v48 = vadd.f32 %v1587_v12, %v96_v39 }
  0x54   :  { %v189_v59 = vadd.f32 %v1587_v12, %v123_v50  ;;  %v266_v38 = vmax.f32 %v202_v34, 0.0  ;;  %v112_v45 = vmul.f32 %v1565_v4, %v46_v42  ;;  %v113_v46 = vmul.f32 %v1565_v4, %v47_v43  ;;  %v76_v42 = vld [vmem:[%s2296_s0 + $0x1e0] sm:$0xff]  ;;  %v77_v43 = vld [vmem:[%s2296_s0 + $0x1e8] sm:$0xff] }
  0x55   :  { %v226_v52 = vmax.f32 %v162_v48, 0.0 }
  0x56   :  { %v253_v63 = vmax.f32 %v189_v59, 0.0  ;;  %v303_v47 = vpack.c.bf16 %v267_v41, %v266_v38  ;;  %v178_v50 = vadd.f32 %v1587_v12, %v112_v45  ;;  %v179_v51 = vadd.f32 %v1587_v12, %v113_v46 }
  0x57   :  { %v126_v59 = vmul.f32 %v1565_v4, %v60_v56  ;;  %v143_v45 = vmul.f32 %v1565_v4, %v77_v43 }
  0x58   :  { %v296_v7 = vpack.c.bf16 %v253_v63, %v252_v62  ;;  %v242_v54 = vmax.f32 %v178_v50, 0.0  ;;  %v243_v55 = vmax.f32 %v179_v51, 0.0  ;;  %v138_v62 = vmul.f32 %v1565_v4, %v72_v58 }
  0x59   :  { %510 = vmatmul.bf16.gmra.mxu3 %v302_v10  ;;  %v192_v2 = vadd.f32 %v1587_v12, %v126_v59  ;;  %v269_v10 = vmax.f32 %v205_v6, 0.0 }
  0x5a   :  { %v291_v1 = vpack.c.bf16 %v243_v55, %v242_v54  ;;  %v204_v5 = vadd.f32 %v1587_v12, %v138_v62 }
  0x5c   :  { %v268_v9 = vmax.f32 %v204_v5, 0.0 }
  0x61   :  { %400 = vmatmul.bf16.gmra.mxu0 %v280_v17  ;;  %440 = vmatmul.bf16.gmra.mxu1 %v288_v21  ;;  %v225_v17 = vmax.f32 %v161_v13, 0.0  ;;  %v59_v21 = vld [vmem:[%s2296_s0 + $0x158] sm:$0xff]  ;;  %v304_v13 = vpack.c.bf16 %v269_v10, %v268_v9 }
  0x62   :  { %480 = vmatmul.bf16.gmra.mxu2 %v296_v7  ;;  %v125_v24 = vmul.f32 %v1565_v4, %v59_v21  ;;  %v256_v7 = vmax.f32 %v192_v2, 0.0  ;;  %v141_v21 = vmul.f32 %v1565_v4, %v75_v19  ;;  %v144_v2 = vmul.f32 %v1565_v4, %v78_v0 }
  0x63   :  { %v282_v27 = vpack.c.bf16 %v225_v17, %v224_v16  ;;  %v74_v16 = vld [vmem:[%s2296_s0 + $0x1d0] sm:$0xff]  ;;  %v128_v17 = vmul.f32 %v1565_v4, %v62_v14 }
  0x64   :  { %v191_v33 = vadd.f32 %v1587_v12, %v125_v24  ;;  %v140_v20 = vmul.f32 %v1565_v4, %v74_v16  ;;  %v210_v5 = vadd.f32 %v1587_v12, %v144_v2 }
  0x65   :  { %v194_v22 = vadd.f32 %v1587_v12, %v128_v17 }
  0x66   :  { %v255_v37 = vmax.f32 %v191_v33, 0.0  ;;  %v206_v24 = vadd.f32 %v1587_v12, %v140_v20 }
  0x67   :  { %v258_v28 = vmax.f32 %v194_v22, 0.0 }
  0x68   :  { %v297_v44 = vpack.c.bf16 %v255_v37, %v254_v36  ;;  %v270_v30 = vmax.f32 %v206_v24, 0.0 }
  0x69   :  { %515 = vmatmul.bf16.gmra.mxu3 %v303_v47  ;;  %v299_v32 = vpack.c.bf16 %v259_v29, %v258_v28  ;;  %v209_v47 = vadd.f32 %v1587_v12, %v143_v45 }
  0x71   :  { %405 = vmatmul.bf16.gmra.mxu0 %v281_v53  ;;  %445 = vmatmul.bf16.gmra.mxu1 %v289_v57  ;;  %v227_v53 = vmax.f32 %v163_v49, 0.0  ;;  %v61_v57 = vld [vmem:[%s2296_s0 + $0x168] sm:$0xff] }
  0x72   :  { %485 = vmatmul.bf16.gmra.mxu2 %v297_v44  ;;  %v127_v60 = vmul.f32 %v1565_v4, %v61_v57  ;;  %v142_v44 = vmul.f32 %v1565_v4, %v76_v42 }
  0x73   :  { %v283_v63 = vpack.c.bf16 %v227_v53, %v226_v52  ;;  %v273_v53 = vmax.f32 %v209_v47, 0.0 }
  0x74   :  { %v193_v3 = vadd.f32 %v1587_v12, %v127_v60  ;;  %v208_v46 = vadd.f32 %v1587_v12, %v142_v44 }
  0x76   :  { %v257_v8 = vmax.f32 %v193_v3, 0.0  ;;  %v272_v52 = vmax.f32 %v208_v46, 0.0 }
  0x78   :  { %v298_v11 = vpack.c.bf16 %v257_v8, %v256_v7  ;;  %v306_v55 = vpack.c.bf16 %v273_v53, %v272_v52 }
  0x79   :  { %520 = vmatmul.bf16.gmra.mxu3 %v304_v13  ;;  %v274_v13 = vmax.f32 %v210_v5, 0.0 }
  0x81   :  { %410 = vmatmul.bf16.gmra.mxu0 %v282_v27  ;;  %450 = vmatmul.bf16.gmra.mxu1 %v290_v31  ;;  %v207_v27 = vadd.f32 %v1587_v12, %v141_v21 }
  0x82   :  { %490 = vmatmul.bf16.gmra.mxu2 %v298_v11 }
  0x83   :  { %v271_v31 = vmax.f32 %v207_v27, 0.0 }
  0x85   :  { %v305_v33 = vpack.c.bf16 %v271_v31, %v270_v30 }
  0x89   :  { %525 = vmatmul.bf16.gmra.mxu3 %v305_v33 }
  0x91   :  { %415 = vmatmul.bf16.gmra.mxu0 %v283_v63  ;;  %455 = vmatmul.bf16.gmra.mxu1 %v291_v1  ;;  %v79_v1 = vld [vmem:[%s2296_s0 + $0x1f8] sm:$0xff] }
  0x92   :  { %495 = vmatmul.bf16.gmra.mxu2 %v299_v32  ;;  %v145_v3 = vmul.f32 %v1565_v4, %v79_v1 }
  0x94   :  { %v211_v6 = vadd.f32 %v1587_v12, %v145_v3 }
  0x96   :  { %v275_v15 = vmax.f32 %v211_v6, 0.0 }
  0x98   :  { %v307_v4 = vpack.c.bf16 %v275_v15, %v274_v13 }
  0x99   :  { %530 = vmatmul.bf16.gmra.mxu3 %v306_v55 }
  0x9e   :  { %v381_v25 = vpop.f32.mrf.mxu0  ;;  %v1883_v26 = vpop.f32.mrf.mxu1 }
  0x9f   :  { %v1126_v34 = vmul.f32 %v381_v25, %v381_v25 }
  0xa5   :  { %v1912_v62 = vpop.f32.mrf.mxu2 }
  0xa6   :  { %v383_v35 = vpop.f32.mrf.mxu0  ;;  %v1886_v36 = vpop.f32.mrf.mxu1 }
  0xa7   :  { %v1311_v37 = vpack.c.bf16 %v383_v35, %v381_v25  ;;  %v1056_v38 = vadd.f32 %v383_v35, %v381_v25  ;;  %v1127_v39 = vmul.f32 %v383_v35, %v383_v35  ;;  %v1351_v40 = vpack.c.bf16 %v1886_v36, %v1883_v26 }
  0xa9   :  { %1312 = vst [vmem:[%s2297_s3] sm:$0xff] %v1311_v37   ;;  %v1190_v41 = vadd.f32 %v1127_v39, %v1126_v34  ;;  %535 = vmatmul.bf16.gmra.mxu3 %v307_v4 }
  0xaa   :  { %1475 = vst [vmem:[%s2297_s3 + $0x40] sm:$0xff] %v1351_v40  }
  0xad   :  { %v1934_v11 = vpop.f32.mrf.mxu2 }
  0xae   :  { %v386_v48 = vpop.f32.mrf.mxu0  ;;  %v1906_v49 = vpop.f32.mrf.mxu1  ;;  %v1391_v14 = vpack.c.bf16 %v1934_v11, %v1912_v62 }
  0xaf   :  { %v1057_v50 = vadd.f32 %v1056_v38, %v386_v48  ;;  %v1128_v51 = vmul.f32 %v386_v48, %v386_v48 }
  0xb0   :  { %1483 = vst [vmem:[%s2297_s3 + $0x80] sm:$0xff] %v1391_v14  }
  0xb1   :  { %v1191_v54 = vadd.f32 %v1190_v41, %v1128_v51 }
  0xb5   :  { %v1947_v20 = vpop.f32.mrf.mxu2 }
  0xb6   :  { %v388_v56 = vpop.f32.mrf.mxu0  ;;  %v1908_v57 = vpop.f32.mrf.mxu1 }
  0xb7   :  { %v1316_v58 = vpack.c.bf16 %v388_v56, %v386_v48  ;;  %v1058_v59 = vadd.f32 %v1057_v50, %v388_v56  ;;  %v1129_v60 = vmul.f32 %v388_v56, %v388_v56  ;;  %v1356_v61 = vpack.c.bf16 %v1908_v57, %v1906_v49 }
  0xb9   :  { %1468 = vst [vmem:[%s2297_s3 + $0x8] sm:$0xff] %v1316_v58   ;;  %v1192_v63 = vadd.f32 %v1191_v54, %v1129_v60 }
  0xba   :  { %1476 = vst [vmem:[%s2297_s3 + $0x48] sm:$0xff] %v1356_v61   ;;  %v1970_v31 = vpop.f32.mrf.mxu3 }
  0xbd   :  { %v1957_v23 = vpop.f32.mrf.mxu2 }
  0xbe   :  { %v391_v7 = vpop.f32.mrf.mxu0  ;;  %v1930_v8 = vpop.f32.mrf.mxu1  ;;  %v1396_v24 = vpack.c.bf16 %v1957_v23, %v1947_v20 }
  0xbf   :  { %v1932_v9 = vadd.f32 %v1058_v59, %v391_v7  ;;  %v1130_v10 = vmul.f32 %v391_v7, %v391_v7 }
  0xc0   :  { %1484 = vst [vmem:[%s2297_s3 + $0x88] sm:$0xff] %v1396_v24  }
  0xc1   :  { %v1938_v16 = vadd.f32 %v1192_v63, %v1130_v10 }
  0xc2   :  { %v1982_v35 = vpop.f32.mrf.mxu3 }
  0xc3   :  { %v1431_v38 = vpack.c.bf16 %v1982_v35, %v1970_v31 }
  0xc5   :  { %v1968_v30 = vpop.f32.mrf.mxu2  ;;  %1491 = vst [vmem:[%s2297_s3 + $0xc0] sm:$0xff] %v1431_v38  }
  0xc6   :  { %v393_v12 = vpop.f32.mrf.mxu0  ;;  %v1943_v17 = vpop.f32.mrf.mxu1 }
  0xc7   :  { %v1321_v18 = vpack.c.bf16 %v393_v12, %v391_v7  ;;  %v1361_v19 = vpack.c.bf16 %v1943_v17, %v1930_v8  ;;  %v1131_v0 = vmul.f32 %v393_v12, %v393_v12  ;;  %v1060_v5 = vadd.f32 %v1932_v9, %v393_v12 }
  0xc9   :  { %1469 = vst [vmem:[%s2297_s3 + $0x10] sm:$0xff] %v1321_v18   ;;  %v1194_v6 = vadd.f32 %v1938_v16, %v1131_v0 }
  0xca   :  { %1477 = vst [vmem:[%s2297_s3 + $0x50] sm:$0xff] %v1361_v19  }
  0xcc   :  { %v2000_v44 = vpop.f32.mrf.mxu3 }
  0xcd   :  { %v1980_v34 = vpop.f32.mrf.mxu2 }
  0xce   :  { %v396_v21 = vpop.f32.mrf.mxu0  ;;  %v1955_v22 = vpop.f32.mrf.mxu1  ;;  %v1401_v37 = vpack.c.bf16 %v1980_v34, %v1968_v30 }
  0xcf   :  { %v1132_v3 = vmul.f32 %v396_v21, %v396_v21  ;;  %v1061_v10 = vadd.f32 %v1060_v5, %v396_v21 }
  0xd0   :  { %1485 = vst [vmem:[%s2297_s3 + $0x90] sm:$0xff] %v1401_v37  }
  0xd1   :  { %v1195_v13 = vadd.f32 %v1194_v6, %v1132_v3 }
  0xd4   :  { %v2012_v48 = vpop.f32.mrf.mxu3 }
  0xd5   :  { %v1998_v43 = vpop.f32.mrf.mxu2  ;;  %v1436_v51 = vpack.c.bf16 %v2012_v48, %v2000_v44 }
  0xd6   :  { %v398_v25 = vpop.f32.mrf.mxu0  ;;  %v1964_v27 = vpop.f32.mrf.mxu1 }
  0xd7   :  { %v1326_v28 = vpack.c.bf16 %v398_v25, %v396_v21  ;;  %v1366_v29 = vpack.c.bf16 %v1964_v27, %v1955_v22  ;;  %1492 = vst [vmem:[%s2297_s3 + $0xc8] sm:$0xff] %v1436_v51   ;;  %v1133_v7 = vmul.f32 %v398_v25, %v398_v25  ;;  %v1062_v18 = vadd.f32 %v1061_v10, %v398_v25 }
  0xd9   :  { %1470 = vst [vmem:[%s2297_s3 + $0x18] sm:$0xff] %v1326_v28   ;;  %v1196_v12 = vadd.f32 %v1195_v13, %v1133_v7 }
  0xda   :  { %1478 = vst [vmem:[%s2297_s3 + $0x58] sm:$0xff] %v1366_v29  }
  0xdc   :  { %v2030_v58 = vpop.f32.mrf.mxu3 }
  0xdd   :  { %v2010_v47 = vpop.f32.mrf.mxu2 }
  0xde   :  { %v401_v32 = vpop.f32.mrf.mxu0  ;;  %v1978_v33 = vpop.f32.mrf.mxu1  ;;  %v1406_v50 = vpack.c.bf16 %v2010_v47, %v1998_v43 }
  0xdf   :  { %v1134_v14 = vmul.f32 %v401_v32, %v401_v32  ;;  %v1063_v37 = vadd.f32 %v1062_v18, %v401_v32 }
  0xe0   :  { %1486 = vst [vmem:[%s2297_s3 + $0x98] sm:$0xff] %v1406_v50  }
  0xe1   :  { %v1197_v16 = vadd.f32 %v1196_v12, %v1134_v14 }
  0xe4   :  { %v2042_v63 = vpop.f32.mrf.mxu3 }
  0xe5   :  { %v2028_v56 = vpop.f32.mrf.mxu2  ;;  %v1441_v2 = vpack.c.bf16 %v2042_v63, %v2030_v58 }
  0xe6   :  { %v403_v39 = vpop.f32.mrf.mxu0  ;;  %v1994_v40 = vpop.f32.mrf.mxu1 }
  0xe7   :  { %v1331_v41 = vpack.c.bf16 %v403_v39, %v401_v32  ;;  %v1371_v42 = vpack.c.bf16 %v1994_v40, %v1978_v33  ;;  %1493 = vst [vmem:[%s2297_s3 + $0xd0] sm:$0xff] %v1441_v2   ;;  %v1135_v29 = vmul.f32 %v403_v39, %v403_v39  ;;  %v1064_v25 = vadd.f32 %v1063_v37, %v403_v39 }
  0xe9   :  { %1471 = vst [vmem:[%s2297_s3 + $0x20] sm:$0xff] %v1331_v41   ;;  %v1198_v38 = vadd.f32 %v1197_v16, %v1135_v29 }
  0xea   :  { %1479 = vst [vmem:[%s2297_s3 + $0x60] sm:$0xff] %v1371_v42  }
  0xec   :  { %v2062_v9 = vpop.f32.mrf.mxu3 }
  0xed   :  { %v2040_v61 = vpop.f32.mrf.mxu2 }
  0xee   :  { %v406_v45 = vpop.f32.mrf.mxu0  ;;  %v2008_v46 = vpop.f32.mrf.mxu1  ;;  %v1411_v1 = vpack.c.bf16 %v2040_v61, %v2028_v56 }
  0xef   :  { %v1136_v21 = vmul.f32 %v406_v45, %v406_v45  ;;  %v1065_v42 = vadd.f32 %v1064_v25, %v406_v45 }
  0xf0   :  { %1487 = vst [vmem:[%s2297_s3 + $0xa0] sm:$0xff] %v1411_v1  }
  0xf1   :  { %v1199_v50 = vadd.f32 %v1198_v38, %v1136_v21  ;;  %v1143_v38 = vmul.f32 %v1886_v36, %v1886_v36 }
  0xf4   :  { %v2074_v1 = vpop.f32.mrf.mxu3 }
  0xf5   :  { %v2060_v28 = vpop.f32.mrf.mxu2  ;;  %v1446_v39 = vpack.c.bf16 %v2074_v1, %v2062_v9 }
  0xf6   :  { %v408_v52 = vpop.f32.mrf.mxu0  ;;  %v2024_v53 = vpop.f32.mrf.mxu1 }
  0xf7   :  { %v1336_v54 = vpack.c.bf16 %v408_v52, %v406_v45  ;;  %v1376_v55 = vpack.c.bf16 %v2024_v53, %v2008_v46  ;;  %v1137_v41 = vmul.f32 %v408_v52, %v408_v52  ;;  %v1066_v32 = vadd.f32 %v1065_v42, %v408_v52  ;;  %1494 = vst [vmem:[%s2297_s3 + $0xd8] sm:$0xff] %v1446_v39  }
  0xf9   :  { %1472 = vst [vmem:[%s2297_s3 + $0x28] sm:$0xff] %v1336_v54   ;;  %v1200_v2 = vadd.f32 %v1199_v50, %v1137_v41  ;;  %v1144_v50 = vmul.f32 %v1906_v49, %v1906_v49 }
  0xfa   :  { %1480 = vst [vmem:[%s2297_s3 + $0x68] sm:$0xff] %v1376_v55  }
  0xfc   :  { %v2092_v16 = vpop.f32.mrf.mxu3 }
  0xfd   :  { %v2072_v0 = vpop.f32.mrf.mxu2 }
  0xfe   :  { %v411_v59 = vpop.f32.mrf.mxu0  ;;  %v2038_v60 = vpop.f32.mrf.mxu1  ;;  %v1416_v5 = vpack.c.bf16 %v2072_v0, %v2060_v28 }
  0xff   :  { %v1138_v51 = vmul.f32 %v411_v59, %v411_v59  ;;  %v1067_v6 = vadd.f32 %v1066_v32, %v411_v59 }
 0x100   :  { %1488 = vst [vmem:[%s2297_s3 + $0xa8] sm:$0xff] %v1416_v5  }
 0x101   :  { %v1201_v45 = vadd.f32 %v1200_v2, %v1138_v51 }
 0x104   :  { %v2114_v5 = vpop.f32.mrf.mxu3 }
 0x105   :  { %v2090_v37 = vpop.f32.mrf.mxu2  ;;  %v1451_v39 = vpack.c.bf16 %v2114_v5, %v2092_v16 }
 0x106   :  { %v413_v15 = vpop.f32.mrf.mxu0  ;;  %v2056_v4 = vpop.f32.mrf.mxu1 }
 0x107   :  { %v1341_v19 = vpack.c.bf16 %v413_v15, %v411_v59  ;;  %v1381_v24 = vpack.c.bf16 %v2056_v4, %v2038_v60  ;;  %v1139_v3 = vmul.f32 %v413_v15, %v413_v15  ;;  %v1068_v52 = vadd.f32 %v1067_v6, %v413_v15  ;;  %1495 = vst [vmem:[%s2297_s3 + $0xe0] sm:$0xff] %v1451_v39  }
 0x108   :  { %v1142_v15 = vmul.f32 %v1883_v26, %v1883_v26  ;;  %v1155_v39 = vmul.f32 %v2056_v4, %v2056_v4 }
 0x109   :  { %1473 = vst [vmem:[%s2297_s3 + $0x30] sm:$0xff] %v1341_v19   ;;  %v1202_v10 = vadd.f32 %v1201_v45, %v1139_v3 }
 0x10a   :  { %1481 = vst [vmem:[%s2297_s3 + $0x70] sm:$0xff] %v1381_v24  }
 0x10d   :  { %v2112_v3 = vpop.f32.mrf.mxu2 }
 0x10e   :  { %v416_v54 = vpop.f32.mrf.mxu0  ;;  %v2070_v55 = vpop.f32.mrf.mxu1 }
 0x10f   :  { %v1140_v7 = vmul.f32 %v416_v54, %v416_v54  ;;  %v1069_v13 = vadd.f32 %v1068_v52, %v416_v54 }
 0x111   :  { %v1203_v14 = vadd.f32 %v1202_v10, %v1140_v7  ;;  %v1148_v10 = vmul.f32 %v1955_v22, %v1955_v22 }
 0x116   :  { %v418_v18 = vpop.f32.mrf.mxu0  ;;  %v2086_v19 = vpop.f32.mrf.mxu1 }
 0x117   :  { %v1346_v24 = vpack.c.bf16 %v418_v18, %v416_v54  ;;  %v1070_v12 = vadd.f32 %v1069_v13, %v418_v18  ;;  %v1141_v59 = vmul.f32 %v418_v18, %v418_v18  ;;  %v1386_v29 = vpack.c.bf16 %v2086_v19, %v2070_v55 }
 0x119   :  { %1474 = vst [vmem:[%s2297_s3 + $0x38] sm:$0xff] %v1346_v24   ;;  %v1071_v21 = vadd.f32 %v1070_v12, %v1883_v26  ;;  %v1204_v25 = vadd.f32 %v1203_v14, %v1141_v59  ;;  %v1145_v26 = vmul.f32 %v1908_v57, %v1908_v57  ;;  %v1149_v14 = vmul.f32 %v1964_v27, %v1964_v27  ;;  %v2138_v12 = vpop.f32.mrf.mxu2 }
 0x11a   :  { %1482 = vst [vmem:[%s2297_s3 + $0x78] sm:$0xff] %v1386_v29   ;;  %v1150_v59 = vmul.f32 %v1978_v33, %v1978_v33 }
 0x11b   :  { %v1072_v41 = vadd.f32 %v1071_v21, %v1886_v36  ;;  %v1205_v42 = vadd.f32 %v1204_v25, %v1142_v15  ;;  %v1421_v36 = vpack.c.bf16 %v2112_v3, %v2090_v37  ;;  %v1151_v21 = vmul.f32 %v1994_v40, %v1994_v40 }
 0x11d   :  { %v1073_v51 = vadd.f32 %v1072_v41, %v1906_v49  ;;  %v1206_v54 = vadd.f32 %v1205_v42, %v1143_v38  ;;  %v1146_v49 = vmul.f32 %v1930_v8, %v1930_v8  ;;  %1489 = vst [vmem:[%s2297_s3 + $0xb0] sm:$0xff] %v1421_v36   ;;  %v1153_v42 = vmul.f32 %v2024_v53, %v2024_v53 }
 0x11f   :  { %v1074_v32 = vadd.f32 %v1073_v51, %v1908_v57  ;;  %v1207_v2 = vadd.f32 %v1206_v54, %v1144_v50  ;;  %v1147_v57 = vmul.f32 %v1943_v17, %v1943_v17 }
 0x121   :  { %v1075_v6 = vadd.f32 %v1074_v32, %v1930_v8  ;;  %v1208_v45 = vadd.f32 %v1207_v2, %v1145_v26 }
 0x123   :  { %v1076_v7 = vadd.f32 %v1075_v6, %v1943_v17  ;;  %v1209_v52 = vadd.f32 %v1208_v45, %v1146_v49  ;;  %v2140_v17 = vpop.f32.mrf.mxu3 }
 0x125   :  { %v1210_v13 = vadd.f32 %v1209_v52, %v1147_v57  ;;  %v1077_v8 = vadd.f32 %v1076_v7, %v1955_v22  ;;  %v1157_v7 = vmul.f32 %v2086_v19, %v2086_v19 }
 0x127   :  { %v1078_v18 = vadd.f32 %v1077_v8, %v1964_v27  ;;  %v1211_v24 = vadd.f32 %v1210_v13, %v1148_v10  ;;  %v1152_v27 = vmul.f32 %v2008_v46, %v2008_v46  ;;  %v1159_v8 = vmul.f32 %v1934_v11, %v1934_v11 }
 0x129   :  { %v1079_v29 = vadd.f32 %v1078_v18, %v1978_v33  ;;  %v1212_v15 = vadd.f32 %v1211_v24, %v1149_v14  ;;  %v2154_v33 = vpop.f32.mrf.mxu2  ;;  %v1160_v18 = vmul.f32 %v1947_v20, %v1947_v20 }
 0x12b   :  { %v1080_v22 = vadd.f32 %v1079_v29, %v1994_v40  ;;  %v1213_v25 = vadd.f32 %v1212_v15, %v1150_v59  ;;  %v2156_v54 = vpop.f32.mrf.mxu3  ;;  %v1426_v40 = vpack.c.bf16 %v2154_v33, %v2138_v12  ;;  %v1161_v59 = vmul.f32 %v1957_v23, %v1957_v23 }
 0x12c   :  { %v1456_v26 = vpack.c.bf16 %v2156_v54, %v2140_v17 }
 0x12d   :  { %v1081_v38 = vadd.f32 %v1080_v22, %v2008_v46  ;;  %v1214_v41 = vadd.f32 %v1213_v25, %v1151_v21  ;;  %v1154_v46 = vmul.f32 %v2038_v60, %v2038_v60  ;;  %1490 = vst [vmem:[%s2297_s3 + $0xb8] sm:$0xff] %v1426_v40  }
 0x12e   :  { %1496 = vst [vmem:[%s2297_s3 + $0xe8] sm:$0xff] %v1456_v26   ;;  %v1166_v26 = vmul.f32 %v2028_v56, %v2028_v56 }
 0x12f   :  { %v1082_v50 = vadd.f32 %v1081_v38, %v2024_v53  ;;  %v1215_v51 = vadd.f32 %v1214_v41, %v1152_v27  ;;  %v1164_v38 = vmul.f32 %v1998_v43, %v1998_v43 }
 0x131   :  { %v1083_v32 = vadd.f32 %v1082_v50, %v2038_v60  ;;  %v1216_v2 = vadd.f32 %v1215_v51, %v1153_v42  ;;  %v1156_v60 = vmul.f32 %v2070_v55, %v2070_v55 }
 0x133   :  { %v1217_v53 = vadd.f32 %v1216_v2, %v1154_v46  ;;  %v1084_v36 = vadd.f32 %v1083_v32, %v2056_v4  ;;  %v2180_v52 = vpop.f32.mrf.mxu3  ;;  %v1158_v4 = vmul.f32 %v1912_v62, %v1912_v62  ;;  %v1167_v46 = vmul.f32 %v2040_v61, %v2040_v61 }
 0x135   :  { %v1218_v49 = vadd.f32 %v1217_v53, %v1155_v39  ;;  %v1085_v6 = vadd.f32 %v1084_v36, %v2070_v55  ;;  %v1168_v53 = vmul.f32 %v2060_v28, %v2060_v28 }
 0x137   :  { %v1219_v45 = vadd.f32 %v1218_v49, %v1156_v60  ;;  %v1086_v57 = vadd.f32 %v1085_v6, %v2086_v19  ;;  %v1169_v49 = vmul.f32 %v2072_v0, %v2072_v0 }
 0x139   :  { %v1087_v10 = vadd.f32 %v1086_v57, %v1912_v62  ;;  %v1220_v13 = vadd.f32 %v1219_v45, %v1157_v7 }
 0x13b   :  { %v1088_v14 = vadd.f32 %v1087_v10, %v1934_v11  ;;  %v1221_v55 = vadd.f32 %v1220_v13, %v1158_v4  ;;  %v2194_v62 = vpop.f32.mrf.mxu3  ;;  %v1162_v11 = vmul.f32 %v1968_v30, %v1968_v30  ;;  %v1172_v13 = vmul.f32 %v2138_v12, %v2138_v12 }
 0x13c   :  { %v1461_v21 = vpack.c.bf16 %v2194_v62, %v2180_v52 }
 0x13d   :  { %v1089_v24 = vadd.f32 %v1088_v14, %v1947_v20  ;;  %v1222_v19 = vadd.f32 %v1221_v55, %v1159_v8  ;;  %v1163_v20 = vmul.f32 %v1980_v34, %v1980_v34  ;;  %v1174_v55 = vmul.f32 %v1970_v31, %v1970_v31 }
 0x13e   :  { %1497 = vst [vmem:[%s2297_s3 + $0xf0] sm:$0xff] %v1461_v21  }
 0x13f   :  { %v1090_v29 = vadd.f32 %v1089_v24, %v1957_v23  ;;  %v1223_v15 = vadd.f32 %v1222_v19, %v1160_v18 }
 0x141   :  { %v1091_v22 = vadd.f32 %v1090_v29, %v1968_v30  ;;  %v1224_v25 = vadd.f32 %v1223_v15, %v1161_v59  ;;  %v1165_v30 = vmul.f32 %v2010_v47, %v2010_v47 }
 0x143   :  { %v1092_v23 = vadd.f32 %v1091_v22, %v1980_v34  ;;  %v1225_v27 = vadd.f32 %v1224_v25, %v1162_v11  ;;  %v2213_v40 = vpop.f32.mrf.mxu3 }
 0x145   :  { %v1226_v41 = vadd.f32 %v1225_v27, %v1163_v20  ;;  %v1093_v42 = vadd.f32 %v1092_v23, %v1998_v43 }
 0x147   :  { %v1094_v50 = vadd.f32 %v1093_v42, %v2010_v47  ;;  %v1227_v51 = vadd.f32 %v1226_v41, %v1164_v38 }
 0x149   :  { %v1095_v34 = vadd.f32 %v1094_v50, %v2028_v56  ;;  %v1228_v32 = vadd.f32 %v1227_v51, %v1165_v30 }
 0x14b   :  { %v1096_v2 = vadd.f32 %v1095_v34, %v2040_v61  ;;  %v1229_v43 = vadd.f32 %v1228_v32, %v1166_v26  ;;  %v538_v56 = vpop.f32.mrf.mxu3  ;;  %v1170_v61 = vmul.f32 %v2090_v37, %v2090_v37 }
 0x14c   :  { %v1466_v60 = vpack.c.bf16 %v538_v56, %v2213_v40 }
 0x14d   :  { %v1097_v47 = vadd.f32 %v1096_v2, %v2060_v28  ;;  %v1230_v36 = vadd.f32 %v1229_v43, %v1167_v46  ;;  %v1185_v46 = vmul.f32 %v2156_v54, %v2156_v54 }
 0x14e   :  { %1498 = vst [vmem:[%s2297_s3 + $0xf8] sm:$0xff] %v1466_v60   ;;  %v1189_v60 = vmul.f32 %v538_v56, %v538_v56 }
 0x14f   :  { %v1098_v39 = vadd.f32 %v1097_v47, %v2072_v0  ;;  %v1231_v6 = vadd.f32 %v1230_v36, %v1168_v53  ;;  %v1171_v0 = vmul.f32 %v2112_v3, %v2112_v3  ;;  %v1186_v53 = vmul.f32 %v2180_v52, %v2180_v52 }
 0x150   :  { %v1187_v36 = vmul.f32 %v2194_v62, %v2194_v62 }
 0x151   :  { %v1232_v45 = vadd.f32 %v1231_v6, %v1169_v49  ;;  %v1099_v57 = vadd.f32 %v1098_v39, %v2090_v37  ;;  %v1173_v37 = vmul.f32 %v2154_v33, %v2154_v33  ;;  %v1188_v49 = vmul.f32 %v2213_v40, %v2213_v40 }
 0x153   :  { %v1233_v28 = vadd.f32 %v1232_v45, %v1170_v61  ;;  %v1100_v7 = vadd.f32 %v1099_v57, %v2112_v3  ;;  %v1175_v3 = vmul.f32 %v1982_v35, %v1982_v35 }
 0x155   :  { %v1234_v4 = vadd.f32 %v1233_v28, %v1171_v0  ;;  %v1101_v10 = vadd.f32 %v1100_v7, %v2138_v12  ;;  %v1176_v12 = vmul.f32 %v2000_v44, %v2000_v44 }
 0x157   :  { %v1235_v8 = vadd.f32 %v1234_v4, %v1172_v13  ;;  %v1102_v14 = vadd.f32 %v1101_v10, %v2154_v33  ;;  %v1177_v33 = vmul.f32 %v2012_v48, %v2012_v48 }
 0x159   :  { %v1103_v18 = vadd.f32 %v1102_v14, %v1970_v31  ;;  %v1236_v24 = vadd.f32 %v1235_v8, %v1173_v37  ;;  %v1178_v31 = vmul.f32 %v2030_v58, %v2030_v58 }
 0x15b   :  { %v1104_v19 = vadd.f32 %v1103_v18, %v1982_v35  ;;  %v1237_v59 = vadd.f32 %v1236_v24, %v1174_v55  ;;  %v1179_v35 = vmul.f32 %v2042_v63, %v2042_v63 }
 0x15d   :  { %v1105_v29 = vadd.f32 %v1104_v19, %v2000_v44  ;;  %v1238_v15 = vadd.f32 %v1237_v59, %v1175_v3  ;;  %v1180_v44 = vmul.f32 %v2062_v9, %v2062_v9 }
 0x15f   :  { %v1106_v21 = vadd.f32 %v1105_v29, %v2012_v48  ;;  %v1239_v11 = vadd.f32 %v1238_v15, %v1176_v12  ;;  %v1181_v48 = vmul.f32 %v2074_v1, %v2074_v1 }
 0x161   :  { %v1107_v22 = vadd.f32 %v1106_v21, %v2030_v58  ;;  %v1240_v25 = vadd.f32 %v1239_v11, %v1177_v33  ;;  %v1182_v58 = vmul.f32 %v2092_v16, %v2092_v16 }
 0x163   :  { %v1108_v20 = vadd.f32 %v1107_v22, %v2042_v63  ;;  %v1241_v23 = vadd.f32 %v1240_v25, %v1178_v31  ;;  %v1183_v63 = vmul.f32 %v2114_v5, %v2114_v5 }
 0x165   :  { %v1242_v27 = vadd.f32 %v1241_v23, %v1179_v35  ;;  %v1109_v38 = vadd.f32 %v1108_v20, %v2062_v9  ;;  %v1184_v9 = vmul.f32 %v2140_v17, %v2140_v17 }
 0x167   :  { %v1110_v41 = vadd.f32 %v1109_v38, %v2074_v1  ;;  %v1243_v42 = vadd.f32 %v1242_v27, %v1180_v44 }
 0x169   :  { %v1111_v30 = vadd.f32 %v1110_v41, %v2092_v16  ;;  %v1244_v50 = vadd.f32 %v1243_v42, %v1181_v48 }
 0x16b   :  { %v1112_v51 = vadd.f32 %v1111_v30, %v2114_v5  ;;  %v1245_v26 = vadd.f32 %v1244_v50, %v1182_v58 }
 0x16d   :  { %v1113_v34 = vadd.f32 %v1112_v51, %v2140_v17  ;;  %v1246_v32 = vadd.f32 %v1245_v26, %v1183_v63 }
 0x16f   :  { %v1114_v1 = vadd.f32 %v1113_v34, %v2156_v54  ;;  %v1247_v2 = vadd.f32 %v1246_v32, %v1184_v9 }
 0x171   :  { %v1248_v16 = vadd.f32 %v1247_v2, %v1185_v46  ;;  %v1115_v43 = vadd.f32 %v1114_v1, %v2180_v52 }
 0x173   :  { %v1249_v5 = vadd.f32 %v1248_v16, %v1186_v53  ;;  %v1116_v47 = vadd.f32 %v1115_v43, %v2194_v62 }
 0x175   :  { %v1250_v17 = vadd.f32 %v1249_v5, %v1187_v36  ;;  %v1117_v39 = vadd.f32 %v1116_v47, %v2213_v40 }
 0x177   :  { %v1251_v54 = vadd.f32 %v1250_v17, %v1188_v49  ;;  %v1118_v6 = vadd.f32 %v1117_v39, %v538_v56 }
 0x179   :  { %v1119_v45 = vrot.slane %v1118_v6, 4  ;;  %v1252_v57 = vadd.f32 %v1251_v54, %v1189_v60 }
 0x17b   :  { %v1120_v61 = vadd.f32 %v1119_v45, %v1118_v6  ;;  %v1253_v28 = vrot.slane %v1252_v57, 4 }
 0x17d   :  { %v1121_v52 = vrot.slane %v1120_v61, 2  ;;  %v1254_v7 = vadd.f32 %v1253_v28, %v1252_v57 }
 0x17f   :  { %v1122_v0 = vadd.f32 %v1121_v52, %v1120_v61  ;;  %v1255_v4 = vrot.slane %v1254_v7, 2 }
 0x181   :  { %v1123_v10 = vrot.slane %v1122_v0, 1  ;;  %v1256_v13 = vadd.f32 %v1255_v4, %v1254_v7 }
 0x183   :  { %v1124_v62 = vadd.f32 %v1123_v10, %v1122_v0  ;;  %v1257_v8 = vrot.slane %v1256_v13, 1 }
 0x185   :  { %1125 = vst [vmem:[%s2298_s4] sm:$0x1] %v1124_v62  ;;  %v1258_v40 = vadd.f32 %v1257_v8, %v1256_v13 }
 0x187   :  { %1259 = vst [vmem:[%s2298_s4 + $0x1] sm:$0x1] %v1258_v40 }

// kernel: preact_bottleneck_pallas.7
= control target key start
LH: loop header
LB: loop body
LE: loop exit
PB: predicated region body
PF: predicated region fallthrough
CT: control target
= control target key end

     0   :  { %s2327_s5 = inlined_call_operand.vmem [shape: bf16[128,128], index: 5, kind: input, shape index: {}]   ;;  %s2328_s2 = inlined_call_operand.vmem [shape: bf16[128,128], index: 2, kind: input, shape index: {}]   ;;  %s2329_s4 = inlined_call_operand.vmem [shape: f32[2,128], index: 4, kind: input, shape index: {}]   ;;  %s2330_s0 = inlined_call_operand.vmem [shape: bf16[512,128], index: 0, kind: input, shape index: {}]   ;;  %s2331_s1 = inlined_call_operand.vmem [shape: f32[2,128], index: 1, kind: input, shape index: {}]   ;;  %s2332_s3 = inlined_call_operand.vmem [shape: f32[512,128], index: 3, kind: input, shape index: {}]   ;;  %s2333_s6 = inlined_call_operand.vmem [shape: f32[512,128], index: 6, kind: output, shape index: {}]  }
   0x1   :  { %v1284_v0 = vld [vmem:[%s2327_s5 + $0x38] sm:$0xff]  ;;  %v1283_v2 = vld [vmem:[%s2327_s5 + $0x30] sm:$0xff]  ;;  %v1282_v4 = vld [vmem:[%s2327_s5 + $0x28] sm:$0xff] }
   0x2   :  { %v1276_v1 = vld [vmem:[%s2328_s2 + $0x38] sm:$0xff]  ;;  %751 = vmatpush.bf16.msra.mxu0 %v1284_v0  ;;  %1444 = vmatpush.bf16.msra.mxu2 %v1284_v0  ;;  %v1275_v3 = vld [vmem:[%s2328_s2 + $0x30] sm:$0xff]  ;;  %v1274_v5 = vld [vmem:[%s2328_s2 + $0x28] sm:$0xff] }
   0x3   :  { %968 = vmatpush.bf16.msra.mxu1 %v1276_v1  ;;  %1452 = vmatpush.bf16.msra.mxu3 %v1276_v1  ;;  %v1281_v6 = vld [vmem:[%s2327_s5 + $0x20] sm:$0xff]  ;;  %v396_v12 = vld [vmem:[%s2332_s3 + $0x8] sm:$0xff]  ;;  %v1280_v16 = vld [vmem:[%s2327_s5 + $0x18] sm:$0xff] }
   0x4   :  { %v1286_v7 = vld [vmem:[%s2330_s0] sm:$0xff]   ;;  %v428_v18 = vld [vmem:[%s2332_s3 + $0x108] sm:$0xff]  ;;  %v1272_v21 = vld [vmem:[%s2328_s2 + $0x18] sm:$0xff] }
   0x5   :  { %v1273_v8 = vld [vmem:[%s2328_s2 + $0x20] sm:$0xff]  ;;  %v1287_v13 = vunpack.c.l.bf16 %v1286_v7  ;;  %v1288_v14 = vunpack.c.h.bf16 %v1286_v7  ;;  %v1279_v30 = vld [vmem:[%s2327_s5 + $0x10] sm:$0xff]  ;;  %v1278_v40 = vld [vmem:[%s2327_s5 + $0x8] sm:$0xff] }
   0x6   :  { %752 = vmatpush.bf16.msra.mxu0 %v1283_v2  ;;  %1445 = vmatpush.bf16.msra.mxu2 %v1283_v2  ;;  %v1428_v9 = vld [vmem:[%s2330_s0 + $0x80] sm:$0xff]   ;;  %v1271_v33 = vld [vmem:[%s2328_s2 + $0x10] sm:$0xff]  ;;  %v1270_v43 = vld [vmem:[%s2328_s2 + $0x8] sm:$0xff] }
   0x7   :  { %969 = vmatpush.bf16.msra.mxu1 %v1275_v3  ;;  %1453 = vmatpush.bf16.msra.mxu3 %v1275_v3  ;;  %v1536_v10 = vld [vmem:[%s2329_s4] ss:$0 sm:$0xff]  ;;  %v1351_v19 = vunpack.c.l.bf16 %v1428_v9  ;;  %v1352_v20 = vunpack.c.h.bf16 %v1428_v9  ;;  %v1566_v24 = vld [vmem:[%s2329_s4 + $0x1] ss:$0 sm:$0xff]  ;;  %v1413_v53 = vld [vmem:[%s2330_s0 + $0x8] sm:$0xff]  }
   0x8   :  { %v395_v11 = vld [vmem:[%s2332_s3] sm:$0xff]  ;;  %v462_v23 = vmul.f32 %v1536_v10, %v396_v12  ;;  %v494_v26 = vmul.f32 %v1536_v10, %v428_v18  ;;  %v1429_v55 = vld [vmem:[%s2330_s0 + $0x88] sm:$0xff]   ;;  %v397_v59 = vld [vmem:[%s2332_s3 + $0x10] sm:$0xff]  ;;  %v1291_v61 = vunpack.c.l.bf16 %v1413_v53  ;;  %v1292_v1 = vunpack.c.h.bf16 %v1413_v53 }
   0x9   :  { %v1547_v15 = vld [vmem:[%s2331_s1] ss:$0 sm:$0xff]  ;;  %v461_v22 = vmul.f32 %v1536_v10, %v395_v11  ;;  %v1575_v29 = vld [vmem:[%s2331_s1 + $0x1] ss:$0 sm:$0xff]  ;;  %v398_v60 = vld [vmem:[%s2332_s3 + $0x18] sm:$0xff]  ;;  %v1355_v2 = vunpack.c.l.bf16 %v1429_v55  ;;  %v1356_v3 = vunpack.c.h.bf16 %v1429_v55 }
   0xa   :  { %753 = vmatpush.bf16.msra.mxu0 %v1282_v4  ;;  %1446 = vmatpush.bf16.msra.mxu2 %v1282_v4  ;;  %v427_v17 = vld [vmem:[%s2332_s3 + $0x100] sm:$0xff]  ;;  %v153_v27 = vmul.f32 %v1547_v15, %v1287_v13  ;;  %v154_v28 = vmul.f32 %v1547_v15, %v1288_v14  ;;  %v185_v31 = vmul.f32 %v1547_v15, %v1351_v19  ;;  %v429_v63 = vld [vmem:[%s2332_s3 + $0x110] sm:$0xff]  ;;  %v430_v0 = vld [vmem:[%s2332_s3 + $0x118] sm:$0xff] }
   0xb   :  { %970 = vmatpush.bf16.msra.mxu1 %v1274_v5  ;;  %1454 = vmatpush.bf16.msra.mxu3 %v1274_v5  ;;  %v493_v25 = vmul.f32 %v1536_v10, %v427_v17  ;;  %v186_v32 = vmul.f32 %v1547_v15, %v1352_v20  ;;  %v527_v34 = vadd.f32 %v1566_v24, %v461_v22  ;;  %v1277_v50 = vld [vmem:[%s2327_s5] sm:$0xff] }
   0xc   :  { %v528_v35 = vadd.f32 %v1566_v24, %v462_v23  ;;  %v560_v37 = vadd.f32 %v1566_v24, %v494_v26  ;;  %v219_v38 = vadd.f32 %v1575_v29, %v153_v27  ;;  %v220_v39 = vadd.f32 %v1575_v29, %v154_v28  ;;  %v1269_v54 = vld [vmem:[%s2328_s2] sm:$0xff] }
   0xd   :  { %v559_v36 = vadd.f32 %v1566_v24, %v493_v25  ;;  %v251_v41 = vadd.f32 %v1575_v29, %v185_v31  ;;  %v252_v42 = vadd.f32 %v1575_v29, %v186_v32  ;;  %v591_v44 = vmax.f32 %v527_v34, 0.0  ;;  %v1414_v32 = vld [vmem:[%s2330_s0 + $0x10] sm:$0xff]  }
   0xe   :  { %754 = vmatpush.bf16.msra.mxu0 %v1281_v6  ;;  %1447 = vmatpush.bf16.msra.mxu2 %v1281_v6  ;;  %v592_v45 = vmax.f32 %v528_v35, 0.0  ;;  %v624_v47 = vmax.f32 %v560_v37, 0.0  ;;  %v283_v48 = vmax.f32 %v219_v38, 0.0  ;;  %v284_v49 = vmax.f32 %v220_v39, 0.0  ;;  %v400_v37 = vld [vmem:[%s2332_s3 + $0x28] sm:$0xff]  ;;  %v431_v38 = vld [vmem:[%s2332_s3 + $0x120] sm:$0xff] }
   0xf   :  { %971 = vmatpush.bf16.msra.mxu1 %v1273_v8  ;;  %1455 = vmatpush.bf16.msra.mxu3 %v1273_v8  ;;  %v623_v46 = vmax.f32 %v559_v36, 0.0  ;;  %v315_v51 = vmax.f32 %v251_v41, 0.0  ;;  %v316_v52 = vmax.f32 %v252_v42, 0.0  ;;  %v463_v4 = vmul.f32 %v1536_v10, %v397_v59  ;;  %v399_v36 = vld [vmem:[%s2332_s3 + $0x20] sm:$0xff] }
  0x10   :  { %v655_v56 = vpack.c.bf16 %v592_v45, %v591_v44  ;;  %v347_v58 = vpack.c.bf16 %v284_v49, %v283_v48  ;;  %v464_v5 = vmul.f32 %v1536_v10, %v398_v60  ;;  %v495_v6 = vmul.f32 %v1536_v10, %v429_v63 }
  0x11   :  { %v671_v57 = vpack.c.bf16 %v624_v47, %v623_v46  ;;  %v363_v62 = vpack.c.bf16 %v316_v52, %v315_v51  ;;  %v496_v7 = vmul.f32 %v1536_v10, %v430_v0  ;;  %v155_v8 = vmul.f32 %v1547_v15, %v1291_v61 }
  0x12   :  { %755 = vmatpush.bf16.msra.mxu0 %v1280_v16  ;;  %1448 = vmatpush.bf16.msra.mxu2 %v1280_v16  ;;  %v156_v9 = vmul.f32 %v1547_v15, %v1292_v1  ;;  %v187_v11 = vmul.f32 %v1547_v15, %v1355_v2  ;;  %v188_v12 = vmul.f32 %v1547_v15, %v1356_v3  ;;  %v1295_v39 = vunpack.c.l.bf16 %v1414_v32 }
  0x13   :  { %972 = vmatpush.bf16.msra.mxu1 %v1272_v21  ;;  %1456 = vmatpush.bf16.msra.mxu3 %v1272_v21  ;;  %v529_v13 = vadd.f32 %v1566_v24, %v463_v4  ;;  %v530_v14 = vadd.f32 %v1566_v24, %v464_v5  ;;  %v561_v16 = vadd.f32 %v1566_v24, %v495_v6  ;;  %v1415_v6 = vld [vmem:[%s2330_s0 + $0x18] sm:$0xff]  }
  0x14   :  { %v562_v17 = vadd.f32 %v1566_v24, %v496_v7  ;;  %v221_v18 = vadd.f32 %v1575_v29, %v155_v8  ;;  %v222_v19 = vadd.f32 %v1575_v29, %v156_v9  ;;  %v253_v20 = vadd.f32 %v1575_v29, %v187_v11  ;;  %v1431_v7 = vld [vmem:[%s2330_s0 + $0x98] sm:$0xff]  }
  0x15   :  { %v254_v21 = vadd.f32 %v1575_v29, %v188_v12  ;;  %v593_v22 = vmax.f32 %v529_v13, 0.0  ;;  %v594_v23 = vmax.f32 %v530_v14, 0.0  ;;  %v625_v25 = vmax.f32 %v561_v16, 0.0  ;;  %v401_v12 = vld [vmem:[%s2332_s3 + $0x30] sm:$0xff]  ;;  %v402_v13 = vld [vmem:[%s2332_s3 + $0x38] sm:$0xff] }
  0x16   :  { %756 = vmatpush.bf16.msra.mxu0 %v1279_v30  ;;  %1449 = vmatpush.bf16.msra.mxu2 %v1279_v30  ;;  %v626_v26 = vmax.f32 %v562_v17, 0.0  ;;  %v285_v27 = vmax.f32 %v221_v18, 0.0  ;;  %v286_v28 = vmax.f32 %v222_v19, 0.0  ;;  %v317_v30 = vmax.f32 %v253_v20, 0.0  ;;  %v433_v17 = vld [vmem:[%s2332_s3 + $0x130] sm:$0xff]  ;;  %v434_v18 = vld [vmem:[%s2332_s3 + $0x138] sm:$0xff] }
  0x17   :  { %973 = vmatpush.bf16.msra.mxu1 %v1271_v33  ;;  %1457 = vmatpush.bf16.msra.mxu3 %v1271_v33  ;;  %v318_v31 = vmax.f32 %v254_v21, 0.0  ;;  %v1430_v33 = vld [vmem:[%s2330_s0 + $0x90] sm:$0xff]   ;;  %v656_v34 = vpack.c.bf16 %v594_v23, %v593_v22  ;;  %v465_v46 = vmul.f32 %v1536_v10, %v399_v36  ;;  %v466_v47 = vmul.f32 %v1536_v10, %v400_v37 }
  0x18   :  { %v672_v35 = vpack.c.bf16 %v626_v26, %v625_v25  ;;  %v348_v41 = vpack.c.bf16 %v286_v28, %v285_v27  ;;  %v1359_v44 = vunpack.c.l.bf16 %v1430_v33  ;;  %v1360_v45 = vunpack.c.h.bf16 %v1430_v33 }
  0x19   :  { %v364_v42 = vpack.c.bf16 %v318_v31, %v317_v30  ;;  %v497_v48 = vmul.f32 %v1536_v10, %v431_v38  ;;  %v532_v55 = vadd.f32 %v1566_v24, %v466_v47  ;;  %v1299_v14 = vunpack.c.l.bf16 %v1415_v6 }
  0x1a   :  { %757 = vmatpush.bf16.msra.mxu0 %v1278_v40  ;;  %1450 = vmatpush.bf16.msra.mxu2 %v1278_v40  ;;  %v1296_v40 = vunpack.c.h.bf16 %v1414_v32  ;;  %v189_v52 = vmul.f32 %v1547_v15, %v1359_v44  ;;  %v190_v53 = vmul.f32 %v1547_v15, %v1360_v45  ;;  %v1300_v19 = vunpack.c.h.bf16 %v1415_v6 }
  0x1b   :  { %974 = vmatpush.bf16.msra.mxu1 %v1270_v43  ;;  %1458 = vmatpush.bf16.msra.mxu3 %v1270_v43  ;;  %v432_v43 = vld [vmem:[%s2332_s3 + $0x128] sm:$0xff]  ;;  %v596_v63 = vmax.f32 %v532_v55, 0.0  ;;  %v1363_v20 = vunpack.c.l.bf16 %v1431_v7  ;;  %v1364_v21 = vunpack.c.h.bf16 %v1431_v7  ;;  %v467_v22 = vmul.f32 %v1536_v10, %v401_v12 }
  0x1c   :  { %v498_v49 = vmul.f32 %v1536_v10, %v432_v43  ;;  %v158_v51 = vmul.f32 %v1547_v15, %v1296_v40  ;;  %v255_v60 = vadd.f32 %v1575_v29, %v189_v52  ;;  %v256_v61 = vadd.f32 %v1575_v29, %v190_v53  ;;  %v403_v52 = vld [vmem:[%s2332_s3 + $0x40] sm:$0xff]  ;;  %v404_v53 = vld [vmem:[%s2332_s3 + $0x48] sm:$0xff] }
  0x1d   :  { %v468_v23 = vmul.f32 %v1536_v10, %v402_v13  ;;  %v499_v25 = vmul.f32 %v1536_v10, %v433_v17  ;;  %v500_v26 = vmul.f32 %v1536_v10, %v434_v18  ;;  %v159_v27 = vmul.f32 %v1547_v15, %v1299_v14 }
  0x1e   :  { %758 = vmatpush.bf16.msra.mxu0 %v1277_v50  ;;  %1451 = vmatpush.bf16.msra.mxu2 %v1277_v50  ;;  %v157_v50 = vmul.f32 %v1547_v15, %v1295_v39  ;;  %v224_v59 = vadd.f32 %v1575_v29, %v158_v51  ;;  %v319_v4 = vmax.f32 %v255_v60, 0.0  ;;  %v320_v5 = vmax.f32 %v256_v61, 0.0 }
  0x1f   :  { %975 = vmatpush.bf16.msra.mxu1 %v1269_v54  ;;  %1459 = vmatpush.bf16.msra.mxu3 %v1269_v54  ;;  %v531_v54 = vadd.f32 %v1566_v24, %v465_v46  ;;  %v160_v28 = vmul.f32 %v1547_v15, %v1300_v19  ;;  %v191_v30 = vmul.f32 %v1547_v15, %v1363_v20 }
  0x20   :  { %v288_v3 = vmax.f32 %v224_v59, 0.0  ;;  %v365_v16 = vpack.c.bf16 %v320_v5, %v319_v4  ;;  %v192_v31 = vmul.f32 %v1547_v15, %v1364_v21  ;;  %v533_v32 = vadd.f32 %v1566_v24, %v467_v22  ;;  %v436_v59 = vld [vmem:[%s2332_s3 + $0x148] sm:$0xff] }
  0x21   :  { %759 = vmatmul.bf16.vlgmr.msra.gmra.mxu0 %v655_v56  ;;  %839 = vmatmul.bf16.vlgmr.msra.gmra.mxu2 %v671_v57  ;;  %v563_v56 = vadd.f32 %v1566_v24, %v497_v48  ;;  %v564_v57 = vadd.f32 %v1566_v24, %v498_v49  ;;  %v534_v33 = vadd.f32 %v1566_v24, %v468_v23  ;;  %v1416_v48 = vld [vmem:[%s2330_s0 + $0x20] sm:$0xff]  }
  0x22   :  { %976 = vmatmul.bf16.vlgmr.msra.gmra.mxu1 %v347_v58  ;;  %1056 = vmatmul.bf16.vlgmr.msra.gmra.mxu3 %v363_v62  ;;  %v223_v58 = vadd.f32 %v1575_v29, %v157_v50  ;;  %v595_v62 = vmax.f32 %v531_v54, 0.0  ;;  %v225_v36 = vadd.f32 %v1575_v29, %v159_v27  ;;  %v226_v37 = vadd.f32 %v1575_v29, %v160_v28  ;;  %v1432_v49 = vld [vmem:[%s2330_s0 + $0xa0] sm:$0xff]  }
  0x23   :  { %v627_v0 = vmax.f32 %v563_v56, 0.0  ;;  %v628_v1 = vmax.f32 %v564_v57, 0.0  ;;  %v257_v38 = vadd.f32 %v1575_v29, %v191_v30  ;;  %v258_v39 = vadd.f32 %v1575_v29, %v192_v31  ;;  %v435_v54 = vld [vmem:[%s2332_s3 + $0x140] sm:$0xff]  ;;  %v405_v31 = vld [vmem:[%s2332_s3 + $0x50] sm:$0xff] }
  0x24   :  { %v287_v2 = vmax.f32 %v223_v58, 0.0  ;;  %v657_v8 = vpack.c.bf16 %v596_v63, %v595_v62  ;;  %v597_v40 = vmax.f32 %v533_v32, 0.0  ;;  %v289_v44 = vmax.f32 %v225_v36, 0.0  ;;  %v406_v32 = vld [vmem:[%s2332_s3 + $0x58] sm:$0xff] }
  0x25   :  { %v673_v9 = vpack.c.bf16 %v628_v1, %v627_v0  ;;  %v290_v45 = vmax.f32 %v226_v37, 0.0  ;;  %v321_v46 = vmax.f32 %v257_v38, 0.0  ;;  %v322_v47 = vmax.f32 %v258_v39, 0.0  ;;  %v438_v36 = vld [vmem:[%s2332_s3 + $0x158] sm:$0xff] }
  0x26   :  { %v349_v11 = vpack.c.bf16 %v288_v3, %v287_v2  ;;  %v1303_v55 = vunpack.c.l.bf16 %v1416_v48  ;;  %v1304_v56 = vunpack.c.h.bf16 %v1416_v48  ;;  %v1367_v60 = vunpack.c.l.bf16 %v1432_v49 }
  0x27   :  { %v350_v57 = vpack.c.bf16 %v290_v45, %v289_v44  ;;  %v366_v58 = vpack.c.bf16 %v322_v47, %v321_v46  ;;  %v1368_v61 = vunpack.c.h.bf16 %v1432_v49  ;;  %v469_v62 = vmul.f32 %v1536_v10, %v403_v52 }
  0x28   :  { %v470_v63 = vmul.f32 %v1536_v10, %v404_v53  ;;  %v501_v0 = vmul.f32 %v1536_v10, %v435_v54  ;;  %v502_v1 = vmul.f32 %v1536_v10, %v436_v59  ;;  %v161_v2 = vmul.f32 %v1547_v15, %v1303_v55 }
  0x29   :  { %v162_v3 = vmul.f32 %v1547_v15, %v1304_v56  ;;  %v193_v4 = vmul.f32 %v1547_v15, %v1367_v60  ;;  %v194_v5 = vmul.f32 %v1547_v15, %v1368_v61  ;;  %v535_v6 = vadd.f32 %v1566_v24, %v469_v62 }
  0x2a   :  { %v536_v7 = vadd.f32 %v1566_v24, %v470_v63 }
  0x2b   :  { %v228_v12 = vadd.f32 %v1575_v29, %v162_v3  ;;  %v259_v13 = vadd.f32 %v1575_v29, %v193_v4  ;;  %v260_v14 = vadd.f32 %v1575_v29, %v194_v5  ;;  %v407_v4 = vld [vmem:[%s2332_s3 + $0x60] sm:$0xff]  ;;  %v408_v5 = vld [vmem:[%s2332_s3 + $0x68] sm:$0xff] }
  0x2c   :  { %v600_v17 = vmax.f32 %v536_v7, 0.0 }
  0x2d   :  { %v292_v21 = vmax.f32 %v228_v12, 0.0  ;;  %v323_v22 = vmax.f32 %v259_v13, 0.0  ;;  %v324_v23 = vmax.f32 %v260_v14, 0.0  ;;  %v440_v12 = vld [vmem:[%s2332_s3 + $0x168] sm:$0xff] }
  0x31   :  { %764 = vmatmul.bf16.gmra.mxu0 %v656_v34  ;;  %844 = vmatmul.bf16.gmra.mxu2 %v672_v35  ;;  %v565_v34 = vadd.f32 %v1566_v24, %v499_v25  ;;  %v566_v35 = vadd.f32 %v1566_v24, %v500_v26  ;;  %v1417_v25 = vld [vmem:[%s2330_s0 + $0x28] sm:$0xff]  }
  0x32   :  { %981 = vmatmul.bf16.gmra.mxu1 %v348_v41  ;;  %1061 = vmatmul.bf16.gmra.mxu3 %v364_v42  ;;  %v598_v41 = vmax.f32 %v534_v33, 0.0  ;;  %v1433_v26 = vld [vmem:[%s2330_s0 + $0xa8] sm:$0xff]   ;;  %v1307_v33 = vunpack.c.l.bf16 %v1417_v25  ;;  %v1308_v37 = vunpack.c.h.bf16 %v1417_v25 }
  0x33   :  { %v629_v42 = vmax.f32 %v565_v34, 0.0  ;;  %v630_v43 = vmax.f32 %v566_v35, 0.0  ;;  %v367_v34 = vpack.c.bf16 %v324_v23, %v323_v22  ;;  %v437_v35 = vld [vmem:[%s2332_s3 + $0x150] sm:$0xff]  ;;  %v1371_v38 = vunpack.c.l.bf16 %v1433_v26 }
  0x34   :  { %v658_v50 = vpack.c.bf16 %v598_v41, %v597_v40  ;;  %v1372_v39 = vunpack.c.h.bf16 %v1433_v26  ;;  %v471_v40 = vmul.f32 %v1536_v10, %v405_v31  ;;  %v472_v41 = vmul.f32 %v1536_v10, %v406_v32 }
  0x35   :  { %v674_v51 = vpack.c.bf16 %v630_v43, %v629_v42  ;;  %v503_v42 = vmul.f32 %v1536_v10, %v437_v35  ;;  %v504_v43 = vmul.f32 %v1536_v10, %v438_v36  ;;  %v163_v44 = vmul.f32 %v1547_v15, %v1307_v33 }
  0x36   :  { %v164_v45 = vmul.f32 %v1547_v15, %v1308_v37  ;;  %v195_v46 = vmul.f32 %v1547_v15, %v1371_v38  ;;  %v196_v47 = vmul.f32 %v1547_v15, %v1372_v39  ;;  %v537_v48 = vadd.f32 %v1566_v24, %v471_v40 }
  0x37   :  { %v538_v49 = vadd.f32 %v1566_v24, %v472_v41  ;;  %v229_v52 = vadd.f32 %v1575_v29, %v163_v44 }
  0x38   :  { %v230_v53 = vadd.f32 %v1575_v29, %v164_v45  ;;  %v261_v54 = vadd.f32 %v1575_v29, %v195_v46  ;;  %v262_v55 = vadd.f32 %v1575_v29, %v196_v47  ;;  %v601_v56 = vmax.f32 %v537_v48, 0.0  ;;  %v409_v47 = vld [vmem:[%s2332_s3 + $0x70] sm:$0xff]  ;;  %v410_v48 = vld [vmem:[%s2332_s3 + $0x78] sm:$0xff] }
  0x39   :  { %v293_v60 = vmax.f32 %v229_v52, 0.0  ;;  %v442_v52 = vld [vmem:[%s2332_s3 + $0x178] sm:$0xff] }
  0x3a   :  { %v294_v61 = vmax.f32 %v230_v53, 0.0  ;;  %v325_v62 = vmax.f32 %v261_v54, 0.0  ;;  %v326_v63 = vmax.f32 %v262_v55, 0.0 }
  0x41   :  { %769 = vmatmul.bf16.gmra.mxu0 %v657_v8  ;;  %849 = vmatmul.bf16.gmra.mxu2 %v673_v9  ;;  %v567_v8 = vadd.f32 %v1566_v24, %v501_v0  ;;  %v568_v9 = vadd.f32 %v1566_v24, %v502_v1  ;;  %v1418_v0 = vld [vmem:[%s2330_s0 + $0x30] sm:$0xff]  }
  0x42   :  { %986 = vmatmul.bf16.gmra.mxu1 %v349_v11  ;;  %1066 = vmatmul.bf16.gmra.mxu3 %v365_v16  ;;  %v227_v11 = vadd.f32 %v1575_v29, %v161_v2  ;;  %v599_v16 = vmax.f32 %v535_v6, 0.0  ;;  %v1434_v1 = vld [vmem:[%s2330_s0 + $0xb0] sm:$0xff]   ;;  %v439_v6 = vld [vmem:[%s2332_s3 + $0x160] sm:$0xff]  ;;  %v1311_v7 = vunpack.c.l.bf16 %v1418_v0 }
  0x43   :  { %v631_v18 = vmax.f32 %v567_v8, 0.0  ;;  %v632_v19 = vmax.f32 %v568_v9, 0.0  ;;  %v1312_v8 = vunpack.c.h.bf16 %v1418_v0  ;;  %v352_v9 = vpack.c.bf16 %v294_v61, %v293_v60 }
  0x44   :  { %v291_v20 = vmax.f32 %v227_v11, 0.0  ;;  %v659_v27 = vpack.c.bf16 %v600_v17, %v599_v16  ;;  %v368_v11 = vpack.c.bf16 %v326_v63, %v325_v62  ;;  %v1375_v13 = vunpack.c.l.bf16 %v1434_v1 }
  0x45   :  { %v675_v28 = vpack.c.bf16 %v632_v19, %v631_v18  ;;  %v1376_v14 = vunpack.c.h.bf16 %v1434_v1  ;;  %v473_v16 = vmul.f32 %v1536_v10, %v407_v4  ;;  %v474_v17 = vmul.f32 %v1536_v10, %v408_v5 }
  0x46   :  { %v351_v30 = vpack.c.bf16 %v292_v21, %v291_v20  ;;  %v505_v18 = vmul.f32 %v1536_v10, %v439_v6  ;;  %v506_v19 = vmul.f32 %v1536_v10, %v440_v12  ;;  %v165_v20 = vmul.f32 %v1547_v15, %v1311_v7 }
  0x47   :  { %v166_v21 = vmul.f32 %v1547_v15, %v1312_v8  ;;  %v197_v22 = vmul.f32 %v1547_v15, %v1375_v13  ;;  %v198_v23 = vmul.f32 %v1547_v15, %v1376_v14  ;;  %v539_v25 = vadd.f32 %v1566_v24, %v473_v16 }
  0x48   :  { %v540_v26 = vadd.f32 %v1566_v24, %v474_v17 }
  0x49   :  { %v232_v31 = vadd.f32 %v1575_v29, %v166_v21  ;;  %v263_v32 = vadd.f32 %v1575_v29, %v197_v22  ;;  %v264_v33 = vadd.f32 %v1575_v29, %v198_v23  ;;  %v411_v22 = vld [vmem:[%s2332_s3 + $0x80] sm:$0xff]  ;;  %v412_v23 = vld [vmem:[%s2332_s3 + $0x88] sm:$0xff] }
  0x4a   :  { %v604_v35 = vmax.f32 %v540_v26, 0.0 }
  0x4b   :  { %v296_v39 = vmax.f32 %v232_v31, 0.0  ;;  %v327_v40 = vmax.f32 %v263_v32, 0.0  ;;  %v328_v41 = vmax.f32 %v264_v33, 0.0  ;;  %v444_v31 = vld [vmem:[%s2332_s3 + $0x188] sm:$0xff] }
  0x51   :  { %774 = vmatmul.bf16.gmra.mxu0 %v658_v50  ;;  %854 = vmatmul.bf16.gmra.mxu2 %v674_v51  ;;  %v569_v50 = vadd.f32 %v1566_v24, %v503_v42  ;;  %v570_v51 = vadd.f32 %v1566_v24, %v504_v43  ;;  %v1419_v42 = vld [vmem:[%s2330_s0 + $0x38] sm:$0xff]  }
  0x52   :  { %991 = vmatmul.bf16.gmra.mxu1 %v350_v57  ;;  %1071 = vmatmul.bf16.gmra.mxu3 %v366_v58  ;;  %v602_v57 = vmax.f32 %v538_v49, 0.0  ;;  %v1435_v43 = vld [vmem:[%s2330_s0 + $0xb8] sm:$0xff]   ;;  %v1315_v49 = vunpack.c.l.bf16 %v1419_v42  ;;  %v1316_v53 = vunpack.c.h.bf16 %v1419_v42 }
  0x53   :  { %v633_v58 = vmax.f32 %v569_v50, 0.0  ;;  %v634_v59 = vmax.f32 %v570_v51, 0.0  ;;  %v369_v50 = vpack.c.bf16 %v328_v41, %v327_v40  ;;  %v441_v51 = vld [vmem:[%s2332_s3 + $0x170] sm:$0xff]  ;;  %v1379_v54 = vunpack.c.l.bf16 %v1435_v43 }
  0x54   :  { %v660_v2 = vpack.c.bf16 %v602_v57, %v601_v56  ;;  %v1380_v55 = vunpack.c.h.bf16 %v1435_v43  ;;  %v475_v56 = vmul.f32 %v1536_v10, %v409_v47  ;;  %v476_v57 = vmul.f32 %v1536_v10, %v410_v48 }
  0x55   :  { %v676_v3 = vpack.c.bf16 %v634_v59, %v633_v58  ;;  %v507_v58 = vmul.f32 %v1536_v10, %v441_v51  ;;  %v508_v59 = vmul.f32 %v1536_v10, %v442_v52  ;;  %v167_v60 = vmul.f32 %v1547_v15, %v1315_v49 }
  0x56   :  { %v168_v61 = vmul.f32 %v1547_v15, %v1316_v53  ;;  %v199_v62 = vmul.f32 %v1547_v15, %v1379_v54  ;;  %v200_v63 = vmul.f32 %v1547_v15, %v1380_v55  ;;  %v541_v0 = vadd.f32 %v1566_v24, %v475_v56 }
  0x57   :  { %v542_v1 = vadd.f32 %v1566_v24, %v476_v57  ;;  %v233_v4 = vadd.f32 %v1575_v29, %v167_v60 }
  0x58   :  { %v234_v5 = vadd.f32 %v1575_v29, %v168_v61  ;;  %v265_v6 = vadd.f32 %v1575_v29, %v199_v62  ;;  %v266_v7 = vadd.f32 %v1575_v29, %v200_v63  ;;  %v605_v8 = vmax.f32 %v541_v0, 0.0  ;;  %v413_v63 = vld [vmem:[%s2332_s3 + $0x90] sm:$0xff]  ;;  %v414_v0 = vld [vmem:[%s2332_s3 + $0x98] sm:$0xff] }
  0x59   :  { %v297_v13 = vmax.f32 %v233_v4, 0.0  ;;  %v445_v4 = vld [vmem:[%s2332_s3 + $0x190] sm:$0xff] }
  0x5a   :  { %v298_v14 = vmax.f32 %v234_v5, 0.0  ;;  %v329_v16 = vmax.f32 %v265_v6, 0.0  ;;  %v330_v17 = vmax.f32 %v266_v7, 0.0  ;;  %v446_v5 = vld [vmem:[%s2332_s3 + $0x198] sm:$0xff] }
  0x61   :  { %779 = vmatmul.bf16.gmra.mxu0 %v659_v27  ;;  %859 = vmatmul.bf16.gmra.mxu2 %v675_v28  ;;  %v571_v27 = vadd.f32 %v1566_v24, %v505_v18  ;;  %v572_v28 = vadd.f32 %v1566_v24, %v506_v19  ;;  %v1420_v18 = vld [vmem:[%s2330_s0 + $0x40] sm:$0xff]  }
  0x62   :  { %996 = vmatmul.bf16.gmra.mxu1 %v351_v30  ;;  %1076 = vmatmul.bf16.gmra.mxu3 %v367_v34  ;;  %v231_v30 = vadd.f32 %v1575_v29, %v165_v20  ;;  %v603_v34 = vmax.f32 %v539_v25, 0.0  ;;  %v1436_v19 = vld [vmem:[%s2330_s0 + $0xc0] sm:$0xff]   ;;  %v1319_v26 = vunpack.c.l.bf16 %v1420_v18 }
  0x63   :  { %v635_v36 = vmax.f32 %v571_v27, 0.0  ;;  %v636_v37 = vmax.f32 %v572_v28, 0.0  ;;  %v443_v25 = vld [vmem:[%s2332_s3 + $0x180] sm:$0xff]  ;;  %v1320_v27 = vunpack.c.h.bf16 %v1420_v18  ;;  %v354_v28 = vpack.c.bf16 %v298_v14, %v297_v13 }
  0x64   :  { %v295_v38 = vmax.f32 %v231_v30, 0.0  ;;  %v661_v44 = vpack.c.bf16 %v604_v35, %v603_v34  ;;  %v370_v30 = vpack.c.bf16 %v330_v17, %v329_v16  ;;  %v1383_v32 = vunpack.c.l.bf16 %v1436_v19 }
  0x65   :  { %v677_v45 = vpack.c.bf16 %v636_v37, %v635_v36  ;;  %v1384_v33 = vunpack.c.h.bf16 %v1436_v19  ;;  %v477_v34 = vmul.f32 %v1536_v10, %v411_v22  ;;  %v478_v35 = vmul.f32 %v1536_v10, %v412_v23 }
  0x66   :  { %v353_v46 = vpack.c.bf16 %v296_v39, %v295_v38  ;;  %v509_v36 = vmul.f32 %v1536_v10, %v443_v25  ;;  %v510_v37 = vmul.f32 %v1536_v10, %v444_v31  ;;  %v169_v38 = vmul.f32 %v1547_v15, %v1319_v26 }
  0x67   :  { %v170_v39 = vmul.f32 %v1547_v15, %v1320_v27  ;;  %v201_v40 = vmul.f32 %v1547_v15, %v1383_v32  ;;  %v202_v41 = vmul.f32 %v1547_v15, %v1384_v33  ;;  %v543_v42 = vadd.f32 %v1566_v24, %v477_v34 }
  0x68   :  { %v544_v43 = vadd.f32 %v1566_v24, %v478_v35  ;;  %v480_v13 = vmul.f32 %v1536_v10, %v414_v0  ;;  %v511_v14 = vmul.f32 %v1536_v10, %v445_v4  ;;  %v512_v16 = vmul.f32 %v1536_v10, %v446_v5 }
  0x69   :  { %v236_v47 = vadd.f32 %v1575_v29, %v170_v39  ;;  %v267_v48 = vadd.f32 %v1575_v29, %v201_v40  ;;  %v268_v49 = vadd.f32 %v1575_v29, %v202_v41  ;;  %v1422_v41 = vld [vmem:[%s2330_s0 + $0x50] sm:$0xff]  }
  0x6a   :  { %v608_v51 = vmax.f32 %v544_v43, 0.0  ;;  %v546_v23 = vadd.f32 %v1566_v24, %v480_v13  ;;  %v577_v26 = vadd.f32 %v1566_v24, %v511_v14  ;;  %v578_v27 = vadd.f32 %v1566_v24, %v512_v16 }
  0x6b   :  { %v300_v55 = vmax.f32 %v236_v47, 0.0  ;;  %v331_v56 = vmax.f32 %v267_v48, 0.0  ;;  %v332_v57 = vmax.f32 %v268_v49, 0.0  ;;  %v415_v49 = vld [vmem:[%s2332_s3 + $0xa0] sm:$0xff] }
  0x6c   :  { %v641_v39 = vmax.f32 %v577_v26, 0.0  ;;  %v642_v40 = vmax.f32 %v578_v27, 0.0  ;;  %v481_v0 = vmul.f32 %v1536_v10, %v415_v49 }
  0x71   :  { %784 = vmatmul.bf16.gmra.mxu0 %v660_v2  ;;  %864 = vmatmul.bf16.gmra.mxu2 %v676_v3  ;;  %v573_v2 = vadd.f32 %v1566_v24, %v507_v58  ;;  %v574_v3 = vadd.f32 %v1566_v24, %v508_v59  ;;  %v1421_v58 = vld [vmem:[%s2330_s0 + $0x48] sm:$0xff]  }
  0x72   :  { %1001 = vmatmul.bf16.gmra.mxu1 %v352_v9  ;;  %1081 = vmatmul.bf16.gmra.mxu3 %v368_v11  ;;  %v606_v9 = vmax.f32 %v542_v1, 0.0  ;;  %v1437_v59 = vld [vmem:[%s2330_s0 + $0xc8] sm:$0xff]   ;;  %v1323_v1 = vunpack.c.l.bf16 %v1421_v58  ;;  %v1324_v6 = vunpack.c.h.bf16 %v1421_v58 }
  0x73   :  { %v637_v11 = vmax.f32 %v573_v2, 0.0  ;;  %v638_v12 = vmax.f32 %v574_v3, 0.0  ;;  %v371_v3 = vpack.c.bf16 %v332_v57, %v331_v56  ;;  %v1387_v7 = vunpack.c.l.bf16 %v1437_v59 }
  0x74   :  { %v662_v20 = vpack.c.bf16 %v606_v9, %v605_v8  ;;  %v1388_v8 = vunpack.c.h.bf16 %v1437_v59  ;;  %v171_v17 = vmul.f32 %v1547_v15, %v1323_v1  ;;  %v172_v18 = vmul.f32 %v1547_v15, %v1324_v6 }
  0x75   :  { %v678_v21 = vpack.c.bf16 %v638_v12, %v637_v11  ;;  %v479_v12 = vmul.f32 %v1536_v10, %v413_v63  ;;  %v203_v19 = vmul.f32 %v1547_v15, %v1387_v7  ;;  %v1328_v56 = vunpack.c.h.bf16 %v1422_v41 }
  0x76   :  { %v238_v32 = vadd.f32 %v1575_v29, %v172_v18 }
  0x77   :  { %v545_v22 = vadd.f32 %v1566_v24, %v479_v12  ;;  %v269_v33 = vadd.f32 %v1575_v29, %v203_v19  ;;  %v174_v6 = vmul.f32 %v1547_v15, %v1328_v56  ;;  %v1999_v56 = vld [vmem:[%s2331_s1] ss:$0 sm:$0xff] }
  0x78   :  { %v302_v43 = vmax.f32 %v238_v32, 0.0  ;;  %v1439_v32 = vld [vmem:[%s2330_s0 + $0xd8] sm:$0xff]  }
  0x81   :  { %789 = vmatmul.bf16.gmra.mxu0 %v661_v44  ;;  %869 = vmatmul.bf16.gmra.mxu2 %v677_v45  ;;  %v575_v44 = vadd.f32 %v1566_v24, %v509_v36  ;;  %v576_v45 = vadd.f32 %v1566_v24, %v510_v37  ;;  %v609_v37 = vmax.f32 %v545_v22, 0.0 }
  0x82   :  { %1006 = vmatmul.bf16.gmra.mxu1 %v353_v46  ;;  %1086 = vmatmul.bf16.gmra.mxu3 %v369_v50  ;;  %v235_v46 = vadd.f32 %v1575_v29, %v169_v38  ;;  %v607_v50 = vmax.f32 %v543_v42, 0.0  ;;  %v610_v38 = vmax.f32 %v546_v23, 0.0 }
  0x83   :  { %v639_v52 = vmax.f32 %v575_v44, 0.0  ;;  %v640_v53 = vmax.f32 %v576_v45, 0.0  ;;  %v333_v44 = vmax.f32 %v269_v33, 0.0 }
  0x84   :  { %v299_v54 = vmax.f32 %v235_v46, 0.0  ;;  %v663_v60 = vpack.c.bf16 %v608_v51, %v607_v50  ;;  %v1438_v46 = vld [vmem:[%s2330_s0 + $0xd0] sm:$0xff]   ;;  %v664_v48 = vpack.c.bf16 %v610_v38, %v609_v37  ;;  %v416_v50 = vld [vmem:[%s2332_s3 + $0xa8] sm:$0xff]  ;;  %v1327_v51 = vunpack.c.l.bf16 %v1422_v41 }
  0x85   :  { %v679_v61 = vpack.c.bf16 %v640_v53, %v639_v52  ;;  %v680_v53 = vpack.c.bf16 %v642_v40, %v641_v39  ;;  %v1391_v57 = vunpack.c.l.bf16 %v1438_v46  ;;  %v1392_v58 = vunpack.c.h.bf16 %v1438_v46  ;;  %v417_v39 = vld [vmem:[%s2332_s3 + $0xb0] sm:$0xff]  ;;  %v418_v40 = vld [vmem:[%s2332_s3 + $0xb8] sm:$0xff] }
  0x86   :  { %v355_v62 = vpack.c.bf16 %v300_v55, %v299_v54  ;;  %v447_v54 = vld [vmem:[%s2332_s3 + $0x1a0] sm:$0xff]  ;;  %v448_v55 = vld [vmem:[%s2332_s3 + $0x1a8] sm:$0xff]  ;;  %v482_v1 = vmul.f32 %v1536_v10, %v416_v50  ;;  %v173_v5 = vmul.f32 %v1547_v15, %v1327_v51 }
  0x87   :  { %v514_v4 = vmul.f32 %v1536_v10, %v448_v55  ;;  %v205_v7 = vmul.f32 %v1547_v15, %v1391_v57  ;;  %v1990_v51 = vld [vmem:[%s2329_s4] ss:$0 sm:$0xff] }
  0x88   :  { %v239_v13 = vadd.f32 %v1575_v29, %v173_v5 }
  0x89   :  { %v580_v16 = vadd.f32 %v1566_v24, %v514_v4  ;;  %v2020_v4 = vld [vmem:[%s2331_s1 + $0x1] ss:$0 sm:$0xff] }
  0x8a   :  { %v303_v27 = vmax.f32 %v239_v13, 0.0 }
  0x91   :  { %794 = vmatmul.bf16.gmra.mxu0 %v662_v20  ;;  %874 = vmatmul.bf16.gmra.mxu2 %v678_v21  ;;  %v204_v20 = vmul.f32 %v1547_v15, %v1388_v8  ;;  %v206_v8 = vmul.f32 %v1547_v15, %v1392_v58  ;;  %v240_v15 = vadd.f32 %v1575_v29, %v174_v6 }
  0x92   :  { %1011 = vmatmul.bf16.gmra.mxu1 %v354_v28  ;;  %1091 = vmatmul.bf16.gmra.mxu3 %v370_v30  ;;  %v237_v28 = vadd.f32 %v1575_v29, %v171_v17  ;;  %v271_v17 = vadd.f32 %v1575_v29, %v205_v7 }
  0x93   :  { %v270_v34 = vadd.f32 %v1575_v29, %v204_v20  ;;  %v272_v18 = vadd.f32 %v1575_v29, %v206_v8  ;;  %v1423_v29 = vld [vmem:[%s2330_s0 + $0x58] sm:$0xff]  }
  0x94   :  { %v301_v42 = vmax.f32 %v237_v28, 0.0  ;;  %v644_v28 = vmax.f32 %v580_v16, 0.0  ;;  %v1331_v41 = vunpack.c.l.bf16 %v1423_v29  ;;  %v1332_v46 = vunpack.c.h.bf16 %v1423_v29  ;;  %v452_v29 = vld [vmem:[%s2332_s3 + $0x1c8] sm:$0xff] }
  0x95   :  { %v334_v45 = vmax.f32 %v270_v34, 0.0 }
  0x96   :  { %v175_v57 = vmul.f32 %v1999_v56, %v1331_v41  ;;  %v176_v58 = vmul.f32 %v1999_v56, %v1332_v46 }
  0x98   :  { %v241_v5 = vadd.f32 %v2020_v4, %v175_v57  ;;  %v242_v8 = vadd.f32 %v2020_v4, %v176_v58 }
  0x9e   :  { %v760_v2 = vpop.f32.mrf.mxu0 }
  0x9f   :  { %v977_v9 = vpop.f32.mrf.mxu1 }
  0xa0   :  { %v978_v11 = vadd.f32 %v977_v9, %v760_v2  ;;  %v547_v9 = vadd.f32 %v1566_v24, %v481_v0 }
  0xa1   :  { %799 = vmatmul.bf16.gmra.mxu0 %v663_v60  ;;  %879 = vmatmul.bf16.gmra.mxu2 %v679_v61  ;;  %v356_v61 = vpack.c.bf16 %v302_v43, %v301_v42 }
  0xa2   :  { %1137 = vst [vmem:[%s2333_s6] sm:$0xff] %v978_v11  ;;  %1016 = vmatmul.bf16.gmra.mxu1 %v355_v62  ;;  %1096 = vmatmul.bf16.gmra.mxu3 %v371_v3  ;;  %v372_v62 = vpack.c.bf16 %v334_v45, %v333_v44  ;;  %v513_v3 = vmul.f32 %v1536_v10, %v447_v54  ;;  %v611_v22 = vmax.f32 %v547_v9, 0.0  ;;  %v449_v44 = vld [vmem:[%s2332_s3 + $0x1b0] sm:$0xff]  ;;  %v450_v45 = vld [vmem:[%s2332_s3 + $0x1b8] sm:$0xff] }
  0xa3   :  { %v548_v10 = vadd.f32 %v1566_v24, %v482_v1  ;;  %v515_v54 = vmul.f32 %v1990_v51, %v449_v44  ;;  %v516_v55 = vmul.f32 %v1990_v51, %v450_v45  ;;  %v518_v44 = vmul.f32 %v1990_v51, %v452_v29 }
  0xa4   :  { %v840_v21 = vpop.f32.mrf.mxu2  ;;  %v579_v12 = vadd.f32 %v1566_v24, %v513_v3  ;;  %v304_v24 = vmax.f32 %v240_v15, 0.0 }
  0xa5   :  { %v1057_v25 = vpop.f32.mrf.mxu3 }
  0xa6   :  { %v1058_v30 = vadd.f32 %v1057_v25, %v840_v21  ;;  %v762_v31 = vpop.f32.mrf.mxu0  ;;  %v612_v25 = vmax.f32 %v548_v10, 0.0  ;;  %v643_v26 = vmax.f32 %v579_v12, 0.0  ;;  %v357_v37 = vpack.c.bf16 %v304_v24, %v303_v27  ;;  %v420_v27 = vld [vmem:[%s2332_s3 + $0xc8] sm:$0xff] }
  0xa7   :  { %v979_v35 = vpop.f32.mrf.mxu1  ;;  %v486_v41 = vmul.f32 %v1990_v51, %v420_v27 }
  0xa8   :  { %1169 = vst [vmem:[%s2333_s6 + $0x100] sm:$0xff] %v1058_v30  ;;  %v980_v36 = vadd.f32 %v979_v35, %v762_v31  ;;  %v335_v30 = vmax.f32 %v271_v17, 0.0  ;;  %v336_v31 = vmax.f32 %v272_v18, 0.0  ;;  %v665_v34 = vpack.c.bf16 %v612_v25, %v611_v22  ;;  %v1424_v17 = vld [vmem:[%s2330_s0 + $0x60] sm:$0xff]  }
  0xa9   :  { %v305_v18 = vmax.f32 %v241_v5, 0.0  ;;  %v1440_v22 = vld [vmem:[%s2330_s0 + $0xe0] sm:$0xff]  }
  0xaa   :  { %1138 = vst [vmem:[%s2333_s6 + $0x8] sm:$0xff] %v980_v36  ;;  %v681_v36 = vpack.c.bf16 %v644_v28, %v643_v26  ;;  %v373_v38 = vpack.c.bf16 %v336_v31, %v335_v30  ;;  %v419_v26 = vld [vmem:[%s2332_s3 + $0xc0] sm:$0xff]  ;;  %v1335_v28 = vunpack.c.l.bf16 %v1424_v17 }
  0xab   :  { %v451_v31 = vld [vmem:[%s2332_s3 + $0x1c0] sm:$0xff] }
  0xac   :  { %v842_v47 = vpop.f32.mrf.mxu2  ;;  %v177_v45 = vmul.f32 %v1999_v56, %v1335_v28 }
  0xad   :  { %v1059_v52 = vpop.f32.mrf.mxu3 }
  0xae   :  { %v1060_v59 = vadd.f32 %v1059_v52, %v842_v47  ;;  %v765_v60 = vpop.f32.mrf.mxu0  ;;  %v1395_v47 = vunpack.c.l.bf16 %v1439_v32  ;;  %v483_v52 = vmul.f32 %v1990_v51, %v417_v39  ;;  %v243_v57 = vadd.f32 %v2020_v4, %v177_v45 }
  0xaf   :  { %v982_v63 = vpop.f32.mrf.mxu1 }
  0xb0   :  { %1170 = vst [vmem:[%s2333_s6 + $0x108] sm:$0xff] %v1060_v59  ;;  %v983_v2 = vadd.f32 %v982_v63, %v765_v60  ;;  %v207_v59 = vmul.f32 %v1999_v56, %v1395_v47 }
  0xb1   :  { %804 = vmatmul.bf16.gmra.mxu0 %v664_v48  ;;  %884 = vmatmul.bf16.gmra.mxu2 %v680_v53  ;;  %v1396_v48 = vunpack.c.h.bf16 %v1439_v32  ;;  %v484_v53 = vmul.f32 %v1990_v51, %v418_v40  ;;  %v1336_v32 = vunpack.c.h.bf16 %v1424_v17  ;;  %v485_v40 = vmul.f32 %v1990_v51, %v419_v26  ;;  %v454_v26 = vld [vmem:[%s2332_s3 + $0x1d8] sm:$0xff] }
  0xb2   :  { %1139 = vst [vmem:[%s2333_s6 + $0x10] sm:$0xff] %v983_v2  ;;  %1021 = vmatmul.bf16.gmra.mxu1 %v356_v61  ;;  %1101 = vmatmul.bf16.gmra.mxu3 %v372_v62  ;;  %v2011_v62 = vld [vmem:[%s2329_s4 + $0x1] ss:$0 sm:$0xff]  ;;  %v273_v9 = vadd.f32 %v2020_v4, %v207_v59 }
  0xb3   :  { %v208_v60 = vmul.f32 %v1999_v56, %v1396_v48  ;;  %v549_v63 = vadd.f32 %v2011_v62, %v483_v52  ;;  %v550_v0 = vadd.f32 %v2011_v62, %v484_v53  ;;  %v581_v2 = vadd.f32 %v2011_v62, %v515_v54 }
  0xb4   :  { %v845_v11 = vpop.f32.mrf.mxu2  ;;  %v582_v3 = vadd.f32 %v2011_v62, %v516_v55  ;;  %v178_v46 = vmul.f32 %v1999_v56, %v1336_v32  ;;  %v552_v52 = vadd.f32 %v2011_v62, %v486_v41  ;;  %v584_v54 = vadd.f32 %v2011_v62, %v518_v44 }
  0xb5   :  { %v1062_v14 = vpop.f32.mrf.mxu3  ;;  %v613_v13 = vmax.f32 %v549_v63, 0.0  ;;  %v645_v16 = vmax.f32 %v581_v2, 0.0 }
  0xb6   :  { %v1063_v19 = vadd.f32 %v1062_v14, %v845_v11  ;;  %v767_v20 = vpop.f32.mrf.mxu0  ;;  %v274_v11 = vadd.f32 %v2020_v4, %v208_v60  ;;  %v614_v14 = vmax.f32 %v550_v0, 0.0  ;;  %v646_v15 = vmax.f32 %v582_v3, 0.0 }
  0xb7   :  { %v984_v21 = vpop.f32.mrf.mxu1  ;;  %v244_v58 = vadd.f32 %v2020_v4, %v178_v46  ;;  %v616_v3 = vmax.f32 %v552_v52, 0.0 }
  0xb8   :  { %1171 = vst [vmem:[%s2333_s6 + $0x110] sm:$0xff] %v1063_v19  ;;  %v985_v23 = vadd.f32 %v984_v21, %v767_v20  ;;  %v306_v19 = vmax.f32 %v242_v8, 0.0  ;;  %v337_v20 = vmax.f32 %v273_v9, 0.0  ;;  %v338_v21 = vmax.f32 %v274_v11, 0.0 }
  0xb9   :  { %v666_v25 = vpack.c.bf16 %v614_v14, %v613_v13  ;;  %v682_v30 = vpack.c.bf16 %v646_v15, %v645_v16  ;;  %v308_v8 = vmax.f32 %v244_v58, 0.0 }
  0xba   :  { %1140 = vst [vmem:[%s2333_s6 + $0x18] sm:$0xff] %v985_v23 }
  0xbc   :  { %v847_v33 = vpop.f32.mrf.mxu2 }
  0xbd   :  { %v1064_v35 = vpop.f32.mrf.mxu3 }
  0xbe   :  { %v1065_v42 = vadd.f32 %v1064_v35, %v847_v33  ;;  %v770_v43 = vpop.f32.mrf.mxu0  ;;  %v1399_v33 = vunpack.c.l.bf16 %v1440_v22 }
  0xbf   :  { %v987_v49 = vpop.f32.mrf.mxu1 }
  0xc0   :  { %1172 = vst [vmem:[%s2333_s6 + $0x118] sm:$0xff] %v1065_v42  ;;  %v988_v50 = vadd.f32 %v987_v49, %v770_v43  ;;  %v517_v43 = vmul.f32 %v1990_v51, %v451_v31  ;;  %v209_v47 = vmul.f32 %v1999_v56, %v1399_v33  ;;  %v551_v49 = vadd.f32 %v2011_v62, %v485_v40 }
  0xc1   :  { %809 = vmatmul.bf16.gmra.mxu0 %v665_v34  ;;  %889 = vmatmul.bf16.gmra.mxu2 %v681_v36  ;;  %v1400_v34 = vunpack.c.h.bf16 %v1440_v22 }
  0xc2   :  { %1141 = vst [vmem:[%s2333_s6 + $0x20] sm:$0xff] %v988_v50  ;;  %1026 = vmatmul.bf16.gmra.mxu1 %v357_v37  ;;  %1106 = vmatmul.bf16.gmra.mxu3 %v373_v38  ;;  %v358_v37 = vpack.c.bf16 %v306_v19, %v305_v18  ;;  %v374_v38 = vpack.c.bf16 %v338_v21, %v337_v20  ;;  %v421_v19 = vld [vmem:[%s2332_s3 + $0xd0] sm:$0xff]  ;;  %v422_v20 = vld [vmem:[%s2332_s3 + $0xd8] sm:$0xff] }
  0xc3   :  { %v210_v48 = vmul.f32 %v1999_v56, %v1400_v34  ;;  %v583_v53 = vadd.f32 %v2011_v62, %v517_v43  ;;  %v275_v59 = vadd.f32 %v2020_v4, %v209_v47  ;;  %v487_v29 = vmul.f32 %v1990_v51, %v421_v19 }
  0xc4   :  { %v850_v61 = vpop.f32.mrf.mxu2  ;;  %v488_v32 = vmul.f32 %v1990_v51, %v422_v20  ;;  %v520_v34 = vmul.f32 %v1990_v51, %v454_v26 }
  0xc5   :  { %v1067_v1 = vpop.f32.mrf.mxu3  ;;  %v276_v60 = vadd.f32 %v2020_v4, %v210_v48  ;;  %v647_v5 = vmax.f32 %v583_v53, 0.0  ;;  %v339_v9 = vmax.f32 %v275_v59, 0.0  ;;  %v553_v40 = vadd.f32 %v2011_v62, %v487_v29  ;;  %v1426_v59 = vld [vmem:[%s2330_s0 + $0x70] sm:$0xff]  }
  0xc6   :  { %v1068_v6 = vadd.f32 %v1067_v1, %v850_v61  ;;  %v772_v7 = vpop.f32.mrf.mxu0  ;;  %v615_v1 = vmax.f32 %v551_v49, 0.0  ;;  %v554_v41 = vadd.f32 %v2011_v62, %v488_v32  ;;  %v586_v44 = vadd.f32 %v2011_v62, %v520_v34 }
  0xc7   :  { %v989_v10 = vpop.f32.mrf.mxu1  ;;  %v340_v11 = vmax.f32 %v276_v60, 0.0 }
  0xc8   :  { %1173 = vst [vmem:[%s2333_s6 + $0x120] sm:$0xff] %v1068_v6  ;;  %v990_v12 = vadd.f32 %v989_v10, %v772_v7  ;;  %v648_v6 = vmax.f32 %v584_v54, 0.0  ;;  %v307_v7 = vmax.f32 %v243_v57, 0.0  ;;  %v1425_v10 = vld [vmem:[%s2330_s0 + $0x68] sm:$0xff]   ;;  %v667_v14 = vpack.c.bf16 %v616_v3, %v615_v1  ;;  %v1442_v1 = vld [vmem:[%s2330_s0 + $0xf0] sm:$0xff]  }
  0xc9   :  { %v375_v18 = vpack.c.bf16 %v340_v11, %v339_v9  ;;  %v1339_v21 = vunpack.c.l.bf16 %v1425_v10  ;;  %v1340_v27 = vunpack.c.h.bf16 %v1425_v10  ;;  %v617_v54 = vmax.f32 %v553_v40, 0.0  ;;  %v455_v11 = vld [vmem:[%s2332_s3 + $0x1e0] sm:$0xff]  ;;  %v456_v10 = vld [vmem:[%s2332_s3 + $0x1e8] sm:$0xff] }
  0xca   :  { %1142 = vst [vmem:[%s2333_s6 + $0x28] sm:$0xff] %v990_v12  ;;  %v1441_v12 = vld [vmem:[%s2330_s0 + $0xe8] sm:$0xff]   ;;  %v683_v15 = vpack.c.bf16 %v648_v6, %v647_v5  ;;  %v359_v17 = vpack.c.bf16 %v308_v8, %v307_v7  ;;  %v650_v58 = vmax.f32 %v586_v44, 0.0  ;;  %v423_v5 = vld [vmem:[%s2332_s3 + $0xe0] sm:$0xff]  ;;  %v1343_v7 = vunpack.c.l.bf16 %v1426_v59 }
  0xcb   :  { %v1403_v28 = vunpack.c.l.bf16 %v1441_v12  ;;  %v424_v6 = vld [vmem:[%s2332_s3 + $0xe8] sm:$0xff]  ;;  %v489_v20 = vmul.f32 %v1990_v51, %v423_v5  ;;  %v458_v5 = vld [vmem:[%s2332_s3 + $0x1f8] sm:$0xff] }
  0xcc   :  { %v852_v23 = vpop.f32.mrf.mxu2  ;;  %v181_v26 = vmul.f32 %v1999_v56, %v1343_v7 }
  0xcd   :  { %v1069_v24 = vpop.f32.mrf.mxu3 }
  0xce   :  { %v1070_v35 = vadd.f32 %v1069_v24, %v852_v23  ;;  %v775_v36 = vpop.f32.mrf.mxu0  ;;  %v1404_v24 = vunpack.c.h.bf16 %v1441_v12  ;;  %v1344_v12 = vunpack.c.h.bf16 %v1426_v59 }
  0xcf   :  { %v992_v39 = vpop.f32.mrf.mxu1 }
  0xd0   :  { %1174 = vst [vmem:[%s2333_s6 + $0x128] sm:$0xff] %v1070_v35  ;;  %v993_v42 = vadd.f32 %v992_v39, %v775_v36  ;;  %v179_v35 = vmul.f32 %v1999_v56, %v1339_v21  ;;  %v180_v36 = vmul.f32 %v1999_v56, %v1340_v27  ;;  %v490_v21 = vmul.f32 %v1990_v51, %v424_v6 }
  0xd1   :  { %814 = vmatmul.bf16.gmra.mxu0 %v666_v25  ;;  %894 = vmatmul.bf16.gmra.mxu2 %v682_v30  ;;  %v453_v25 = vld [vmem:[%s2332_s3 + $0x1d0] sm:$0xff]  ;;  %v182_v27 = vmul.f32 %v1999_v56, %v1344_v12 }
  0xd2   :  { %1143 = vst [vmem:[%s2333_s6 + $0x30] sm:$0xff] %v993_v42  ;;  %1031 = vmatmul.bf16.gmra.mxu1 %v358_v37  ;;  %1111 = vmatmul.bf16.gmra.mxu3 %v374_v38  ;;  %v519_v33 = vmul.f32 %v1990_v51, %v453_v25  ;;  %v211_v37 = vmul.f32 %v1999_v56, %v1403_v28 }
  0xd3   :  { %v212_v38 = vmul.f32 %v1999_v56, %v1404_v24  ;;  %v245_v45 = vadd.f32 %v2020_v4, %v179_v35  ;;  %v246_v48 = vadd.f32 %v2020_v4, %v180_v36  ;;  %v522_v25 = vmul.f32 %v1990_v51, %v456_v10 }
  0xd4   :  { %v855_v50 = vpop.f32.mrf.mxu2  ;;  %v585_v43 = vadd.f32 %v2011_v62, %v519_v33  ;;  %v277_v49 = vadd.f32 %v2020_v4, %v211_v37  ;;  %v556_v29 = vadd.f32 %v2011_v62, %v490_v21  ;;  %v247_v35 = vadd.f32 %v2020_v4, %v181_v26 }
  0xd5   :  { %v1072_v55 = vpop.f32.mrf.mxu3  ;;  %v309_v60 = vmax.f32 %v245_v45, 0.0  ;;  %v588_v33 = vadd.f32 %v2011_v62, %v522_v25  ;;  %v248_v36 = vadd.f32 %v2020_v4, %v182_v27 }
  0xd6   :  { %v1073_v61 = vadd.f32 %v1072_v55, %v855_v50  ;;  %v777_v63 = vpop.f32.mrf.mxu0  ;;  %v278_v50 = vadd.f32 %v2020_v4, %v212_v38  ;;  %v618_v55 = vmax.f32 %v554_v41, 0.0  ;;  %v649_v57 = vmax.f32 %v585_v43, 0.0 }
  0xd7   :  { %v994_v0 = vpop.f32.mrf.mxu1  ;;  %v620_v44 = vmax.f32 %v556_v29, 0.0 }
  0xd8   :  { %1175 = vst [vmem:[%s2333_s6 + $0x130] sm:$0xff] %v1073_v61  ;;  %v995_v2 = vadd.f32 %v994_v0, %v777_v63  ;;  %v310_v61 = vmax.f32 %v246_v48, 0.0  ;;  %v341_v63 = vmax.f32 %v277_v49, 0.0  ;;  %v342_v0 = vmax.f32 %v278_v50, 0.0 }
  0xd9   :  { %v668_v3 = vpack.c.bf16 %v618_v55, %v617_v54  ;;  %v684_v9 = vpack.c.bf16 %v650_v58, %v649_v57  ;;  %v312_v48 = vmax.f32 %v248_v36, 0.0 }
  0xda   :  { %1144 = vst [vmem:[%s2333_s6 + $0x38] sm:$0xff] %v995_v2 }
  0xdc   :  { %v857_v13 = vpop.f32.mrf.mxu2 }
  0xdd   :  { %v1074_v16 = vpop.f32.mrf.mxu3 }
  0xde   :  { %v1075_v22 = vadd.f32 %v1074_v16, %v857_v13  ;;  %v780_v23 = vpop.f32.mrf.mxu0  ;;  %v1407_v13 = vunpack.c.l.bf16 %v1442_v1 }
  0xdf   :  { %v997_v30 = vpop.f32.mrf.mxu1 }
  0xe0   :  { %1176 = vst [vmem:[%s2333_s6 + $0x138] sm:$0xff] %v1075_v22  ;;  %v998_v31 = vadd.f32 %v997_v30, %v780_v23  ;;  %v521_v23 = vmul.f32 %v1990_v51, %v455_v11  ;;  %v213_v28 = vmul.f32 %v1999_v56, %v1407_v13  ;;  %v555_v30 = vadd.f32 %v2011_v62, %v489_v20 }
  0xe1   :  { %819 = vmatmul.bf16.gmra.mxu0 %v667_v14  ;;  %899 = vmatmul.bf16.gmra.mxu2 %v683_v15  ;;  %v1408_v14 = vunpack.c.h.bf16 %v1442_v1 }
  0xe2   :  { %1145 = vst [vmem:[%s2333_s6 + $0x40] sm:$0xff] %v998_v31  ;;  %1036 = vmatmul.bf16.gmra.mxu1 %v359_v17  ;;  %1116 = vmatmul.bf16.gmra.mxu3 %v375_v18  ;;  %v360_v17 = vpack.c.bf16 %v310_v61, %v309_v60  ;;  %v376_v18 = vpack.c.bf16 %v342_v0, %v341_v63  ;;  %v425_v61 = vld [vmem:[%s2332_s3 + $0xf0] sm:$0xff]  ;;  %v426_v63 = vld [vmem:[%s2332_s3 + $0xf8] sm:$0xff] }
  0xe3   :  { %v214_v24 = vmul.f32 %v1999_v56, %v1408_v14  ;;  %v587_v32 = vadd.f32 %v2011_v62, %v521_v23  ;;  %v279_v37 = vadd.f32 %v2020_v4, %v213_v28  ;;  %v491_v10 = vmul.f32 %v1990_v51, %v425_v61 }
  0xe4   :  { %v860_v39 = vpop.f32.mrf.mxu2  ;;  %v492_v12 = vmul.f32 %v1990_v51, %v426_v63  ;;  %v524_v14 = vmul.f32 %v1990_v51, %v458_v5 }
  0xe5   :  { %v1077_v42 = vpop.f32.mrf.mxu3  ;;  %v280_v38 = vadd.f32 %v2020_v4, %v214_v24  ;;  %v651_v45 = vmax.f32 %v587_v32, 0.0  ;;  %v343_v49 = vmax.f32 %v279_v37, 0.0  ;;  %v557_v20 = vadd.f32 %v2011_v62, %v491_v10 }
  0xe6   :  { %v1078_v46 = vadd.f32 %v1077_v42, %v860_v39  ;;  %v782_v47 = vpop.f32.mrf.mxu0  ;;  %v619_v42 = vmax.f32 %v555_v30, 0.0  ;;  %v590_v23 = vadd.f32 %v2011_v62, %v524_v14 }
  0xe7   :  { %v999_v52 = vpop.f32.mrf.mxu1  ;;  %v344_v50 = vmax.f32 %v280_v38, 0.0  ;;  %v621_v29 = vmax.f32 %v557_v20, 0.0 }
  0xe8   :  { %1177 = vst [vmem:[%s2333_s6 + $0x140] sm:$0xff] %v1078_v46  ;;  %v1000_v53 = vadd.f32 %v999_v52, %v782_v47  ;;  %v652_v46 = vmax.f32 %v588_v33, 0.0  ;;  %v311_v47 = vmax.f32 %v247_v35, 0.0  ;;  %v1427_v52 = vld [vmem:[%s2330_s0 + $0x78] sm:$0xff]   ;;  %v669_v55 = vpack.c.bf16 %v620_v44, %v619_v42 }
  0xe9   :  { %v377_v60 = vpack.c.bf16 %v344_v50, %v343_v49  ;;  %v1347_v0 = vunpack.c.l.bf16 %v1427_v52  ;;  %v1348_v6 = vunpack.c.h.bf16 %v1427_v52 }
  0xea   :  { %1146 = vst [vmem:[%s2333_s6 + $0x48] sm:$0xff] %v1000_v53  ;;  %v1443_v53 = vld [vmem:[%s2330_s0 + $0xf8] sm:$0xff]   ;;  %v685_v58 = vpack.c.bf16 %v652_v46, %v651_v45  ;;  %v361_v59 = vpack.c.bf16 %v312_v48, %v311_v47 }
  0xeb   :  { %v1411_v7 = vunpack.c.l.bf16 %v1443_v53 }
  0xec   :  { %v862_v2 = vpop.f32.mrf.mxu2 }
  0xed   :  { %v1079_v8 = vpop.f32.mrf.mxu3 }
  0xee   :  { %v1080_v16 = vadd.f32 %v1079_v8, %v862_v2  ;;  %v785_v15 = vpop.f32.mrf.mxu0  ;;  %v1412_v8 = vunpack.c.h.bf16 %v1443_v53 }
  0xef   :  { %v1002_v19 = vpop.f32.mrf.mxu1 }
  0xf0   :  { %1178 = vst [vmem:[%s2333_s6 + $0x148] sm:$0xff] %v1080_v16  ;;  %v1003_v22 = vadd.f32 %v1002_v19, %v785_v15  ;;  %v183_v16 = vmul.f32 %v1999_v56, %v1347_v0  ;;  %v184_v15 = vmul.f32 %v1999_v56, %v1348_v6 }
  0xf1   :  { %824 = vmatmul.bf16.gmra.mxu0 %v668_v3  ;;  %904 = vmatmul.bf16.gmra.mxu2 %v684_v9  ;;  %v457_v3 = vld [vmem:[%s2332_s3 + $0x1f0] sm:$0xff] }
  0xf2   :  { %1147 = vst [vmem:[%s2333_s6 + $0x50] sm:$0xff] %v1003_v22  ;;  %1041 = vmatmul.bf16.gmra.mxu1 %v360_v17  ;;  %1121 = vmatmul.bf16.gmra.mxu3 %v376_v18  ;;  %v523_v13 = vmul.f32 %v1990_v51, %v457_v3  ;;  %v215_v17 = vmul.f32 %v1999_v56, %v1411_v7 }
  0xf3   :  { %v216_v18 = vmul.f32 %v1999_v56, %v1412_v8  ;;  %v558_v51 = vadd.f32 %v2011_v62, %v492_v12  ;;  %v249_v25 = vadd.f32 %v2020_v4, %v183_v16  ;;  %v250_v28 = vadd.f32 %v2020_v4, %v184_v15 }
  0xf4   :  { %v865_v31 = vpop.f32.mrf.mxu2  ;;  %v589_v22 = vadd.f32 %v2011_v62, %v523_v13  ;;  %v281_v24 = vadd.f32 %v2020_v4, %v215_v17  ;;  %v654_v62 = vmax.f32 %v590_v23, 0.0 }
  0xf5   :  { %v1082_v34 = vpop.f32.mrf.mxu3  ;;  %v282_v56 = vadd.f32 %v2020_v4, %v216_v18  ;;  %v622_v32 = vmax.f32 %v558_v51, 0.0  ;;  %v314_v35 = vmax.f32 %v250_v28, 0.0 }
  0xf6   :  { %v1083_v39 = vadd.f32 %v1082_v34, %v865_v31  ;;  %v787_v40 = vpop.f32.mrf.mxu0  ;;  %v653_v33 = vmax.f32 %v589_v22, 0.0  ;;  %v313_v34 = vmax.f32 %v249_v25, 0.0  ;;  %v345_v36 = vmax.f32 %v281_v24, 0.0 }
  0xf7   :  { %v1004_v41 = vpop.f32.mrf.mxu1  ;;  %v346_v37 = vmax.f32 %v282_v56, 0.0 }
  0xf8   :  { %1179 = vst [vmem:[%s2333_s6 + $0x150] sm:$0xff] %v1083_v39  ;;  %v1005_v43 = vadd.f32 %v1004_v41, %v787_v40  ;;  %v670_v39 = vpack.c.bf16 %v622_v32, %v621_v29  ;;  %v686_v40 = vpack.c.bf16 %v654_v62, %v653_v33 }
  0xf9   :  { %v378_v44 = vpack.c.bf16 %v346_v37, %v345_v36 }
  0xfa   :  { %1148 = vst [vmem:[%s2333_s6 + $0x58] sm:$0xff] %v1005_v43  ;;  %v362_v43 = vpack.c.bf16 %v314_v35, %v313_v34 }
  0xfc   :  { %v867_v54 = vpop.f32.mrf.mxu2 }
  0xfd   :  { %v1084_v57 = vpop.f32.mrf.mxu3 }
  0xfe   :  { %v1085_v1 = vadd.f32 %v1084_v57, %v867_v54  ;;  %v790_v2 = vpop.f32.mrf.mxu0 }
  0xff   :  { %v1007_v9 = vpop.f32.mrf.mxu1 }
 0x100   :  { %1180 = vst [vmem:[%s2333_s6 + $0x158] sm:$0xff] %v1085_v1  ;;  %v1008_v11 = vadd.f32 %v1007_v9, %v790_v2 }
 0x101   :  { %829 = vmatmul.bf16.gmra.mxu0 %v669_v55  ;;  %909 = vmatmul.bf16.gmra.mxu2 %v685_v58 }
 0x102   :  { %1149 = vst [vmem:[%s2333_s6 + $0x60] sm:$0xff] %v1008_v11  ;;  %1046 = vmatmul.bf16.gmra.mxu1 %v361_v59  ;;  %1126 = vmatmul.bf16.gmra.mxu3 %v377_v60 }
 0x104   :  { %v870_v19 = vpop.f32.mrf.mxu2 }
 0x105   :  { %v1087_v21 = vpop.f32.mrf.mxu3 }
 0x106   :  { %v1088_v26 = vadd.f32 %v1087_v21, %v870_v19  ;;  %v792_v27 = vpop.f32.mrf.mxu0 }
 0x107   :  { %v1009_v30 = vpop.f32.mrf.mxu1 }
 0x108   :  { %1181 = vst [vmem:[%s2333_s6 + $0x160] sm:$0xff] %v1088_v26  ;;  %v1010_v31 = vadd.f32 %v1009_v30, %v792_v27 }
 0x10a   :  { %1150 = vst [vmem:[%s2333_s6 + $0x68] sm:$0xff] %v1010_v31 }
 0x10c   :  { %v872_v38 = vpop.f32.mrf.mxu2 }
 0x10d   :  { %v1089_v4 = vpop.f32.mrf.mxu3 }
 0x10e   :  { %v1090_v41 = vadd.f32 %v1089_v4, %v872_v38  ;;  %v795_v42 = vpop.f32.mrf.mxu0 }
 0x10f   :  { %v1012_v45 = vpop.f32.mrf.mxu1 }
 0x110   :  { %1182 = vst [vmem:[%s2333_s6 + $0x168] sm:$0xff] %v1090_v41  ;;  %v1013_v46 = vadd.f32 %v1012_v45, %v795_v42 }
 0x111   :  { %834 = vmatmul.bf16.gmra.mxu0 %v670_v39  ;;  %914 = vmatmul.bf16.gmra.mxu2 %v686_v40 }
 0x112   :  { %1151 = vst [vmem:[%s2333_s6 + $0x70] sm:$0xff] %v1013_v46  ;;  %1051 = vmatmul.bf16.gmra.mxu1 %v362_v43  ;;  %1131 = vmatmul.bf16.gmra.mxu3 %v378_v44 }
 0x114   :  { %v875_v47 = vpop.f32.mrf.mxu2 }
 0x115   :  { %v1092_v48 = vpop.f32.mrf.mxu3 }
 0x116   :  { %v1093_v49 = vadd.f32 %v1092_v48, %v875_v47  ;;  %v797_v50 = vpop.f32.mrf.mxu0 }
 0x117   :  { %v1014_v52 = vpop.f32.mrf.mxu1 }
 0x118   :  { %1183 = vst [vmem:[%s2333_s6 + $0x170] sm:$0xff] %v1093_v49  ;;  %v1015_v53 = vadd.f32 %v1014_v52, %v797_v50 }
 0x11a   :  { %1152 = vst [vmem:[%s2333_s6 + $0x78] sm:$0xff] %v1015_v53 }
 0x11c   :  { %v877_v54 = vpop.f32.mrf.mxu2 }
 0x11d   :  { %v1094_v55 = vpop.f32.mrf.mxu3 }
 0x11e   :  { %v1095_v57 = vadd.f32 %v1094_v55, %v877_v54  ;;  %v800_v58 = vpop.f32.mrf.mxu0 }
 0x11f   :  { %v1017_v59 = vpop.f32.mrf.mxu1 }
 0x120   :  { %1184 = vst [vmem:[%s2333_s6 + $0x178] sm:$0xff] %v1095_v57  ;;  %v1018_v60 = vadd.f32 %v1017_v59, %v800_v58 }
 0x122   :  { %1153 = vst [vmem:[%s2333_s6 + $0x80] sm:$0xff] %v1018_v60 }
 0x124   :  { %v880_v61 = vpop.f32.mrf.mxu2 }
 0x125   :  { %v1097_v63 = vpop.f32.mrf.mxu3 }
 0x126   :  { %v1098_v0 = vadd.f32 %v1097_v63, %v880_v61  ;;  %v802_v1 = vpop.f32.mrf.mxu0 }
 0x127   :  { %v1019_v2 = vpop.f32.mrf.mxu1 }
 0x128   :  { %1185 = vst [vmem:[%s2333_s6 + $0x180] sm:$0xff] %v1098_v0  ;;  %v1020_v3 = vadd.f32 %v1019_v2, %v802_v1 }
 0x12a   :  { %1154 = vst [vmem:[%s2333_s6 + $0x88] sm:$0xff] %v1020_v3 }
 0x12c   :  { %v882_v5 = vpop.f32.mrf.mxu2 }
 0x12d   :  { %v1099_v6 = vpop.f32.mrf.mxu3 }
 0x12e   :  { %v1100_v7 = vadd.f32 %v1099_v6, %v882_v5  ;;  %v805_v8 = vpop.f32.mrf.mxu0 }
 0x12f   :  { %v1022_v9 = vpop.f32.mrf.mxu1 }
 0x130   :  { %1186 = vst [vmem:[%s2333_s6 + $0x188] sm:$0xff] %v1100_v7  ;;  %v1023_v11 = vadd.f32 %v1022_v9, %v805_v8 }
 0x132   :  { %1155 = vst [vmem:[%s2333_s6 + $0x90] sm:$0xff] %v1023_v11 }
 0x134   :  { %v885_v10 = vpop.f32.mrf.mxu2 }
 0x135   :  { %v1102_v12 = vpop.f32.mrf.mxu3 }
 0x136   :  { %v1103_v13 = vadd.f32 %v1102_v12, %v885_v10  ;;  %v807_v14 = vpop.f32.mrf.mxu0 }
 0x137   :  { %v1024_v16 = vpop.f32.mrf.mxu1 }
 0x138   :  { %1187 = vst [vmem:[%s2333_s6 + $0x190] sm:$0xff] %v1103_v13  ;;  %v1025_v15 = vadd.f32 %v1024_v16, %v807_v14 }
 0x13a   :  { %1156 = vst [vmem:[%s2333_s6 + $0x98] sm:$0xff] %v1025_v15 }
 0x13c   :  { %v887_v17 = vpop.f32.mrf.mxu2 }
 0x13d   :  { %v1104_v18 = vpop.f32.mrf.mxu3 }
 0x13e   :  { %v1105_v19 = vadd.f32 %v1104_v18, %v887_v17  ;;  %v810_v20 = vpop.f32.mrf.mxu0 }
 0x13f   :  { %v1027_v21 = vpop.f32.mrf.mxu1 }
 0x140   :  { %1188 = vst [vmem:[%s2333_s6 + $0x198] sm:$0xff] %v1105_v19  ;;  %v1028_v51 = vadd.f32 %v1027_v21, %v810_v20 }
 0x142   :  { %1157 = vst [vmem:[%s2333_s6 + $0xa0] sm:$0xff] %v1028_v51 }
 0x144   :  { %v890_v22 = vpop.f32.mrf.mxu2 }
 0x145   :  { %v1107_v23 = vpop.f32.mrf.mxu3 }
 0x146   :  { %v1108_v25 = vadd.f32 %v1107_v23, %v890_v22  ;;  %v812_v26 = vpop.f32.mrf.mxu0 }
 0x147   :  { %v1029_v27 = vpop.f32.mrf.mxu1 }
 0x148   :  { %1189 = vst [vmem:[%s2333_s6 + $0x1a0] sm:$0xff] %v1108_v25  ;;  %v1030_v28 = vadd.f32 %v1029_v27, %v812_v26 }
 0x14a   :  { %1158 = vst [vmem:[%s2333_s6 + $0xa8] sm:$0xff] %v1030_v28 }
 0x14c   :  { %v892_v24 = vpop.f32.mrf.mxu2 }
 0x14d   :  { %v1109_v56 = vpop.f32.mrf.mxu3 }
 0x14e   :  { %v1110_v30 = vadd.f32 %v1109_v56, %v892_v24  ;;  %v815_v31 = vpop.f32.mrf.mxu0 }
 0x14f   :  { %v1032_v29 = vpop.f32.mrf.mxu1 }
 0x150   :  { %1190 = vst [vmem:[%s2333_s6 + $0x1a8] sm:$0xff] %v1110_v30  ;;  %v1033_v32 = vadd.f32 %v1032_v29, %v815_v31 }
 0x152   :  { %1159 = vst [vmem:[%s2333_s6 + $0xb0] sm:$0xff] %v1033_v32 }
 0x154   :  { %v895_v33 = vpop.f32.mrf.mxu2 }
 0x155   :  { %v1112_v62 = vpop.f32.mrf.mxu3 }
 0x156   :  { %v1113_v34 = vadd.f32 %v1112_v62, %v895_v33  ;;  %v817_v35 = vpop.f32.mrf.mxu0 }
 0x157   :  { %v1034_v36 = vpop.f32.mrf.mxu1 }
 0x158   :  { %1191 = vst [vmem:[%s2333_s6 + $0x1b0] sm:$0xff] %v1113_v34  ;;  %v1035_v37 = vadd.f32 %v1034_v36, %v817_v35 }
 0x15a   :  { %1160 = vst [vmem:[%s2333_s6 + $0xb8] sm:$0xff] %v1035_v37 }
 0x15c   :  { %v897_v38 = vpop.f32.mrf.mxu2 }
 0x15d   :  { %v1114_v4 = vpop.f32.mrf.mxu3 }
 0x15e   :  { %v1115_v39 = vadd.f32 %v1114_v4, %v897_v38  ;;  %v820_v40 = vpop.f32.mrf.mxu0 }
 0x15f   :  { %v1037_v41 = vpop.f32.mrf.mxu1 }
 0x160   :  { %1192 = vst [vmem:[%s2333_s6 + $0x1b8] sm:$0xff] %v1115_v39  ;;  %v1038_v42 = vadd.f32 %v1037_v41, %v820_v40 }
 0x162   :  { %1161 = vst [vmem:[%s2333_s6 + $0xc0] sm:$0xff] %v1038_v42 }
 0x164   :  { %v900_v43 = vpop.f32.mrf.mxu2 }
 0x165   :  { %v1117_v44 = vpop.f32.mrf.mxu3 }
 0x166   :  { %v1118_v45 = vadd.f32 %v1117_v44, %v900_v43  ;;  %v822_v46 = vpop.f32.mrf.mxu0 }
 0x167   :  { %v1039_v47 = vpop.f32.mrf.mxu1 }
 0x168   :  { %1193 = vst [vmem:[%s2333_s6 + $0x1c0] sm:$0xff] %v1118_v45  ;;  %v1040_v48 = vadd.f32 %v1039_v47, %v822_v46 }
 0x16a   :  { %1162 = vst [vmem:[%s2333_s6 + $0xc8] sm:$0xff] %v1040_v48 }
 0x16c   :  { %v902_v49 = vpop.f32.mrf.mxu2 }
 0x16d   :  { %v1119_v50 = vpop.f32.mrf.mxu3 }
 0x16e   :  { %v1120_v52 = vadd.f32 %v1119_v50, %v902_v49  ;;  %v825_v53 = vpop.f32.mrf.mxu0 }
 0x16f   :  { %v1042_v54 = vpop.f32.mrf.mxu1 }
 0x170   :  { %1194 = vst [vmem:[%s2333_s6 + $0x1c8] sm:$0xff] %v1120_v52  ;;  %v1043_v55 = vadd.f32 %v1042_v54, %v825_v53 }
 0x172   :  { %1163 = vst [vmem:[%s2333_s6 + $0xd0] sm:$0xff] %v1043_v55 }
 0x174   :  { %v905_v57 = vpop.f32.mrf.mxu2 }
 0x175   :  { %v1122_v58 = vpop.f32.mrf.mxu3 }
 0x176   :  { %v1123_v59 = vadd.f32 %v1122_v58, %v905_v57  ;;  %v827_v60 = vpop.f32.mrf.mxu0 }
 0x177   :  { %v1044_v61 = vpop.f32.mrf.mxu1 }
 0x178   :  { %1195 = vst [vmem:[%s2333_s6 + $0x1d0] sm:$0xff] %v1123_v59  ;;  %v1045_v63 = vadd.f32 %v1044_v61, %v827_v60 }
 0x17a   :  { %1164 = vst [vmem:[%s2333_s6 + $0xd8] sm:$0xff] %v1045_v63 }
 0x17c   :  { %v907_v0 = vpop.f32.mrf.mxu2 }
 0x17d   :  { %v1124_v1 = vpop.f32.mrf.mxu3 }
 0x17e   :  { %v1125_v2 = vadd.f32 %v1124_v1, %v907_v0  ;;  %v830_v3 = vpop.f32.mrf.mxu0 }
 0x17f   :  { %v1047_v5 = vpop.f32.mrf.mxu1 }
 0x180   :  { %1196 = vst [vmem:[%s2333_s6 + $0x1d8] sm:$0xff] %v1125_v2  ;;  %v1048_v6 = vadd.f32 %v1047_v5, %v830_v3 }
 0x182   :  { %1165 = vst [vmem:[%s2333_s6 + $0xe0] sm:$0xff] %v1048_v6 }
 0x184   :  { %v910_v7 = vpop.f32.mrf.mxu2 }
 0x185   :  { %v1127_v8 = vpop.f32.mrf.mxu3 }
 0x186   :  { %v1128_v9 = vadd.f32 %v1127_v8, %v910_v7  ;;  %v832_v11 = vpop.f32.mrf.mxu0 }
 0x187   :  { %v1049_v10 = vpop.f32.mrf.mxu1 }
 0x188   :  { %1197 = vst [vmem:[%s2333_s6 + $0x1e0] sm:$0xff] %v1128_v9  ;;  %v1050_v12 = vadd.f32 %v1049_v10, %v832_v11 }
 0x18a   :  { %1166 = vst [vmem:[%s2333_s6 + $0xe8] sm:$0xff] %v1050_v12 }
 0x18c   :  { %v912_v13 = vpop.f32.mrf.mxu2 }
 0x18d   :  { %v1129_v14 = vpop.f32.mrf.mxu3 }
 0x18e   :  { %v1130_v16 = vadd.f32 %v1129_v14, %v912_v13  ;;  %v835_v15 = vpop.f32.mrf.mxu0 }
 0x18f   :  { %v1052_v17 = vpop.f32.mrf.mxu1 }
 0x190   :  { %1198 = vst [vmem:[%s2333_s6 + $0x1e8] sm:$0xff] %v1130_v16  ;;  %v1053_v18 = vadd.f32 %v1052_v17, %v835_v15 }
 0x192   :  { %1167 = vst [vmem:[%s2333_s6 + $0xf0] sm:$0xff] %v1053_v18 }
 0x194   :  { %v915_v19 = vpop.f32.mrf.mxu2 }
 0x195   :  { %v1132_v20 = vpop.f32.mrf.mxu3 }
 0x196   :  { %v1133_v21 = vadd.f32 %v1132_v20, %v915_v19  ;;  %v837_v51 = vpop.f32.mrf.mxu0 }
 0x197   :  { %v1054_v22 = vpop.f32.mrf.mxu1 }
 0x198   :  { %1199 = vst [vmem:[%s2333_s6 + $0x1f0] sm:$0xff] %v1133_v21  ;;  %v1055_v23 = vadd.f32 %v1054_v22, %v837_v51 }
 0x19a   :  { %1168 = vst [vmem:[%s2333_s6 + $0xf8] sm:$0xff] %v1055_v23 }
 0x19c   :  { %v917_v25 = vpop.f32.mrf.mxu2 }
 0x19d   :  { %v1134_v26 = vpop.f32.mrf.mxu3 }
 0x19e   :  { %v1135_v27 = vadd.f32 %v1134_v26, %v917_v25 }
 0x1a0   :  { %1200 = vst [vmem:[%s2333_s6 + $0x1f8] sm:$0xff] %v1135_v27 }

// kernel: preact_bottleneck_pallas.6
= control target key start
LH: loop header
LB: loop body
LE: loop exit
PB: predicated region body
PF: predicated region fallthrough
CT: control target
= control target key end

     0   :  { %v5120_v1 = vmov 0.0   ;;  %s6555_s2 = inlined_call_operand.vmem [shape: bf16[9,128,128], index: 2, kind: input, shape index: {}]   ;;  %s6556_s0 = inlined_call_operand.vmem [shape: bf16[2,16,16,128], index: 0, kind: input, shape index: {}]   ;;  %s6557_s1 = inlined_call_operand.vmem [shape: f32[2,128], index: 1, kind: input, shape index: {}]   ;;  %s6558_s3 = inlined_call_operand.vmem [shape: bf16[2,16,16,128], index: 3, kind: output, shape index: {0}]   ;;  %s6559_s4 = inlined_call_operand.vmem [shape: f32[1,2,128], index: 4, kind: output, shape index: {1}]  }
   0x1   :  { %v4679_v0 = vld [vmem:[%s6555_s2 + $0x78] sm:$0xff]  ;;  %19 = vst [vmem:[#allocation2 + $0x1b0] sm:$0xff] %v5120_v1  ;;  %v4678_v2 = vld [vmem:[%s6555_s2 + $0x70] sm:$0xff]  ;;  %v5161_v6 = vld [vmem:[%s6557_s1] ss:$0 sm:$0xff] }
   0x2   :  { %20 = vst [vmem:[#allocation2 + $0x1b8] sm:$0xff] %v5120_v1  ;;  %5086 = vmatpush.bf16.msra.mxu1 %v4679_v0  ;;  %5087 = vmatpush.bf16.msra.mxu2 %v4679_v0  ;;  %v5030_v3 = vld [vmem:[%s6556_s0 + $0x38] sm:$0xff]   ;;  %v5166_v7 = vld [vmem:[%s6557_s1 + $0x1] ss:$0 sm:$0xff]  ;;  %v4677_v10 = vld [vmem:[%s6555_s2 + $0x68] sm:$0xff] }
   0x3   :  { %21 = vst [vmem:[#allocation2 + $0x1c0] sm:$0x3] %v5120_v1  ;;  %5088 = vmatpush.bf16.msra.mxu3 %v4679_v0  ;;  %763 = vmatpush.bf16.msra.mxu0 %v4679_v0  ;;  %v4766_v4 = vunpack.c.l.bf16 %v5030_v3  ;;  %v4767_v5 = vunpack.c.h.bf16 %v5030_v3  ;;  %v4676_v14 = vld [vmem:[%s6555_s2 + $0x60] sm:$0xff]  ;;  %v5046_v16 = vld [vmem:[%s6556_s0 + $0xb8] sm:$0xff]   ;;  %v4674_v20 = vld [vmem:[%s6555_s2 + $0x50] sm:$0xff] }
   0x4   :  { %83 = vst [vmem:[#allocation2 + $0x1c1] sm:$0x1] %v5120_v1  ;;  %v4675_v17 = vld [vmem:[%s6555_s2 + $0x58] sm:$0xff]  ;;  %v4830_v18 = vunpack.c.l.bf16 %v5046_v16  ;;  %v4831_v19 = vunpack.c.h.bf16 %v5046_v16  ;;  %v4673_v23 = vld [vmem:[%s6555_s2 + $0x48] sm:$0xff]  ;;  %v4672_v26 = vld [vmem:[%s6555_s2 + $0x40] sm:$0xff] }
   0x5   :  { %v245_v8 = vmul.f32 %v5161_v6, %v4766_v4  ;;  %v246_v9 = vmul.f32 %v5161_v6, %v4767_v5  ;;  %16 = vst [vmem:[#allocation2] sm:$0xff] %v5120_v1  ;;  %v5031_v27 = vld [vmem:[%s6556_s0 + $0x40] sm:$0xff]   ;;  %v5048_v16 = vld [vmem:[%s6556_s0 + $0xc8] sm:$0xff]  }
   0x6   :  { %5089 = vmatpush.bf16.msra.mxu1 %v4678_v2  ;;  %5090 = vmatpush.bf16.msra.mxu2 %v4678_v2  ;;  %17 = vst [vmem:[#allocation2 + $0x8] sm:$0xff] %v5120_v1  ;;  %v277_v21 = vmul.f32 %v5161_v6, %v4830_v18  ;;  %v278_v22 = vmul.f32 %v5161_v6, %v4831_v19  ;;  %v5039_v28 = vld [vmem:[%s6556_s0 + $0x80] sm:$0xff]   ;;  %v4770_v37 = vunpack.c.l.bf16 %v5031_v27  ;;  %v4771_v38 = vunpack.c.h.bf16 %v5031_v27 }
   0x7   :  { %5091 = vmatpush.bf16.msra.mxu3 %v4678_v2  ;;  %764 = vmatpush.bf16.msra.mxu0 %v4678_v2  ;;  %v5177_v11 = vadd.f32 %v5166_v7, %v245_v8  ;;  %v5180_v12 = vadd.f32 %v5166_v7, %v246_v9  ;;  %18 = vst [vmem:[#allocation2 + $0x10] sm:$0x3] %v5120_v1  ;;  %v5047_v29 = vld [vmem:[%s6556_s0 + $0xc0] sm:$0xff]   ;;  %v4802_v39 = vunpack.c.l.bf16 %v5039_v28  ;;  %v4803_v40 = vunpack.c.h.bf16 %v5039_v28  ;;  %v5032_v9 = vld [vmem:[%s6556_s0 + $0x48] sm:$0xff]  }
   0x8   :  { %23 = vst [vmem:[#allocation2 + $0x198] sm:$0xff] %v5120_v1  ;;  %v5220_v24 = vadd.f32 %v5166_v7, %v277_v21  ;;  %v5223_v25 = vadd.f32 %v5166_v7, %v278_v22  ;;  %v4737_v36 = vld [vmem:[%s6556_s0] sm:$0xff]   ;;  %v4834_v43 = vunpack.c.l.bf16 %v5047_v29  ;;  %v4835_v44 = vunpack.c.h.bf16 %v5047_v29  ;;  %v5024_v21 = vld [vmem:[%s6556_s0 + $0x8] sm:$0xff]  }
   0x9   :  { %v375_v13 = vmax.f32 %v5177_v11, 0.0  ;;  %24 = vst [vmem:[#allocation2 + $0x1a0] sm:$0xff] %v5120_v1  ;;  %v376_v15 = vmax.f32 %v5180_v12, 0.0  ;;  %v634_v30 = vld [vmem:[#allocation2 + $0x1b1] sm:$0xff]  ;;  %v4738_v47 = vunpack.c.l.bf16 %v4737_v36  ;;  %v4739_v48 = vunpack.c.h.bf16 %v4737_v36 }
   0xa   :  { %5092 = vmatpush.bf16.msra.mxu1 %v4677_v10  ;;  %5093 = vmatpush.bf16.msra.mxu2 %v4677_v10  ;;  %25 = vst [vmem:[#allocation2 + $0x1a8] sm:$0x3] %v5120_v1  ;;  %v635_v31 = vld [vmem:[#allocation2 + $0x1b9] sm:$0xff]  ;;  %v407_v32 = vmax.f32 %v5220_v24, 0.0  ;;  %v408_v33 = vmax.f32 %v5223_v25, 0.0  ;;  %v247_v49 = vmul.f32 %v5161_v6, %v4770_v37  ;;  %v248_v50 = vmul.f32 %v5161_v6, %v4771_v38 }
   0xb   :  { %5094 = vmatpush.bf16.msra.mxu3 %v4677_v10  ;;  %765 = vmatpush.bf16.msra.mxu0 %v4677_v10  ;;  %440 = vst [vmem:[#allocation2 + $0xc1] sm:$0xff] %v375_v13  ;;  %v674_v41 = vpack.c.bf16 %v376_v15, %v375_v13  ;;  %v682_v42 = vpack.c.bf16 %v635_v31, %v634_v30  ;;  %v5040_v13 = vld [vmem:[%s6556_s0 + $0x88] sm:$0xff]   ;;  %v4775_v18 = vunpack.c.h.bf16 %v5032_v9  ;;  %v4839_v27 = vunpack.c.h.bf16 %v5048_v16 }
   0xc   :  { %441 = vst [vmem:[#allocation2 + $0xc9] sm:$0xff] %v376_v15  ;;  %v690_v45 = vpack.c.bf16 %v408_v33, %v407_v32  ;;  %v263_v51 = vmul.f32 %v5161_v6, %v4802_v39  ;;  %v264_v52 = vmul.f32 %v5161_v6, %v4803_v40  ;;  %v279_v53 = vmul.f32 %v5161_v6, %v4834_v43 }
   0xd   :  { %26 = vst [vmem:[#allocation2 + $0x348] sm:$0xff] %v5120_v1  ;;  %v602_v34 = vld [vmem:[#allocation2 + $0x1] sm:$0xff]  ;;  %v280_v54 = vmul.f32 %v5161_v6, %v4835_v44  ;;  %v231_v55 = vmul.f32 %v5161_v6, %v4738_v47  ;;  %v232_v56 = vmul.f32 %v5161_v6, %v4739_v48  ;;  %v5273_v57 = vadd.f32 %v5166_v7, %v247_v49  ;;  %v4687_v47 = vld [vmem:[%s6555_s2 + $0xb8] sm:$0xff] }
   0xe   :  { %5095 = vmatpush.bf16.msra.mxu1 %v4676_v14  ;;  %5096 = vmatpush.bf16.msra.mxu2 %v4676_v14  ;;  %27 = vst [vmem:[#allocation2 + $0x350] sm:$0xff] %v5120_v1  ;;  %v603_v35 = vld [vmem:[#allocation2 + $0x9] sm:$0xff]  ;;  %v5276_v58 = vadd.f32 %v5166_v7, %v248_v50  ;;  %v5280_v59 = vadd.f32 %v5166_v7, %v263_v51  ;;  %v4774_v15 = vunpack.c.l.bf16 %v5032_v9  ;;  %v4806_v19 = vunpack.c.l.bf16 %v5040_v13  ;;  %v4695_v48 = vld [vmem:[%s6555_s2 + $0xf8] sm:$0xff] }
   0xf   :  { %5097 = vmatpush.bf16.msra.mxu3 %v4676_v14  ;;  %766 = vmatpush.bf16.msra.mxu0 %v4676_v14  ;;  %28 = vst [vmem:[#allocation2 + $0x358] sm:$0x3] %v5120_v1  ;;  %v666_v46 = vpack.c.bf16 %v603_v35, %v602_v34  ;;  %v5283_v60 = vadd.f32 %v5166_v7, %v264_v52  ;;  %v377_v2 = vmax.f32 %v5273_v57, 0.0  ;;  %v4742_v29 = vunpack.c.l.bf16 %v5024_v21  ;;  %v4671_v49 = vld [vmem:[%s6555_s2 + $0x38] sm:$0xff]  ;;  %v5041_v9 = vld [vmem:[%s6556_s0 + $0x90] sm:$0xff]   ;;  %v5043_v57 = vld [vmem:[%s6556_s0 + $0xa0] sm:$0xff]  }
  0x10   :  { %30 = vst [vmem:[#allocation2 + $0x18] sm:$0x1] %v5120_v1  ;;  %v5286_v61 = vadd.f32 %v5166_v7, %v279_v53  ;;  %v5290_v62 = vadd.f32 %v5166_v7, %v280_v54  ;;  %v5293_v63 = vadd.f32 %v5166_v7, %v231_v55  ;;  %v5296_v0 = vadd.f32 %v5166_v7, %v232_v56  ;;  %v4703_v53 = vld [vmem:[%s6555_s2 + $0x138] sm:$0xff] }
  0x11   :  { %31 = vst [vmem:[#allocation2 + $0x30] sm:$0x1] %v5120_v1  ;;  %v378_v3 = vmax.f32 %v5276_v58, 0.0  ;;  %v393_v4 = vmax.f32 %v5280_v59, 0.0  ;;  %v394_v5 = vmax.f32 %v5283_v60, 0.0  ;;  %v249_v28 = vmul.f32 %v5161_v6, %v4774_v15  ;;  %v5027_v59 = vld [vmem:[%s6556_s0 + $0x20] sm:$0xff]  }
  0x12   :  { %5098 = vmatpush.bf16.msra.mxu1 %v4675_v17  ;;  %5099 = vmatpush.bf16.msra.mxu2 %v4675_v17  ;;  %32 = vst [vmem:[#allocation2 + $0x48] sm:$0x1] %v5120_v1  ;;  %v409_v8 = vmax.f32 %v5286_v61, 0.0  ;;  %v410_v10 = vmax.f32 %v5290_v62, 0.0  ;;  %v361_v11 = vmax.f32 %v5293_v63, 0.0  ;;  %v362_v12 = vmax.f32 %v5296_v0, 0.0 }
  0x13   :  { %5100 = vmatpush.bf16.msra.mxu3 %v4675_v17  ;;  %767 = vmatpush.bf16.msra.mxu0 %v4675_v17  ;;  %33 = vst [vmem:[#allocation2 + $0x60] sm:$0x1] %v5120_v1  ;;  %v675_v14 = vpack.c.bf16 %v378_v3, %v377_v2  ;;  %v683_v17 = vpack.c.bf16 %v394_v5, %v393_v4  ;;  %v4743_v30 = vunpack.c.h.bf16 %v5024_v21  ;;  %v4682_v61 = vld [vmem:[%s6555_s2 + $0x90] sm:$0xff] }
  0x14   :  { %34 = vst [vmem:[#allocation2 + $0x78] sm:$0x1] %v5120_v1  ;;  %v691_v22 = vpack.c.bf16 %v410_v10, %v409_v8  ;;  %v250_v31 = vmul.f32 %v5161_v6, %v4775_v18  ;;  %v265_v34 = vmul.f32 %v5161_v6, %v4806_v19  ;;  %v282_v37 = vmul.f32 %v5161_v6, %v4839_v27  ;;  %v5049_v19 = vld [vmem:[%s6556_s0 + $0xd0] sm:$0xff]  }
  0x15   :  { %35 = vst [vmem:[#allocation2 + $0x90] sm:$0x1] %v5120_v1  ;;  %v5358_v38 = vadd.f32 %v5166_v7, %v249_v28  ;;  %v233_v39 = vmul.f32 %v5161_v6, %v4742_v29  ;;  %v234_v40 = vmul.f32 %v5161_v6, %v4743_v30  ;;  %v5025_v27 = vld [vmem:[%s6556_s0 + $0x10] sm:$0xff]  }
  0x16   :  { %5101 = vmatpush.bf16.msra.mxu1 %v4674_v20  ;;  %5102 = vmatpush.bf16.msra.mxu2 %v4674_v20  ;;  %36 = vst [vmem:[#allocation2 + $0xa8] sm:$0x1] %v5120_v1  ;;  %v4686_v28 = vld [vmem:[%s6555_s2 + $0xb0] sm:$0xff] }
  0x17   :  { %5103 = vmatpush.bf16.msra.mxu3 %v4674_v20  ;;  %768 = vmatpush.bf16.msra.mxu0 %v4674_v20  ;;  %37 = vst [vmem:[#allocation2 + $0xc0] sm:$0x1] %v5120_v1  ;;  %v4807_v20 = vunpack.c.h.bf16 %v5040_v13  ;;  %v379_v50 = vmax.f32 %v5358_v38, 0.0  ;;  %v5395_v51 = vadd.f32 %v5166_v7, %v233_v39  ;;  %v5398_v52 = vadd.f32 %v5166_v7, %v234_v40  ;;  %v4666_v0 = vld [vmem:[%s6555_s2 + $0x10] sm:$0xff] }
  0x18   :  { %38 = vst [vmem:[#allocation2 + $0xd8] sm:$0x1] %v5120_v1 }
  0x19   :  { %39 = vst [vmem:[#allocation2 + $0xf0] sm:$0x1] %v5120_v1  ;;  %v266_v35 = vmul.f32 %v5161_v6, %v4807_v20 }
  0x1a   :  { %5104 = vmatpush.bf16.msra.mxu1 %v4673_v23  ;;  %5105 = vmatpush.bf16.msra.mxu2 %v4673_v23  ;;  %40 = vst [vmem:[#allocation2 + $0x108] sm:$0x1] %v5120_v1 }
  0x1b   :  { %5106 = vmatpush.bf16.msra.mxu3 %v4673_v23  ;;  %769 = vmatpush.bf16.msra.mxu0 %v4673_v23  ;;  %41 = vst [vmem:[#allocation2 + $0x120] sm:$0x1] %v5120_v1  ;;  %v5342_v23 = vpack.c.bf16 %v362_v12, %v361_v11  ;;  %v5370_v43 = vadd.f32 %v5166_v7, %v266_v35  ;;  %v4694_v35 = vld [vmem:[%s6555_s2 + $0xf0] sm:$0xff] }
  0x1c   :  { %42 = vst [vmem:[#allocation2 + $0x138] sm:$0x1] %v5120_v1 }
  0x1d   :  { %43 = vst [vmem:[#allocation2 + $0x150] sm:$0x1] %v5120_v1  ;;  %v6572_v56 = vmax.f32 %v5370_v43, 0.0 }
  0x1e   :  { %5107 = vmatpush.bf16.msra.mxu1 %v4672_v26  ;;  %5108 = vmatpush.bf16.msra.mxu2 %v4672_v26  ;;  %44 = vst [vmem:[#allocation2 + $0x168] sm:$0x1] %v5120_v1 }
  0x1f   :  { %5109 = vmatpush.bf16.msra.mxu3 %v4672_v26  ;;  %770 = vmatpush.bf16.msra.mxu0 %v4672_v26  ;;  %45 = vst [vmem:[#allocation2 + $0x180] sm:$0x1] %v5120_v1  ;;  %v4838_v26 = vunpack.c.l.bf16 %v5048_v16  ;;  %v6561_v16 = vmax.f32 %v5395_v51, 0.0 }
  0x20   :  { %47 = vst [vmem:[#allocation2 + $0x1b0] sm:$0x1] %v5120_v1 }
  0x21   :  { %811 = vmatmul.bf16.vlgmr.msra.gmra.mxu1 %v674_v41  ;;  %851 = vmatmul.bf16.vlgmr.msra.gmra.mxu2 %v682_v42  ;;  %48 = vst [vmem:[#allocation2 + $0x1c8] sm:$0x1] %v5120_v1  ;;  %v281_v36 = vmul.f32 %v5161_v6, %v4838_v26  ;;  %v5364_v41 = vadd.f32 %v5166_v7, %v250_v31  ;;  %v4811_v26 = vunpack.c.h.bf16 %v5041_v9  ;;  %v4842_v31 = vunpack.c.l.bf16 %v5049_v19 }
  0x22   :  { %49 = vst [vmem:[#allocation2 + $0x1e0] sm:$0x1] %v5120_v1  ;;  %891 = vmatmul.bf16.vlgmr.msra.gmra.mxu3 %v690_v45  ;;  %771 = vmatmul.bf16.vlgmr.msra.gmra.mxu0 %v666_v46  ;;  %v5367_v42 = vadd.f32 %v5166_v7, %v265_v34  ;;  %v5378_v45 = vadd.f32 %v5166_v7, %v282_v37  ;;  %v5033_v46 = vld [vmem:[%s6556_s0 + $0x50] sm:$0xff]   ;;  %v4843_v34 = vunpack.c.h.bf16 %v5049_v19 }
  0x23   :  { %50 = vst [vmem:[#allocation2 + $0x1f8] sm:$0x1] %v5120_v1  ;;  %v5375_v44 = vadd.f32 %v5166_v7, %v281_v36  ;;  %v380_v54 = vmax.f32 %v5364_v41, 0.0  ;;  %1310 = vmatpush.bf16.msrb.mxu2 %v4687_v47  ;;  %1704 = vmatpush.bf16.msrb.mxu3 %v4695_v48  ;;  %v4778_v15 = vunpack.c.l.bf16 %v5033_v46  ;;  %v4779_v18 = vunpack.c.h.bf16 %v5033_v46  ;;  %v4670_v36 = vld [vmem:[%s6555_s2 + $0x30] sm:$0xff] }
  0x24   :  { %51 = vst [vmem:[#allocation2 + $0x210] sm:$0x1] %v5120_v1  ;;  %v395_v55 = vmax.f32 %v5367_v42, 0.0  ;;  %980 = vmatpush.bf16.msrb.mxu1 %v4671_v49  ;;  %2098 = vmatpush.bf16.msrb.mxu0 %v4703_v53  ;;  %v4702_v37 = vld [vmem:[%s6555_s2 + $0x130] sm:$0xff]  ;;  %v4746_v46 = vunpack.c.l.bf16 %v5025_v27  ;;  %v4747_v47 = vunpack.c.h.bf16 %v5025_v27  ;;  %v268_v49 = vmul.f32 %v5161_v6, %v4811_v26  ;;  %v4685_v26 = vld [vmem:[%s6555_s2 + $0xa8] sm:$0xff] }
  0x25   :  { %52 = vst [vmem:[#allocation2 + $0x228] sm:$0x1] %v5120_v1  ;;  %v6567_v13 = vmax.f32 %v5375_v44, 0.0  ;;  %v676_v20 = vpack.c.bf16 %v380_v54, %v379_v50  ;;  %v251_v30 = vmul.f32 %v5161_v6, %v4778_v15  ;;  %v252_v40 = vmul.f32 %v5161_v6, %v4779_v18 }
  0x26   :  { %53 = vst [vmem:[#allocation2 + $0x240] sm:$0x1] %v5120_v1  ;;  %v684_v21 = vpack.c.bf16 %v6572_v56, %v395_v55  ;;  %v284_v15 = vmul.f32 %v5161_v6, %v4843_v34  ;;  %v235_v19 = vmul.f32 %v5161_v6, %v4746_v46  ;;  %v4701_v34 = vld [vmem:[%s6555_s2 + $0x128] sm:$0xff] }
  0x27   :  { %54 = vst [vmem:[#allocation2 + $0x258] sm:$0x1] %v5120_v1  ;;  %1311 = vmatpush.bf16.msrb.mxu2 %v4686_v28  ;;  %1705 = vmatpush.bf16.msrb.mxu3 %v4694_v35  ;;  %v5465_v53 = vadd.f32 %v5166_v7, %v251_v30  ;;  %v5472_v18 = vadd.f32 %v5166_v7, %v252_v40  ;;  %v4693_v30 = vld [vmem:[%s6555_s2 + $0xe8] sm:$0xff] }
  0x28   :  { %55 = vst [vmem:[#allocation2 + $0x270] sm:$0x1] %v5120_v1  ;;  %981 = vmatpush.bf16.msrb.mxu1 %v4670_v36  ;;  %2099 = vmatpush.bf16.msrb.mxu0 %v4702_v37  ;;  %v5507_v36 = vadd.f32 %v5166_v7, %v235_v19 }
  0x29   :  { %56 = vst [vmem:[#allocation2 + $0x288] sm:$0x1] %v5120_v1  ;;  %v6563_v27 = vmax.f32 %v5465_v53, 0.0  ;;  %v6562_v35 = vmax.f32 %v5472_v18, 0.0 }
  0x2a   :  { %57 = vst [vmem:[#allocation2 + $0x2a0] sm:$0x1] %v5120_v1  ;;  %v6571_v19 = vmax.f32 %v5507_v36, 0.0 }
  0x2b   :  { %58 = vst [vmem:[#allocation2 + $0x2b8] sm:$0x1] %v5120_v1  ;;  %1312 = vmatpush.bf16.msrb.mxu2 %v4685_v26  ;;  %1706 = vmatpush.bf16.msrb.mxu3 %v4693_v30  ;;  %v5050_v30 = vld [vmem:[%s6556_s0 + $0xd8] sm:$0xff]  }
  0x2c   :  { %59 = vst [vmem:[#allocation2 + $0x2d0] sm:$0x1] %v5120_v1  ;;  %2100 = vmatpush.bf16.msrb.mxu0 %v4701_v34 }
  0x2d   :  { %60 = vst [vmem:[#allocation2 + $0x2e8] sm:$0x1] %v5120_v1 }
  0x2e   :  { %61 = vst [vmem:[#allocation2 + $0x300] sm:$0x1] %v5120_v1 }
  0x2f   :  { %62 = vst [vmem:[#allocation2 + $0x318] sm:$0x1] %v5120_v1 }
  0x30   :  { %63 = vst [vmem:[#allocation2 + $0x330] sm:$0x1] %v5120_v1 }
  0x31   :  { %66 = vst [vmem:[#allocation2 + $0x29] sm:$0x1] %v5120_v1  ;;  %816 = vmatmul.bf16.gmra.mxu1 %v675_v14  ;;  %856 = vmatmul.bf16.gmra.mxu2 %v683_v17  ;;  %v6566_v14 = vmax.f32 %v5378_v45, 0.0  ;;  %v6560_v17 = vmax.f32 %v5398_v52, 0.0 }
  0x32   :  { %67 = vst [vmem:[#allocation2 + $0x41] sm:$0x1] %v5120_v1  ;;  %896 = vmatmul.bf16.gmra.mxu3 %v691_v22  ;;  %776 = vmatmul.bf16.gmra.mxu0 %v5342_v23  ;;  %v4810_v22 = vunpack.c.l.bf16 %v5041_v9  ;;  %v283_v9 = vmul.f32 %v5161_v6, %v4842_v31  ;;  %v4669_v31 = vld [vmem:[%s6555_s2 + $0x28] sm:$0xff] }
  0x33   :  { %68 = vst [vmem:[#allocation2 + $0x59] sm:$0x1] %v5120_v1  ;;  %v692_v29 = vpack.c.bf16 %v6566_v14, %v6567_v13  ;;  %v5456_v39 = vpack.c.bf16 %v6560_v17, %v6561_v16  ;;  %982 = vmatpush.bf16.msrb.mxu1 %v4669_v31  ;;  %v4692_v14 = vld [vmem:[%s6555_s2 + $0xe0] sm:$0xff] }
  0x34   :  { %69 = vst [vmem:[#allocation2 + $0x71] sm:$0x1] %v5120_v1  ;;  %v267_v48 = vmul.f32 %v5161_v6, %v4810_v22  ;;  %v5481_v22 = vadd.f32 %v5166_v7, %v268_v49  ;;  %v5490_v28 = vadd.f32 %v5166_v7, %v283_v9  ;;  %v4668_v13 = vld [vmem:[%s6555_s2 + $0x20] sm:$0xff]  ;;  %1707 = vmatpush.bf16.msrb.mxu3 %v4692_v14 }
  0x35   :  { %70 = vst [vmem:[#allocation2 + $0x89] sm:$0x1] %v5120_v1 }
  0x36   :  { %71 = vst [vmem:[#allocation2 + $0xa1] sm:$0x1] %v5120_v1  ;;  %v6564_v46 = vmax.f32 %v5481_v22, 0.0  ;;  %v6569_v49 = vmax.f32 %v5490_v28, 0.0 }
  0x37   :  { %72 = vst [vmem:[#allocation2 + $0xb9] sm:$0x1] %v5120_v1  ;;  %983 = vmatpush.bf16.msrb.mxu1 %v4668_v13 }
  0x38   :  { %73 = vst [vmem:[#allocation2 + $0xd1] sm:$0x1] %v5120_v1 }
  0x39   :  { %74 = vst [vmem:[#allocation2 + $0xe9] sm:$0x1] %v5120_v1 }
  0x3a   :  { %75 = vst [vmem:[#allocation2 + $0x101] sm:$0x1] %v5120_v1 }
  0x3b   :  { %76 = vst [vmem:[#allocation2 + $0x119] sm:$0x1] %v5120_v1 }
  0x3c   :  { %77 = vst [vmem:[#allocation2 + $0x131] sm:$0x1] %v5120_v1 }
  0x3d   :  { %78 = vst [vmem:[#allocation2 + $0x149] sm:$0x1] %v5120_v1 }
  0x3e   :  { %79 = vst [vmem:[#allocation2 + $0x161] sm:$0x1] %v5120_v1 }
  0x3f   :  { %80 = vst [vmem:[#allocation2 + $0x179] sm:$0x1] %v5120_v1 }
  0x40   :  { %81 = vst [vmem:[#allocation2 + $0x191] sm:$0x1] %v5120_v1 }
  0x41   :  { %84 = vst [vmem:[#allocation2 + $0x1d9] sm:$0x1] %v5120_v1  ;;  %821 = vmatmul.bf16.gmra.mxu1 %v676_v20  ;;  %861 = vmatmul.bf16.gmra.mxu2 %v684_v21  ;;  %v236_v20 = vmul.f32 %v5161_v6, %v4747_v47  ;;  %v5478_v21 = vadd.f32 %v5166_v7, %v267_v48  ;;  %v5034_v47 = vld [vmem:[%s6556_s0 + $0x58] sm:$0xff]  }
  0x42   :  { %85 = vst [vmem:[#allocation2 + $0x1f1] sm:$0x1] %v5120_v1  ;;  %901 = vmatmul.bf16.gmra.mxu3 %v692_v29  ;;  %781 = vmatmul.bf16.gmra.mxu0 %v5456_v39  ;;  %v5493_v29 = vadd.f32 %v5166_v7, %v284_v15  ;;  %v5042_v48 = vld [vmem:[%s6556_s0 + $0x98] sm:$0xff]   ;;  %v677_v15 = vpack.c.bf16 %v6562_v35, %v6563_v27  ;;  %v4782_v26 = vunpack.c.l.bf16 %v5034_v47  ;;  %v4783_v34 = vunpack.c.h.bf16 %v5034_v47  ;;  %v4684_v27 = vld [vmem:[%s6555_s2 + $0xa0] sm:$0xff] }
  0x43   :  { %86 = vst [vmem:[#allocation2 + $0x209] sm:$0x1] %v5120_v1  ;;  %v5510_v37 = vadd.f32 %v5166_v7, %v236_v20  ;;  %v6565_v40 = vmax.f32 %v5478_v21, 0.0  ;;  %v4814_v17 = vunpack.c.l.bf16 %v5042_v48  ;;  %v4815_v16 = vunpack.c.h.bf16 %v5042_v48  ;;  %v5026_v35 = vld [vmem:[%s6556_s0 + $0x18] sm:$0xff]   ;;  %1313 = vmatpush.bf16.msrb.mxu2 %v4684_v27 }
  0x44   :  { %87 = vst [vmem:[#allocation2 + $0x221] sm:$0x1] %v5120_v1  ;;  %v6568_v9 = vmax.f32 %v5493_v29, 0.0  ;;  %v4846_v47 = vunpack.c.l.bf16 %v5050_v30  ;;  %v253_v27 = vmul.f32 %v5161_v6, %v4782_v26 }
  0x45   :  { %88 = vst [vmem:[#allocation2 + $0x239] sm:$0x1] %v5120_v1  ;;  %v6570_v20 = vmax.f32 %v5510_v37, 0.0  ;;  %v685_v31 = vpack.c.bf16 %v6564_v46, %v6565_v40  ;;  %v4847_v40 = vunpack.c.h.bf16 %v5050_v30  ;;  %v4700_v30 = vld [vmem:[%s6555_s2 + $0x120] sm:$0xff]  ;;  %v270_v56 = vmul.f32 %v5161_v6, %v4815_v16 }
  0x46   :  { %89 = vst [vmem:[#allocation2 + $0x251] sm:$0x1] %v5120_v1  ;;  %v693_v46 = vpack.c.bf16 %v6568_v9, %v6569_v49  ;;  %v4750_v9 = vunpack.c.l.bf16 %v5026_v35  ;;  %v4751_v49 = vunpack.c.h.bf16 %v5026_v35  ;;  %2101 = vmatpush.bf16.msrb.mxu0 %v4700_v30  ;;  %v285_v24 = vmul.f32 %v5161_v6, %v4846_v47  ;;  %v4683_v35 = vld [vmem:[%s6555_s2 + $0x98] sm:$0xff] }
  0x47   :  { %90 = vst [vmem:[#allocation2 + $0x269] sm:$0x1] %v5120_v1  ;;  %v5557_v48 = vpack.c.bf16 %v6570_v20, %v6571_v19  ;;  %v254_v20 = vmul.f32 %v5161_v6, %v4783_v34  ;;  %v269_v19 = vmul.f32 %v5161_v6, %v4814_v17  ;;  %v5585_v25 = vadd.f32 %v5166_v7, %v253_v27  ;;  %v5035_v34 = vld [vmem:[%s6556_s0 + $0x60] sm:$0xff]  }
  0x48   :  { %91 = vst [vmem:[#allocation2 + $0x281] sm:$0x1] %v5120_v1  ;;  %v237_v17 = vmul.f32 %v5161_v6, %v4750_v9  ;;  %v238_v16 = vmul.f32 %v5161_v6, %v4751_v49  ;;  %v5594_v14 = vadd.f32 %v5166_v7, %v270_v56  ;;  %1314 = vmatpush.bf16.msrb.mxu2 %v4683_v35  ;;  %v4691_v9 = vld [vmem:[%s6555_s2 + $0xd8] sm:$0xff]  ;;  %v4786_v30 = vunpack.c.l.bf16 %v5035_v34 }
  0x49   :  { %92 = vst [vmem:[#allocation2 + $0x299] sm:$0x1] %v5120_v1  ;;  %v5591_v13 = vadd.f32 %v5166_v7, %v269_v19  ;;  %v4699_v19 = vld [vmem:[%s6555_s2 + $0x118] sm:$0xff]  ;;  %1708 = vmatpush.bf16.msrb.mxu3 %v4691_v9  ;;  %v4787_v27 = vunpack.c.h.bf16 %v5035_v34  ;;  %v4754_v35 = vunpack.c.l.bf16 %v5027_v59  ;;  %v4690_v9 = vld [vmem:[%s6555_s2 + $0xd0] sm:$0xff] }
  0x4a   :  { %93 = vst [vmem:[#allocation2 + $0x2b1] sm:$0x1] %v5120_v1  ;;  %v5609_v56 = vadd.f32 %v5166_v7, %v237_v17  ;;  %v5612_v49 = vadd.f32 %v5166_v7, %v238_v16  ;;  %2102 = vmatpush.bf16.msrb.mxu0 %v4699_v19  ;;  %v255_v63 = vmul.f32 %v5161_v6, %v4786_v30 }
  0x4b   :  { %94 = vst [vmem:[#allocation2 + $0x2c9] sm:$0x1] %v5120_v1  ;;  %v399_v26 = vmax.f32 %v5591_v13, 0.0 }
  0x4c   :  { %95 = vst [vmem:[#allocation2 + $0x2e1] sm:$0x1] %v5120_v1  ;;  %v367_v58 = vmax.f32 %v5609_v56, 0.0  ;;  %1315 = vmatpush.bf16.msrb.mxu2 %v4682_v61  ;;  %v5706_v41 = vadd.f32 %v5166_v7, %v255_v63  ;;  %v5036_v63 = vld [vmem:[%s6556_s0 + $0x68] sm:$0xff]   ;;  %v5037_v56 = vld [vmem:[%s6556_s0 + $0x70] sm:$0xff]  }
  0x4d   :  { %96 = vst [vmem:[#allocation2 + $0x2f9] sm:$0x1] %v5120_v1  ;;  %1709 = vmatpush.bf16.msrb.mxu3 %v4690_v9 }
  0x4e   :  { %97 = vst [vmem:[#allocation2 + $0x311] sm:$0x1] %v5120_v1 }
  0x4f   :  { %98 = vst [vmem:[#allocation2 + $0x329] sm:$0x1] %v5120_v1 }
  0x50   :  { %99 = vst [vmem:[#allocation2 + $0x341] sm:$0x1] %v5120_v1 }
  0x51   :  { %472 = vst [vmem:[#allocation2 + $0x271] sm:$0xff] %v407_v32  ;;  %826 = vmatmul.bf16.gmra.mxu1 %v677_v15  ;;  %866 = vmatmul.bf16.gmra.mxu2 %v685_v31  ;;  %v286_v32 = vmul.f32 %v5161_v6, %v4847_v40  ;;  %v5602_v40 = vadd.f32 %v5166_v7, %v285_v24  ;;  %v4667_v15 = vld [vmem:[%s6555_s2 + $0x18] sm:$0xff]  ;;  %v400_v31 = vmax.f32 %v5594_v14, 0.0  ;;  %v5051_v24 = vld [vmem:[%s6556_s0 + $0xe0] sm:$0xff]  }
  0x52   :  { %473 = vst [vmem:[#allocation2 + $0x279] sm:$0xff] %v408_v33  ;;  %906 = vmatmul.bf16.gmra.mxu3 %v693_v46  ;;  %786 = vmatmul.bf16.gmra.mxu0 %v5557_v48  ;;  %v5588_v33 = vadd.f32 %v5166_v7, %v254_v20  ;;  %v4850_v17 = vunpack.c.l.bf16 %v5051_v24  ;;  %v4851_v16 = vunpack.c.h.bf16 %v5051_v24  ;;  %v4681_v24 = vld [vmem:[%s6555_s2 + $0x88] sm:$0xff]  ;;  %v4696_v14 = vld [vmem:[%s6555_s2 + $0x100] sm:$0xff] }
  0x53   :  { %29 = vst [vmem:[#allocation2] sm:$0x1] %v5120_v1  ;;  %v5605_v46 = vadd.f32 %v5166_v7, %v286_v32  ;;  %984 = vmatpush.bf16.msrb.mxu1 %v4667_v15  ;;  %v4819_v32 = vunpack.c.h.bf16 %v5043_v57  ;;  %1316 = vmatpush.bf16.msrb.mxu2 %v4681_v24  ;;  %v6588_v24 = vmax.f32 %v5507_v36, 0.0 }
  0x54   :  { %46 = vst [vmem:[#allocation2 + $0x198] sm:$0x1] %v5120_v1  ;;  %v384_v20 = vmax.f32 %v5588_v33, 0.0  ;;  %v287_v34 = vmul.f32 %v5161_v6, %v4850_v17  ;;  %v288_v38 = vmul.f32 %v5161_v6, %v4851_v16  ;;  %v6582_v17 = vmax.f32 %v5465_v53, 0.0 }
  0x55   :  { %64 = vst [vmem:[#allocation2 + $0x348] sm:$0x1] %v5120_v1  ;;  %v416_v47 = vmax.f32 %v5605_v46, 0.0  ;;  %v272_v19 = vmul.f32 %v5161_v6, %v4819_v32  ;;  %v6584_v53 = vmax.f32 %v5478_v21, 0.0  ;;  %v5052_v21 = vld [vmem:[%s6556_s0 + $0xe8] sm:$0xff]  }
  0x56   :  { %65 = vst [vmem:[#allocation2 + $0x11] sm:$0x1] %v5120_v1 }
  0x57   :  { %82 = vst [vmem:[#allocation2 + $0x1a9] sm:$0x1] %v5120_v1  ;;  %985 = vmatpush.bf16.msrb.mxu1 %v4666_v0 }
  0x58   :  { %100 = vst [vmem:[#allocation2 + $0x359] sm:$0x1] %v5120_v1  ;;  %v383_v1 = vmax.f32 %v5585_v25, 0.0 }
  0x59   :  { %442 = vst [vmem:[#allocation2 + $0xd9] sm:$0xff] %v377_v2  ;;  %v415_v2 = vmax.f32 %v5602_v40, 0.0 }
  0x5a   :  { %443 = vst [vmem:[#allocation2 + $0xe1] sm:$0xff] %v378_v3  ;;  %v368_v3 = vmax.f32 %v5612_v49, 0.0  ;;  %v678_v60 = vpack.c.bf16 %v384_v20, %v383_v1  ;;  %v5045_v49 = vld [vmem:[%s6556_s0 + $0xb0] sm:$0xff]  }
  0x5b   :  { %458 = vst [vmem:[#allocation2 + $0x1c9] sm:$0xff] %v393_v4  ;;  %v686_v4 = vpack.c.bf16 %v400_v31, %v399_v26 }
  0x5c   :  { %459 = vst [vmem:[#allocation2 + $0x1d1] sm:$0xff] %v394_v5  ;;  %v4818_v5 = vunpack.c.l.bf16 %v5043_v57  ;;  %v5678_v62 = vpack.c.bf16 %v368_v3, %v367_v58  ;;  %v6577_v57 = vmax.f32 %v5370_v43, 0.0  ;;  %v6579_v43 = vmax.f32 %v5378_v45, 0.0 }
  0x5d   :  { %474 = vst [vmem:[#allocation2 + $0x289] sm:$0xff] %v409_v8  ;;  %v694_v8 = vpack.c.bf16 %v416_v47, %v415_v2 }
  0x5e   :  { %475 = vst [vmem:[#allocation2 + $0x291] sm:$0xff] %v410_v10  ;;  %v256_v10 = vmul.f32 %v5161_v6, %v4787_v27  ;;  %v271_v15 = vmul.f32 %v5161_v6, %v4818_v5  ;;  %v5718_v27 = vadd.f32 %v5166_v7, %v272_v19  ;;  %v385_v5 = vmax.f32 %v5706_v41, 0.0 }
  0x5f   :  { %426 = vst [vmem:[#allocation2 + $0x19] sm:$0xff] %v361_v11  ;;  %v4755_v11 = vunpack.c.h.bf16 %v5027_v59  ;;  %v6580_v59 = vmax.f32 %v5395_v51, 0.0  ;;  %v4689_v51 = vld [vmem:[%s6555_s2 + $0xc8] sm:$0xff] }
  0x60   :  { %427 = vst [vmem:[#allocation2 + $0x21] sm:$0xff] %v362_v12  ;;  %v4698_v12 = vld [vmem:[%s6555_s2 + $0x110] sm:$0xff]  ;;  %v5715_v30 = vadd.f32 %v5166_v7, %v271_v15  ;;  %1710 = vmatpush.bf16.msrb.mxu3 %v4689_v51  ;;  %v6589_v51 = vmax.f32 %v5510_v37, 0.0 }
  0x61   :  { %444 = vst [vmem:[#allocation2 + $0xf1] sm:$0xff] %v379_v50  ;;  %831 = vmatmul.bf16.gmra.mxu1 %v678_v60  ;;  %871 = vmatmul.bf16.gmra.mxu2 %v686_v4  ;;  %v239_v50 = vmul.f32 %v5161_v6, %v4754_v35  ;;  %v240_v42 = vmul.f32 %v5161_v6, %v4755_v11  ;;  %v6581_v4 = vmax.f32 %v5398_v52, 0.0  ;;  %v4665_v52 = vld [vmem:[%s6555_s2 + $0x8] sm:$0xff]  ;;  %v402_v35 = vmax.f32 %v5718_v27, 0.0  ;;  %v5029_v27 = vld [vmem:[%s6556_s0 + $0x30] sm:$0xff]  }
  0x62   :  { %445 = vst [vmem:[#allocation2 + $0xf9] sm:$0xff] %v380_v54  ;;  %911 = vmatmul.bf16.gmra.mxu3 %v694_v8  ;;  %2103 = vmatpush.bf16.msrb.mxu0 %v4698_v12  ;;  %v5709_v54 = vadd.f32 %v5166_v7, %v256_v10  ;;  %v5728_v60 = vadd.f32 %v5166_v7, %v287_v34  ;;  %v4697_v8 = vld [vmem:[%s6555_s2 + $0x108] sm:$0xff]  ;;  %v401_v16 = vmax.f32 %v5715_v30, 0.0  ;;  %v6583_v10 = vmax.f32 %v5472_v18, 0.0 }
  0x63   :  { %460 = vst [vmem:[#allocation2 + $0x1e1] sm:$0xff] %v395_v55  ;;  %791 = vmatmul.bf16.gmra.mxu0 %v5678_v62  ;;  %v6578_v55 = vmax.f32 %v5375_v44, 0.0  ;;  %v5731_v44 = vadd.f32 %v5166_v7, %v288_v38  ;;  %v5738_v32 = vadd.f32 %v5166_v7, %v239_v50  ;;  %v5741_v61 = vadd.f32 %v5166_v7, %v240_v42  ;;  %v5044_v11 = vld [vmem:[%s6556_s0 + $0xa8] sm:$0xff]  }
  0x64   :  { %461 = vst [vmem:[#allocation2 + $0x1e9] sm:$0xff] %v6577_v57  ;;  %v386_v45 = vmax.f32 %v5709_v54, 0.0  ;;  %986 = vmatpush.bf16.msrb.mxu1 %v4665_v52  ;;  %v417_v9 = vmax.f32 %v5728_v60, 0.0  ;;  %v6585_v12 = vmax.f32 %v5481_v22, 0.0  ;;  %v4790_v34 = vunpack.c.l.bf16 %v5036_v63  ;;  %v5887_v60 = vld [vmem:[%s6557_s1] ss:$0 sm:$0xff] }
  0x65   :  { %476 = vst [vmem:[#allocation2 + $0x2a1] sm:$0xff] %v6578_v55  ;;  %v418_v0 = vmax.f32 %v5731_v44, 0.0  ;;  %v369_v15 = vmax.f32 %v5738_v32, 0.0  ;;  %v370_v19 = vmax.f32 %v5741_v61, 0.0  ;;  %v6586_v38 = vmax.f32 %v5490_v28, 0.0  ;;  %v5028_v55 = vld [vmem:[%s6556_s0 + $0x28] sm:$0xff]  }
  0x66   :  { %477 = vst [vmem:[#allocation2 + $0x2a9] sm:$0xff] %v6579_v43  ;;  %2104 = vmatpush.bf16.msrb.mxu0 %v4697_v8  ;;  %v679_v18 = vpack.c.bf16 %v386_v45, %v385_v5  ;;  %v687_v22 = vpack.c.bf16 %v402_v35, %v401_v16  ;;  %v4791_v50 = vunpack.c.h.bf16 %v5036_v63  ;;  %v4822_v57 = vunpack.c.l.bf16 %v5044_v11  ;;  %v5900_v61 = vld [vmem:[%s6557_s1 + $0x1] ss:$0 sm:$0xff] }
  0x67   :  { %428 = vst [vmem:[#allocation2 + $0x31] sm:$0xff] %v6580_v59  ;;  %v4823_v42 = vunpack.c.h.bf16 %v5044_v11  ;;  %v6587_v43 = vmax.f32 %v5493_v29, 0.0  ;;  %v695_v28 = vpack.c.bf16 %v418_v0, %v417_v9  ;;  %v4854_v59 = vunpack.c.l.bf16 %v5052_v21  ;;  %v4664_v11 = vld [vmem:[%s6555_s2] sm:$0xff] }
  0x68   :  { %429 = vst [vmem:[#allocation2 + $0x39] sm:$0xff] %v6581_v4  ;;  %v4855_v4 = vunpack.c.h.bf16 %v5052_v21  ;;  %v5802_v52 = vpack.c.bf16 %v370_v19, %v369_v15  ;;  %v257_v29 = vmul.f32 %v5161_v6, %v4790_v34  ;;  %v4758_v36 = vunpack.c.l.bf16 %v5028_v55  ;;  %987 = vmatpush.bf16.msrb.mxu1 %v4664_v11 }
  0x69   :  { %446 = vst [vmem:[#allocation2 + $0x109] sm:$0xff] %v6582_v17  ;;  %v4759_v8 = vunpack.c.h.bf16 %v5028_v55  ;;  %v258_v17 = vmul.f32 %v5161_v6, %v4791_v50  ;;  %v273_v37 = vmul.f32 %v5161_v6, %v4822_v57  ;;  %v274_v63 = vmul.f32 %v5161_v6, %v4823_v42 }
  0x6a   :  { %447 = vst [vmem:[#allocation2 + $0x111] sm:$0xff] %v6583_v10  ;;  %v289_v10 = vmul.f32 %v5161_v6, %v4854_v59  ;;  %v290_v25 = vmul.f32 %v5161_v6, %v4855_v4  ;;  %v323_v33 = vadd.f32 %v5166_v7, %v257_v29  ;;  %2105 = vmatpush.bf16.msrb.mxu0 %v4696_v14  ;;  %v4794_v21 = vunpack.c.l.bf16 %v5037_v56  ;;  %v4727_v29 = vld [vmem:[%s6555_s2 + $0x1f8] sm:$0xff] }
  0x6b   :  { %462 = vst [vmem:[#allocation2 + $0x1f9] sm:$0xff] %v6584_v53  ;;  %v242_v13 = vmul.f32 %v5161_v6, %v4759_v8  ;;  %v339_v53 = vadd.f32 %v5166_v7, %v273_v37  ;;  %v4795_v54 = vunpack.c.h.bf16 %v5037_v56  ;;  %v4763_v32 = vunpack.c.h.bf16 %v5029_v27  ;;  %v1149_v56 = vld [vmem:[#allocation2 + $0x2] sm:$0xff] }
  0x6c   :  { %463 = vst [vmem:[#allocation2 + $0x201] sm:$0xff] %v6585_v12  ;;  %v355_v12 = vadd.f32 %v5166_v7, %v289_v10  ;;  %v5845_v40 = vadd.f32 %v5166_v7, %v290_v25  ;;  %v4735_v25 = vld [vmem:[%s6555_s2 + $0x238] sm:$0xff] }
  0x6d   :  { %478 = vst [vmem:[#allocation2 + $0x2b9] sm:$0xff] %v6586_v38  ;;  %v5853_v46 = vadd.f32 %v5166_v7, %v242_v13  ;;  %v4826_v38 = vunpack.c.l.bf16 %v5045_v49  ;;  %v260_v44 = vmul.f32 %v5887_v60, %v4795_v54 }
  0x6e   :  { %479 = vst [vmem:[#allocation2 + $0x2c1] sm:$0xff] %v6587_v43  ;;  %3675 = vmatpush.bf16.msra.mxu0 %v4735_v25  ;;  %v4710_v25 = vld [vmem:[%s6555_s2 + $0x170] sm:$0xff] }
  0x6f   :  { %430 = vst [vmem:[#allocation2 + $0x49] sm:$0xff] %v6588_v24  ;;  %v326_v59 = vadd.f32 %v5900_v61, %v260_v44 }
  0x70   :  { %431 = vst [vmem:[#allocation2 + $0x51] sm:$0xff] %v6589_v51  ;;  %v244_v51 = vmul.f32 %v5887_v60, %v4763_v32 }
  0x71   :  { %448 = vst [vmem:[#allocation2 + $0x121] sm:$0xff] %v383_v1  ;;  %836 = vmatmul.bf16.gmra.mxu1 %v679_v18  ;;  %876 = vmatmul.bf16.gmra.mxu2 %v687_v22  ;;  %v4680_v1 = vld [vmem:[%s6555_s2 + $0x80] sm:$0xff]  ;;  %v403_v18 = vmax.f32 %v339_v53, 0.0  ;;  %v4827_v22 = vunpack.c.h.bf16 %v5045_v49 }
  0x72   :  { %449 = vst [vmem:[#allocation2 + $0x129] sm:$0xff] %v384_v20  ;;  %916 = vmatmul.bf16.gmra.mxu3 %v695_v28  ;;  %v241_v20 = vmul.f32 %v5161_v6, %v4758_v36  ;;  %v340_v6 = vadd.f32 %v5166_v7, %v274_v63  ;;  %1317 = vmatpush.bf16.msrb.mxu2 %v4680_v1  ;;  %v4719_v28 = vld [vmem:[%s6555_s2 + $0x1b8] sm:$0xff]  ;;  %v390_v1 = vmax.f32 %v326_v59, 0.0 }
  0x73   :  { %464 = vst [vmem:[#allocation2 + $0x211] sm:$0xff] %v399_v26  ;;  %796 = vmatmul.bf16.gmra.mxu0 %v5802_v52  ;;  %v4688_v26 = vld [vmem:[%s6555_s2 + $0xc0] sm:$0xff]  ;;  %v276_v55 = vmul.f32 %v5887_v60, %v4827_v22 }
  0x74   :  { %465 = vst [vmem:[#allocation2 + $0x219] sm:$0xff] %v400_v31  ;;  %v324_v31 = vadd.f32 %v5166_v7, %v258_v17  ;;  %1711 = vmatpush.bf16.msrb.mxu3 %v4688_v26  ;;  %v404_v34 = vmax.f32 %v340_v6, 0.0  ;;  %v4711_v17 = vld [vmem:[%s6555_s2 + $0x178] sm:$0xff] }
  0x75   :  { %480 = vst [vmem:[#allocation2 + $0x2d1] sm:$0xff] %v415_v2  ;;  %v5850_v2 = vadd.f32 %v5166_v7, %v241_v20  ;;  %v419_v7 = vmax.f32 %v355_v12, 0.0  ;;  %v342_v8 = vadd.f32 %v5900_v61, %v276_v55  ;;  %2492 = vmatpush.bf16.msra.mxu1 %v4711_v17  ;;  %v310_v20 = vadd.f32 %v5900_v61, %v244_v51 }
  0x76   :  { %481 = vst [vmem:[#allocation2 + $0x2d9] sm:$0xff] %v416_v47  ;;  %v387_v47 = vmax.f32 %v323_v33, 0.0  ;;  %2887 = vmatpush.bf16.msra.mxu2 %v4719_v28  ;;  %v1547_v28 = vld [vmem:[#allocation2 + $0x48] sm:$0xff] }
  0x77   :  { %432 = vst [vmem:[#allocation2 + $0x61] sm:$0xff] %v367_v58  ;;  %v388_v58 = vmax.f32 %v324_v31, 0.0  ;;  %v371_v41 = vmax.f32 %v5850_v2, 0.0  ;;  %v406_v26 = vmax.f32 %v342_v8, 0.0  ;;  %v374_v53 = vmax.f32 %v310_v20, 0.0  ;;  %v1548_v59 = vld [vmem:[#allocation2 + $0x50] sm:$0xff] }
  0x78   :  { %433 = vst [vmem:[#allocation2 + $0x69] sm:$0xff] %v368_v3  ;;  %v420_v3 = vmax.f32 %v5845_v40, 0.0  ;;  %3281 = vmatpush.bf16.msra.mxu3 %v4727_v29  ;;  %v4718_v8 = vld [vmem:[%s6555_s2 + $0x1b0] sm:$0xff] }
  0x79   :  { %450 = vst [vmem:[#allocation2 + $0x139] sm:$0xff] %v385_v5  ;;  %v372_v5 = vmax.f32 %v5853_v46, 0.0  ;;  %v680_v30 = vpack.c.bf16 %v388_v58, %v387_v47  ;;  %v490_v46 = vld [vmem:[#allocation2] sm:$0xff]  ;;  %2493 = vmatpush.bf16.msra.mxu1 %v4710_v25  ;;  %v1156_v20 = vld [vmem:[#allocation2 + $0x52] sm:$0xff] }
  0x7a   :  { %451 = vst [vmem:[#allocation2 + $0x141] sm:$0xff] %v386_v45  ;;  %v5053_v45 = vld [vmem:[%s6556_s0 + $0xf0] sm:$0xff]   ;;  %2888 = vmatpush.bf16.msra.mxu2 %v4718_v8 }
  0x7b   :  { %466 = vst [vmem:[#allocation2 + $0x229] sm:$0xff] %v401_v16  ;;  %v688_v16 = vpack.c.bf16 %v404_v34, %v403_v18  ;;  %v4858_v50 = vunpack.c.l.bf16 %v5053_v45  ;;  %v4859_v57 = vunpack.c.h.bf16 %v5053_v45  ;;  %v5892_v42 = vpack.c.bf16 %v372_v5, %v371_v41 }
  0x7c   :  { %467 = vst [vmem:[#allocation2 + $0x231] sm:$0xff] %v402_v35  ;;  %v696_v35 = vpack.c.bf16 %v420_v3, %v419_v7 }
  0x7d   :  { %482 = vst [vmem:[#allocation2 + $0x2e9] sm:$0xff] %v417_v9  ;;  %v259_v9 = vmul.f32 %v5887_v60, %v4794_v21  ;;  %v291_v43 = vmul.f32 %v5887_v60, %v4858_v50  ;;  %v292_v24 = vmul.f32 %v5887_v60, %v4859_v57 }
  0x7e   :  { %483 = vst [vmem:[#allocation2 + $0x2f1] sm:$0xff] %v418_v0  ;;  %v4762_v0 = vunpack.c.l.bf16 %v5029_v27  ;;  %v1545_v27 = vld [vmem:[#allocation2 + $0x30] sm:$0xff] }
  0x7f   :  { %434 = vst [vmem:[#allocation2 + $0x79] sm:$0xff] %v369_v15  ;;  %v275_v15 = vmul.f32 %v5887_v60, %v4826_v38  ;;  %v357_v63 = vadd.f32 %v5900_v61, %v291_v43  ;;  %v358_v10 = vadd.f32 %v5900_v61, %v292_v24  ;;  %v1152_v38 = vld [vmem:[#allocation2 + $0x22] sm:$0xff]  ;;  %v1154_v43 = vld [vmem:[#allocation2 + $0x3a] sm:$0xff] }
  0x80   :  { %435 = vst [vmem:[#allocation2 + $0x81] sm:$0xff] %v370_v19  ;;  %v325_v19 = vadd.f32 %v5900_v61, %v259_v9  ;;  %v243_v4 = vmul.f32 %v5887_v60, %v4762_v0 }
  0x81   :  { %452 = vst [vmem:[#allocation2 + $0x151] sm:$0xff] %v387_v47  ;;  %841 = vmatmul.bf16.gmra.mxu1 %v680_v30  ;;  %881 = vmatmul.bf16.gmra.mxu2 %v688_v16  ;;  %v341_v36 = vadd.f32 %v5900_v61, %v275_v15  ;;  %v421_v11 = vmax.f32 %v357_v63, 0.0  ;;  %v422_v14 = vmax.f32 %v358_v10, 0.0  ;;  %v1150_v47 = vld [vmem:[#allocation2 + $0xa] sm:$0xff]  ;;  %v1151_v16 = vld [vmem:[#allocation2 + $0x1a] sm:$0xff] }
  0x82   :  { %453 = vst [vmem:[#allocation2 + $0x159] sm:$0xff] %v388_v58  ;;  %921 = vmatmul.bf16.gmra.mxu3 %v696_v35  ;;  %v389_v37 = vmax.f32 %v325_v19, 0.0  ;;  %v309_v33 = vadd.f32 %v5900_v61, %v243_v4  ;;  %v1543_v58 = vld [vmem:[#allocation2 + $0x18] sm:$0xff]  ;;  %v1214_v50 = vpack.c.bf16 %v1152_v38, %v1151_v16 }
  0x83   :  { %468 = vst [vmem:[#allocation2 + $0x241] sm:$0xff] %v403_v18  ;;  %801 = vmatmul.bf16.gmra.mxu0 %v5892_v42  ;;  %v405_v13 = vmax.f32 %v341_v36, 0.0  ;;  %v697_v40 = vpack.c.bf16 %v422_v14, %v421_v11  ;;  %v1544_v18 = vld [vmem:[#allocation2 + $0x20] sm:$0xff]  ;;  %v1546_v35 = vld [vmem:[#allocation2 + $0x38] sm:$0xff] }
  0x84   :  { %469 = vst [vmem:[#allocation2 + $0x249] sm:$0xff] %v404_v34  ;;  %v373_v31 = vmax.f32 %v309_v33, 0.0  ;;  %v681_v6 = vpack.c.bf16 %v390_v1, %v389_v37  ;;  %v5930_v34 = vld [vmem:[#allocation2 + $0x1b8] sm:$0xff]  ;;  %v1608_v44 = vpack.c.bf16 %v1546_v35, %v1545_v27  ;;  %v1155_v33 = vld [vmem:[#allocation2 + $0x4a] sm:$0xff] }
  0x85   :  { %484 = vst [vmem:[#allocation2 + $0x301] sm:$0xff] %v419_v7  ;;  %v689_v12 = vpack.c.bf16 %v406_v26, %v405_v13  ;;  %v554_v49 = vpack.c.bf16 %v5930_v34, %v490_v46  ;;  %v1213_v7 = vpack.c.bf16 %v1150_v47, %v1149_v56  ;;  %v1153_v19 = vld [vmem:[#allocation2 + $0x32] sm:$0xff] }
  0x86   :  { %485 = vst [vmem:[#allocation2 + $0x309] sm:$0xff] %v420_v3  ;;  %v5927_v2 = vpack.c.bf16 %v374_v53, %v373_v31  ;;  %v1215_v51 = vpack.c.bf16 %v1154_v43, %v1153_v19 }
  0x87   :  { %436 = vst [vmem:[#allocation2 + $0x91] sm:$0xff] %v371_v41  ;;  %v1607_v41 = vpack.c.bf16 %v1544_v18, %v1543_v58  ;;  %v1157_v58 = vld [vmem:[#allocation2 + $0x62] sm:$0xff]  ;;  %v1158_v18 = vld [vmem:[#allocation2 + $0x6a] sm:$0xff] }
  0x88   :  { %437 = vst [vmem:[#allocation2 + $0x99] sm:$0xff] %v372_v5  ;;  %v1217_v16 = vpack.c.bf16 %v1158_v18, %v1157_v58 }
  0x89   :  { %454 = vst [vmem:[#allocation2 + $0x169] sm:$0xff] %v389_v37  ;;  %v4726_v37 = vld [vmem:[%s6555_s2 + $0x1f0] sm:$0xff] }
  0x8a   :  { %455 = vst [vmem:[#allocation2 + $0x171] sm:$0xff] %v390_v1  ;;  %3282 = vmatpush.bf16.msra.mxu3 %v4726_v37 }
  0x8b   :  { %470 = vst [vmem:[#allocation2 + $0x259] sm:$0xff] %v405_v13 }
  0x8c   :  { %471 = vst [vmem:[#allocation2 + $0x261] sm:$0xff] %v406_v26  ;;  %v1549_v26 = vld [vmem:[#allocation2 + $0x60] sm:$0xff] }
  0x8d   :  { %486 = vst [vmem:[#allocation2 + $0x319] sm:$0xff] %v421_v11  ;;  %v1550_v11 = vld [vmem:[#allocation2 + $0x68] sm:$0xff] }
  0x8e   :  { %487 = vst [vmem:[#allocation2 + $0x321] sm:$0xff] %v422_v14  ;;  %v1216_v14 = vpack.c.bf16 %v1156_v20, %v1155_v33 }
  0x8f   :  { %438 = vst [vmem:[#allocation2 + $0xa9] sm:$0xff] %v373_v31  ;;  %v1554_v8 = vld [vmem:[#allocation2 + $0x98] sm:$0xff] }
  0x90   :  { %439 = vst [vmem:[#allocation2 + $0xb1] sm:$0xff] %v374_v53  ;;  %v1162_v58 = vld [vmem:[#allocation2 + $0x9a] sm:$0xff] }
  0x91   :  { %846 = vmatmul.bf16.gmra.mxu1 %v681_v6  ;;  %886 = vmatmul.bf16.gmra.mxu2 %v689_v12  ;;  %v1610_v6 = vpack.c.bf16 %v1550_v11, %v1549_v26 }
  0x92   :  { %926 = vmatmul.bf16.gmra.mxu3 %v697_v40 }
  0x93   :  { %806 = vmatmul.bf16.gmra.mxu0 %v5927_v2 }
  0x9e   :  { %v5933_v3 = vpop.f32.mrf.mxu1 }
  0x9f   :  { %v5935_v21 = vpop.f32.mrf.mxu0 }
  0xa1   :  { %988 = vmatmul.bf16.vlgmr.msrb.gmra.mxu1 %v554_v49  ;;  %1318 = vmatmul.bf16.vlgmr.msrb.gmra.mxu2 %v1213_v7  ;;  %v1551_v7 = vld [vmem:[#allocation2 + $0x78] sm:$0xff] }
  0xa2   :  { %1712 = vmatmul.bf16.vlgmr.msrb.gmra.mxu3 %v1607_v41 }
  0xa3   :  { %2106 = vmatmul.bf16.vlgmr.msrb.gmra.mxu0 %v5342_v23 }
  0xa4   :  { %v5938_v5 = vpop.f32.mrf.mxu2 }
  0xa5   :  { %v5940_v54 = vpop.f32.mrf.mxu3 }
  0xa6   :  { %6590 = vst [vmem:[#allocation3_spill] sm:$0xff] %v5940_v54  ;;  %v5942_v45 = vpop.f32.mrf.mxu1 }
  0xa7   :  { %v5944_v30 = vpop.f32.mrf.mxu0 }
  0xac   :  { %v5946_v22 = vpop.f32.mrf.mxu2 }
  0xad   :  { %v5948_v9 = vpop.f32.mrf.mxu3 }
  0xae   :  { %6591 = vst [vmem:[#allocation4_spill] sm:$0xff] %v5948_v9  ;;  %v5950_v57 = vpop.f32.mrf.mxu1 }
  0xaf   :  { %v5952_v23 = vpop.f32.mrf.mxu0 }
  0xb1   :  { %993 = vmatmul.bf16.gmra.mxu1 %v1607_v41  ;;  %1323 = vmatmul.bf16.gmra.mxu2 %v1214_v50  ;;  %v1552_v41 = vld [vmem:[#allocation2 + $0x80] sm:$0xff] }
  0xb2   :  { %1717 = vmatmul.bf16.gmra.mxu3 %v1608_v44 }
  0xb3   :  { %2111 = vmatmul.bf16.gmra.mxu0 %v5456_v39  ;;  %v1609_v39 = vpack.c.bf16 %v1548_v59, %v1547_v28  ;;  %v1159_v28 = vld [vmem:[#allocation2 + $0x7a] sm:$0xff]  ;;  %v1160_v59 = vld [vmem:[#allocation2 + $0x82] sm:$0xff] }
  0xb4   :  { %v5955_v0 = vpop.f32.mrf.mxu2  ;;  %v1218_v37 = vpack.c.bf16 %v1160_v59, %v1159_v28 }
  0xb5   :  { %v5957_v32 = vpop.f32.mrf.mxu3 }
  0xb6   :  { %6592 = vst [vmem:[#allocation5_spill] sm:$0xff] %v5957_v32  ;;  %v5959_v15 = vpop.f32.mrf.mxu1 }
  0xb7   :  { %v5961_v55 = vpop.f32.mrf.mxu0 }
  0xbc   :  { %v5963_v24 = vpop.f32.mrf.mxu2 }
  0xbd   :  { %v5965_v4 = vpop.f32.mrf.mxu3 }
  0xbe   :  { %6593 = vst [vmem:[#allocation6_spill] sm:$0xff] %v5965_v4  ;;  %v5967_v29 = vpop.f32.mrf.mxu1 }
  0xbf   :  { %v5969_v36 = vpop.f32.mrf.mxu0 }
  0xc1   :  { %998 = vmatmul.bf16.gmra.mxu1 %v1608_v44  ;;  %1328 = vmatmul.bf16.gmra.mxu2 %v1215_v51 }
  0xc2   :  { %1722 = vmatmul.bf16.gmra.mxu3 %v1609_v39 }
  0xc3   :  { %2116 = vmatmul.bf16.gmra.mxu0 %v5557_v48  ;;  %v4734_v48 = vld [vmem:[%s6555_s2 + $0x230] sm:$0xff] }
  0xc4   :  { %v5975_v17 = vpop.f32.mrf.mxu2  ;;  %3676 = vmatpush.bf16.msra.mxu0 %v4734_v48 }
  0xc5   :  { %v5980_v63 = vpop.f32.mrf.mxu3 }
  0xc6   :  { %6594 = vst [vmem:[#allocation7_spill] sm:$0xff] %v5980_v63  ;;  %v5982_v10 = vpop.f32.mrf.mxu1 }
  0xc7   :  { %v5987_v1 = vpop.f32.mrf.mxu0 }
  0xcc   :  { %v5992_v13 = vpop.f32.mrf.mxu2 }
  0xcd   :  { %v5994_v31 = vpop.f32.mrf.mxu3 }
  0xce   :  { %6595 = vst [vmem:[#allocation8_spill] sm:$0xff] %v5994_v31  ;;  %v5996_v53 = vpop.f32.mrf.mxu1 }
  0xcf   :  { %v5998_v12 = vpop.f32.mrf.mxu0 }
  0xd1   :  { %1003 = vmatmul.bf16.gmra.mxu1 %v1609_v39  ;;  %1333 = vmatmul.bf16.gmra.mxu2 %v1216_v14  ;;  %v1553_v39 = vld [vmem:[#allocation2 + $0x90] sm:$0xff] }
  0xd2   :  { %1727 = vmatmul.bf16.gmra.mxu3 %v1610_v6 }
  0xd3   :  { %2121 = vmatmul.bf16.gmra.mxu0 %v5678_v62  ;;  %v1611_v62 = vpack.c.bf16 %v1552_v41, %v1551_v7  ;;  %v1555_v7 = vld [vmem:[#allocation2 + $0xa8] sm:$0xff]  ;;  %v1556_v41 = vld [vmem:[#allocation2 + $0xb0] sm:$0xff] }
  0xd4   :  { %v6001_v40 = vpop.f32.mrf.mxu2 }
  0xd5   :  { %v6003_v46 = vpop.f32.mrf.mxu3 }
  0xd6   :  { %6596 = vst [vmem:[#allocation9_spill] sm:$0xff] %v6003_v46  ;;  %v6005_v56 = vpop.f32.mrf.mxu1 }
  0xd7   :  { %v6007_v47 = vpop.f32.mrf.mxu0 }
  0xdc   :  { %v6009_v49 = vpop.f32.mrf.mxu2 }
  0xdd   :  { %6597 = vst [vmem:[#allocation10_spill] sm:$0xff] %v6009_v49  ;;  %v6011_v38 = vpop.f32.mrf.mxu3 }
  0xde   :  { %6598 = vst [vmem:[#allocation11_spill] sm:$0xff] %v6011_v38  ;;  %v6013_v27 = vpop.f32.mrf.mxu1 }
  0xe0   :  { %v6015_v35 = vpop.f32.mrf.mxu0 }
  0xe1   :  { %1008 = vmatmul.bf16.gmra.mxu1 %v1610_v6  ;;  %1338 = vmatmul.bf16.gmra.mxu2 %v1217_v16  ;;  %v1161_v6 = vld [vmem:[#allocation2 + $0x92] sm:$0xff] }
  0xe2   :  { %1732 = vmatmul.bf16.gmra.mxu3 %v1611_v62  ;;  %v1219_v16 = vpack.c.bf16 %v1162_v58, %v1161_v6 }
  0xe3   :  { %2126 = vmatmul.bf16.gmra.mxu0 %v5802_v52  ;;  %v1612_v52 = vpack.c.bf16 %v1554_v8, %v1553_v39  ;;  %v4717_v39 = vld [vmem:[%s6555_s2 + $0x1a8] sm:$0xff] }
  0xe4   :  { %v6018_v50 = vpop.f32.mrf.mxu2  ;;  %2889 = vmatpush.bf16.msra.mxu2 %v4717_v39 }
  0xe5   :  { %6599 = vst [vmem:[#allocation12_spill] sm:$0xff] %v6018_v50  ;;  %v6020_v44 = vpop.f32.mrf.mxu3 }
  0xe6   :  { %6600 = vst [vmem:[#allocation13_spill] sm:$0xff] %v6020_v44  ;;  %v6022_v19 = vpop.f32.mrf.mxu1 }
  0xe8   :  { %v6024_v43 = vpop.f32.mrf.mxu0 }
  0xec   :  { %v6026_v51 = vpop.f32.mrf.mxu2 }
  0xed   :  { %6601 = vst [vmem:[#allocation14_spill] sm:$0xff] %v6026_v51  ;;  %v6028_v25 = vpop.f32.mrf.mxu3  ;;  %v1167_v51 = vld [vmem:[#allocation2 + $0xda] sm:$0xff] }
  0xee   :  { %6602 = vst [vmem:[#allocation15_spill] sm:$0xff] %v6028_v25  ;;  %v6030_v48 = vpop.f32.mrf.mxu1  ;;  %v1952_v25 = vld [vmem:[#allocation2 + $0xc9] sm:$0xff] }
  0xf0   :  { %v6032_v33 = vpop.f32.mrf.mxu0 }
  0xf1   :  { %1013 = vmatmul.bf16.gmra.mxu1 %v1611_v62  ;;  %1343 = vmatmul.bf16.gmra.mxu2 %v1218_v37  ;;  %v4725_v37 = vld [vmem:[%s6555_s2 + $0x1e8] sm:$0xff] }
  0xf2   :  { %1737 = vmatmul.bf16.gmra.mxu3 %v1612_v52 }
  0xf3   :  { %2131 = vmatmul.bf16.gmra.mxu0 %v5892_v42  ;;  %v1613_v42 = vpack.c.bf16 %v1556_v41, %v1555_v7  ;;  %3283 = vmatpush.bf16.msra.mxu3 %v4725_v37  ;;  %v1163_v41 = vld [vmem:[#allocation2 + $0xaa] sm:$0xff]  ;;  %v1951_v37 = vld [vmem:[#allocation2 + $0xc1] sm:$0xff] }
  0xf4   :  { %v6035_v20 = vpop.f32.mrf.mxu2 }
  0xf5   :  { %6603 = vst [vmem:[#allocation16_spill] sm:$0xff] %v6035_v20  ;;  %v6037_v26 = vpop.f32.mrf.mxu3 }
  0xf6   :  { %6604 = vst [vmem:[#allocation17_spill] sm:$0xff] %v6037_v26  ;;  %v6039_v11 = vpop.f32.mrf.mxu1 }
  0xf8   :  { %v6041_v14 = vpop.f32.mrf.mxu0 }
  0xfc   :  { %v6043_v18 = vpop.f32.mrf.mxu2 }
  0xfd   :  { %6605 = vst [vmem:[#allocation18_spill] sm:$0xff] %v6043_v18  ;;  %v6045_v62 = vpop.f32.mrf.mxu3 }
  0xfe   :  { %6606 = vst [vmem:[#allocation19_spill] sm:$0xff] %v6045_v62  ;;  %v6047_v28 = vpop.f32.mrf.mxu1  ;;  %v1558_v62 = vld [vmem:[#allocation2 + $0xc8] sm:$0xff] }
 0x100   :  { %v6049_v59 = vpop.f32.mrf.mxu0 }
 0x101   :  { %1018 = vmatmul.bf16.gmra.mxu1 %v1612_v52  ;;  %1348 = vmatmul.bf16.gmra.mxu2 %v1219_v16  ;;  %v4709_v52 = vld [vmem:[%s6555_s2 + $0x168] sm:$0xff]  ;;  %v1164_v16 = vld [vmem:[#allocation2 + $0xb2] sm:$0xff] }
 0x102   :  { %1742 = vmatmul.bf16.gmra.mxu3 %v1613_v42  ;;  %2494 = vmatpush.bf16.msra.mxu1 %v4709_v52  ;;  %v1220_v26 = vpack.c.bf16 %v1164_v16, %v1163_v41  ;;  %v2008_v52 = vpack.c.bf16 %v1952_v25, %v1951_v37  ;;  %v1165_v16 = vld [vmem:[#allocation2 + $0xc2] sm:$0xff]  ;;  %v1953_v37 = vld [vmem:[#allocation2 + $0xd9] sm:$0xff] }
 0x103   :  { %2136 = vmatmul.bf16.gmra.mxu0 %v5927_v2  ;;  %v4733_v2 = vld [vmem:[%s6555_s2 + $0x228] sm:$0xff]  ;;  %v1560_v25 = vld [vmem:[#allocation2 + $0xe0] sm:$0xff] }
 0x104   :  { %v6055_v8 = vpop.f32.mrf.mxu2  ;;  %3677 = vmatpush.bf16.msra.mxu0 %v4733_v2 }
 0x105   :  { %6607 = vst [vmem:[#allocation20_spill] sm:$0xff] %v6055_v8  ;;  %v6060_v6 = vpop.f32.mrf.mxu3 }
 0x106   :  { %6608 = vst [vmem:[#allocation21_spill] sm:$0xff] %v6060_v6  ;;  %v6062_v58 = vpop.f32.mrf.mxu1  ;;  %v1557_v6 = vld [vmem:[#allocation2 + $0xc0] sm:$0xff] }
 0x107   :  { %v1614_v46 = vpack.c.bf16 %v1558_v62, %v1557_v6  ;;  %v1559_v62 = vld [vmem:[#allocation2 + $0xd8] sm:$0xff] }
 0x108   :  { %v6067_v7 = vpop.f32.mrf.mxu0  ;;  %v1615_v9 = vpack.c.bf16 %v1560_v25, %v1559_v62 }
 0x10c   :  { %v6072_v39 = vpop.f32.mrf.mxu2 }
 0x10d   :  { %6609 = vst [vmem:[#allocation22_spill] sm:$0xff] %v6072_v39  ;;  %v6074_v44 = vpop.f32.mrf.mxu3 }
 0x10e   :  { %6610 = vst [vmem:[#allocation23_spill] sm:$0xff] %v6074_v44  ;;  %v6076_v38 = vpop.f32.mrf.mxu1  ;;  %v1166_v44 = vld [vmem:[#allocation2 + $0xca] sm:$0xff] }
 0x10f   :  { %v1221_v6 = vpack.c.bf16 %v1166_v44, %v1165_v16 }
 0x110   :  { %v6078_v31 = vpop.f32.mrf.mxu0 }
 0x111   :  { %1023 = vmatmul.bf16.gmra.mxu1 %v1613_v42  ;;  %1353 = vmatmul.bf16.gmra.mxu2 %v1220_v26  ;;  %v1954_v42 = vld [vmem:[#allocation2 + $0xe1] sm:$0xff] }
 0x112   :  { %1747 = vmatmul.bf16.gmra.mxu3 %v1614_v46  ;;  %v2009_v54 = vpack.c.bf16 %v1954_v42, %v1953_v37  ;;  %v1561_v37 = vld [vmem:[#allocation2 + $0xf0] sm:$0xff] }
 0x113   :  { %2141 = vmatmul.bf16.gmra.mxu0 %v2008_v52 }
 0x114   :  { %v6080_v2 = vpop.f32.mrf.mxu2 }
 0x115   :  { %6611 = vst [vmem:[#allocation24_spill] sm:$0xff] %v6080_v2  ;;  %v6082_v63 = vpop.f32.mrf.mxu3 }
 0x116   :  { %6612 = vst [vmem:[#allocation25_spill] sm:$0xff] %v6082_v63  ;;  %v6084_v4 = vpop.f32.mrf.mxu1 }
 0x118   :  { %v6086_v41 = vpop.f32.mrf.mxu0 }
 0x11c   :  { %v6088_v32 = vpop.f32.mrf.mxu2 }
 0x11d   :  { %6613 = vst [vmem:[#allocation26_spill] sm:$0xff] %v6088_v32  ;;  %v6090_v26 = vpop.f32.mrf.mxu3 }
 0x11e   :  { %6614 = vst [vmem:[#allocation27_spill] sm:$0xff] %v6090_v26  ;;  %v989_v52 = vpop.f32.mrf.mxu1  ;;  %v1168_v26 = vld [vmem:[#allocation2 + $0xe2] sm:$0xff] }
 0x11f   :  { %v990_v63 = vadd.f32 %v989_v52, %v5935_v21  ;;  %v1222_v42 = vpack.c.bf16 %v1168_v26, %v1167_v51  ;;  %v1955_v21 = vld [vmem:[#allocation2 + $0xf1] sm:$0xff]  ;;  %v1956_v52 = vld [vmem:[#allocation2 + $0xf9] sm:$0xff] }
 0x120   :  { %v2107_v2 = vpop.f32.mrf.mxu0  ;;  %v2010_v49 = vpack.c.bf16 %v1956_v52, %v1955_v21 }
 0x121   :  { %1028 = vmatmul.bf16.gmra.mxu1 %v1614_v46  ;;  %1358 = vmatmul.bf16.gmra.mxu2 %v1221_v6  ;;  %v1562_v46 = vld [vmem:[#allocation2 + $0xf8] sm:$0xff] }
 0x122   :  { %1752 = vmatmul.bf16.gmra.mxu3 %v1615_v9 }
 0x123   :  { %2146 = vmatmul.bf16.gmra.mxu0 %v2009_v54 }
 0x124   :  { %v1319_v39 = vpop.f32.mrf.mxu2 }
 0x125   :  { %v1479_v8 = vadd.f32 %v1319_v39, %v990_v63  ;;  %v1713_v32 = vpop.f32.mrf.mxu3  ;;  %v1616_v39 = vpack.c.bf16 %v1562_v46, %v1561_v37  ;;  %v1170_v37 = vld [vmem:[#allocation2 + $0xfa] sm:$0xff] }
 0x126   :  { %v991_v18 = vpop.f32.mrf.mxu1 }
 0x127   :  { %v1873_v20 = vadd.f32 %v1713_v32, %v1479_v8  ;;  %v992_v62 = vadd.f32 %v991_v18, %v5944_v30 }
 0x128   :  { %v2109_v44 = vpop.f32.mrf.mxu0 }
 0x129   :  { %v6093_v16 = vadd.f32 %v2107_v2, %v1873_v20 }
 0x12c   :  { %v1321_v25 = vpop.f32.mrf.mxu2 }
 0x12d   :  { %v1480_v6 = vadd.f32 %v1321_v25, %v992_v62  ;;  %v1715_v54 = vpop.f32.mrf.mxu3 }
 0x12e   :  { %v994_v50 = vpop.f32.mrf.mxu1 }
 0x12f   :  { %v1874_v63 = vadd.f32 %v1715_v54, %v1480_v6  ;;  %v995_v8 = vadd.f32 %v994_v50, %v5952_v23  ;;  %v1169_v6 = vld [vmem:[#allocation2 + $0xf2] sm:$0xff]  ;;  %v1957_v23 = vld [vmem:[#allocation2 + $0x109] sm:$0xff] }
 0x130   :  { %v2112_v32 = vpop.f32.mrf.mxu0  ;;  %v1223_v52 = vpack.c.bf16 %v1170_v37, %v1169_v6  ;;  %v1958_v50 = vld [vmem:[#allocation2 + $0x111] sm:$0xff] }
 0x131   :  { %1033 = vmatmul.bf16.gmra.mxu1 %v1615_v9  ;;  %1363 = vmatmul.bf16.gmra.mxu2 %v1222_v42  ;;  %v6096_v20 = vadd.f32 %v2109_v44, %v1874_v63  ;;  %v1563_v42 = vld [vmem:[#allocation2 + $0x108] sm:$0xff]  ;;  %v1564_v44 = vld [vmem:[#allocation2 + $0x110] sm:$0xff] }
 0x132   :  { %1757 = vmatmul.bf16.gmra.mxu3 %v1616_v39 }
 0x133   :  { %2151 = vmatmul.bf16.gmra.mxu0 %v2010_v49 }
 0x134   :  { %v1324_v30 = vpop.f32.mrf.mxu2 }
 0x135   :  { %v1481_v18 = vadd.f32 %v1324_v30, %v995_v8  ;;  %v1718_v2 = vpop.f32.mrf.mxu3  ;;  %v1617_v8 = vpack.c.bf16 %v1564_v44, %v1563_v42  ;;  %v2011_v30 = vpack.c.bf16 %v1958_v50, %v1957_v23  ;;  %v1171_v44 = vld [vmem:[#allocation2 + $0x10a] sm:$0xff]  ;;  %v1565_v50 = vld [vmem:[#allocation2 + $0x120] sm:$0xff] }
 0x136   :  { %v996_v51 = vpop.f32.mrf.mxu1 }
 0x137   :  { %v1875_v26 = vadd.f32 %v1718_v2, %v1481_v18  ;;  %v997_v46 = vadd.f32 %v996_v51, %v5961_v55  ;;  %v4716_v55 = vld [vmem:[%s6555_s2 + $0x1a0] sm:$0xff] }
 0x138   :  { %v2114_v62 = vpop.f32.mrf.mxu0  ;;  %2890 = vmatpush.bf16.msra.mxu2 %v4716_v55 }
 0x139   :  { %v6099_v25 = vadd.f32 %v2112_v32, %v1875_v26  ;;  %v4724_v26 = vld [vmem:[%s6555_s2 + $0x1e0] sm:$0xff] }
 0x13a   :  { %3284 = vmatpush.bf16.msra.mxu3 %v4724_v26 }
 0x13c   :  { %v1326_v9 = vpop.f32.mrf.mxu2 }
 0x13d   :  { %v1482_v21 = vadd.f32 %v1326_v9, %v997_v46  ;;  %v1720_v49 = vpop.f32.mrf.mxu3  ;;  %v4732_v9 = vld [vmem:[%s6555_s2 + $0x220] sm:$0xff] }
 0x13e   :  { %v999_v54 = vpop.f32.mrf.mxu1  ;;  %3678 = vmatpush.bf16.msra.mxu0 %v4732_v9 }
 0x13f   :  { %v1876_v63 = vadd.f32 %v1720_v49, %v1482_v21  ;;  %v1000_v2 = vadd.f32 %v999_v54, %v5969_v36  ;;  %v4708_v36 = vld [vmem:[%s6555_s2 + $0x160] sm:$0xff]  ;;  %v1172_v21 = vld [vmem:[#allocation2 + $0x112] sm:$0xff]  ;;  %v1566_v49 = vld [vmem:[#allocation2 + $0x128] sm:$0xff] }
 0x140   :  { %v2117_v18 = vpop.f32.mrf.mxu0  ;;  %2495 = vmatpush.bf16.msra.mxu1 %v4708_v36 }
 0x141   :  { %1038 = vmatmul.bf16.gmra.mxu1 %v1616_v39  ;;  %1368 = vmatmul.bf16.gmra.mxu2 %v1223_v52  ;;  %v6102_v32 = vadd.f32 %v2114_v62, %v1876_v63  ;;  %v1224_v63 = vpack.c.bf16 %v1172_v21, %v1171_v44 }
 0x142   :  { %1762 = vmatmul.bf16.gmra.mxu3 %v1617_v8 }
 0x143   :  { %2156 = vmatmul.bf16.gmra.mxu0 %v2011_v30  ;;  %v1959_v30 = vld [vmem:[#allocation2 + $0x121] sm:$0xff] }
 0x144   :  { %v1329_v51 = vpop.f32.mrf.mxu2 }
 0x145   :  { %v1483_v6 = vadd.f32 %v1329_v51, %v1000_v2  ;;  %v1723_v37 = vpop.f32.mrf.mxu3  ;;  %v1960_v2 = vld [vmem:[#allocation2 + $0x129] sm:$0xff] }
 0x146   :  { %v1001_v39 = vpop.f32.mrf.mxu1 }
 0x147   :  { %v1877_v62 = vadd.f32 %v1723_v37, %v1483_v6  ;;  %v1002_v52 = vadd.f32 %v1001_v39, %v5987_v1  ;;  %v1618_v6 = vpack.c.bf16 %v1566_v49, %v1565_v50  ;;  %v2012_v37 = vpack.c.bf16 %v1960_v2, %v1959_v30  ;;  %v1174_v50 = vld [vmem:[#allocation2 + $0x12a] sm:$0xff] }
 0x148   :  { %v2119_v46 = vpop.f32.mrf.mxu0 }
 0x149   :  { %v6117_v42 = vadd.f32 %v2117_v18, %v1877_v62 }
 0x14c   :  { %v1331_v23 = vpop.f32.mrf.mxu2 }
 0x14d   :  { %v1484_v54 = vadd.f32 %v1331_v23, %v1002_v52  ;;  %v1725_v55 = vpop.f32.mrf.mxu3 }
 0x14e   :  { %v1004_v51 = vpop.f32.mrf.mxu1 }
 0x14f   :  { %v1878_v26 = vadd.f32 %v1725_v55, %v1484_v54  ;;  %v1005_v1 = vadd.f32 %v1004_v51, %v5998_v12  ;;  %v1173_v54 = vld [vmem:[#allocation2 + $0x122] sm:$0xff]  ;;  %v1961_v12 = vld [vmem:[#allocation2 + $0x139] sm:$0xff] }
 0x150   :  { %v2122_v36 = vpop.f32.mrf.mxu0  ;;  %v1225_v2 = vpack.c.bf16 %v1174_v50, %v1173_v54  ;;  %v1962_v55 = vld [vmem:[#allocation2 + $0x141] sm:$0xff] }
 0x151   :  { %1043 = vmatmul.bf16.gmra.mxu1 %v1617_v8  ;;  %1373 = vmatmul.bf16.gmra.mxu2 %v1224_v63  ;;  %v6120_v18 = vadd.f32 %v2119_v46, %v1878_v26  ;;  %v1567_v63 = vld [vmem:[#allocation2 + $0x138] sm:$0xff]  ;;  %v1568_v46 = vld [vmem:[#allocation2 + $0x140] sm:$0xff] }
 0x152   :  { %1767 = vmatmul.bf16.gmra.mxu3 %v1618_v6 }
 0x153   :  { %2161 = vmatmul.bf16.gmra.mxu0 %v2012_v37 }
 0x154   :  { %v1334_v39 = vpop.f32.mrf.mxu2 }
 0x155   :  { %v1485_v62 = vadd.f32 %v1334_v39, %v1005_v1  ;;  %v1728_v9 = vpop.f32.mrf.mxu3  ;;  %v1619_v1 = vpack.c.bf16 %v1568_v46, %v1567_v63  ;;  %v2013_v39 = vpack.c.bf16 %v1962_v55, %v1961_v12 }
 0x156   :  { %v1006_v44 = vpop.f32.mrf.mxu1 }
 0x157   :  { %v1879_v21 = vadd.f32 %v1728_v9, %v1485_v62  ;;  %v1007_v49 = vadd.f32 %v1006_v44, %v6007_v47 }
 0x158   :  { %v2124_v52 = vpop.f32.mrf.mxu0 }
 0x159   :  { %v6123_v23 = vadd.f32 %v2122_v36, %v1879_v21  ;;  %v5038_v36 = vld [vmem:[%s6556_s0 + $0x78] sm:$0xff]  }
 0x15a   :  { %v4798_v9 = vunpack.c.l.bf16 %v5038_v36  ;;  %v4799_v44 = vunpack.c.h.bf16 %v5038_v36 }
 0x15c   :  { %v1336_v8 = vpop.f32.mrf.mxu2  ;;  %v261_v50 = vmul.f32 %v5887_v60, %v4798_v9 }
 0x15d   :  { %v1486_v30 = vadd.f32 %v1336_v8, %v1007_v49  ;;  %v1730_v51 = vpop.f32.mrf.mxu3  ;;  %v262_v49 = vmul.f32 %v5887_v60, %v4799_v44  ;;  %v1963_v44 = vld [vmem:[#allocation2 + $0x151] sm:$0xff] }
 0x15e   :  { %v1009_v26 = vpop.f32.mrf.mxu1  ;;  %v6135_v46 = vadd.f32 %v5900_v61, %v261_v50 }
 0x15f   :  { %v1880_v37 = vadd.f32 %v1730_v51, %v1486_v30  ;;  %v1010_v21 = vadd.f32 %v1009_v26, %v6015_v35  ;;  %v1175_v51 = vld [vmem:[#allocation2 + $0x13a] sm:$0xff]  ;;  %v1176_v26 = vld [vmem:[#allocation2 + $0x142] sm:$0xff] }
 0x160   :  { %v2127_v62 = vpop.f32.mrf.mxu0  ;;  %v1226_v9 = vpack.c.bf16 %v1176_v26, %v1175_v51 }
 0x161   :  { %1048 = vmatmul.bf16.gmra.mxu1 %v1618_v6  ;;  %1378 = vmatmul.bf16.gmra.mxu2 %v1225_v2  ;;  %v6129_v47 = vadd.f32 %v2124_v52, %v1880_v37  ;;  %v6138_v52 = vadd.f32 %v5900_v61, %v262_v49  ;;  %v6574_v2 = vmax.f32 %v6135_v46, 0.0  ;;  %v1569_v37 = vld [vmem:[#allocation2 + $0x150] sm:$0xff] }
 0x162   :  { %1772 = vmatmul.bf16.gmra.mxu3 %v1619_v1 }
 0x163   :  { %2166 = vmatmul.bf16.gmra.mxu0 %v2013_v39  ;;  %v6573_v35 = vmax.f32 %v6138_v52, 0.0  ;;  %456 = vst [vmem:[#allocation2 + $0x181] sm:$0xff] %v6574_v2  ;;  %v1570_v39 = vld [vmem:[#allocation2 + $0x158] sm:$0xff] }
 0x164   :  { %v1339_v54 = vpop.f32.mrf.mxu2  ;;  %v1620_v49 = vpack.c.bf16 %v1570_v39, %v1569_v37  ;;  %v1178_v37 = vld [vmem:[#allocation2 + $0x15a] sm:$0xff] }
 0x165   :  { %v1487_v8 = vadd.f32 %v1339_v54, %v1010_v21  ;;  %v1733_v6 = vpop.f32.mrf.mxu3  ;;  %457 = vst [vmem:[#allocation2 + $0x189] sm:$0xff] %v6573_v35  ;;  %v1964_v21 = vld [vmem:[#allocation2 + $0x159] sm:$0xff] }
 0x166   :  { %v1011_v63 = vpop.f32.mrf.mxu1 }
 0x167   :  { %v1881_v30 = vadd.f32 %v1733_v6, %v1487_v8  ;;  %v1012_v60 = vadd.f32 %v1011_v63, %v6024_v43  ;;  %v2014_v8 = vpack.c.bf16 %v1964_v21, %v1963_v44 }
 0x168   :  { %v2129_v12 = vpop.f32.mrf.mxu0 }
 0x169   :  { %v6142_v55 = vadd.f32 %v2127_v62, %v1881_v30 }
 0x16c   :  { %v1341_v61 = vpop.f32.mrf.mxu2 }
 0x16d   :  { %v1488_v36 = vadd.f32 %v1341_v61, %v1012_v60  ;;  %v1735_v54 = vpop.f32.mrf.mxu3 }
 0x16e   :  { %v1014_v62 = vpop.f32.mrf.mxu1 }
 0x16f   :  { %v1882_v50 = vadd.f32 %v1735_v54, %v1488_v36  ;;  %v1015_v43 = vadd.f32 %v1014_v62, %v6032_v33  ;;  %v1177_v36 = vld [vmem:[#allocation2 + $0x152] sm:$0xff]  ;;  %v1965_v33 = vld [vmem:[#allocation2 + $0x169] sm:$0xff] }
 0x170   :  { %v2132_v6 = vpop.f32.mrf.mxu0  ;;  %v1227_v21 = vpack.c.bf16 %v1178_v37, %v1177_v36  ;;  %v1966_v54 = vld [vmem:[#allocation2 + $0x171] sm:$0xff] }
 0x171   :  { %1053 = vmatmul.bf16.gmra.mxu1 %v1619_v1  ;;  %1383 = vmatmul.bf16.gmra.mxu2 %v1226_v9  ;;  %v6149_v30 = vadd.f32 %v2129_v12, %v1882_v50  ;;  %v1571_v9 = vld [vmem:[#allocation2 + $0x168] sm:$0xff]  ;;  %v1572_v12 = vld [vmem:[#allocation2 + $0x170] sm:$0xff] }
 0x172   :  { %1777 = vmatmul.bf16.gmra.mxu3 %v1620_v49 }
 0x173   :  { %2171 = vmatmul.bf16.gmra.mxu0 %v2014_v8 }
 0x174   :  { %v1344_v63 = vpop.f32.mrf.mxu2 }
 0x175   :  { %v1489_v35 = vadd.f32 %v1344_v63, %v1015_v43  ;;  %v1738_v60 = vpop.f32.mrf.mxu3  ;;  %v1621_v43 = vpack.c.bf16 %v1572_v12, %v1571_v9  ;;  %v2015_v63 = vpack.c.bf16 %v1966_v54, %v1965_v33  ;;  %v1179_v12 = vld [vmem:[#allocation2 + $0x16a] sm:$0xff]  ;;  %v1573_v54 = vld [vmem:[#allocation2 + $0x180] sm:$0xff] }
 0x176   :  { %v1016_v51 = vpop.f32.mrf.mxu1 }
 0x177   :  { %v1883_v26 = vadd.f32 %v1738_v60, %v1489_v35  ;;  %v1017_v39 = vadd.f32 %v1016_v51, %v6041_v14  ;;  %v4715_v14 = vld [vmem:[%s6555_s2 + $0x198] sm:$0xff] }
 0x178   :  { %v2134_v61 = vpop.f32.mrf.mxu0  ;;  %2891 = vmatpush.bf16.msra.mxu2 %v4715_v14 }
 0x179   :  { %v6152_v2 = vadd.f32 %v2132_v6, %v1883_v26  ;;  %v4723_v26 = vld [vmem:[%s6555_s2 + $0x1d8] sm:$0xff] }
 0x17a   :  { %3285 = vmatpush.bf16.msra.mxu3 %v4723_v26  ;;  %v6615_v26 = vmax.f32 %v6135_v46, 0.0  ;;  %v522_v46 = vld [vmem:[#allocation2 + $0x1b0] sm:$0xff] }
 0x17c   :  { %v1346_v1 = vpop.f32.mrf.mxu2 }
 0x17d   :  { %v1490_v44 = vadd.f32 %v1346_v1, %v1017_v39  ;;  %v1740_v62 = vpop.f32.mrf.mxu3  ;;  %v4731_v1 = vld [vmem:[%s6555_s2 + $0x218] sm:$0xff] }
 0x17e   :  { %v1019_v50 = vpop.f32.mrf.mxu1  ;;  %3679 = vmatpush.bf16.msra.mxu0 %v4731_v1 }
 0x17f   :  { %v1884_v8 = vadd.f32 %v1740_v62, %v1490_v44  ;;  %v1020_v60 = vadd.f32 %v1019_v50, %v6049_v59  ;;  %v4707_v59 = vld [vmem:[%s6555_s2 + $0x158] sm:$0xff]  ;;  %v1574_v62 = vld [vmem:[#allocation2 + $0x188] sm:$0xff] }
 0x180   :  { %v2137_v35 = vpop.f32.mrf.mxu0  ;;  %2496 = vmatpush.bf16.msra.mxu1 %v4707_v59  ;;  %v1180_v44 = vld [vmem:[#allocation2 + $0x172] sm:$0xff] }
 0x181   :  { %1058 = vmatmul.bf16.gmra.mxu1 %v1620_v49  ;;  %1388 = vmatmul.bf16.gmra.mxu2 %v1227_v21  ;;  %v6155_v6 = vadd.f32 %v2134_v61, %v1884_v8  ;;  %v1228_v8 = vpack.c.bf16 %v1180_v44, %v1179_v12 }
 0x182   :  { %1782 = vmatmul.bf16.gmra.mxu3 %v1621_v43 }
 0x183   :  { %2176 = vmatmul.bf16.gmra.mxu0 %v2015_v63 }
 0x184   :  { %v1349_v51 = vpop.f32.mrf.mxu2 }
 0x185   :  { %v1491_v36 = vadd.f32 %v1349_v51, %v1020_v60  ;;  %v1743_v37 = vpop.f32.mrf.mxu3  ;;  %v1622_v51 = vpack.c.bf16 %v1574_v62, %v1573_v54  ;;  %v1182_v54 = vld [vmem:[#allocation2 + $0x1ba] sm:$0xff] }
 0x186   :  { %v1021_v49 = vpop.f32.mrf.mxu1 }
 0x187   :  { %v1885_v61 = vadd.f32 %v1743_v37, %v1491_v36  ;;  %v1022_v21 = vadd.f32 %v1021_v49, %v6067_v7  ;;  %v6616_v36 = vmax.f32 %v6138_v52, 0.0  ;;  %v1181_v52 = vld [vmem:[#allocation2 + $0x1b2] sm:$0xff] }
 0x188   :  { %v2139_v39 = vpop.f32.mrf.mxu0 }
 0x189   :  { %v6170_v9 = vadd.f32 %v2137_v35, %v1885_v61  ;;  %v2016_v35 = vpack.c.bf16 %v6616_v36, %v6615_v26 }
 0x18c   :  { %v1351_v33 = vpop.f32.mrf.mxu2 }
 0x18d   :  { %v1492_v50 = vadd.f32 %v1351_v33, %v1022_v21  ;;  %v1745_v63 = vpop.f32.mrf.mxu3 }
 0x18e   :  { %v1024_v60 = vpop.f32.mrf.mxu1 }
 0x18f   :  { %v1886_v14 = vadd.f32 %v1745_v63, %v1492_v50  ;;  %v1025_v7 = vadd.f32 %v1024_v60, %v6078_v31  ;;  %v1576_v50 = vld [vmem:[#allocation2 + $0x1d0] sm:$0xff]  ;;  %v570_v31 = vpack.c.bf16 %v5930_v34, %v522_v46  ;;  %v1229_v63 = vpack.c.bf16 %v1182_v54, %v1181_v52 }
 0x190   :  { %v2142_v37 = vpop.f32.mrf.mxu0  ;;  %v1969_v60 = vld [vmem:[#allocation2 + $0x1c9] sm:$0xff] }
 0x191   :  { %1063 = vmatmul.bf16.gmra.mxu1 %v1621_v43  ;;  %1393 = vmatmul.bf16.gmra.mxu2 %v1228_v8  ;;  %v6177_v61 = vadd.f32 %v2139_v39, %v1886_v14  ;;  %v1575_v39 = vld [vmem:[#allocation2 + $0x1c8] sm:$0xff]  ;;  %v1970_v14 = vld [vmem:[#allocation2 + $0x1d1] sm:$0xff] }
 0x192   :  { %1787 = vmatmul.bf16.gmra.mxu3 %v1622_v51  ;;  %v1183_v54 = vld [vmem:[#allocation2 + $0x1ca] sm:$0xff] }
 0x193   :  { %2181 = vmatmul.bf16.gmra.mxu0 %v2016_v35  ;;  %v1623_v35 = vpack.c.bf16 %v1576_v50, %v1575_v39  ;;  %v1577_v50 = vld [vmem:[#allocation2 + $0x1e0] sm:$0xff] }
 0x194   :  { %v1354_v49 = vpop.f32.mrf.mxu2 }
 0x195   :  { %v1493_v59 = vadd.f32 %v1354_v49, %v1025_v7  ;;  %v1748_v1 = vpop.f32.mrf.mxu3 }
 0x196   :  { %v1026_v12 = vpop.f32.mrf.mxu1 }
 0x197   :  { %v1887_v44 = vadd.f32 %v1748_v1, %v1493_v59  ;;  %v1027_v43 = vadd.f32 %v1026_v12, %v6086_v41 }
 0x198   :  { %v2144_v21 = vpop.f32.mrf.mxu0 }
 0x199   :  { %v6180_v33 = vadd.f32 %v2142_v37, %v1887_v44  ;;  %v2017_v37 = vpack.c.bf16 %v1970_v14, %v1969_v60 }
 0x19c   :  { %v1356_v62 = vpop.f32.mrf.mxu2 }
 0x19d   :  { %v1494_v8 = vadd.f32 %v1356_v62, %v1027_v43  ;;  %v1750_v51 = vpop.f32.mrf.mxu3  ;;  %v1184_v43 = vld [vmem:[#allocation2 + $0x1d2] sm:$0xff] }
 0x19e   :  { %v1029_v26 = vpop.f32.mrf.mxu1 }
 0x19f   :  { %v1888_v36 = vadd.f32 %v1750_v51, %v1494_v8  ;;  %v1030_v41 = vadd.f32 %v1029_v26, %v5933_v3  ;;  %v1971_v3 = vld [vmem:[#allocation2 + $0x1e1] sm:$0xff] }
 0x1a0   :  { %v2147_v7 = vpop.f32.mrf.mxu0 }
 0x1a1   :  { %1068 = vmatmul.bf16.gmra.mxu1 %v570_v31  ;;  %1398 = vmatmul.bf16.gmra.mxu2 %v1229_v63  ;;  %v6184_v49 = vadd.f32 %v2144_v21, %v1888_v36  ;;  %v1578_v21 = vld [vmem:[#allocation2 + $0x1e8] sm:$0xff]  ;;  %v1230_v31 = vpack.c.bf16 %v1184_v43, %v1183_v54 }
 0x1a2   :  { %1792 = vmatmul.bf16.gmra.mxu3 %v1623_v35  ;;  %v1972_v63 = vld [vmem:[#allocation2 + $0x1e9] sm:$0xff]  ;;  %v1624_v26 = vpack.c.bf16 %v1578_v21, %v1577_v50  ;;  %v1579_v50 = vld [vmem:[#allocation2 + $0x1f8] sm:$0xff] }
 0x1a3   :  { %2186 = vmatmul.bf16.gmra.mxu0 %v2017_v37  ;;  %v2018_v36 = vpack.c.bf16 %v1972_v63, %v1971_v3  ;;  %v1185_v43 = vld [vmem:[#allocation2 + $0x1e2] sm:$0xff] }
 0x1a4   :  { %v1359_v59 = vpop.f32.mrf.mxu2 }
 0x1a5   :  { %v1495_v1 = vadd.f32 %v1359_v59, %v1030_v41  ;;  %v1753_v34 = vpop.f32.mrf.mxu3 }
 0x1a6   :  { %v1031_v12 = vpop.f32.mrf.mxu1 }
 0x1a7   :  { %v1889_v44 = vadd.f32 %v1753_v34, %v1495_v1  ;;  %v1032_v62 = vadd.f32 %v1031_v12, %v5942_v45 }
 0x1a8   :  { %v2149_v46 = vpop.f32.mrf.mxu0 }
 0x1a9   :  { %v6187_v52 = vadd.f32 %v2147_v7, %v1889_v44 }
 0x1ac   :  { %v1361_v39 = vpop.f32.mrf.mxu2 }
 0x1ad   :  { %v1496_v8 = vadd.f32 %v1361_v39, %v1032_v62  ;;  %v1755_v60 = vpop.f32.mrf.mxu3  ;;  %v1186_v62 = vld [vmem:[#allocation2 + $0x1ea] sm:$0xff] }
 0x1ae   :  { %v1034_v14 = vpop.f32.mrf.mxu1 }
 0x1af   :  { %v1890_v51 = vadd.f32 %v1755_v60, %v1496_v8  ;;  %v1035_v41 = vadd.f32 %v1034_v14, %v5950_v57  ;;  %v1231_v8 = vpack.c.bf16 %v1186_v62, %v1185_v43  ;;  %v1973_v57 = vld [vmem:[#allocation2 + $0x1f9] sm:$0xff]  ;;  %v4730_v43 = vld [vmem:[%s6555_s2 + $0x210] sm:$0xff] }
 0x1b0   :  { %v2152_v37 = vpop.f32.mrf.mxu0  ;;  %3680 = vmatpush.bf16.msra.mxu0 %v4730_v43 }
 0x1b1   :  { %1073 = vmatmul.bf16.gmra.mxu1 %v1623_v35  ;;  %1403 = vmatmul.bf16.gmra.mxu2 %v1230_v31  ;;  %v6190_v7 = vadd.f32 %v2149_v46, %v1890_v51  ;;  %v1580_v46 = vld [vmem:[#allocation2 + $0x200] sm:$0xff] }
 0x1b2   :  { %1797 = vmatmul.bf16.gmra.mxu3 %v1624_v26  ;;  %v1974_v31 = vld [vmem:[#allocation2 + $0x201] sm:$0xff]  ;;  %v1625_v14 = vpack.c.bf16 %v1580_v46, %v1579_v50 }
 0x1b3   :  { %2191 = vmatmul.bf16.gmra.mxu0 %v2018_v36  ;;  %v2019_v51 = vpack.c.bf16 %v1974_v31, %v1973_v57 }
 0x1b4   :  { %v1364_v45 = vpop.f32.mrf.mxu2 }
 0x1b5   :  { %v1497_v59 = vadd.f32 %v1364_v45, %v1035_v41  ;;  %v1758_v1 = vpop.f32.mrf.mxu3 }
 0x1b6   :  { %v1036_v34 = vpop.f32.mrf.mxu1 }
 0x1b7   :  { %v1891_v12 = vadd.f32 %v1758_v1, %v1497_v59  ;;  %v1037_v39 = vadd.f32 %v1036_v34, %v5959_v15  ;;  %v4714_v15 = vld [vmem:[%s6555_s2 + $0x190] sm:$0xff] }
 0x1b8   :  { %v2154_v44 = vpop.f32.mrf.mxu0  ;;  %v4722_v59 = vld [vmem:[%s6555_s2 + $0x1d0] sm:$0xff]  ;;  %2892 = vmatpush.bf16.msra.mxu2 %v4714_v15 }
 0x1b9   :  { %v6193_v54 = vadd.f32 %v2152_v37, %v1891_v12  ;;  %3286 = vmatpush.bf16.msra.mxu3 %v4722_v59 }
 0x1bc   :  { %v1366_v35 = vpop.f32.mrf.mxu2 }
 0x1bd   :  { %v1498_v21 = vadd.f32 %v1366_v35, %v1037_v39  ;;  %v1760_v3 = vpop.f32.mrf.mxu3  ;;  %v1187_v39 = vld [vmem:[#allocation2 + $0x1fa] sm:$0xff]  ;;  %v1188_v35 = vld [vmem:[#allocation2 + $0x202] sm:$0xff] }
 0x1be   :  { %v1039_v63 = vpop.f32.mrf.mxu1  ;;  %v1232_v31 = vpack.c.bf16 %v1188_v35, %v1187_v39  ;;  %v1189_v35 = vld [vmem:[#allocation2 + $0x212] sm:$0xff] }
 0x1bf   :  { %v1892_v60 = vadd.f32 %v1760_v3, %v1498_v21  ;;  %v1040_v41 = vadd.f32 %v1039_v63, %v5967_v29  ;;  %v4706_v29 = vld [vmem:[%s6555_s2 + $0x150] sm:$0xff]  ;;  %v1976_v63 = vld [vmem:[#allocation2 + $0x219] sm:$0xff] }
 0x1c0   :  { %v2157_v36 = vpop.f32.mrf.mxu0  ;;  %2497 = vmatpush.bf16.msra.mxu1 %v4706_v29  ;;  %v1581_v21 = vld [vmem:[#allocation2 + $0x210] sm:$0xff] }
 0x1c1   :  { %1078 = vmatmul.bf16.gmra.mxu1 %v1624_v26  ;;  %1408 = vmatmul.bf16.gmra.mxu2 %v1231_v8  ;;  %v6196_v37 = vadd.f32 %v2154_v44, %v1892_v60  ;;  %v1582_v8 = vld [vmem:[#allocation2 + $0x218] sm:$0xff] }
 0x1c2   :  { %1802 = vmatmul.bf16.gmra.mxu3 %v1625_v14  ;;  %v1975_v3 = vld [vmem:[#allocation2 + $0x211] sm:$0xff]  ;;  %v1626_v15 = vpack.c.bf16 %v1582_v8, %v1581_v21  ;;  %v1583_v21 = vld [vmem:[#allocation2 + $0x228] sm:$0xff] }
 0x1c3   :  { %2196 = vmatmul.bf16.gmra.mxu0 %v2019_v51 }
 0x1c4   :  { %v1369_v45 = vpop.f32.mrf.mxu2 }
 0x1c5   :  { %v1499_v1 = vadd.f32 %v1369_v45, %v1040_v41  ;;  %v1763_v34 = vpop.f32.mrf.mxu3  ;;  %v2020_v45 = vpack.c.bf16 %v1976_v63, %v1975_v3 }
 0x1c6   :  { %v1041_v26 = vpop.f32.mrf.mxu1 }
 0x1c7   :  { %v1893_v12 = vadd.f32 %v1763_v34, %v1499_v1  ;;  %v1042_v50 = vadd.f32 %v1041_v26, %v5982_v10 }
 0x1c8   :  { %v2159_v44 = vpop.f32.mrf.mxu0 }
 0x1c9   :  { %v6211_v62 = vadd.f32 %v2157_v36, %v1893_v12 }
 0x1cc   :  { %v1371_v46 = vpop.f32.mrf.mxu2 }
 0x1cd   :  { %v1500_v57 = vadd.f32 %v1371_v46, %v1042_v50  ;;  %v1765_v60 = vpop.f32.mrf.mxu3  ;;  %v1190_v50 = vld [vmem:[#allocation2 + $0x21a] sm:$0xff] }
 0x1ce   :  { %v1044_v51 = vpop.f32.mrf.mxu1 }
 0x1cf   :  { %v1894_v41 = vadd.f32 %v1765_v60, %v1500_v57  ;;  %v1045_v10 = vadd.f32 %v1044_v51, %v5996_v53  ;;  %v1233_v57 = vpack.c.bf16 %v1190_v50, %v1189_v35  ;;  %v1977_v53 = vld [vmem:[#allocation2 + $0x229] sm:$0xff] }
 0x1d0   :  { %v2162_v59 = vpop.f32.mrf.mxu0  ;;  %v1191_v50 = vld [vmem:[#allocation2 + $0x22a] sm:$0xff] }
 0x1d1   :  { %1083 = vmatmul.bf16.gmra.mxu1 %v1625_v14  ;;  %1413 = vmatmul.bf16.gmra.mxu2 %v1232_v31  ;;  %v6214_v36 = vadd.f32 %v2159_v44, %v1894_v41  ;;  %v1584_v44 = vld [vmem:[#allocation2 + $0x230] sm:$0xff] }
 0x1d2   :  { %1807 = vmatmul.bf16.gmra.mxu3 %v1626_v15  ;;  %v1978_v31 = vld [vmem:[#allocation2 + $0x231] sm:$0xff]  ;;  %v1627_v51 = vpack.c.bf16 %v1584_v44, %v1583_v21  ;;  %v1585_v21 = vld [vmem:[#allocation2 + $0x240] sm:$0xff] }
 0x1d3   :  { %2201 = vmatmul.bf16.gmra.mxu0 %v2020_v45  ;;  %v2021_v41 = vpack.c.bf16 %v1978_v31, %v1977_v53 }
 0x1d4   :  { %v1374_v1 = vpop.f32.mrf.mxu2 }
 0x1d5   :  { %v1501_v34 = vadd.f32 %v1374_v1, %v1045_v10  ;;  %v1768_v26 = vpop.f32.mrf.mxu3 }
 0x1d6   :  { %v1046_v12 = vpop.f32.mrf.mxu1 }
 0x1d7   :  { %v1895_v29 = vadd.f32 %v1768_v26, %v1501_v34  ;;  %v1047_v46 = vadd.f32 %v1046_v12, %v6005_v56 }
 0x1d8   :  { %v2164_v43 = vpop.f32.mrf.mxu0 }
 0x1d9   :  { %v6217_v39 = vadd.f32 %v2162_v59, %v1895_v29 }
 0x1dc   :  { %v1376_v14 = vpop.f32.mrf.mxu2 }
 0x1dd   :  { %v1502_v8 = vadd.f32 %v1376_v14, %v1047_v46  ;;  %v1770_v3 = vpop.f32.mrf.mxu3  ;;  %v1192_v46 = vld [vmem:[#allocation2 + $0x232] sm:$0xff] }
 0x1de   :  { %v1049_v63 = vpop.f32.mrf.mxu1 }
 0x1df   :  { %v1896_v60 = vadd.f32 %v1770_v3, %v1502_v8  ;;  %v1050_v10 = vadd.f32 %v1049_v63, %v6013_v27  ;;  %v1234_v8 = vpack.c.bf16 %v1192_v46, %v1191_v50  ;;  %v1979_v27 = vld [vmem:[#allocation2 + $0x241] sm:$0xff] }
 0x1e0   :  { %v2167_v45 = vpop.f32.mrf.mxu0  ;;  %v1193_v46 = vld [vmem:[#allocation2 + $0x242] sm:$0xff] }
 0x1e1   :  { %1088 = vmatmul.bf16.gmra.mxu1 %v1626_v15  ;;  %1418 = vmatmul.bf16.gmra.mxu2 %v1233_v57  ;;  %v6220_v59 = vadd.f32 %v2164_v43, %v1896_v60  ;;  %v1586_v43 = vld [vmem:[#allocation2 + $0x248] sm:$0xff] }
 0x1e2   :  { %1812 = vmatmul.bf16.gmra.mxu3 %v1627_v51  ;;  %v1980_v57 = vld [vmem:[#allocation2 + $0x249] sm:$0xff]  ;;  %v1628_v63 = vpack.c.bf16 %v1586_v43, %v1585_v21  ;;  %v1587_v21 = vld [vmem:[#allocation2 + $0x258] sm:$0xff] }
 0x1e3   :  { %2206 = vmatmul.bf16.gmra.mxu0 %v2021_v41  ;;  %v2022_v60 = vpack.c.bf16 %v1980_v57, %v1979_v27 }
 0x1e4   :  { %v1379_v56 = vpop.f32.mrf.mxu2 }
 0x1e5   :  { %v1503_v1 = vadd.f32 %v1379_v56, %v1050_v10  ;;  %v1773_v34 = vpop.f32.mrf.mxu3 }
 0x1e6   :  { %v1051_v26 = vpop.f32.mrf.mxu1 }
 0x1e7   :  { %v1897_v12 = vadd.f32 %v1773_v34, %v1503_v1  ;;  %v1052_v14 = vadd.f32 %v1051_v26, %v6022_v19 }
 0x1e8   :  { %v2169_v29 = vpop.f32.mrf.mxu0 }
 0x1e9   :  { %v6223_v35 = vadd.f32 %v2167_v45, %v1897_v12 }
 0x1ec   :  { %v1381_v15 = vpop.f32.mrf.mxu2 }
 0x1ed   :  { %v1504_v44 = vadd.f32 %v1381_v15, %v1052_v14  ;;  %v1775_v53 = vpop.f32.mrf.mxu3  ;;  %v1194_v14 = vld [vmem:[#allocation2 + $0x24a] sm:$0xff] }
 0x1ee   :  { %v1054_v31 = vpop.f32.mrf.mxu1 }
 0x1ef   :  { %v1898_v3 = vadd.f32 %v1775_v53, %v1504_v44  ;;  %v1055_v10 = vadd.f32 %v1054_v31, %v6030_v48  ;;  %v1235_v44 = vpack.c.bf16 %v1194_v14, %v1193_v46  ;;  %v1981_v48 = vld [vmem:[#allocation2 + $0x259] sm:$0xff]  ;;  %v4729_v46 = vld [vmem:[%s6555_s2 + $0x208] sm:$0xff] }
 0x1f0   :  { %v2172_v41 = vpop.f32.mrf.mxu0  ;;  %3681 = vmatpush.bf16.msra.mxu0 %v4729_v46 }
 0x1f1   :  { %1093 = vmatmul.bf16.gmra.mxu1 %v1627_v51  ;;  %1423 = vmatmul.bf16.gmra.mxu2 %v1234_v8  ;;  %v6226_v45 = vadd.f32 %v2169_v29, %v1898_v3  ;;  %v1588_v29 = vld [vmem:[#allocation2 + $0x260] sm:$0xff] }
 0x1f2   :  { %1817 = vmatmul.bf16.gmra.mxu3 %v1628_v63  ;;  %v1982_v8 = vld [vmem:[#allocation2 + $0x261] sm:$0xff]  ;;  %v1629_v31 = vpack.c.bf16 %v1588_v29, %v1587_v21 }
 0x1f3   :  { %2211 = vmatmul.bf16.gmra.mxu0 %v2022_v60  ;;  %v2023_v3 = vpack.c.bf16 %v1982_v8, %v1981_v48 }
 0x1f4   :  { %v1384_v19 = vpop.f32.mrf.mxu2 }
 0x1f5   :  { %v1505_v56 = vadd.f32 %v1384_v19, %v1055_v10  ;;  %v1778_v1 = vpop.f32.mrf.mxu3 }
 0x1f6   :  { %v1056_v34 = vpop.f32.mrf.mxu1 }
 0x1f7   :  { %v1899_v26 = vadd.f32 %v1778_v1, %v1505_v56  ;;  %v1057_v15 = vadd.f32 %v1056_v34, %v6039_v11  ;;  %v4713_v11 = vld [vmem:[%s6555_s2 + $0x188] sm:$0xff] }
 0x1f8   :  { %v2174_v12 = vpop.f32.mrf.mxu0  ;;  %v4721_v56 = vld [vmem:[%s6555_s2 + $0x1c8] sm:$0xff]  ;;  %2893 = vmatpush.bf16.msra.mxu2 %v4713_v11 }
 0x1f9   :  { %v6229_v50 = vadd.f32 %v2172_v41, %v1899_v26  ;;  %3287 = vmatpush.bf16.msra.mxu3 %v4721_v56 }
 0x1fc   :  { %v1386_v51 = vpop.f32.mrf.mxu2 }
 0x1fd   :  { %v1506_v43 = vadd.f32 %v1386_v51, %v1057_v15  ;;  %v1780_v27 = vpop.f32.mrf.mxu3  ;;  %v1195_v15 = vld [vmem:[#allocation2 + $0x25a] sm:$0xff]  ;;  %v1196_v51 = vld [vmem:[#allocation2 + $0x262] sm:$0xff] }
 0x1fe   :  { %v1059_v57 = vpop.f32.mrf.mxu1  ;;  %v1236_v8 = vpack.c.bf16 %v1196_v51, %v1195_v15  ;;  %v1197_v51 = vld [vmem:[#allocation2 + $0x272] sm:$0xff] }
 0x1ff   :  { %v1900_v53 = vadd.f32 %v1780_v27, %v1506_v43  ;;  %v1060_v10 = vadd.f32 %v1059_v57, %v6047_v28  ;;  %v4705_v28 = vld [vmem:[%s6555_s2 + $0x148] sm:$0xff]  ;;  %v1589_v43 = vld [vmem:[#allocation2 + $0x270] sm:$0xff]  ;;  %v1984_v57 = vld [vmem:[#allocation2 + $0x279] sm:$0xff] }
 0x200   :  { %v2177_v60 = vpop.f32.mrf.mxu0  ;;  %2498 = vmatpush.bf16.msra.mxu1 %v4705_v28  ;;  %v1983_v27 = vld [vmem:[#allocation2 + $0x271] sm:$0xff] }
 0x201   :  { %1098 = vmatmul.bf16.gmra.mxu1 %v1628_v63  ;;  %1428 = vmatmul.bf16.gmra.mxu2 %v1235_v44  ;;  %v6232_v41 = vadd.f32 %v2174_v12, %v1900_v53  ;;  %v1590_v44 = vld [vmem:[#allocation2 + $0x278] sm:$0xff] }
 0x202   :  { %1822 = vmatmul.bf16.gmra.mxu3 %v1629_v31  ;;  %v1630_v11 = vpack.c.bf16 %v1590_v44, %v1589_v43  ;;  %v1591_v43 = vld [vmem:[#allocation2 + $0x288] sm:$0xff] }
 0x203   :  { %2216 = vmatmul.bf16.gmra.mxu0 %v2023_v3 }
 0x204   :  { %v1389_v19 = vpop.f32.mrf.mxu2 }
 0x205   :  { %v1507_v1 = vadd.f32 %v1389_v19, %v1060_v10  ;;  %v1783_v34 = vpop.f32.mrf.mxu3  ;;  %v2024_v19 = vpack.c.bf16 %v1984_v57, %v1983_v27 }
 0x206   :  { %v1061_v63 = vpop.f32.mrf.mxu1 }
 0x207   :  { %v1901_v26 = vadd.f32 %v1783_v34, %v1507_v1  ;;  %v1062_v21 = vadd.f32 %v1061_v63, %v6062_v58 }
 0x208   :  { %v2179_v12 = vpop.f32.mrf.mxu0 }
 0x209   :  { %v6247_v14 = vadd.f32 %v2177_v60, %v1901_v26 }
 0x20c   :  { %v1391_v29 = vpop.f32.mrf.mxu2 }
 0x20d   :  { %v1508_v48 = vadd.f32 %v1391_v29, %v1062_v21  ;;  %v1785_v53 = vpop.f32.mrf.mxu3  ;;  %v1198_v21 = vld [vmem:[#allocation2 + $0x27a] sm:$0xff] }
 0x20e   :  { %v1064_v3 = vpop.f32.mrf.mxu1 }
 0x20f   :  { %v1902_v10 = vadd.f32 %v1785_v53, %v1508_v48  ;;  %v1065_v58 = vadd.f32 %v1064_v3, %v6076_v38  ;;  %v1237_v48 = vpack.c.bf16 %v1198_v21, %v1197_v51  ;;  %v1985_v38 = vld [vmem:[#allocation2 + $0x289] sm:$0xff] }
 0x210   :  { %v2182_v56 = vpop.f32.mrf.mxu0  ;;  %v1199_v21 = vld [vmem:[#allocation2 + $0x28a] sm:$0xff] }
 0x211   :  { %1103 = vmatmul.bf16.gmra.mxu1 %v1629_v31  ;;  %1433 = vmatmul.bf16.gmra.mxu2 %v1236_v8  ;;  %v6250_v60 = vadd.f32 %v2179_v12, %v1902_v10  ;;  %v1592_v12 = vld [vmem:[#allocation2 + $0x290] sm:$0xff] }
 0x212   :  { %1827 = vmatmul.bf16.gmra.mxu3 %v1630_v11  ;;  %v1986_v8 = vld [vmem:[#allocation2 + $0x291] sm:$0xff]  ;;  %v1631_v3 = vpack.c.bf16 %v1592_v12, %v1591_v43  ;;  %v1593_v43 = vld [vmem:[#allocation2 + $0x2a0] sm:$0xff] }
 0x213   :  { %2221 = vmatmul.bf16.gmra.mxu0 %v2024_v19  ;;  %v2025_v10 = vpack.c.bf16 %v1986_v8, %v1985_v38 }
 0x214   :  { %v1394_v1 = vpop.f32.mrf.mxu2 }
 0x215   :  { %v1509_v34 = vadd.f32 %v1394_v1, %v1065_v58  ;;  %v1788_v63 = vpop.f32.mrf.mxu3 }
 0x216   :  { %v1066_v26 = vpop.f32.mrf.mxu1 }
 0x217   :  { %v1903_v28 = vadd.f32 %v1788_v63, %v1509_v34  ;;  %v1067_v29 = vadd.f32 %v1066_v26, %v6084_v4 }
 0x218   :  { %v2184_v46 = vpop.f32.mrf.mxu0 }
 0x219   :  { %v6253_v15 = vadd.f32 %v2182_v56, %v1903_v28 }
 0x21c   :  { %v1396_v31 = vpop.f32.mrf.mxu2 }
 0x21d   :  { %v1510_v44 = vadd.f32 %v1396_v31, %v1067_v29  ;;  %v1790_v27 = vpop.f32.mrf.mxu3  ;;  %v1200_v29 = vld [vmem:[#allocation2 + $0x292] sm:$0xff] }
 0x21e   :  { %v1069_v57 = vpop.f32.mrf.mxu1 }
 0x21f   :  { %v1904_v53 = vadd.f32 %v1790_v27, %v1510_v44  ;;  %v1070_v58 = vadd.f32 %v1069_v57, %v5938_v5  ;;  %v1238_v44 = vpack.c.bf16 %v1200_v29, %v1199_v21  ;;  %v1987_v5 = vld [vmem:[#allocation2 + $0x2a1] sm:$0xff] }
 0x220   :  { %v2187_v19 = vpop.f32.mrf.mxu0  ;;  %v1201_v29 = vld [vmem:[#allocation2 + $0x2a2] sm:$0xff] }
 0x221   :  { %1108 = vmatmul.bf16.gmra.mxu1 %v1630_v11  ;;  %1438 = vmatmul.bf16.gmra.mxu2 %v1237_v48  ;;  %v6256_v56 = vadd.f32 %v2184_v46, %v1904_v53  ;;  %v1594_v46 = vld [vmem:[#allocation2 + $0x2a8] sm:$0xff] }
 0x222   :  { %1832 = vmatmul.bf16.gmra.mxu3 %v1631_v3  ;;  %v1988_v48 = vld [vmem:[#allocation2 + $0x2a9] sm:$0xff]  ;;  %v1632_v57 = vpack.c.bf16 %v1594_v46, %v1593_v43  ;;  %v1595_v43 = vld [vmem:[#allocation2 + $0x2b8] sm:$0xff] }
 0x223   :  { %2226 = vmatmul.bf16.gmra.mxu0 %v2025_v10  ;;  %v2026_v53 = vpack.c.bf16 %v1988_v48, %v1987_v5 }
 0x224   :  { %v1399_v4 = vpop.f32.mrf.mxu2 }
 0x225   :  { %v1511_v1 = vadd.f32 %v1399_v4, %v1070_v58  ;;  %v1793_v34 = vpop.f32.mrf.mxu3 }
 0x226   :  { %v1071_v63 = vpop.f32.mrf.mxu1 }
 0x227   :  { %v1905_v26 = vadd.f32 %v1793_v34, %v1511_v1  ;;  %v1072_v31 = vadd.f32 %v1071_v63, %v5946_v22 }
 0x228   :  { %v2189_v28 = vpop.f32.mrf.mxu0 }
 0x229   :  { %v6259_v51 = vadd.f32 %v2187_v19, %v1905_v26 }
 0x22c   :  { %v1401_v11 = vpop.f32.mrf.mxu2 }
 0x22d   :  { %v1512_v12 = vadd.f32 %v1401_v11, %v1072_v31  ;;  %v1795_v38 = vpop.f32.mrf.mxu3  ;;  %v1202_v31 = vld [vmem:[#allocation2 + $0x2aa] sm:$0xff] }
 0x22e   :  { %v1074_v8 = vpop.f32.mrf.mxu1 }
 0x22f   :  { %v1906_v27 = vadd.f32 %v1795_v38, %v1512_v12  ;;  %v1075_v58 = vadd.f32 %v1074_v8, %v5955_v0  ;;  %v1239_v12 = vpack.c.bf16 %v1202_v31, %v1201_v29  ;;  %v1989_v0 = vld [vmem:[#allocation2 + $0x2b9] sm:$0xff] }
 0x230   :  { %v2192_v10 = vpop.f32.mrf.mxu0  ;;  %v4728_v29 = vld [vmem:[%s6555_s2 + $0x200] sm:$0xff] }
 0x231   :  { %1113 = vmatmul.bf16.gmra.mxu1 %v1631_v3  ;;  %1443 = vmatmul.bf16.gmra.mxu2 %v1238_v44  ;;  %v6262_v19 = vadd.f32 %v2189_v28, %v1906_v27  ;;  %v1596_v28 = vld [vmem:[#allocation2 + $0x2c0] sm:$0xff] }
 0x232   :  { %1837 = vmatmul.bf16.gmra.mxu3 %v1632_v57  ;;  %v1990_v44 = vld [vmem:[#allocation2 + $0x2c1] sm:$0xff]  ;;  %v1633_v8 = vpack.c.bf16 %v1596_v28, %v1595_v43  ;;  %3682 = vmatpush.bf16.msra.mxu0 %v4728_v29 }
 0x233   :  { %2231 = vmatmul.bf16.gmra.mxu0 %v2026_v53  ;;  %v2027_v27 = vpack.c.bf16 %v1990_v44, %v1989_v0 }
 0x234   :  { %v1404_v22 = vpop.f32.mrf.mxu2 }
 0x235   :  { %v1513_v4 = vadd.f32 %v1404_v22, %v1075_v58  ;;  %v1798_v1 = vpop.f32.mrf.mxu3 }
 0x236   :  { %v1076_v34 = vpop.f32.mrf.mxu1 }
 0x237   :  { %v1907_v63 = vadd.f32 %v1798_v1, %v1513_v4  ;;  %v1077_v11 = vadd.f32 %v1076_v34, %v5963_v24  ;;  %v4712_v24 = vld [vmem:[%s6555_s2 + $0x180] sm:$0xff] }
 0x238   :  { %v2194_v26 = vpop.f32.mrf.mxu0  ;;  %v4720_v4 = vld [vmem:[%s6555_s2 + $0x1c0] sm:$0xff]  ;;  %2894 = vmatpush.bf16.msra.mxu2 %v4712_v24 }
 0x239   :  { %v6265_v21 = vadd.f32 %v2192_v10, %v1907_v63  ;;  %3288 = vmatpush.bf16.msra.mxu3 %v4720_v4 }
 0x23c   :  { %v1406_v3 = vpop.f32.mrf.mxu2 }
 0x23d   :  { %v1514_v46 = vadd.f32 %v1406_v3, %v1077_v11  ;;  %v1800_v5 = vpop.f32.mrf.mxu3  ;;  %v1203_v11 = vld [vmem:[#allocation2 + $0x2ba] sm:$0xff]  ;;  %v1204_v3 = vld [vmem:[#allocation2 + $0x2c2] sm:$0xff] }
 0x23e   :  { %v1079_v48 = vpop.f32.mrf.mxu1  ;;  %v1240_v44 = vpack.c.bf16 %v1204_v3, %v1203_v11  ;;  %v1205_v3 = vld [vmem:[#allocation2 + $0x2d2] sm:$0xff] }
 0x23f   :  { %v1908_v38 = vadd.f32 %v1800_v5, %v1514_v46  ;;  %v1080_v58 = vadd.f32 %v1079_v48, %v5975_v17  ;;  %v4704_v17 = vld [vmem:[%s6555_s2 + $0x140] sm:$0xff]  ;;  %v1597_v46 = vld [vmem:[#allocation2 + $0x2d0] sm:$0xff] }
 0x240   :  { %v2197_v53 = vpop.f32.mrf.mxu0  ;;  %2499 = vmatpush.bf16.msra.mxu1 %v4704_v17  ;;  %v1991_v5 = vld [vmem:[#allocation2 + $0x2d1] sm:$0xff]  ;;  %v1992_v48 = vld [vmem:[#allocation2 + $0x2d9] sm:$0xff] }
 0x241   :  { %1118 = vmatmul.bf16.gmra.mxu1 %v1632_v57  ;;  %1448 = vmatmul.bf16.gmra.mxu2 %v1239_v12  ;;  %v6268_v10 = vadd.f32 %v2194_v26, %v1908_v38  ;;  %v1598_v12 = vld [vmem:[#allocation2 + $0x2d8] sm:$0xff] }
 0x242   :  { %1842 = vmatmul.bf16.gmra.mxu3 %v1633_v8  ;;  %v1634_v24 = vpack.c.bf16 %v1598_v12, %v1597_v46  ;;  %v1599_v12 = vld [vmem:[#allocation2 + $0x2e8] sm:$0xff] }
 0x243   :  { %2236 = vmatmul.bf16.gmra.mxu0 %v2027_v27 }
 0x244   :  { %v1409_v22 = vpop.f32.mrf.mxu2 }
 0x245   :  { %v1515_v1 = vadd.f32 %v1409_v22, %v1080_v58  ;;  %v1803_v34 = vpop.f32.mrf.mxu3  ;;  %v2028_v22 = vpack.c.bf16 %v1992_v48, %v1991_v5  ;;  %v1994_v5 = vld [vmem:[#allocation2 + $0x2f1] sm:$0xff] }
 0x246   :  { %v1081_v57 = vpop.f32.mrf.mxu1 }
 0x247   :  { %v1909_v63 = vadd.f32 %v1803_v34, %v1515_v1  ;;  %v1082_v43 = vadd.f32 %v1081_v57, %v5992_v13 }
 0x248   :  { %v2199_v26 = vpop.f32.mrf.mxu0 }
 0x249   :  { %v6283_v31 = vadd.f32 %v2197_v53, %v1909_v63 }
 0x24c   :  { %v1411_v28 = vpop.f32.mrf.mxu2 }
 0x24d   :  { %v1516_v0 = vadd.f32 %v1411_v28, %v1082_v43  ;;  %v1805_v38 = vpop.f32.mrf.mxu3  ;;  %v1206_v43 = vld [vmem:[#allocation2 + $0x2da] sm:$0xff] }
 0x24e   :  { %v1084_v27 = vpop.f32.mrf.mxu1  ;;  %v6618_v28 = vld [vmem:[#allocation10_spill] sm:$0xff] }
 0x24f   :  { %v1910_v58 = vadd.f32 %v1805_v38, %v1516_v0  ;;  %v1085_v13 = vadd.f32 %v1084_v27, %v6001_v40  ;;  %v1993_v40 = vld [vmem:[#allocation2 + $0x2e9] sm:$0xff] }
 0x250   :  { %v2202_v4 = vpop.f32.mrf.mxu0 }
 0x251   :  { %1123 = vmatmul.bf16.gmra.mxu1 %v1633_v8  ;;  %1453 = vmatmul.bf16.gmra.mxu2 %v1240_v44  ;;  %v6286_v53 = vadd.f32 %v2199_v26, %v1910_v58  ;;  %v1600_v26 = vld [vmem:[#allocation2 + $0x2f0] sm:$0xff]  ;;  %v1241_v44 = vpack.c.bf16 %v1206_v43, %v1205_v3  ;;  %v5116_v43 = vld [vmem:[%s6557_s1] ss:$0 sm:$0xff] }
 0x252   :  { %1847 = vmatmul.bf16.gmra.mxu3 %v1634_v24  ;;  %v1635_v58 = vpack.c.bf16 %v1600_v26, %v1599_v12 }
 0x253   :  { %2241 = vmatmul.bf16.gmra.mxu0 %v2028_v22  ;;  %v2029_v22 = vpack.c.bf16 %v1994_v5, %v1993_v40 }
 0x254   :  { %v1414_v1 = vpop.f32.mrf.mxu2 }
 0x255   :  { %v1517_v34 = vadd.f32 %v1414_v1, %v1085_v13  ;;  %v1808_v57 = vpop.f32.mrf.mxu3 }
 0x256   :  { %v1086_v63 = vpop.f32.mrf.mxu1 }
 0x257   :  { %v1911_v17 = vadd.f32 %v1808_v57, %v1517_v34  ;;  %v1087_v46 = vadd.f32 %v1086_v63, %v6618_v28  ;;  %v6620_v63 = vld [vmem:[#allocation12_spill] sm:$0xff] }
 0x258   :  { %v2204_v29 = vpop.f32.mrf.mxu0 }
 0x259   :  { %v6289_v11 = vadd.f32 %v2202_v4, %v1911_v17  ;;  %v5054_v4 = vld [vmem:[%s6556_s0 + $0xf8] sm:$0xff]  }
 0x25a   :  { %v4862_v34 = vunpack.c.l.bf16 %v5054_v4  ;;  %v4863_v57 = vunpack.c.h.bf16 %v5054_v4  ;;  %v6622_v4 = vld [vmem:[#allocation14_spill] sm:$0xff] }
 0x25b   :  { %6617 = vst [vmem:[#allocation28_spill] sm:$0xff] %v6289_v11 }
 0x25c   :  { %v1416_v8 = vpop.f32.mrf.mxu2  ;;  %v293_v28 = vmul.f32 %v5116_v43, %v4862_v34 }
 0x25d   :  { %v1518_v0 = vadd.f32 %v1416_v8, %v1087_v46  ;;  %v1810_v48 = vpop.f32.mrf.mxu3 }
 0x25e   :  { %v1089_v38 = vpop.f32.mrf.mxu1 }
 0x25f   :  { %v1912_v27 = vadd.f32 %v1810_v48, %v1518_v0  ;;  %v1090_v17 = vadd.f32 %v1089_v38, %v6620_v63  ;;  %v1601_v63 = vld [vmem:[#allocation2 + $0x300] sm:$0xff] }
 0x260   :  { %v2207_v13 = vpop.f32.mrf.mxu0 }
 0x261   :  { %1128 = vmatmul.bf16.gmra.mxu1 %v1634_v24  ;;  %1458 = vmatmul.bf16.gmra.mxu2 %v1241_v44  ;;  %v6295_v1 = vadd.f32 %v2204_v29, %v1912_v27  ;;  %v294_v24 = vmul.f32 %v5116_v43, %v4863_v57  ;;  %v5117_v29 = vld [vmem:[%s6557_s1 + $0x1] ss:$0 sm:$0xff]  ;;  %v1207_v27 = vld [vmem:[#allocation2 + $0x2ea] sm:$0xff] }
 0x262   :  { %1852 = vmatmul.bf16.gmra.mxu3 %v1635_v58  ;;  %v6304_v26 = vadd.f32 %v5117_v29, %v293_v28  ;;  %v1995_v28 = vld [vmem:[#allocation2 + $0x301] sm:$0xff] }
 0x263   :  { %6619 = vst [vmem:[#allocation10_spill] sm:$0xff] %v6295_v1  ;;  %2246 = vmatmul.bf16.gmra.mxu0 %v2029_v22  ;;  %v6306_v0 = vadd.f32 %v5117_v29, %v294_v24  ;;  %v1208_v22 = vld [vmem:[#allocation2 + $0x2f2] sm:$0xff]  ;;  %v1996_v24 = vld [vmem:[#allocation2 + $0x309] sm:$0xff] }
 0x264   :  { %v1419_v3 = vpop.f32.mrf.mxu2  ;;  %v6575_v40 = vmax.f32 %v6304_v26, 0.0  ;;  %v1242_v43 = vpack.c.bf16 %v1208_v22, %v1207_v27 }
 0x265   :  { %v1519_v46 = vadd.f32 %v1419_v3, %v1090_v17  ;;  %v1813_v8 = vpop.f32.mrf.mxu3  ;;  %v6576_v5 = vmax.f32 %v6306_v0, 0.0  ;;  %v1602_v17 = vld [vmem:[#allocation2 + $0x308] sm:$0xff] }
 0x266   :  { %v1091_v12 = vpop.f32.mrf.mxu1  ;;  %488 = vst [vmem:[#allocation2 + $0x331] sm:$0xff] %v6575_v40  ;;  %v1636_v29 = vpack.c.bf16 %v1602_v17, %v1601_v63  ;;  %v1210_v63 = vld [vmem:[#allocation2 + $0x30a] sm:$0xff]  ;;  %v6626_v17 = vld [vmem:[#allocation18_spill] sm:$0xff] }
 0x267   :  { %v1913_v44 = vadd.f32 %v1813_v8, %v1519_v46  ;;  %v1092_v34 = vadd.f32 %v1091_v12, %v6622_v4  ;;  %489 = vst [vmem:[#allocation2 + $0x339] sm:$0xff] %v6576_v5  ;;  %v6624_v12 = vld [vmem:[#allocation16_spill] sm:$0xff] }
 0x268   :  { %v2209_v48 = vpop.f32.mrf.mxu0 }
 0x269   :  { %v6310_v38 = vadd.f32 %v2207_v13, %v1913_v44  ;;  %v2030_v44 = vpack.c.bf16 %v1996_v24, %v1995_v28 }
 0x26b   :  { %6621 = vst [vmem:[#allocation12_spill] sm:$0xff] %v6310_v38 }
 0x26c   :  { %v1421_v57 = vpop.f32.mrf.mxu2 }
 0x26d   :  { %v1520_v3 = vadd.f32 %v1421_v57, %v1092_v34  ;;  %v1815_v46 = vpop.f32.mrf.mxu3 }
 0x26e   :  { %v1094_v13 = vpop.f32.mrf.mxu1 }
 0x26f   :  { %v1914_v8 = vadd.f32 %v1815_v46, %v1520_v3  ;;  %v1095_v4 = vadd.f32 %v1094_v13, %v6624_v12  ;;  %v1209_v3 = vld [vmem:[#allocation2 + $0x302] sm:$0xff]  ;;  %v1997_v13 = vld [vmem:[#allocation2 + $0x319] sm:$0xff] }
 0x270   :  { %v2212_v38 = vpop.f32.mrf.mxu0  ;;  %v1243_v46 = vpack.c.bf16 %v1210_v63, %v1209_v3 }
 0x271   :  { %1133 = vmatmul.bf16.gmra.mxu1 %v1635_v58  ;;  %1463 = vmatmul.bf16.gmra.mxu2 %v1242_v43  ;;  %v6317_v40 = vadd.f32 %v2209_v48, %v1914_v8  ;;  %v1603_v43 = vld [vmem:[#allocation2 + $0x318] sm:$0xff]  ;;  %v1604_v48 = vld [vmem:[#allocation2 + $0x320] sm:$0xff] }
 0x272   :  { %1857 = vmatmul.bf16.gmra.mxu3 %v1636_v29  ;;  %v1998_v8 = vld [vmem:[#allocation2 + $0x321] sm:$0xff] }
 0x273   :  { %6623 = vst [vmem:[#allocation14_spill] sm:$0xff] %v6317_v40  ;;  %2251 = vmatmul.bf16.gmra.mxu0 %v2030_v44  ;;  %v2031_v40 = vpack.c.bf16 %v1998_v8, %v1997_v13 }
 0x274   :  { %v1424_v5 = vpop.f32.mrf.mxu2 }
 0x275   :  { %v1521_v1 = vadd.f32 %v1424_v5, %v1095_v4  ;;  %v1818_v34 = vpop.f32.mrf.mxu3  ;;  %v1637_v4 = vpack.c.bf16 %v1604_v48, %v1603_v43  ;;  %v1212_v43 = vld [vmem:[#allocation2 + $0x322] sm:$0xff]  ;;  %v6629_v48 = vld [vmem:[#allocation22_spill] sm:$0xff] }
 0x276   :  { %v1096_v27 = vpop.f32.mrf.mxu1 }
 0x277   :  { %v1915_v22 = vadd.f32 %v1818_v34, %v1521_v1  ;;  %v1097_v28 = vadd.f32 %v1096_v27, %v6626_v17  ;;  %v6627_v34 = vld [vmem:[#allocation20_spill] sm:$0xff] }
 0x278   :  { %v2214_v57 = vpop.f32.mrf.mxu0 }
 0x279   :  { %v6320_v11 = vadd.f32 %v2212_v38, %v1915_v22 }
 0x27b   :  { %6625 = vst [vmem:[#allocation16_spill] sm:$0xff] %v6320_v11 }
 0x27c   :  { %v1426_v58 = vpop.f32.mrf.mxu2 }
 0x27d   :  { %v1522_v24 = vadd.f32 %v1426_v58, %v1097_v28  ;;  %v1820_v44 = vpop.f32.mrf.mxu3 }
 0x27e   :  { %v1099_v12 = vpop.f32.mrf.mxu1 }
 0x27f   :  { %v1916_v5 = vadd.f32 %v1820_v44, %v1522_v24  ;;  %v1100_v22 = vadd.f32 %v1099_v12, %v6627_v34  ;;  %v1211_v24 = vld [vmem:[#allocation2 + $0x31a] sm:$0xff] }
 0x280   :  { %v2217_v1 = vpop.f32.mrf.mxu0  ;;  %v1244_v44 = vpack.c.bf16 %v1212_v43, %v1211_v24 }
 0x281   :  { %1138 = vmatmul.bf16.gmra.mxu1 %v1636_v29  ;;  %1468 = vmatmul.bf16.gmra.mxu2 %v1243_v46  ;;  %v6323_v38 = vadd.f32 %v2214_v57, %v1916_v5  ;;  %v1605_v46 = vld [vmem:[#allocation2 + $0x330] sm:$0xff]  ;;  %v1606_v57 = vld [vmem:[#allocation2 + $0x338] sm:$0xff] }
 0x282   :  { %1862 = vmatmul.bf16.gmra.mxu3 %v1637_v4  ;;  %v1638_v34 = vpack.c.bf16 %v1606_v57, %v1605_v46  ;;  %v2331_v57 = vld [vmem:[#allocation2 + $0x1a] sm:$0xff] }
 0x283   :  { %2256 = vmatmul.bf16.gmra.mxu0 %v2031_v40 }
 0x284   :  { %v1429_v27 = vpop.f32.mrf.mxu2 }
 0x285   :  { %v1523_v17 = vadd.f32 %v1429_v27, %v1100_v22  ;;  %v1823_v28 = vpop.f32.mrf.mxu3  ;;  %v6630_v22 = vmax.f32 %v6304_v26, 0.0  ;;  %v6631_v27 = vmax.f32 %v6306_v0, 0.0  ;;  %v2332_v0 = vld [vmem:[#allocation2 + $0x22] sm:$0xff] }
 0x286   :  { %v1101_v3 = vpop.f32.mrf.mxu1 }
 0x287   :  { %v1917_v63 = vadd.f32 %v1823_v28, %v1523_v17  ;;  %v1102_v13 = vadd.f32 %v1101_v3, %v6629_v48  ;;  %v2032_v17 = vpack.c.bf16 %v6631_v27, %v6630_v22  ;;  %v6633_v3 = vld [vmem:[#allocation24_spill] sm:$0xff]  ;;  %v3121_v22 = vld [vmem:[#allocation2 + $0x39] sm:$0xff] }
 0x288   :  { %v2219_v58 = vpop.f32.mrf.mxu0 }
 0x289   :  { %v6326_v11 = vadd.f32 %v2217_v1, %v1917_v63 }
 0x28b   :  { %6628 = vst [vmem:[#allocation18_spill] sm:$0xff] %v6326_v11 }
 0x28c   :  { %v1431_v29 = vpop.f32.mrf.mxu2 }
 0x28d   :  { %v1524_v8 = vadd.f32 %v1431_v29, %v1102_v13  ;;  %v1825_v12 = vpop.f32.mrf.mxu3 }
 0x28e   :  { %v1104_v5 = vpop.f32.mrf.mxu1 }
 0x28f   :  { %v1918_v40 = vadd.f32 %v1825_v12, %v1524_v8  ;;  %v1105_v63 = vadd.f32 %v1104_v5, %v6633_v3  ;;  %v2726_v8 = vld [vmem:[#allocation2 + $0x30] sm:$0xff]  ;;  %v2727_v12 = vld [vmem:[#allocation2 + $0x38] sm:$0xff] }
 0x290   :  { %v2222_v1 = vpop.f32.mrf.mxu0  ;;  %v2790_v27 = vpack.c.bf16 %v2727_v12, %v2726_v8  ;;  %v3515_v3 = vld [vmem:[#allocation2 + $0x3a] sm:$0xff] }
 0x291   :  { %1143 = vmatmul.bf16.gmra.mxu1 %v1637_v4  ;;  %1473 = vmatmul.bf16.gmra.mxu2 %v1244_v44  ;;  %v6333_v28 = vadd.f32 %v2219_v58, %v1918_v40  ;;  %v6635_v4 = vld [vmem:[#allocation26_spill] sm:$0xff] }
 0x292   :  { %1867 = vmatmul.bf16.gmra.mxu3 %v1638_v34  ;;  %v3120_v40 = vld [vmem:[#allocation2 + $0x31] sm:$0xff]  ;;  %v2395_v34 = vpack.c.bf16 %v2332_v0, %v2331_v57 }
 0x293   :  { %6632 = vst [vmem:[#allocation20_spill] sm:$0xff] %v6333_v28  ;;  %2261 = vmatmul.bf16.gmra.mxu0 %v2032_v17  ;;  %v3514_v17 = vld [vmem:[#allocation2 + $0x32] sm:$0xff] }
 0x294   :  { %v1434_v48 = vpop.f32.mrf.mxu2  ;;  %v3578_v28 = vpack.c.bf16 %v3515_v3, %v3514_v17 }
 0x295   :  { %v1525_v24 = vadd.f32 %v1434_v48, %v1105_v63  ;;  %v1828_v43 = vpop.f32.mrf.mxu3 }
 0x296   :  { %v1106_v13 = vpop.f32.mrf.mxu1 }
 0x297   :  { %v1919_v29 = vadd.f32 %v1828_v43, %v1525_v24  ;;  %v1107_v44 = vadd.f32 %v1106_v13, %v6635_v4  ;;  %v3184_v43 = vpack.c.bf16 %v3121_v22, %v3120_v40  ;;  %v2729_v40 = vld [vmem:[#allocation2 + $0x50] sm:$0xff]  ;;  %v6639_v22 = vld [vmem:[#allocation4_spill] sm:$0xff] }
 0x298   :  { %v2224_v46 = vpop.f32.mrf.mxu0 }
 0x299   :  { %v6336_v26 = vadd.f32 %v2222_v1, %v1919_v29 }
 0x29b   :  { %6634 = vst [vmem:[#allocation22_spill] sm:$0xff] %v6336_v26  ;;  %v6637_v26 = vld [vmem:[#allocation3_spill] sm:$0xff] }
 0x29c   :  { %v1436_v58 = vpop.f32.mrf.mxu2 }
 0x29d   :  { %v1526_v5 = vadd.f32 %v1436_v58, %v1107_v44  ;;  %v1830_v63 = vpop.f32.mrf.mxu3 }
 0x29e   :  { %v1109_v48 = vpop.f32.mrf.mxu1 }
 0x29f   :  { %v1920_v24 = vadd.f32 %v1830_v63, %v1526_v5  ;;  %v1110_v13 = vadd.f32 %v1109_v48, %v6637_v26  ;;  %v2728_v5 = vld [vmem:[#allocation2 + $0x48] sm:$0xff]  ;;  %v3517_v48 = vld [vmem:[#allocation2 + $0x52] sm:$0xff] }
 0x2a0   :  { %v2227_v1 = vpop.f32.mrf.mxu0  ;;  %v2791_v63 = vpack.c.bf16 %v2729_v40, %v2728_v5  ;;  %v3516_v26 = vld [vmem:[#allocation2 + $0x4a] sm:$0xff] }
 0x2a1   :  { %2500 = vmatmul.bf16.vlgmr.msra.gmra.mxu1 %v2395_v34  ;;  %2895 = vmatmul.bf16.vlgmr.msra.gmra.mxu2 %v2790_v27  ;;  %v6339_v29 = vadd.f32 %v2224_v46, %v1920_v24  ;;  %v3122_v27 = vld [vmem:[#allocation2 + $0x49] sm:$0xff]  ;;  %v3123_v46 = vld [vmem:[#allocation2 + $0x51] sm:$0xff] }
 0x2a2   :  { %3289 = vmatmul.bf16.vlgmr.msra.gmra.mxu3 %v3184_v43 }
 0x2a3   :  { %6636 = vst [vmem:[#allocation24_spill] sm:$0xff] %v6339_v29  ;;  %3683 = vmatmul.bf16.vlgmr.msra.gmra.mxu0 %v3578_v28  ;;  %v3579_v29 = vpack.c.bf16 %v3517_v48, %v3516_v26 }
 0x2a4   :  { %v1439_v4 = vpop.f32.mrf.mxu2 }
 0x2a5   :  { %v1527_v44 = vadd.f32 %v1439_v4, %v1110_v13  ;;  %v1833_v57 = vpop.f32.mrf.mxu3  ;;  %v3185_v4 = vpack.c.bf16 %v3123_v46, %v3122_v27  ;;  %v2731_v27 = vld [vmem:[#allocation2 + $0x68] sm:$0xff]  ;;  %v6643_v46 = vld [vmem:[#allocation6_spill] sm:$0xff] }
 0x2a6   :  { %v1111_v0 = vpop.f32.mrf.mxu1 }
 0x2a7   :  { %v1921_v8 = vadd.f32 %v1833_v57, %v1527_v44  ;;  %v1112_v17 = vadd.f32 %v1111_v0, %v6639_v22  ;;  %v6641_v57 = vld [vmem:[#allocation5_spill] sm:$0xff] }
 0x2a8   :  { %v2229_v12 = vpop.f32.mrf.mxu0 }
 0x2a9   :  { %v6342_v58 = vadd.f32 %v2227_v1, %v1921_v8 }
 0x2ab   :  { %6638 = vst [vmem:[#allocation26_spill] sm:$0xff] %v6342_v58 }
 0x2ac   :  { %v1441_v34 = vpop.f32.mrf.mxu2 }
 0x2ad   :  { %v1528_v3 = vadd.f32 %v1441_v34, %v1112_v17  ;;  %v1835_v24 = vpop.f32.mrf.mxu3 }
 0x2ae   :  { %v1114_v43 = vpop.f32.mrf.mxu1 }
 0x2af   :  { %v1922_v13 = vadd.f32 %v1835_v24, %v1528_v3  ;;  %v1115_v8 = vadd.f32 %v1114_v43, %v6641_v57  ;;  %v2730_v3 = vld [vmem:[#allocation2 + $0x60] sm:$0xff] }
 0x2b0   :  { %v2232_v44 = vpop.f32.mrf.mxu0  ;;  %v2792_v24 = vpack.c.bf16 %v2731_v27, %v2730_v3  ;;  %v3518_v43 = vld [vmem:[#allocation2 + $0x62] sm:$0xff] }
 0x2b1   :  { %2505 = vmatmul.bf16.gmra.mxu1 %v3578_v28  ;;  %2900 = vmatmul.bf16.gmra.mxu2 %v2791_v63  ;;  %v6345_v1 = vadd.f32 %v2229_v12, %v1922_v13  ;;  %v3124_v63 = vld [vmem:[#allocation2 + $0x61] sm:$0xff]  ;;  %v3125_v12 = vld [vmem:[#allocation2 + $0x69] sm:$0xff] }
 0x2b2   :  { %3294 = vmatmul.bf16.gmra.mxu3 %v3185_v4  ;;  %v3519_v13 = vld [vmem:[#allocation2 + $0x6a] sm:$0xff] }
 0x2b3   :  { %6640 = vst [vmem:[#allocation3_spill] sm:$0xff] %v6345_v1  ;;  %3688 = vmatmul.bf16.gmra.mxu0 %v3579_v29  ;;  %v3580_v1 = vpack.c.bf16 %v3519_v13, %v3518_v43 }
 0x2b4   :  { %v1444_v0 = vpop.f32.mrf.mxu2 }
 0x2b5   :  { %v1529_v22 = vadd.f32 %v1444_v0, %v1115_v8  ;;  %v1838_v17 = vpop.f32.mrf.mxu3  ;;  %v3186_v0 = vpack.c.bf16 %v3125_v12, %v3124_v63  ;;  %v2733_v63 = vld [vmem:[#allocation2 + $0x80] sm:$0xff]  ;;  %v6647_v12 = vld [vmem:[#allocation8_spill] sm:$0xff] }
 0x2b6   :  { %v1116_v5 = vpop.f32.mrf.mxu1 }
 0x2b7   :  { %v1923_v40 = vadd.f32 %v1838_v17, %v1529_v22  ;;  %v1117_v26 = vadd.f32 %v1116_v5, %v6643_v46  ;;  %v6645_v17 = vld [vmem:[#allocation7_spill] sm:$0xff] }
 0x2b8   :  { %v2234_v34 = vpop.f32.mrf.mxu0 }
 0x2b9   :  { %v6348_v58 = vadd.f32 %v2232_v44, %v1923_v40 }
 0x2bb   :  { %6642 = vst [vmem:[#allocation4_spill] sm:$0xff] %v6348_v58 }
 0x2bc   :  { %v1446_v28 = vpop.f32.mrf.mxu2 }
 0x2bd   :  { %v1530_v48 = vadd.f32 %v1446_v28, %v1117_v26  ;;  %v1840_v4 = vpop.f32.mrf.mxu3 }
 0x2be   :  { %v1119_v57 = vpop.f32.mrf.mxu1 }
 0x2bf   :  { %v1924_v8 = vadd.f32 %v1840_v4, %v1530_v48  ;;  %v1120_v40 = vadd.f32 %v1119_v57, %v6645_v17  ;;  %v2732_v48 = vld [vmem:[#allocation2 + $0x78] sm:$0xff] }
 0x2c0   :  { %v2237_v22 = vpop.f32.mrf.mxu0  ;;  %v2793_v4 = vpack.c.bf16 %v2733_v63, %v2732_v48  ;;  %v3520_v57 = vld [vmem:[#allocation2 + $0x7a] sm:$0xff] }
 0x2c1   :  { %2510 = vmatmul.bf16.gmra.mxu1 %v3579_v29  ;;  %2905 = vmatmul.bf16.gmra.mxu2 %v2792_v24  ;;  %v6351_v44 = vadd.f32 %v2234_v34, %v1924_v8  ;;  %v3126_v24 = vld [vmem:[#allocation2 + $0x79] sm:$0xff]  ;;  %v3127_v34 = vld [vmem:[#allocation2 + $0x81] sm:$0xff] }
 0x2c2   :  { %3299 = vmatmul.bf16.gmra.mxu3 %v3186_v0  ;;  %v3521_v8 = vld [vmem:[#allocation2 + $0x82] sm:$0xff] }
 0x2c3   :  { %6644 = vst [vmem:[#allocation5_spill] sm:$0xff] %v6351_v44  ;;  %3693 = vmatmul.bf16.gmra.mxu0 %v3580_v1  ;;  %v3581_v44 = vpack.c.bf16 %v3521_v8, %v3520_v57 }
 0x2c4   :  { %v1449_v5 = vpop.f32.mrf.mxu2 }
 0x2c5   :  { %v1531_v46 = vadd.f32 %v1449_v5, %v1120_v40  ;;  %v1843_v26 = vpop.f32.mrf.mxu3  ;;  %v3187_v5 = vpack.c.bf16 %v3127_v34, %v3126_v24  ;;  %v2735_v24 = vld [vmem:[#allocation2 + $0x98] sm:$0xff]  ;;  %v6651_v34 = vld [vmem:[#allocation11_spill] sm:$0xff] }
 0x2c6   :  { %v1121_v3 = vpop.f32.mrf.mxu1 }
 0x2c7   :  { %v1925_v27 = vadd.f32 %v1843_v26, %v1531_v46  ;;  %v1122_v43 = vadd.f32 %v1121_v3, %v6647_v12  ;;  %v6649_v26 = vld [vmem:[#allocation9_spill] sm:$0xff] }
 0x2c8   :  { %v2239_v28 = vpop.f32.mrf.mxu0 }
 0x2c9   :  { %v6354_v58 = vadd.f32 %v2237_v22, %v1925_v27 }
 0x2cb   :  { %6646 = vst [vmem:[#allocation6_spill] sm:$0xff] %v6354_v58 }
 0x2cc   :  { %v1451_v29 = vpop.f32.mrf.mxu2 }
 0x2cd   :  { %v1532_v13 = vadd.f32 %v1451_v29, %v1122_v43  ;;  %v1845_v0 = vpop.f32.mrf.mxu3 }
 0x2ce   :  { %v1124_v17 = vpop.f32.mrf.mxu1 }
 0x2cf   :  { %v1926_v40 = vadd.f32 %v1845_v0, %v1532_v13  ;;  %v1125_v27 = vadd.f32 %v1124_v17, %v6649_v26  ;;  %v2734_v13 = vld [vmem:[#allocation2 + $0x90] sm:$0xff] }
 0x2d0   :  { %v2242_v46 = vpop.f32.mrf.mxu0  ;;  %v2794_v0 = vpack.c.bf16 %v2735_v24, %v2734_v13  ;;  %v3522_v17 = vld [vmem:[#allocation2 + $0x92] sm:$0xff] }
 0x2d1   :  { %2515 = vmatmul.bf16.gmra.mxu1 %v3580_v1  ;;  %2910 = vmatmul.bf16.gmra.mxu2 %v2793_v4  ;;  %v6357_v22 = vadd.f32 %v2239_v28, %v1926_v40  ;;  %v3128_v4 = vld [vmem:[#allocation2 + $0x91] sm:$0xff]  ;;  %v3129_v28 = vld [vmem:[#allocation2 + $0x99] sm:$0xff] }
 0x2d2   :  { %3304 = vmatmul.bf16.gmra.mxu3 %v3187_v5  ;;  %v3523_v40 = vld [vmem:[#allocation2 + $0x9a] sm:$0xff] }
 0x2d3   :  { %6648 = vst [vmem:[#allocation7_spill] sm:$0xff] %v6357_v22  ;;  %3698 = vmatmul.bf16.gmra.mxu0 %v3581_v44  ;;  %v3582_v22 = vpack.c.bf16 %v3523_v40, %v3522_v17 }
 0x2d4   :  { %v1454_v3 = vpop.f32.mrf.mxu2 }
 0x2d5   :  { %v1533_v12 = vadd.f32 %v1454_v3, %v1125_v27  ;;  %v1848_v43 = vpop.f32.mrf.mxu3  ;;  %v3188_v3 = vpack.c.bf16 %v3129_v28, %v3128_v4  ;;  %v2737_v4 = vld [vmem:[#allocation2 + $0xb0] sm:$0xff]  ;;  %v6655_v28 = vld [vmem:[#allocation15_spill] sm:$0xff] }
 0x2d6   :  { %v1126_v48 = vpop.f32.mrf.mxu1 }
 0x2d7   :  { %v1927_v63 = vadd.f32 %v1848_v43, %v1533_v12  ;;  %v1127_v57 = vadd.f32 %v1126_v48, %v6651_v34  ;;  %v6653_v43 = vld [vmem:[#allocation13_spill] sm:$0xff] }
 0x2d8   :  { %v2244_v29 = vpop.f32.mrf.mxu0 }
 0x2d9   :  { %v6360_v58 = vadd.f32 %v2242_v46, %v1927_v63 }
 0x2db   :  { %6650 = vst [vmem:[#allocation8_spill] sm:$0xff] %v6360_v58 }
 0x2dc   :  { %v1456_v1 = vpop.f32.mrf.mxu2 }
 0x2dd   :  { %v1534_v8 = vadd.f32 %v1456_v1, %v1127_v57  ;;  %v1850_v5 = vpop.f32.mrf.mxu3 }
 0x2de   :  { %v1129_v26 = vpop.f32.mrf.mxu1 }
 0x2df   :  { %v1928_v27 = vadd.f32 %v1850_v5, %v1534_v8  ;;  %v1130_v63 = vadd.f32 %v1129_v26, %v6653_v43  ;;  %v2736_v8 = vld [vmem:[#allocation2 + $0xa8] sm:$0xff] }
 0x2e0   :  { %v2247_v12 = vpop.f32.mrf.mxu0  ;;  %v2795_v5 = vpack.c.bf16 %v2737_v4, %v2736_v8  ;;  %v3524_v26 = vld [vmem:[#allocation2 + $0xaa] sm:$0xff] }
 0x2e1   :  { %2520 = vmatmul.bf16.gmra.mxu1 %v3581_v44  ;;  %2915 = vmatmul.bf16.gmra.mxu2 %v2794_v0  ;;  %v6363_v46 = vadd.f32 %v2244_v29, %v1928_v27  ;;  %v3130_v0 = vld [vmem:[#allocation2 + $0xa9] sm:$0xff]  ;;  %v3131_v29 = vld [vmem:[#allocation2 + $0xb1] sm:$0xff] }
 0x2e2   :  { %3309 = vmatmul.bf16.gmra.mxu3 %v3188_v3  ;;  %v3525_v27 = vld [vmem:[#allocation2 + $0xb2] sm:$0xff] }
 0x2e3   :  { %6652 = vst [vmem:[#allocation9_spill] sm:$0xff] %v6363_v46  ;;  %3703 = vmatmul.bf16.gmra.mxu0 %v3582_v22  ;;  %v3583_v46 = vpack.c.bf16 %v3525_v27, %v3524_v26 }
 0x2e4   :  { %v1459_v48 = vpop.f32.mrf.mxu2 }
 0x2e5   :  { %v1535_v34 = vadd.f32 %v1459_v48, %v1130_v63  ;;  %v1853_v57 = vpop.f32.mrf.mxu3  ;;  %v3189_v48 = vpack.c.bf16 %v3131_v29, %v3130_v0  ;;  %v2739_v0 = vld [vmem:[#allocation2 + $0xc8] sm:$0xff]  ;;  %v6659_v29 = vld [vmem:[#allocation19_spill] sm:$0xff] }
 0x2e6   :  { %v1131_v13 = vpop.f32.mrf.mxu1 }
 0x2e7   :  { %v1929_v24 = vadd.f32 %v1853_v57, %v1535_v34  ;;  %v1132_v17 = vadd.f32 %v1131_v13, %v6655_v28  ;;  %v6657_v57 = vld [vmem:[#allocation17_spill] sm:$0xff] }
 0x2e8   :  { %v2249_v1 = vpop.f32.mrf.mxu0 }
 0x2e9   :  { %v6366_v58 = vadd.f32 %v2247_v12, %v1929_v24 }
 0x2eb   :  { %6654 = vst [vmem:[#allocation11_spill] sm:$0xff] %v6366_v58 }
 0x2ec   :  { %v1461_v44 = vpop.f32.mrf.mxu2 }
 0x2ed   :  { %v1536_v40 = vadd.f32 %v1461_v44, %v1132_v17  ;;  %v1855_v3 = vpop.f32.mrf.mxu3 }
 0x2ee   :  { %v1134_v43 = vpop.f32.mrf.mxu1 }
 0x2ef   :  { %v1930_v63 = vadd.f32 %v1855_v3, %v1536_v40  ;;  %v1135_v24 = vadd.f32 %v1134_v43, %v6657_v57  ;;  %v2738_v40 = vld [vmem:[#allocation2 + $0xc0] sm:$0xff] }
 0x2f0   :  { %v2252_v34 = vpop.f32.mrf.mxu0  ;;  %v2796_v3 = vpack.c.bf16 %v2739_v0, %v2738_v40  ;;  %v3526_v43 = vld [vmem:[#allocation2 + $0xc2] sm:$0xff] }
 0x2f1   :  { %2525 = vmatmul.bf16.gmra.mxu1 %v3582_v22  ;;  %2920 = vmatmul.bf16.gmra.mxu2 %v2795_v5  ;;  %v6369_v12 = vadd.f32 %v2249_v1, %v1930_v63  ;;  %v3132_v5 = vld [vmem:[#allocation2 + $0xc1] sm:$0xff]  ;;  %v3133_v1 = vld [vmem:[#allocation2 + $0xc9] sm:$0xff] }
 0x2f2   :  { %3314 = vmatmul.bf16.gmra.mxu3 %v3189_v48  ;;  %v3527_v63 = vld [vmem:[#allocation2 + $0xca] sm:$0xff] }
 0x2f3   :  { %6656 = vst [vmem:[#allocation13_spill] sm:$0xff] %v6369_v12  ;;  %3708 = vmatmul.bf16.gmra.mxu0 %v3583_v46  ;;  %v3584_v12 = vpack.c.bf16 %v3527_v63, %v3526_v43 }
 0x2f4   :  { %v1464_v13 = vpop.f32.mrf.mxu2 }
 0x2f5   :  { %v1537_v28 = vadd.f32 %v1464_v13, %v1135_v24  ;;  %v1858_v17 = vpop.f32.mrf.mxu3  ;;  %v3190_v13 = vpack.c.bf16 %v3133_v1, %v3132_v5  ;;  %v2741_v5 = vld [vmem:[#allocation2 + $0xe0] sm:$0xff] }
 0x2f6   :  { %v1136_v8 = vpop.f32.mrf.mxu1  ;;  %v6663_v1 = vld [vmem:[#allocation23_spill] sm:$0xff] }
 0x2f7   :  { %v1931_v4 = vadd.f32 %v1858_v17, %v1537_v28  ;;  %v1137_v26 = vadd.f32 %v1136_v8, %v6659_v29  ;;  %v6661_v17 = vld [vmem:[#allocation21_spill] sm:$0xff] }
 0x2f8   :  { %v2254_v44 = vpop.f32.mrf.mxu0 }
 0x2f9   :  { %v6372_v58 = vadd.f32 %v2252_v34, %v1931_v4 }
 0x2fb   :  { %6658 = vst [vmem:[#allocation15_spill] sm:$0xff] %v6372_v58 }
 0x2fc   :  { %v1466_v22 = vpop.f32.mrf.mxu2 }
 0x2fd   :  { %v1538_v27 = vadd.f32 %v1466_v22, %v1137_v26  ;;  %v1860_v48 = vpop.f32.mrf.mxu3 }
 0x2fe   :  { %v1139_v57 = vpop.f32.mrf.mxu1 }
 0x2ff   :  { %v1932_v24 = vadd.f32 %v1860_v48, %v1538_v27  ;;  %v1140_v4 = vadd.f32 %v1139_v57, %v6661_v17  ;;  %v2740_v27 = vld [vmem:[#allocation2 + $0xd8] sm:$0xff] }
 0x300   :  { %v2257_v28 = vpop.f32.mrf.mxu0  ;;  %v2797_v48 = vpack.c.bf16 %v2741_v5, %v2740_v27  ;;  %v3528_v57 = vld [vmem:[#allocation2 + $0xda] sm:$0xff] }
 0x301   :  { %2530 = vmatmul.bf16.gmra.mxu1 %v3583_v46  ;;  %2925 = vmatmul.bf16.gmra.mxu2 %v2796_v3  ;;  %v6375_v34 = vadd.f32 %v2254_v44, %v1932_v24  ;;  %v3134_v3 = vld [vmem:[#allocation2 + $0xd9] sm:$0xff]  ;;  %v3135_v44 = vld [vmem:[#allocation2 + $0xe1] sm:$0xff] }
 0x302   :  { %3319 = vmatmul.bf16.gmra.mxu3 %v3190_v13  ;;  %v3529_v24 = vld [vmem:[#allocation2 + $0xe2] sm:$0xff] }
 0x303   :  { %6660 = vst [vmem:[#allocation17_spill] sm:$0xff] %v6375_v34  ;;  %3713 = vmatmul.bf16.gmra.mxu0 %v3584_v12  ;;  %v3585_v34 = vpack.c.bf16 %v3529_v24, %v3528_v57 }
 0x304   :  { %v1469_v8 = vpop.f32.mrf.mxu2 }
 0x305   :  { %v1539_v29 = vadd.f32 %v1469_v8, %v1140_v4  ;;  %v1863_v26 = vpop.f32.mrf.mxu3  ;;  %v3191_v8 = vpack.c.bf16 %v3135_v44, %v3134_v3  ;;  %v2743_v3 = vld [vmem:[#allocation2 + $0xf8] sm:$0xff]  ;;  %v6667_v44 = vld [vmem:[#allocation27_spill] sm:$0xff] }
 0x306   :  { %v1141_v40 = vpop.f32.mrf.mxu1 }
 0x307   :  { %v1933_v0 = vadd.f32 %v1863_v26, %v1539_v29  ;;  %v1142_v43 = vadd.f32 %v1141_v40, %v6663_v1  ;;  %v6665_v26 = vld [vmem:[#allocation25_spill] sm:$0xff] }
 0x308   :  { %v2259_v22 = vpop.f32.mrf.mxu0 }
 0x309   :  { %v6378_v58 = vadd.f32 %v2257_v28, %v1933_v0 }
 0x30b   :  { %6662 = vst [vmem:[#allocation19_spill] sm:$0xff] %v6378_v58 }
 0x30c   :  { %v1471_v46 = vpop.f32.mrf.mxu2 }
 0x30d   :  { %v1540_v63 = vadd.f32 %v1471_v46, %v1142_v43  ;;  %v1865_v13 = vpop.f32.mrf.mxu3 }
 0x30e   :  { %v1144_v17 = vpop.f32.mrf.mxu1 }
 0x30f   :  { %v1934_v4 = vadd.f32 %v1865_v13, %v1540_v63  ;;  %v1145_v0 = vadd.f32 %v1144_v17, %v6665_v26  ;;  %v2742_v63 = vld [vmem:[#allocation2 + $0xf0] sm:$0xff] }
 0x310   :  { %v2262_v29 = vpop.f32.mrf.mxu0  ;;  %v2798_v13 = vpack.c.bf16 %v2743_v3, %v2742_v63  ;;  %v3530_v17 = vld [vmem:[#allocation2 + $0xf2] sm:$0xff] }
 0x311   :  { %2535 = vmatmul.bf16.gmra.mxu1 %v3584_v12  ;;  %2930 = vmatmul.bf16.gmra.mxu2 %v2797_v48  ;;  %v6381_v28 = vadd.f32 %v2259_v22, %v1934_v4  ;;  %v3136_v48 = vld [vmem:[#allocation2 + $0xf1] sm:$0xff]  ;;  %v3137_v22 = vld [vmem:[#allocation2 + $0xf9] sm:$0xff] }
 0x312   :  { %3324 = vmatmul.bf16.gmra.mxu3 %v3191_v8  ;;  %v3531_v4 = vld [vmem:[#allocation2 + $0xfa] sm:$0xff] }
 0x313   :  { %6664 = vst [vmem:[#allocation21_spill] sm:$0xff] %v6381_v28  ;;  %3718 = vmatmul.bf16.gmra.mxu0 %v3585_v34  ;;  %v3586_v28 = vpack.c.bf16 %v3531_v4, %v3530_v17  ;;  %v3532_v17 = vld [vmem:[#allocation2 + $0x10a] sm:$0xff]  ;;  %v3533_v4 = vld [vmem:[#allocation2 + $0x112] sm:$0xff] }
 0x314   :  { %v1474_v40 = vpop.f32.mrf.mxu2 }
 0x315   :  { %v1541_v1 = vadd.f32 %v1474_v40, %v1145_v0  ;;  %v1868_v43 = vpop.f32.mrf.mxu3  ;;  %v3192_v40 = vpack.c.bf16 %v3137_v22, %v3136_v48 }
 0x316   :  { %v1146_v27 = vpop.f32.mrf.mxu1 }
 0x317   :  { %v1935_v5 = vadd.f32 %v1868_v43, %v1541_v1  ;;  %v1147_v57 = vadd.f32 %v1146_v27, %v6667_v44 }
 0x318   :  { %v2264_v46 = vpop.f32.mrf.mxu0 }
 0x319   :  { %v6384_v58 = vadd.f32 %v2262_v29, %v1935_v5 }
 0x31b   :  { %6666 = vst [vmem:[#allocation23_spill] sm:$0xff] %v6384_v58  ;;  %v2745_v58 = vld [vmem:[#allocation2 + $0x110] sm:$0xff] }
 0x31c   :  { %v1476_v12 = vpop.f32.mrf.mxu2 }
 0x31d   :  { %v1542_v24 = vadd.f32 %v1476_v12, %v1147_v57  ;;  %v1870_v8 = vpop.f32.mrf.mxu3  ;;  %v2744_v12 = vld [vmem:[#allocation2 + $0x108] sm:$0xff] }
 0x31e   :  { %v2501_v26 = vpop.f32.mrf.mxu1 }
 0x31f   :  { %v1936_v0 = vadd.f32 %v1870_v8, %v1542_v24  ;;  %v2661_v43 = vadd.f32 %v2501_v26, %v6093_v16  ;;  %v3138_v24 = vld [vmem:[#allocation2 + $0x109] sm:$0xff] }
 0x320   :  { %v3684_v1 = vpop.f32.mrf.mxu0 }
 0x321   :  { %2540 = vmatmul.bf16.gmra.mxu1 %v3585_v34  ;;  %2935 = vmatmul.bf16.gmra.mxu2 %v2798_v13  ;;  %v6387_v29 = vadd.f32 %v2264_v46, %v1936_v0  ;;  %v3139_v34 = vld [vmem:[#allocation2 + $0x111] sm:$0xff]  ;;  %v2799_v46 = vpack.c.bf16 %v2745_v58, %v2744_v12 }
 0x322   :  { %3329 = vmatmul.bf16.gmra.mxu3 %v3192_v40  ;;  %v3193_v40 = vpack.c.bf16 %v3139_v34, %v3138_v24  ;;  %v2746_v24 = vld [vmem:[#allocation2 + $0x120] sm:$0xff]  ;;  %v2747_v34 = vld [vmem:[#allocation2 + $0x128] sm:$0xff] }
 0x323   :  { %6668 = vst [vmem:[#allocation25_spill] sm:$0xff] %v6387_v29  ;;  %3723 = vmatmul.bf16.gmra.mxu0 %v3586_v28 }
 0x324   :  { %v2896_v27 = vpop.f32.mrf.mxu2 }
 0x325   :  { %v3056_v5 = vadd.f32 %v2896_v27, %v2661_v43  ;;  %v3290_v44 = vpop.f32.mrf.mxu3  ;;  %v3587_v43 = vpack.c.bf16 %v3533_v4, %v3532_v17  ;;  %v3140_v4 = vld [vmem:[#allocation2 + $0x121] sm:$0xff] }
 0x326   :  { %v2503_v63 = vpop.f32.mrf.mxu1 }
 0x327   :  { %v3450_v57 = vadd.f32 %v3290_v44, %v3056_v5  ;;  %v2662_v48 = vadd.f32 %v2503_v63, %v6096_v20 }
 0x328   :  { %v3686_v3 = vpop.f32.mrf.mxu0 }
 0x329   :  { %v3844_v8 = vadd.f32 %v3684_v1, %v3450_v57 }
 0x32b   :  { %v4106_v5 = vmul.f32 %v3844_v8, %v3844_v8 }
 0x32c   :  { %v2898_v22 = vpop.f32.mrf.mxu2 }
 0x32d   :  { %v3057_v13 = vadd.f32 %v2898_v22, %v2662_v48  ;;  %v3292_v16 = vpop.f32.mrf.mxu3 }
 0x32e   :  { %v2506_v26 = vpop.f32.mrf.mxu1 }
 0x32f   :  { %v3451_v0 = vadd.f32 %v3292_v16, %v3057_v13  ;;  %v2663_v11 = vadd.f32 %v2506_v26, %v6099_v25 }
 0x330   :  { %v3689_v29 = vpop.f32.mrf.mxu0 }
 0x331   :  { %v3845_v27 = vadd.f32 %v3686_v3, %v3451_v0  ;;  %2545 = vmatmul.bf16.gmra.mxu1 %v3586_v28  ;;  %2940 = vmatmul.bf16.gmra.mxu2 %v2799_v46  ;;  %v2800_v0 = vpack.c.bf16 %v2747_v34, %v2746_v24 }
 0x332   :  { %3334 = vmatmul.bf16.gmra.mxu3 %v3193_v40  ;;  %v3534_v40 = vld [vmem:[#allocation2 + $0x122] sm:$0xff] }
 0x333   :  { %v4867_v44 = vpack.c.bf16 %v3845_v27, %v3844_v8  ;;  %v4036_v20 = vadd.f32 %v3845_v27, %v3844_v8  ;;  %v4107_v63 = vmul.f32 %v3845_v27, %v3845_v27  ;;  %3728 = vmatmul.bf16.gmra.mxu0 %v3587_v43  ;;  %v3141_v8 = vld [vmem:[#allocation2 + $0x129] sm:$0xff] }
 0x334   :  { %v2901_v58 = vpop.f32.mrf.mxu2  ;;  %v3535_v27 = vld [vmem:[#allocation2 + $0x12a] sm:$0xff] }
 0x335   :  { %4868 = vst [vmem:[%s6558_s3] sm:$0xff] %v4867_v44   ;;  %v4170_v1 = vadd.f32 %v4107_v63, %v4106_v5  ;;  %v3058_v57 = vadd.f32 %v2901_v58, %v2663_v11  ;;  %v3295_v12 = vpop.f32.mrf.mxu3  ;;  %v3194_v63 = vpack.c.bf16 %v3141_v8, %v3140_v4 }
 0x336   :  { %v2508_v3 = vpop.f32.mrf.mxu1 }
 0x337   :  { %v3452_v48 = vadd.f32 %v3295_v12, %v3058_v57  ;;  %v2664_v25 = vadd.f32 %v2508_v3, %v6102_v32 }
 0x338   :  { %v3691_v22 = vpop.f32.mrf.mxu0 }
 0x339   :  { %v3846_v28 = vadd.f32 %v3689_v29, %v3452_v48  ;;  %v3588_v29 = vpack.c.bf16 %v3535_v27, %v3534_v40 }
 0x33b   :  { %v4037_v13 = vadd.f32 %v4036_v20, %v3846_v28  ;;  %v4108_v46 = vmul.f32 %v3846_v28, %v3846_v28 }
 0x33c   :  { %v2903_v17 = vpop.f32.mrf.mxu2 }
 0x33d   :  { %v4171_v16 = vadd.f32 %v4170_v1, %v4108_v46  ;;  %v3059_v26 = vadd.f32 %v2903_v17, %v2664_v25  ;;  %v3297_v11 = vpop.f32.mrf.mxu3  ;;  %v2748_v17 = vld [vmem:[#allocation2 + $0x138] sm:$0xff] }
 0x33e   :  { %v2511_v5 = vpop.f32.mrf.mxu1 }
 0x33f   :  { %v3453_v44 = vadd.f32 %v3297_v11, %v3059_v26  ;;  %v2665_v3 = vadd.f32 %v2511_v5, %v6117_v42  ;;  %v3142_v26 = vld [vmem:[#allocation2 + $0x139] sm:$0xff] }
 0x340   :  { %v3694_v57 = vpop.f32.mrf.mxu0  ;;  %v3536_v5 = vld [vmem:[#allocation2 + $0x13a] sm:$0xff] }
 0x341   :  { %v3847_v58 = vadd.f32 %v3691_v22, %v3453_v44  ;;  %2550 = vmatmul.bf16.gmra.mxu1 %v3587_v43  ;;  %2945 = vmatmul.bf16.gmra.mxu2 %v2800_v0  ;;  %v3143_v0 = vld [vmem:[#allocation2 + $0x141] sm:$0xff] }
 0x342   :  { %3339 = vmatmul.bf16.gmra.mxu3 %v3194_v63 }
 0x343   :  { %v4872_v20 = vpack.c.bf16 %v3847_v58, %v3846_v28  ;;  %v4038_v12 = vadd.f32 %v4037_v13, %v3847_v58  ;;  %v4109_v32 = vmul.f32 %v3847_v58, %v3847_v58  ;;  %3733 = vmatmul.bf16.gmra.mxu0 %v3588_v29  ;;  %v2749_v28 = vld [vmem:[#allocation2 + $0x140] sm:$0xff] }
 0x344   :  { %v2906_v1 = vpop.f32.mrf.mxu2  ;;  %v2801_v11 = vpack.c.bf16 %v2749_v28, %v2748_v17 }
 0x345   :  { %5055 = vst [vmem:[%s6558_s3 + $0x8] sm:$0xff] %v4872_v20   ;;  %v4172_v48 = vadd.f32 %v4171_v16, %v4109_v32  ;;  %v3060_v24 = vadd.f32 %v2906_v1, %v2665_v3  ;;  %v3300_v34 = vpop.f32.mrf.mxu3  ;;  %v3537_v16 = vld [vmem:[#allocation2 + $0x142] sm:$0xff]  ;;  %v3195_v20 = vpack.c.bf16 %v3143_v0, %v3142_v26  ;;  %v3144_v26 = vld [vmem:[#allocation2 + $0x151] sm:$0xff]  ;;  %v3145_v0 = vld [vmem:[#allocation2 + $0x159] sm:$0xff] }
 0x346   :  { %v2513_v46 = vpop.f32.mrf.mxu1 }
 0x347   :  { %v3454_v22 = vadd.f32 %v3300_v34, %v3060_v24  ;;  %v2666_v42 = vadd.f32 %v2513_v46, %v6120_v18 }
 0x348   :  { %v3696_v43 = vpop.f32.mrf.mxu0 }
 0x349   :  { %v3848_v25 = vadd.f32 %v3694_v57, %v3454_v22  ;;  %v3589_v57 = vpack.c.bf16 %v3537_v16, %v3536_v5  ;;  %v3538_v16 = vld [vmem:[#allocation2 + $0x152] sm:$0xff] }
 0x34b   :  { %v4039_v13 = vadd.f32 %v4038_v12, %v3848_v25  ;;  %v4110_v4 = vmul.f32 %v3848_v25, %v3848_v25 }
 0x34c   :  { %v2908_v8 = vpop.f32.mrf.mxu2 }
 0x34d   :  { %v4173_v40 = vadd.f32 %v4172_v48, %v4110_v4  ;;  %v3061_v27 = vadd.f32 %v2908_v8, %v2666_v42  ;;  %v3302_v44 = vpop.f32.mrf.mxu3  ;;  %v2750_v4 = vld [vmem:[#allocation2 + $0x150] sm:$0xff] }
 0x34e   :  { %v2516_v63 = vpop.f32.mrf.mxu1 }
 0x34f   :  { %v3455_v58 = vadd.f32 %v3302_v44, %v3061_v27  ;;  %v2667_v24 = vadd.f32 %v2516_v63, %v6123_v23 }
 0x350   :  { %v3699_v3 = vpop.f32.mrf.mxu0 }
 0x351   :  { %v3849_v32 = vadd.f32 %v3696_v43, %v3455_v58  ;;  %2555 = vmatmul.bf16.gmra.mxu1 %v3588_v29  ;;  %2950 = vmatmul.bf16.gmra.mxu2 %v2801_v11 }
 0x352   :  { %3344 = vmatmul.bf16.gmra.mxu3 %v3195_v20  ;;  %v3196_v20 = vpack.c.bf16 %v3145_v0, %v3144_v26 }
 0x353   :  { %v4877_v12 = vpack.c.bf16 %v3849_v32, %v3848_v25  ;;  %v4040_v1 = vadd.f32 %v4039_v13, %v3849_v32  ;;  %v4111_v18 = vmul.f32 %v3849_v32, %v3849_v32  ;;  %3738 = vmatmul.bf16.gmra.mxu0 %v3589_v57  ;;  %v2751_v25 = vld [vmem:[#allocation2 + $0x158] sm:$0xff] }
 0x354   :  { %v2911_v48 = vpop.f32.mrf.mxu2  ;;  %v2802_v5 = vpack.c.bf16 %v2751_v25, %v2750_v4  ;;  %v2752_v4 = vld [vmem:[#allocation2 + $0x168] sm:$0xff] }
 0x355   :  { %5056 = vst [vmem:[%s6558_s3 + $0x10] sm:$0xff] %v4877_v12   ;;  %v4174_v34 = vadd.f32 %v4173_v40, %v4111_v18  ;;  %v3062_v46 = vadd.f32 %v2911_v48, %v2667_v24  ;;  %v3305_v22 = vpop.f32.mrf.mxu3  ;;  %v3539_v40 = vld [vmem:[#allocation2 + $0x15a] sm:$0xff] }
 0x356   :  { %v2518_v17 = vpop.f32.mrf.mxu1  ;;  %v3590_v32 = vpack.c.bf16 %v3539_v40, %v3538_v16 }
 0x357   :  { %v3456_v43 = vadd.f32 %v3305_v22, %v3062_v46  ;;  %v2668_v23 = vadd.f32 %v2518_v17, %v6129_v47 }
 0x358   :  { %v3701_v29 = vpop.f32.mrf.mxu0 }
 0x359   :  { %v3850_v28 = vadd.f32 %v3699_v3, %v3456_v43 }
 0x35b   :  { %v4041_v13 = vadd.f32 %v4040_v1, %v3850_v28  ;;  %v4112_v42 = vmul.f32 %v3850_v28, %v3850_v28 }
 0x35c   :  { %v2913_v8 = vpop.f32.mrf.mxu2 }
 0x35d   :  { %v4175_v27 = vadd.f32 %v4174_v34, %v4112_v42  ;;  %v3063_v11 = vadd.f32 %v2913_v8, %v2668_v23  ;;  %v3307_v44 = vpop.f32.mrf.mxu3  ;;  %v3146_v23 = vld [vmem:[#allocation2 + $0x169] sm:$0xff]  ;;  %v3147_v8 = vld [vmem:[#allocation2 + $0x171] sm:$0xff] }
 0x35e   :  { %v2521_v63 = vpop.f32.mrf.mxu1 }
 0x35f   :  { %v3457_v58 = vadd.f32 %v3307_v44, %v3063_v11  ;;  %v2669_v24 = vadd.f32 %v2521_v63, %v6142_v55  ;;  %v3197_v63 = vpack.c.bf16 %v3147_v8, %v3146_v23  ;;  %v3542_v8 = vld [vmem:[#allocation2 + $0x182] sm:$0xff] }
 0x360   :  { %v3704_v12 = vpop.f32.mrf.mxu0 }
 0x361   :  { %v3851_v3 = vadd.f32 %v3701_v29, %v3457_v58  ;;  %2560 = vmatmul.bf16.gmra.mxu1 %v3589_v57  ;;  %2955 = vmatmul.bf16.gmra.mxu2 %v2802_v5  ;;  %v3540_v5 = vld [vmem:[#allocation2 + $0x16a] sm:$0xff] }
 0x362   :  { %3349 = vmatmul.bf16.gmra.mxu3 %v3196_v20 }
 0x363   :  { %v4882_v1 = vpack.c.bf16 %v3851_v3, %v3850_v28  ;;  %v4042_v18 = vadd.f32 %v4041_v13, %v3851_v3  ;;  %v4113_v47 = vmul.f32 %v3851_v3, %v3851_v3  ;;  %3743 = vmatmul.bf16.gmra.mxu0 %v3590_v32  ;;  %v2753_v28 = vld [vmem:[#allocation2 + $0x170] sm:$0xff] }
 0x364   :  { %v2916_v48 = vpop.f32.mrf.mxu2  ;;  %v2803_v11 = vpack.c.bf16 %v2753_v28, %v2752_v4 }
 0x365   :  { %5057 = vst [vmem:[%s6558_s3 + $0x18] sm:$0xff] %v4882_v1   ;;  %v4176_v34 = vadd.f32 %v4175_v27, %v4113_v47  ;;  %v3064_v46 = vadd.f32 %v2916_v48, %v2669_v24  ;;  %v3310_v22 = vpop.f32.mrf.mxu3  ;;  %v3541_v27 = vld [vmem:[#allocation2 + $0x172] sm:$0xff] }
 0x366   :  { %v2523_v17 = vpop.f32.mrf.mxu1  ;;  %v3591_v58 = vpack.c.bf16 %v3541_v27, %v3540_v5 }
 0x367   :  { %v3458_v43 = vadd.f32 %v3310_v22, %v3064_v46  ;;  %v2670_v55 = vadd.f32 %v2523_v17, %v6149_v30 }
 0x368   :  { %v3706_v57 = vpop.f32.mrf.mxu0 }
 0x369   :  { %v3852_v29 = vadd.f32 %v3704_v12, %v3458_v43  ;;  %v2754_v43 = vld [vmem:[#allocation2 + $0x180] sm:$0xff] }
 0x36b   :  { %v4043_v25 = vadd.f32 %v4042_v18, %v3852_v29  ;;  %v4114_v13 = vmul.f32 %v3852_v29, %v3852_v29 }
 0x36c   :  { %v2918_v42 = vpop.f32.mrf.mxu2 }
 0x36d   :  { %v4177_v26 = vadd.f32 %v4176_v34, %v4114_v13  ;;  %v3065_v0 = vadd.f32 %v2918_v42, %v2670_v55  ;;  %v3312_v16 = vpop.f32.mrf.mxu3  ;;  %v3149_v13 = vld [vmem:[#allocation2 + $0x189] sm:$0xff] }
 0x36e   :  { %v2526_v40 = vpop.f32.mrf.mxu1 }
 0x36f   :  { %v3459_v44 = vadd.f32 %v3312_v16, %v3065_v0  ;;  %v2671_v18 = vadd.f32 %v2526_v40, %v6152_v2 }
 0x370   :  { %v3709_v3 = vpop.f32.mrf.mxu0 }
 0x371   :  { %v3853_v20 = vadd.f32 %v3706_v57, %v3459_v44  ;;  %2565 = vmatmul.bf16.gmra.mxu1 %v3590_v32  ;;  %2960 = vmatmul.bf16.gmra.mxu2 %v2803_v11 }
 0x372   :  { %3354 = vmatmul.bf16.gmra.mxu3 %v3197_v63 }
 0x373   :  { %v4887_v12 = vpack.c.bf16 %v3853_v20, %v3852_v29  ;;  %v4044_v1 = vadd.f32 %v4043_v25, %v3853_v20  ;;  %v4115_v30 = vmul.f32 %v3853_v20, %v3853_v20  ;;  %3748 = vmatmul.bf16.gmra.mxu0 %v3591_v58  ;;  %v2755_v29 = vld [vmem:[#allocation2 + $0x188] sm:$0xff] }
 0x374   :  { %v2921_v47 = vpop.f32.mrf.mxu2  ;;  %v3148_v25 = vld [vmem:[#allocation2 + $0x181] sm:$0xff]  ;;  %v2804_v23 = vpack.c.bf16 %v2755_v29, %v2754_v43 }
 0x375   :  { %5058 = vst [vmem:[%s6558_s3 + $0x20] sm:$0xff] %v4887_v12   ;;  %v4178_v24 = vadd.f32 %v4177_v26, %v4115_v30  ;;  %v3066_v48 = vadd.f32 %v2921_v47, %v2671_v18  ;;  %v3315_v34 = vpop.f32.mrf.mxu3  ;;  %v3543_v26 = vld [vmem:[#allocation2 + $0x18a] sm:$0xff]  ;;  %v3198_v27 = vpack.c.bf16 %v3149_v13, %v3148_v25  ;;  %v3151_v43 = vld [vmem:[#allocation2 + $0x1a1] sm:$0xff] }
 0x376   :  { %v2528_v46 = vpop.f32.mrf.mxu1  ;;  %v3592_v16 = vpack.c.bf16 %v3543_v26, %v3542_v8  ;;  %v3545_v25 = vld [vmem:[#allocation2 + $0x1a2] sm:$0xff] }
 0x377   :  { %v3460_v22 = vadd.f32 %v3315_v34, %v3066_v48  ;;  %v2672_v2 = vadd.f32 %v2528_v46, %v6155_v6  ;;  %v2756_v34 = vld [vmem:[#allocation2 + $0x198] sm:$0xff] }
 0x378   :  { %v3711_v32 = vpop.f32.mrf.mxu0 }
 0x379   :  { %v3854_v17 = vadd.f32 %v3709_v3, %v3460_v22 }
 0x37b   :  { %v4045_v57 = vadd.f32 %v4044_v1, %v3854_v17  ;;  %v4116_v4 = vmul.f32 %v3854_v17, %v3854_v17 }
 0x37c   :  { %v2923_v28 = vpop.f32.mrf.mxu2 }
 0x37d   :  { %v4179_v55 = vadd.f32 %v4178_v24, %v4116_v4  ;;  %v3067_v42 = vadd.f32 %v2923_v28, %v2672_v2  ;;  %v3317_v0 = vpop.f32.mrf.mxu3  ;;  %v5118_v4 = vld [vmem:[#allocation2 + $0x1b8] sm:$0xff] }
 0x37e   :  { %v2531_v11 = vpop.f32.mrf.mxu1  ;;  %v2805_v2 = vpack.c.bf16 %v5118_v4, %v2756_v34  ;;  %v3544_v28 = vld [vmem:[#allocation2 + $0x19a] sm:$0xff] }
 0x37f   :  { %v3461_v5 = vadd.f32 %v3317_v0, %v3067_v42  ;;  %v2673_v3 = vadd.f32 %v2531_v11, %v6170_v9  ;;  %v3593_v8 = vpack.c.bf16 %v3545_v25, %v3544_v28  ;;  %v3152_v34 = vld [vmem:[#allocation2 + $0x1e1] sm:$0xff] }
 0x380   :  { %v3714_v44 = vpop.f32.mrf.mxu0 }
 0x381   :  { %v3855_v40 = vadd.f32 %v3711_v32, %v3461_v5  ;;  %2570 = vmatmul.bf16.gmra.mxu1 %v3591_v58  ;;  %2965 = vmatmul.bf16.gmra.mxu2 %v2804_v23  ;;  %v3150_v32 = vld [vmem:[#allocation2 + $0x199] sm:$0xff] }
 0x382   :  { %3359 = vmatmul.bf16.gmra.mxu3 %v3198_v27  ;;  %v3199_v23 = vpack.c.bf16 %v3151_v43, %v3150_v32  ;;  %v3546_v43 = vld [vmem:[#allocation2 + $0x1e2] sm:$0xff] }
 0x383   :  { %v4892_v63 = vpack.c.bf16 %v3855_v40, %v3854_v17  ;;  %v4046_v20 = vadd.f32 %v4045_v57, %v3855_v40  ;;  %v4117_v6 = vmul.f32 %v3855_v40, %v3855_v40  ;;  %3753 = vmatmul.bf16.gmra.mxu0 %v3592_v16 }
 0x384   :  { %v2926_v12 = vpop.f32.mrf.mxu2 }
 0x385   :  { %5059 = vst [vmem:[%s6558_s3 + $0x28] sm:$0xff] %v4892_v63   ;;  %v4180_v1 = vadd.f32 %v4179_v55, %v4117_v6  ;;  %v3068_v30 = vadd.f32 %v2926_v12, %v2673_v3  ;;  %v3320_v18 = vpop.f32.mrf.mxu3 }
 0x386   :  { %v2533_v47 = vpop.f32.mrf.mxu1 }
 0x387   :  { %v3462_v24 = vadd.f32 %v3320_v18, %v3068_v30  ;;  %v2674_v17 = vadd.f32 %v2533_v47, %v6177_v61  ;;  %v2364_v30 = vld [vmem:[#allocation2 + $0x1d2] sm:$0xff]  ;;  %v2758_v18 = vld [vmem:[#allocation2 + $0x1e0] sm:$0xff]  ;;  %v2759_v47 = vld [vmem:[#allocation2 + $0x1e8] sm:$0xff] }
 0x388   :  { %v3716_v58 = vpop.f32.mrf.mxu0  ;;  %v2806_v32 = vpack.c.bf16 %v2759_v47, %v2758_v18 }
 0x389   :  { %v3856_v48 = vadd.f32 %v3714_v44, %v3462_v24 }
 0x38b   :  { %v4047_v46 = vadd.f32 %v4046_v20, %v3856_v48  ;;  %v4118_v22 = vmul.f32 %v3856_v48, %v3856_v48 }
 0x38c   :  { %v2928_v9 = vpop.f32.mrf.mxu2 }
 0x38d   :  { %v4181_v29 = vadd.f32 %v4180_v1, %v4118_v22  ;;  %v3069_v57 = vadd.f32 %v2928_v9, %v2674_v17  ;;  %v3322_v13 = vpop.f32.mrf.mxu3  ;;  %v2363_v1 = vld [vmem:[#allocation2 + $0x1ca] sm:$0xff] }
 0x38e   :  { %v2536_v55 = vpop.f32.mrf.mxu1  ;;  %v2411_v9 = vpack.c.bf16 %v2364_v30, %v2363_v1  ;;  %v3155_v1 = vld [vmem:[#allocation2 + $0x201] sm:$0xff] }
 0x38f   :  { %v3463_v42 = vadd.f32 %v3322_v13, %v3069_v57  ;;  %v2675_v27 = vadd.f32 %v2536_v55, %v6180_v33 }
 0x390   :  { %v3719_v0 = vpop.f32.mrf.mxu0 }
 0x391   :  { %v3857_v26 = vadd.f32 %v3716_v58, %v3463_v42  ;;  %2575 = vmatmul.bf16.gmra.mxu1 %v3592_v16  ;;  %2970 = vmatmul.bf16.gmra.mxu2 %v2805_v2 }
 0x392   :  { %3364 = vmatmul.bf16.gmra.mxu3 %v3199_v23 }
 0x393   :  { %v4897_v11 = vpack.c.bf16 %v3857_v26, %v3856_v48  ;;  %v4048_v61 = vadd.f32 %v4047_v46, %v3857_v26  ;;  %v4119_v5 = vmul.f32 %v3857_v26, %v3857_v26  ;;  %3758 = vmatmul.bf16.gmra.mxu0 %v3593_v8  ;;  %v3153_v46 = vld [vmem:[#allocation2 + $0x1e9] sm:$0xff] }
 0x394   :  { %v2931_v40 = vpop.f32.mrf.mxu2  ;;  %v3200_v28 = vpack.c.bf16 %v3153_v46, %v3152_v34 }
 0x395   :  { %5060 = vst [vmem:[%s6558_s3 + $0x30] sm:$0xff] %v4897_v11   ;;  %v4182_v44 = vadd.f32 %v4181_v29, %v4119_v5  ;;  %v3070_v63 = vadd.f32 %v2931_v40, %v2675_v27  ;;  %v3325_v20 = vpop.f32.mrf.mxu3  ;;  %v3547_v29 = vld [vmem:[#allocation2 + $0x1ea] sm:$0xff] }
 0x396   :  { %v2538_v6 = vpop.f32.mrf.mxu1  ;;  %v3594_v25 = vpack.c.bf16 %v3547_v29, %v3546_v43 }
 0x397   :  { %v3464_v3 = vadd.f32 %v3325_v20, %v3070_v63  ;;  %v2676_v48 = vadd.f32 %v2538_v6, %v6184_v49  ;;  %v2760_v63 = vld [vmem:[#allocation2 + $0x1f8] sm:$0xff]  ;;  %v2761_v20 = vld [vmem:[#allocation2 + $0x200] sm:$0xff] }
 0x398   :  { %v3721_v16 = vpop.f32.mrf.mxu0  ;;  %v2807_v47 = vpack.c.bf16 %v2761_v20, %v2760_v63  ;;  %v3551_v63 = vld [vmem:[#allocation2 + $0x21a] sm:$0xff] }
 0x399   :  { %v3858_v12 = vadd.f32 %v3719_v0, %v3464_v3 }
 0x39b   :  { %v4049_v24 = vadd.f32 %v4048_v61, %v3858_v12  ;;  %v4120_v33 = vmul.f32 %v3858_v12, %v3858_v12 }
 0x39c   :  { %v2933_v58 = vpop.f32.mrf.mxu2 }
 0x39d   :  { %v4183_v22 = vadd.f32 %v4182_v44, %v4120_v33  ;;  %v3071_v17 = vadd.f32 %v2933_v58, %v2676_v48  ;;  %v3327_v57 = vpop.f32.mrf.mxu3  ;;  %v3549_v33 = vld [vmem:[#allocation2 + $0x202] sm:$0xff] }
 0x39e   :  { %v2541_v4 = vpop.f32.mrf.mxu1 }
 0x39f   :  { %v3465_v2 = vadd.f32 %v3327_v57, %v3071_v17  ;;  %v2677_v8 = vadd.f32 %v2541_v4, %v6187_v52 }
 0x3a0   :  { %v3724_v55 = vpop.f32.mrf.mxu0 }
 0x3a1   :  { %v3859_v13 = vadd.f32 %v3721_v16, %v3465_v2  ;;  %2580 = vmatmul.bf16.gmra.mxu1 %v2411_v9  ;;  %2975 = vmatmul.bf16.gmra.mxu2 %v2806_v32  ;;  %v3154_v16 = vld [vmem:[#allocation2 + $0x1f9] sm:$0xff] }
 0x3a2   :  { %3369 = vmatmul.bf16.gmra.mxu3 %v3200_v28  ;;  %v3201_v46 = vpack.c.bf16 %v3155_v1, %v3154_v16 }
 0x3a3   :  { %v4902_v42 = vpack.c.bf16 %v3859_v13, %v3858_v12  ;;  %v4050_v49 = vadd.f32 %v4049_v24, %v3859_v13  ;;  %v4121_v23 = vmul.f32 %v3859_v13, %v3859_v13  ;;  %3763 = vmatmul.bf16.gmra.mxu0 %v3594_v25  ;;  %v3548_v24 = vld [vmem:[#allocation2 + $0x1fa] sm:$0xff] }
 0x3a4   :  { %v2936_v26 = vpop.f32.mrf.mxu2 }
 0x3a5   :  { %5061 = vst [vmem:[%s6558_s3 + $0x38] sm:$0xff] %v4902_v42   ;;  %v4184_v0 = vadd.f32 %v4183_v22, %v4121_v23  ;;  %v3072_v11 = vadd.f32 %v2936_v26, %v2677_v8  ;;  %v3330_v61 = vpop.f32.mrf.mxu3  ;;  %v3595_v22 = vpack.c.bf16 %v3549_v33, %v3548_v24  ;;  %v2763_v23 = vld [vmem:[#allocation2 + $0x218] sm:$0xff] }
 0x3a6   :  { %v2543_v5 = vpop.f32.mrf.mxu1 }
 0x3a7   :  { %v3466_v27 = vadd.f32 %v3330_v61, %v3072_v11  ;;  %v2678_v52 = vadd.f32 %v2543_v5, %v6190_v7  ;;  %v3156_v11 = vld [vmem:[#allocation2 + $0x211] sm:$0xff]  ;;  %v3157_v61 = vld [vmem:[#allocation2 + $0x219] sm:$0xff] }
 0x3a8   :  { %v3726_v44 = vpop.f32.mrf.mxu0 }
 0x3a9   :  { %v3860_v40 = vadd.f32 %v3724_v55, %v3466_v27 }
 0x3ab   :  { %v4051_v6 = vadd.f32 %v4050_v49, %v3860_v40  ;;  %v4122_v3 = vmul.f32 %v3860_v40, %v3860_v40  ;;  %v2762_v49 = vld [vmem:[#allocation2 + $0x210] sm:$0xff] }
 0x3ac   :  { %v2938_v12 = vpop.f32.mrf.mxu2 }
 0x3ad   :  { %v4185_v30 = vadd.f32 %v4184_v0, %v4122_v3  ;;  %v3073_v18 = vadd.f32 %v2938_v12, %v2678_v52  ;;  %v3332_v48 = vpop.f32.mrf.mxu3  ;;  %v3202_v52 = vpack.c.bf16 %v3157_v61, %v3156_v11 }
 0x3ae   :  { %v2546_v58 = vpop.f32.mrf.mxu1 }
 0x3af   :  { %v3467_v34 = vadd.f32 %v3332_v48, %v3073_v18  ;;  %v2679_v29 = vadd.f32 %v2546_v58, %v6193_v54 }
 0x3b0   :  { %v3729_v9 = vpop.f32.mrf.mxu0 }
 0x3b1   :  { %v3861_v17 = vadd.f32 %v3726_v44, %v3467_v34  ;;  %2585 = vmatmul.bf16.gmra.mxu1 %v3594_v25  ;;  %2980 = vmatmul.bf16.gmra.mxu2 %v2807_v47  ;;  %v3550_v44 = vld [vmem:[#allocation2 + $0x212] sm:$0xff] }
 0x3b2   :  { %3374 = vmatmul.bf16.gmra.mxu3 %v3201_v46  ;;  %v3596_v12 = vpack.c.bf16 %v3551_v63, %v3550_v44 }
 0x3b3   :  { %v4907_v32 = vpack.c.bf16 %v3861_v17, %v3860_v40  ;;  %v4052_v43 = vadd.f32 %v4051_v6, %v3861_v17  ;;  %v4123_v7 = vmul.f32 %v3861_v17, %v3861_v17  ;;  %3768 = vmatmul.bf16.gmra.mxu0 %v3595_v22  ;;  %v2808_v40 = vpack.c.bf16 %v2763_v23, %v2762_v49 }
 0x3b4   :  { %v2941_v57 = vpop.f32.mrf.mxu2 }
 0x3b5   :  { %5062 = vst [vmem:[%s6558_s3 + $0x40] sm:$0xff] %v4907_v32   ;;  %v4186_v4 = vadd.f32 %v4185_v30, %v4123_v7  ;;  %v3074_v2 = vadd.f32 %v2941_v57, %v2679_v29  ;;  %v3335_v28 = vpop.f32.mrf.mxu3  ;;  %v2765_v32 = vld [vmem:[#allocation2 + $0x230] sm:$0xff] }
 0x3b6   :  { %v2548_v13 = vpop.f32.mrf.mxu1  ;;  %v3158_v57 = vld [vmem:[#allocation2 + $0x229] sm:$0xff] }
 0x3b7   :  { %v3468_v55 = vadd.f32 %v3335_v28, %v3074_v2  ;;  %v2680_v54 = vadd.f32 %v2548_v13, %v6196_v37 }
 0x3b8   :  { %v3731_v25 = vpop.f32.mrf.mxu0 }
 0x3b9   :  { %v3862_v42 = vadd.f32 %v3729_v9, %v3468_v55  ;;  %v2764_v9 = vld [vmem:[#allocation2 + $0x228] sm:$0xff] }
 0x3ba   :  { %v2809_v13 = vpack.c.bf16 %v2765_v32, %v2764_v9  ;;  %v3552_v55 = vld [vmem:[#allocation2 + $0x22a] sm:$0xff] }
 0x3bb   :  { %v4053_v8 = vadd.f32 %v4052_v43, %v3862_v42  ;;  %v4124_v26 = vmul.f32 %v3862_v42, %v3862_v42 }
 0x3bc   :  { %v2943_v0 = vpop.f32.mrf.mxu2 }
 0x3bd   :  { %v4187_v5 = vadd.f32 %v4186_v4, %v4124_v26  ;;  %v3075_v27 = vadd.f32 %v2943_v0, %v2680_v54  ;;  %v3337_v20 = vpop.f32.mrf.mxu3  ;;  %v3159_v4 = vld [vmem:[#allocation2 + $0x231] sm:$0xff] }
 0x3be   :  { %v2551_v6 = vpop.f32.mrf.mxu1 }
 0x3bf   :  { %v3469_v3 = vadd.f32 %v3337_v20, %v3075_v27  ;;  %v2681_v47 = vadd.f32 %v2551_v6, %v6211_v62 }
 0x3c0   :  { %v3734_v1 = vpop.f32.mrf.mxu0 }
 0x3c1   :  { %v3863_v16 = vadd.f32 %v3731_v25, %v3469_v3  ;;  %2590 = vmatmul.bf16.gmra.mxu1 %v3595_v22  ;;  %2985 = vmatmul.bf16.gmra.mxu2 %v2808_v40 }
 0x3c2   :  { %3379 = vmatmul.bf16.gmra.mxu3 %v3202_v52 }
 0x3c3   :  { %v4912_v30 = vpack.c.bf16 %v3863_v16, %v3862_v42  ;;  %v4054_v18 = vadd.f32 %v4053_v8, %v3863_v16  ;;  %v4125_v37 = vmul.f32 %v3863_v16, %v3863_v16  ;;  %3773 = vmatmul.bf16.gmra.mxu0 %v3596_v12  ;;  %v3553_v42 = vld [vmem:[#allocation2 + $0x232] sm:$0xff]  ;;  %v3203_v8 = vpack.c.bf16 %v3159_v4, %v3158_v57  ;;  %v2767_v16 = vld [vmem:[#allocation2 + $0x248] sm:$0xff] }
 0x3c4   :  { %v2946_v24 = vpop.f32.mrf.mxu2  ;;  %v3597_v26 = vpack.c.bf16 %v3553_v42, %v3552_v55 }
 0x3c5   :  { %5063 = vst [vmem:[%s6558_s3 + $0x48] sm:$0xff] %v4912_v30   ;;  %v4188_v33 = vadd.f32 %v4187_v5, %v4125_v37  ;;  %v3076_v48 = vadd.f32 %v2946_v24, %v2681_v47  ;;  %v3340_v58 = vpop.f32.mrf.mxu3  ;;  %v3160_v37 = vld [vmem:[#allocation2 + $0x241] sm:$0xff]  ;;  %v3161_v47 = vld [vmem:[#allocation2 + $0x249] sm:$0xff] }
 0x3c6   :  { %v2553_v34 = vpop.f32.mrf.mxu1  ;;  %v3204_v9 = vpack.c.bf16 %v3161_v47, %v3160_v37 }
 0x3c7   :  { %v3470_v46 = vadd.f32 %v3340_v58, %v3076_v48  ;;  %v2682_v62 = vadd.f32 %v2553_v34, %v6214_v36  ;;  %v3554_v58 = vld [vmem:[#allocation2 + $0x242] sm:$0xff]  ;;  %v3555_v34 = vld [vmem:[#allocation2 + $0x24a] sm:$0xff] }
 0x3c8   :  { %v3736_v22 = vpop.f32.mrf.mxu0  ;;  %v3598_v32 = vpack.c.bf16 %v3555_v34, %v3554_v58 }
 0x3c9   :  { %v3864_v17 = vadd.f32 %v3734_v1, %v3470_v46 }
 0x3cb   :  { %v4055_v43 = vadd.f32 %v4054_v18, %v3864_v17  ;;  %v4126_v7 = vmul.f32 %v3864_v17, %v3864_v17 }
 0x3cc   :  { %v2948_v29 = vpop.f32.mrf.mxu2 }
 0x3cd   :  { %v4189_v2 = vadd.f32 %v4188_v33, %v4126_v7  ;;  %v3077_v28 = vadd.f32 %v2948_v29, %v2682_v62  ;;  %v3342_v25 = vpop.f32.mrf.mxu3 }
 0x3ce   :  { %v2556_v49 = vpop.f32.mrf.mxu1 }
 0x3cf   :  { %v3471_v23 = vadd.f32 %v3342_v25, %v3077_v28  ;;  %v2683_v5 = vadd.f32 %v2556_v49, %v6217_v39 }
 0x3d0   :  { %v3739_v0 = vpop.f32.mrf.mxu0 }
 0x3d1   :  { %v3865_v54 = vadd.f32 %v3736_v22, %v3471_v23  ;;  %2595 = vmatmul.bf16.gmra.mxu1 %v3596_v12  ;;  %2990 = vmatmul.bf16.gmra.mxu2 %v2809_v13  ;;  %v2766_v12 = vld [vmem:[#allocation2 + $0x240] sm:$0xff]  ;;  %v2768_v23 = vld [vmem:[#allocation2 + $0x258] sm:$0xff] }
 0x3d2   :  { %3384 = vmatmul.bf16.gmra.mxu3 %v3203_v8  ;;  %v2810_v48 = vpack.c.bf16 %v2767_v16, %v2766_v12  ;;  %v2769_v8 = vld [vmem:[#allocation2 + $0x260] sm:$0xff] }
 0x3d3   :  { %v4917_v11 = vpack.c.bf16 %v3865_v54, %v3864_v17  ;;  %v4056_v61 = vadd.f32 %v4055_v43, %v3865_v54  ;;  %v4127_v36 = vmul.f32 %v3865_v54, %v3865_v54  ;;  %3778 = vmatmul.bf16.gmra.mxu0 %v3597_v26 }
 0x3d4   :  { %v2951_v27 = vpop.f32.mrf.mxu2 }
 0x3d5   :  { %5064 = vst [vmem:[%s6558_s3 + $0x50] sm:$0xff] %v4917_v11   ;;  %v4190_v40 = vadd.f32 %v4189_v2, %v4127_v36  ;;  %v3078_v44 = vadd.f32 %v2951_v27, %v2683_v5  ;;  %v3345_v63 = vpop.f32.mrf.mxu3  ;;  %v3162_v11 = vld [vmem:[#allocation2 + $0x259] sm:$0xff]  ;;  %v2811_v27 = vpack.c.bf16 %v2769_v8, %v2768_v23 }
 0x3d6   :  { %v2558_v20 = vpop.f32.mrf.mxu1 }
 0x3d7   :  { %v3472_v6 = vadd.f32 %v3345_v63, %v3078_v44  ;;  %v2684_v39 = vadd.f32 %v2558_v20, %v6220_v59  ;;  %v3557_v44 = vld [vmem:[#allocation2 + $0x262] sm:$0xff] }
 0x3d8   :  { %v3741_v52 = vpop.f32.mrf.mxu0 }
 0x3d9   :  { %v3866_v3 = vadd.f32 %v3739_v0, %v3472_v6 }
 0x3db   :  { %v4057_v1 = vadd.f32 %v4056_v61, %v3866_v3  ;;  %v4128_v30 = vmul.f32 %v3866_v3, %v3866_v3  ;;  %v3163_v61 = vld [vmem:[#allocation2 + $0x261] sm:$0xff] }
 0x3dc   :  { %v2953_v18 = vpop.f32.mrf.mxu2 }
 0x3dd   :  { %v4191_v24 = vadd.f32 %v4190_v40, %v4128_v30  ;;  %v3079_v33 = vadd.f32 %v2953_v18, %v2684_v39  ;;  %v3347_v46 = vpop.f32.mrf.mxu3  ;;  %v3556_v40 = vld [vmem:[#allocation2 + $0x25a] sm:$0xff] }
 0x3de   :  { %v2561_v17 = vpop.f32.mrf.mxu1 }
 0x3df   :  { %v3473_v22 = vadd.f32 %v3347_v46, %v3079_v33  ;;  %v2685_v57 = vadd.f32 %v2561_v17, %v6223_v35  ;;  %v2770_v46 = vld [vmem:[#allocation2 + $0x270] sm:$0xff]  ;;  %v2771_v17 = vld [vmem:[#allocation2 + $0x278] sm:$0xff] }
 0x3e0   :  { %v3744_v7 = vpop.f32.mrf.mxu0 }
 0x3e1   :  { %v3867_v43 = vadd.f32 %v3741_v52, %v3473_v22  ;;  %2600 = vmatmul.bf16.gmra.mxu1 %v3597_v26  ;;  %2995 = vmatmul.bf16.gmra.mxu2 %v2810_v48  ;;  %v3599_v52 = vpack.c.bf16 %v3557_v44, %v3556_v40  ;;  %v2772_v40 = vld [vmem:[#allocation2 + $0x288] sm:$0xff]  ;;  %v2773_v44 = vld [vmem:[#allocation2 + $0x290] sm:$0xff] }
 0x3e2   :  { %3389 = vmatmul.bf16.gmra.mxu3 %v3204_v9 }
 0x3e3   :  { %v4922_v62 = vpack.c.bf16 %v3867_v43, %v3866_v3  ;;  %v4058_v29 = vadd.f32 %v4057_v1, %v3867_v43  ;;  %v4129_v59 = vmul.f32 %v3867_v43, %v3867_v43  ;;  %3783 = vmatmul.bf16.gmra.mxu0 %v3598_v32  ;;  %v3205_v3 = vpack.c.bf16 %v3163_v61, %v3162_v11  ;;  %v3164_v43 = vld [vmem:[#allocation2 + $0x271] sm:$0xff] }
 0x3e4   :  { %v2956_v4 = vpop.f32.mrf.mxu2 }
 0x3e5   :  { %5065 = vst [vmem:[%s6558_s3 + $0x58] sm:$0xff] %v4922_v62   ;;  %v4192_v2 = vadd.f32 %v4191_v24, %v4129_v59  ;;  %v3080_v28 = vadd.f32 %v2956_v4, %v2685_v57  ;;  %v3350_v13 = vpop.f32.mrf.mxu3  ;;  %v2812_v59 = vpack.c.bf16 %v2771_v17, %v2770_v46  ;;  %v3558_v57 = vld [vmem:[#allocation2 + $0x272] sm:$0xff]  ;;  %v3559_v4 = vld [vmem:[#allocation2 + $0x27a] sm:$0xff] }
 0x3e6   :  { %v2563_v55 = vpop.f32.mrf.mxu1 }
 0x3e7   :  { %v3474_v42 = vadd.f32 %v3350_v13, %v3080_v28  ;;  %v2686_v35 = vadd.f32 %v2563_v55, %v6226_v45 }
 0x3e8   :  { %v3746_v49 = vpop.f32.mrf.mxu0 }
 0x3e9   :  { %v3868_v25 = vadd.f32 %v3744_v7, %v3474_v42  ;;  %v3165_v7 = vld [vmem:[#allocation2 + $0x279] sm:$0xff]  ;;  %v3600_v42 = vpack.c.bf16 %v3559_v4, %v3558_v57 }
 0x3ea   :  { %v3206_v55 = vpack.c.bf16 %v3165_v7, %v3164_v43 }
 0x3eb   :  { %v4059_v26 = vadd.f32 %v4058_v29, %v3868_v25  ;;  %v4130_v54 = vmul.f32 %v3868_v25, %v3868_v25 }
 0x3ec   :  { %v2958_v0 = vpop.f32.mrf.mxu2 }
 0x3ed   :  { %v4193_v36 = vadd.f32 %v4192_v2, %v4130_v54  ;;  %v3081_v5 = vadd.f32 %v2958_v0, %v2686_v35  ;;  %v3352_v63 = vpop.f32.mrf.mxu3 }
 0x3ee   :  { %v2566_v20 = vpop.f32.mrf.mxu1 }
 0x3ef   :  { %v3475_v6 = vadd.f32 %v3352_v63, %v3081_v5  ;;  %v2687_v39 = vadd.f32 %v2566_v20, %v6229_v50 }
 0x3f0   :  { %v3749_v16 = vpop.f32.mrf.mxu0 }
 0x3f1   :  { %v3869_v12 = vadd.f32 %v3746_v49, %v3475_v6  ;;  %2605 = vmatmul.bf16.gmra.mxu1 %v3598_v32  ;;  %3000 = vmatmul.bf16.gmra.mxu2 %v2811_v27 }
 0x3f2   :  { %3394 = vmatmul.bf16.gmra.mxu3 %v3205_v3  ;;  %v3166_v3 = vld [vmem:[#allocation2 + $0x289] sm:$0xff] }
 0x3f3   :  { %v4927_v1 = vpack.c.bf16 %v3869_v12, %v3868_v25  ;;  %v4060_v30 = vadd.f32 %v4059_v26, %v3869_v12  ;;  %v4131_v45 = vmul.f32 %v3869_v12, %v3869_v12  ;;  %3788 = vmatmul.bf16.gmra.mxu0 %v3599_v52 }
 0x3f4   :  { %v2961_v18 = vpop.f32.mrf.mxu2 }
 0x3f5   :  { %5066 = vst [vmem:[%s6558_s3 + $0x60] sm:$0xff] %v4927_v1   ;;  %v4194_v37 = vadd.f32 %v4193_v36, %v4131_v45  ;;  %v3082_v47 = vadd.f32 %v2961_v18, %v2687_v39  ;;  %v3355_v24 = vpop.f32.mrf.mxu3  ;;  %v2813_v1 = vpack.c.bf16 %v2773_v44, %v2772_v40  ;;  %v3561_v45 = vld [vmem:[#allocation2 + $0x292] sm:$0xff] }
 0x3f6   :  { %v2568_v33 = vpop.f32.mrf.mxu1 }
 0x3f7   :  { %v3476_v48 = vadd.f32 %v3355_v24, %v3082_v47  ;;  %v2688_v50 = vadd.f32 %v2568_v33, %v6232_v41 }
 0x3f8   :  { %v3751_v34 = vpop.f32.mrf.mxu0 }
 0x3f9   :  { %v3870_v58 = vadd.f32 %v3749_v16, %v3476_v48 }
 0x3fb   :  { %v4061_v22 = vadd.f32 %v4060_v30, %v3870_v58  ;;  %v4132_v9 = vmul.f32 %v3870_v58, %v3870_v58  ;;  %v3560_v30 = vld [vmem:[#allocation2 + $0x28a] sm:$0xff] }
 0x3fc   :  { %v2963_v32 = vpop.f32.mrf.mxu2  ;;  %v3601_v24 = vpack.c.bf16 %v3561_v45, %v3560_v30  ;;  %v3170_v45 = vld [vmem:[#allocation2 + $0x2b9] sm:$0xff] }
 0x3fd   :  { %v4195_v62 = vadd.f32 %v4194_v37, %v4132_v9  ;;  %v3083_v29 = vadd.f32 %v2963_v32, %v2688_v50  ;;  %v3357_v2 = vpop.f32.mrf.mxu3 }
 0x3fe   :  { %v2571_v28 = vpop.f32.mrf.mxu1 }
 0x3ff   :  { %v3477_v13 = vadd.f32 %v3357_v2, %v3083_v29  ;;  %v2689_v26 = vadd.f32 %v2571_v28, %v6247_v14  ;;  %v2774_v29 = vld [vmem:[#allocation2 + $0x2a0] sm:$0xff] }
 0x400   :  { %v3754_v49 = vpop.f32.mrf.mxu0  ;;  %v3168_v28 = vld [vmem:[#allocation2 + $0x2a1] sm:$0xff] }
 0x401   :  { %v3871_v25 = vadd.f32 %v3751_v34, %v3477_v13  ;;  %2610 = vmatmul.bf16.gmra.mxu1 %v3599_v52  ;;  %3005 = vmatmul.bf16.gmra.mxu2 %v2812_v59  ;;  %v3167_v52 = vld [vmem:[#allocation2 + $0x291] sm:$0xff]  ;;  %v2775_v59 = vld [vmem:[#allocation2 + $0x2a8] sm:$0xff] }
 0x402   :  { %3399 = vmatmul.bf16.gmra.mxu3 %v3206_v55  ;;  %v3207_v47 = vpack.c.bf16 %v3167_v52, %v3166_v3  ;;  %v3169_v13 = vld [vmem:[#allocation2 + $0x2a9] sm:$0xff]  ;;  %v2776_v52 = vld [vmem:[#allocation2 + $0x2b8] sm:$0xff] }
 0x403   :  { %v4932_v23 = vpack.c.bf16 %v3871_v25, %v3870_v58  ;;  %v4062_v8 = vadd.f32 %v4061_v22, %v3871_v25  ;;  %v4133_v41 = vmul.f32 %v3871_v25, %v3871_v25  ;;  %3793 = vmatmul.bf16.gmra.mxu0 %v3600_v42  ;;  %v2814_v25 = vpack.c.bf16 %v2775_v59, %v2774_v29 }
 0x404   :  { %v2966_v54 = vpop.f32.mrf.mxu2 }
 0x405   :  { %5067 = vst [vmem:[%s6558_s3 + $0x68] sm:$0xff] %v4932_v23   ;;  %v4196_v35 = vadd.f32 %v4195_v62, %v4133_v41  ;;  %v3084_v0 = vadd.f32 %v2966_v54, %v2689_v26  ;;  %v3360_v11 = vpop.f32.mrf.mxu3  ;;  %v3563_v23 = vld [vmem:[#allocation2 + $0x2aa] sm:$0xff]  ;;  %v3208_v54 = vpack.c.bf16 %v3169_v13, %v3168_v28  ;;  %v2779_v28 = vld [vmem:[#allocation2 + $0x2d8] sm:$0xff] }
 0x406   :  { %v2573_v61 = vpop.f32.mrf.mxu1 }
 0x407   :  { %v3478_v36 = vadd.f32 %v3360_v11, %v3084_v0  ;;  %v2690_v14 = vadd.f32 %v2573_v61, %v6250_v60 }
 0x408   :  { %v3756_v27 = vpop.f32.mrf.mxu0 }
 0x409   :  { %v3872_v5 = vadd.f32 %v3754_v49, %v3478_v36  ;;  %v3562_v49 = vld [vmem:[#allocation2 + $0x2a2] sm:$0xff] }
 0x40b   :  { %v4063_v63 = vadd.f32 %v4062_v8, %v3872_v5  ;;  %v4134_v20 = vmul.f32 %v3872_v5, %v3872_v5 }
 0x40c   :  { %v2968_v6 = vpop.f32.mrf.mxu2 }
 0x40d   :  { %v4197_v12 = vadd.f32 %v4196_v35, %v4134_v20  ;;  %v3085_v16 = vadd.f32 %v2968_v6, %v2690_v14  ;;  %v3362_v39 = vpop.f32.mrf.mxu3  ;;  %v3602_v35 = vpack.c.bf16 %v3563_v23, %v3562_v49  ;;  %v3173_v49 = vld [vmem:[#allocation2 + $0x2d9] sm:$0xff] }
 0x40e   :  { %v2576_v18 = vpop.f32.mrf.mxu1 }
 0x40f   :  { %v3479_v37 = vadd.f32 %v3362_v39, %v3085_v16  ;;  %v2691_v46 = vadd.f32 %v2576_v18, %v6253_v15  ;;  %v3171_v39 = vld [vmem:[#allocation2 + $0x2c1] sm:$0xff] }
 0x410   :  { %v3759_v48 = vpop.f32.mrf.mxu0 }
 0x411   :  { %v3873_v33 = vadd.f32 %v3756_v27, %v3479_v37  ;;  %2615 = vmatmul.bf16.gmra.mxu1 %v3600_v42  ;;  %3010 = vmatmul.bf16.gmra.mxu2 %v2813_v1 }
 0x412   :  { %3404 = vmatmul.bf16.gmra.mxu3 %v3207_v47 }
 0x413   :  { %v4937_v58 = vpack.c.bf16 %v3873_v33, %v3872_v5  ;;  %v4064_v34 = vadd.f32 %v4063_v63, %v3873_v33  ;;  %v4135_v60 = vmul.f32 %v3873_v33, %v3873_v33  ;;  %3798 = vmatmul.bf16.gmra.mxu0 %v3601_v24  ;;  %v3565_v33 = vld [vmem:[#allocation2 + $0x2c2] sm:$0xff] }
 0x414   :  { %v2971_v17 = vpop.f32.mrf.mxu2 }
 0x415   :  { %5068 = vst [vmem:[%s6558_s3 + $0x70] sm:$0xff] %v4937_v58   ;;  %v4198_v22 = vadd.f32 %v4197_v12, %v4135_v60  ;;  %v3086_v9 = vadd.f32 %v2971_v17, %v2691_v46  ;;  %v3365_v50 = vpop.f32.mrf.mxu3  ;;  %v2777_v12 = vld [vmem:[#allocation2 + $0x2c0] sm:$0xff]  ;;  %v3209_v60 = vpack.c.bf16 %v3171_v39, %v3170_v45 }
 0x416   :  { %v2578_v32 = vpop.f32.mrf.mxu1  ;;  %v2815_v47 = vpack.c.bf16 %v2777_v12, %v2776_v52 }
 0x417   :  { %v3480_v43 = vadd.f32 %v3365_v50, %v3086_v9  ;;  %v2692_v15 = vadd.f32 %v2578_v32, %v6256_v56 }
 0x418   :  { %v3761_v62 = vpop.f32.mrf.mxu0 }
 0x419   :  { %v3874_v7 = vadd.f32 %v3759_v48, %v3480_v43 }
 0x41b   :  { %v4065_v57 = vadd.f32 %v4064_v34, %v3874_v7  ;;  %v4136_v4 = vmul.f32 %v3874_v7, %v3874_v7 }
 0x41c   :  { %v2973_v2 = vpop.f32.mrf.mxu2 }
 0x41d   :  { %v4199_v55 = vadd.f32 %v4198_v22, %v4136_v4  ;;  %v3087_v42 = vadd.f32 %v2973_v2, %v2692_v15  ;;  %v3367_v8 = vpop.f32.mrf.mxu3  ;;  %v2778_v2 = vld [vmem:[#allocation2 + $0x2d0] sm:$0xff] }
 0x41e   :  { %v2581_v41 = vpop.f32.mrf.mxu1 }
 0x41f   :  { %v3481_v26 = vadd.f32 %v3367_v8, %v3087_v42  ;;  %v2693_v5 = vadd.f32 %v2581_v41, %v6259_v51  ;;  %v2816_v41 = vpack.c.bf16 %v2779_v28, %v2778_v2 }
 0x420   :  { %v3764_v11 = vpop.f32.mrf.mxu0 }
 0x421   :  { %v3875_v0 = vadd.f32 %v3761_v62, %v3481_v26  ;;  %2620 = vmatmul.bf16.gmra.mxu1 %v3601_v24  ;;  %3015 = vmatmul.bf16.gmra.mxu2 %v2814_v25  ;;  %v3564_v24 = vld [vmem:[#allocation2 + $0x2ba] sm:$0xff]  ;;  %v3172_v25 = vld [vmem:[#allocation2 + $0x2d1] sm:$0xff] }
 0x422   :  { %3409 = vmatmul.bf16.gmra.mxu3 %v3208_v54  ;;  %v3603_v46 = vpack.c.bf16 %v3565_v33, %v3564_v24  ;;  %v3566_v26 = vld [vmem:[#allocation2 + $0x2d2] sm:$0xff]  ;;  %v3567_v54 = vld [vmem:[#allocation2 + $0x2da] sm:$0xff] }
 0x423   :  { %v4942_v61 = vpack.c.bf16 %v3875_v0, %v3874_v7  ;;  %v4066_v36 = vadd.f32 %v4065_v57, %v3875_v0  ;;  %v4137_v56 = vmul.f32 %v3875_v0, %v3875_v0  ;;  %3803 = vmatmul.bf16.gmra.mxu0 %v3602_v35 }
 0x424   :  { %v2976_v27 = vpop.f32.mrf.mxu2 }
 0x425   :  { %5069 = vst [vmem:[%s6558_s3 + $0x78] sm:$0xff] %v4942_v61   ;;  %v4200_v40 = vadd.f32 %v4199_v55, %v4137_v56  ;;  %v3088_v44 = vadd.f32 %v2976_v27, %v2693_v5  ;;  %v3370_v63 = vpop.f32.mrf.mxu3  ;;  %v3210_v61 = vpack.c.bf16 %v3173_v49, %v3172_v25  ;;  %v6670_v25 = vld [vmem:[#allocation10_spill] sm:$0xff] }
 0x426   :  { %v2583_v20 = vpop.f32.mrf.mxu1 }
 0x427   :  { %v3482_v14 = vadd.f32 %v3370_v63, %v3088_v44  ;;  %v2694_v51 = vadd.f32 %v2583_v20, %v6262_v19 }
 0x428   :  { %v3766_v3 = vpop.f32.mrf.mxu0 }
 0x429   :  { %v3876_v6 = vadd.f32 %v3764_v11, %v3482_v14 }
 0x42b   :  { %v4067_v16 = vadd.f32 %v4066_v36, %v3876_v6  ;;  %v4138_v1 = vmul.f32 %v3876_v6, %v3876_v6  ;;  %v3604_v36 = vpack.c.bf16 %v3567_v54, %v3566_v26 }
 0x42c   :  { %v2978_v30 = vpop.f32.mrf.mxu2 }
 0x42d   :  { %v4201_v18 = vadd.f32 %v4200_v40, %v4138_v1  ;;  %v3089_v37 = vadd.f32 %v2978_v30, %v2694_v51  ;;  %v3372_v48 = vpop.f32.mrf.mxu3  ;;  %v2780_v1 = vld [vmem:[#allocation2 + $0x2e8] sm:$0xff]  ;;  %v2781_v51 = vld [vmem:[#allocation2 + $0x2f0] sm:$0xff] }
 0x42e   :  { %v2586_v58 = vpop.f32.mrf.mxu1  ;;  %v2817_v33 = vpack.c.bf16 %v2781_v51, %v2780_v1 }
 0x42f   :  { %v3483_v34 = vadd.f32 %v3372_v48, %v3089_v37  ;;  %v2695_v32 = vadd.f32 %v2586_v58, %v6265_v21  ;;  %v3175_v37 = vld [vmem:[#allocation2 + $0x2f1] sm:$0xff] }
 0x430   :  { %v3769_v22 = vpop.f32.mrf.mxu0  ;;  %v3568_v48 = vld [vmem:[#allocation2 + $0x2ea] sm:$0xff]  ;;  %v3569_v58 = vld [vmem:[#allocation2 + $0x2f2] sm:$0xff] }
 0x431   :  { %v3877_v17 = vadd.f32 %v3766_v3, %v3483_v34  ;;  %2625 = vmatmul.bf16.gmra.mxu1 %v3602_v35  ;;  %3020 = vmatmul.bf16.gmra.mxu2 %v2815_v47 }
 0x432   :  { %3414 = vmatmul.bf16.gmra.mxu3 %v3209_v60 }
 0x433   :  { %v4947_v9 = vpack.c.bf16 %v3877_v17, %v3876_v6  ;;  %v4068_v50 = vadd.f32 %v4067_v16, %v3877_v17  ;;  %v4139_v19 = vmul.f32 %v3877_v17, %v3877_v17  ;;  %3808 = vmatmul.bf16.gmra.mxu0 %v3603_v46 }
 0x434   :  { %v2981_v43 = vpop.f32.mrf.mxu2 }
 0x435   :  { %5070 = vst [vmem:[%s6558_s3 + $0x80] sm:$0xff] %v4947_v9   ;;  %v4202_v7 = vadd.f32 %v4201_v18, %v4139_v19  ;;  %v3090_v62 = vadd.f32 %v2981_v43, %v2695_v32  ;;  %v3375_v29 = vpop.f32.mrf.mxu3  ;;  %v3174_v18 = vld [vmem:[#allocation2 + $0x2e9] sm:$0xff] }
 0x436   :  { %v2588_v59 = vpop.f32.mrf.mxu1  ;;  %v3211_v17 = vpack.c.bf16 %v3175_v37, %v3174_v18  ;;  %v6669_v43 = vld [vmem:[#allocation28_spill] sm:$0xff] }
 0x437   :  { %v3484_v57 = vadd.f32 %v3375_v29, %v3090_v62  ;;  %v2696_v21 = vadd.f32 %v2588_v59, %v6268_v10 }
 0x438   :  { %v3771_v15 = vpop.f32.mrf.mxu0 }
 0x439   :  { %v3878_v4 = vadd.f32 %v3769_v22, %v3484_v57  ;;  %v3605_v22 = vpack.c.bf16 %v3569_v58, %v3568_v48  ;;  %v3178_v48 = vld [vmem:[#allocation2 + $0x319] sm:$0xff]  ;;  %v3179_v58 = vld [vmem:[#allocation2 + $0x321] sm:$0xff] }
 0x43b   :  { %v4069_v13 = vadd.f32 %v4068_v50, %v3878_v4  ;;  %v4140_v55 = vmul.f32 %v3878_v4, %v3878_v4 }
 0x43c   :  { %v2983_v42 = vpop.f32.mrf.mxu2 }
 0x43d   :  { %v4203_v23 = vadd.f32 %v4202_v7, %v4140_v55  ;;  %v3091_v8 = vadd.f32 %v2983_v42, %v2696_v21  ;;  %v3377_v35 = vpop.f32.mrf.mxu3  ;;  %v2783_v55 = vld [vmem:[#allocation2 + $0x308] sm:$0xff] }
 0x43e   :  { %v2591_v0 = vpop.f32.mrf.mxu1 }
 0x43f   :  { %v3485_v11 = vadd.f32 %v3377_v35, %v3091_v8  ;;  %v2697_v44 = vadd.f32 %v2591_v0, %v6283_v31  ;;  %v3176_v8 = vld [vmem:[#allocation2 + $0x301] sm:$0xff] }
 0x440   :  { %v3774_v5 = vpop.f32.mrf.mxu0  ;;  %v3570_v0 = vld [vmem:[#allocation2 + $0x302] sm:$0xff] }
 0x441   :  { %v3879_v56 = vadd.f32 %v3771_v15, %v3485_v11  ;;  %2630 = vmatmul.bf16.gmra.mxu1 %v3603_v46  ;;  %3025 = vmatmul.bf16.gmra.mxu2 %v2816_v41  ;;  %v3177_v41 = vld [vmem:[#allocation2 + $0x309] sm:$0xff] }
 0x442   :  { %3419 = vmatmul.bf16.gmra.mxu3 %v3210_v61  ;;  %v3571_v11 = vld [vmem:[#allocation2 + $0x30a] sm:$0xff] }
 0x443   :  { %v4952_v27 = vpack.c.bf16 %v3879_v56, %v3878_v4  ;;  %v4070_v40 = vadd.f32 %v4069_v13, %v3879_v56  ;;  %v4141_v10 = vmul.f32 %v3879_v56, %v3879_v56  ;;  %3813 = vmatmul.bf16.gmra.mxu0 %v3604_v36  ;;  %v2782_v13 = vld [vmem:[#allocation2 + $0x300] sm:$0xff] }
 0x444   :  { %v2986_v63 = vpop.f32.mrf.mxu2  ;;  %v2818_v35 = vpack.c.bf16 %v2783_v55, %v2782_v13 }
 0x445   :  { %5071 = vst [vmem:[%s6558_s3 + $0x88] sm:$0xff] %v4952_v27   ;;  %v4204_v20 = vadd.f32 %v4203_v23, %v4141_v10  ;;  %v3092_v14 = vadd.f32 %v2986_v63, %v2697_v44  ;;  %v3380_v6 = vpop.f32.mrf.mxu3  ;;  %v3606_v27 = vpack.c.bf16 %v3571_v11, %v3570_v0  ;;  %v3181_v0 = vld [vmem:[#allocation2 + $0x339] sm:$0xff] }
 0x446   :  { %v2593_v3 = vpop.f32.mrf.mxu1 }
 0x447   :  { %v3486_v52 = vadd.f32 %v3380_v6, %v3092_v14  ;;  %v2698_v31 = vadd.f32 %v2593_v3, %v6286_v53  ;;  %v6671_v14 = vld [vmem:[#allocation12_spill] sm:$0xff] }
 0x448   :  { %v3776_v16 = vpop.f32.mrf.mxu0 }
 0x449   :  { %v3880_v12 = vadd.f32 %v3774_v5, %v3486_v52  ;;  %v3212_v5 = vpack.c.bf16 %v3177_v41, %v3176_v8 }
 0x44b   :  { %v4071_v30 = vadd.f32 %v4070_v40, %v3880_v12  ;;  %v4142_v45 = vmul.f32 %v3880_v12, %v3880_v12 }
 0x44c   :  { %v2988_v39 = vpop.f32.mrf.mxu2 }
 0x44d   :  { %v4205_v47 = vadd.f32 %v4204_v20, %v4142_v45  ;;  %v3093_v24 = vadd.f32 %v2988_v39, %v2698_v31  ;;  %v3382_v34 = vpop.f32.mrf.mxu3  ;;  %v2784_v31 = vld [vmem:[#allocation2 + $0x318] sm:$0xff]  ;;  %v2785_v39 = vld [vmem:[#allocation2 + $0x320] sm:$0xff] }
 0x44e   :  { %v2596_v60 = vpop.f32.mrf.mxu1 }
 0x44f   :  { %v3487_v46 = vadd.f32 %v3382_v34, %v3093_v24  ;;  %v2699_v7 = vadd.f32 %v2596_v60, %v6669_v43 }
 0x450   :  { %v3779_v50 = vpop.f32.mrf.mxu0 }
 0x451   :  { %v3881_v9 = vadd.f32 %v3776_v16, %v3487_v46  ;;  %2635 = vmatmul.bf16.gmra.mxu1 %v3604_v36  ;;  %3030 = vmatmul.bf16.gmra.mxu2 %v2817_v33  ;;  %v2819_v46 = vpack.c.bf16 %v2785_v39, %v2784_v31 }
 0x452   :  { %3424 = vmatmul.bf16.gmra.mxu3 %v3211_v17  ;;  %v3572_v17 = vld [vmem:[#allocation2 + $0x31a] sm:$0xff] }
 0x453   :  { %v4957_v19 = vpack.c.bf16 %v3881_v9, %v3880_v12  ;;  %v4072_v32 = vadd.f32 %v4071_v30, %v3881_v9  ;;  %v4143_v53 = vmul.f32 %v3881_v9, %v3881_v9  ;;  %3818 = vmatmul.bf16.gmra.mxu0 %v3605_v22 }
 0x454   :  { %v2991_v62 = vpop.f32.mrf.mxu2 }
 0x455   :  { %5072 = vst [vmem:[%s6558_s3 + $0x90] sm:$0xff] %v4957_v19   ;;  %v4206_v29 = vadd.f32 %v4205_v47, %v4143_v53  ;;  %v3094_v59 = vadd.f32 %v2991_v62, %v2699_v7  ;;  %v3385_v57 = vpop.f32.mrf.mxu3  ;;  %v6672_v47 = vld [vmem:[#allocation14_spill] sm:$0xff] }
 0x456   :  { %v2598_v4 = vpop.f32.mrf.mxu1 }
 0x457   :  { %v3488_v15 = vadd.f32 %v3385_v57, %v3094_v59  ;;  %v2700_v49 = vadd.f32 %v2598_v4, %v6670_v25  ;;  %v6673_v57 = vld [vmem:[#allocation16_spill] sm:$0xff] }
 0x458   :  { %v3781_v28 = vpop.f32.mrf.mxu0 }
 0x459   :  { %v3882_v2 = vadd.f32 %v3779_v50, %v3488_v15 }
 0x45b   :  { %v4073_v21 = vadd.f32 %v4072_v32, %v3882_v2  ;;  %v4144_v42 = vmul.f32 %v3882_v2, %v3882_v2  ;;  %v3213_v32 = vpack.c.bf16 %v3179_v58, %v3178_v48 }
 0x45c   :  { %v2993_v23 = vpop.f32.mrf.mxu2 }
 0x45d   :  { %v4207_v26 = vadd.f32 %v4206_v29, %v4144_v42  ;;  %v3095_v54 = vadd.f32 %v2993_v23, %v2700_v49  ;;  %v3387_v61 = vpop.f32.mrf.mxu3  ;;  %v2786_v49 = vld [vmem:[#allocation2 + $0x330] sm:$0xff]  ;;  %v2787_v23 = vld [vmem:[#allocation2 + $0x338] sm:$0xff] }
 0x45e   :  { %v2601_v36 = vpop.f32.mrf.mxu1 }
 0x45f   :  { %v3489_v56 = vadd.f32 %v3387_v61, %v3095_v54  ;;  %v2701_v6 = vadd.f32 %v2601_v36, %v6671_v14  ;;  %v2820_v36 = vpack.c.bf16 %v2787_v23, %v2786_v49 }
 0x460   :  { %v3784_v10 = vpop.f32.mrf.mxu0 }
 0x461   :  { %v3883_v40 = vadd.f32 %v3781_v28, %v3489_v56  ;;  %2640 = vmatmul.bf16.gmra.mxu1 %v3605_v22  ;;  %3035 = vmatmul.bf16.gmra.mxu2 %v2818_v35  ;;  %v3573_v22 = vld [vmem:[#allocation2 + $0x322] sm:$0xff]  ;;  %v3180_v35 = vld [vmem:[#allocation2 + $0x331] sm:$0xff] }
 0x462   :  { %3429 = vmatmul.bf16.gmra.mxu3 %v3212_v5  ;;  %v3607_v53 = vpack.c.bf16 %v3573_v22, %v3572_v17  ;;  %v3574_v56 = vld [vmem:[#allocation2 + $0x332] sm:$0xff]  ;;  %v3575_v5 = vld [vmem:[#allocation2 + $0x33a] sm:$0xff] }
 0x463   :  { %v4962_v44 = vpack.c.bf16 %v3883_v40, %v3882_v2  ;;  %v4074_v63 = vadd.f32 %v4073_v21, %v3883_v40  ;;  %v4145_v20 = vmul.f32 %v3883_v40, %v3883_v40  ;;  %3823 = vmatmul.bf16.gmra.mxu0 %v3606_v27  ;;  %v5119_v22 = vld [vmem:[#allocation2 + $0x1b8] sm:$0xff] }
 0x464   :  { %v2996_v3 = vpop.f32.mrf.mxu2 }
 0x465   :  { %5073 = vst [vmem:[%s6558_s3 + $0x98] sm:$0xff] %v4962_v44   ;;  %v4208_v52 = vadd.f32 %v4207_v26, %v4145_v20  ;;  %v3096_v12 = vadd.f32 %v2996_v3, %v2701_v6  ;;  %v3390_v16 = vpop.f32.mrf.mxu3  ;;  %v3214_v44 = vpack.c.bf16 %v3181_v0, %v3180_v35 }
 0x466   :  { %v2603_v1 = vpop.f32.mrf.mxu1 }
 0x467   :  { %v3490_v51 = vadd.f32 %v3390_v16, %v3096_v12  ;;  %v2702_v24 = vadd.f32 %v2603_v1, %v6672_v47 }
 0x468   :  { %v3786_v45 = vpop.f32.mrf.mxu0 }
 0x469   :  { %v3884_v30 = vadd.f32 %v3784_v10, %v3490_v51 }
 0x46b   :  { %v4075_v18 = vadd.f32 %v4074_v63, %v3884_v30  ;;  %v4146_v37 = vmul.f32 %v3884_v30, %v3884_v30  ;;  %v3608_v63 = vpack.c.bf16 %v3575_v5, %v3574_v56 }
 0x46c   :  { %v2998_v33 = vpop.f32.mrf.mxu2 }
 0x46d   :  { %v4209_v34 = vadd.f32 %v4208_v52, %v4146_v37  ;;  %v3097_v60 = vadd.f32 %v2998_v33, %v2702_v24  ;;  %v3392_v9 = vpop.f32.mrf.mxu3  ;;  %v6674_v52 = vld [vmem:[#allocation18_spill] sm:$0xff]  ;;  %v2788_v37 = vld [vmem:[#allocation2 + $0x348] sm:$0xff] }
 0x46e   :  { %v2606_v50 = vpop.f32.mrf.mxu1  ;;  %v6675_v33 = vld [vmem:[#allocation20_spill] sm:$0xff] }
 0x46f   :  { %v3491_v19 = vadd.f32 %v3392_v9, %v3097_v60  ;;  %v2703_v4 = vadd.f32 %v2606_v50, %v6673_v57  ;;  %v3183_v60 = vld [vmem:[#allocation2 + $0x351] sm:$0xff]  ;;  %v2821_v9 = vpack.c.bf16 %v5119_v22, %v2788_v37  ;;  %v6680_v22 = vld [vmem:[#allocation4_spill] sm:$0xff] }
 0x470   :  { %v3789_v7 = vpop.f32.mrf.mxu0  ;;  %v3576_v50 = vld [vmem:[#allocation2 + $0x34a] sm:$0xff] }
 0x471   :  { %v3885_v43 = vadd.f32 %v3786_v45, %v3491_v19  ;;  %2645 = vmatmul.bf16.gmra.mxu1 %v3606_v27  ;;  %3040 = vmatmul.bf16.gmra.mxu2 %v2819_v46  ;;  %v3577_v19 = vld [vmem:[#allocation2 + $0x352] sm:$0xff] }
 0x472   :  { %3434 = vmatmul.bf16.gmra.mxu3 %v3213_v32 }
 0x473   :  { %v4967_v62 = vpack.c.bf16 %v3885_v43, %v3884_v30  ;;  %v4076_v29 = vadd.f32 %v4075_v18, %v3885_v43  ;;  %v4147_v59 = vmul.f32 %v3885_v43, %v3885_v43  ;;  %3828 = vmatmul.bf16.gmra.mxu0 %v3607_v53 }
 0x474   :  { %v3001_v15 = vpop.f32.mrf.mxu2 }
 0x475   :  { %5074 = vst [vmem:[%s6558_s3 + $0xa0] sm:$0xff] %v4967_v62   ;;  %v4210_v2 = vadd.f32 %v4209_v34, %v4147_v59  ;;  %v3098_v28 = vadd.f32 %v3001_v15, %v2703_v4  ;;  %v3395_v13 = vpop.f32.mrf.mxu3  ;;  %v3182_v34 = vld [vmem:[#allocation2 + $0x349] sm:$0xff]  ;;  %v3609_v62 = vpack.c.bf16 %v3577_v19, %v3576_v50 }
 0x476   :  { %v2608_v55 = vpop.f32.mrf.mxu1 }
 0x477   :  { %v3492_v21 = vadd.f32 %v3395_v13, %v3098_v28  ;;  %v2704_v26 = vadd.f32 %v2608_v55, %v6323_v38 }
 0x478   :  { %v3791_v25 = vpop.f32.mrf.mxu0 }
 0x479   :  { %v3886_v42 = vadd.f32 %v3789_v7, %v3492_v21  ;;  %v3215_v7 = vpack.c.bf16 %v3183_v60, %v3182_v34 }
 0x47b   :  { %v4077_v8 = vadd.f32 %v4076_v29, %v3886_v42  ;;  %v4148_v41 = vmul.f32 %v3886_v42, %v3886_v42 }
 0x47c   :  { %v3003_v54 = vpop.f32.mrf.mxu2 }
 0x47d   :  { %v4211_v11 = vadd.f32 %v4210_v2, %v4148_v41  ;;  %v3099_v61 = vadd.f32 %v3003_v54, %v2704_v26  ;;  %v3397_v27 = vpop.f32.mrf.mxu3  ;;  %v6676_v2 = vld [vmem:[#allocation22_spill] sm:$0xff]  ;;  %v6677_v54 = vld [vmem:[#allocation24_spill] sm:$0xff] }
 0x47e   :  { %v2611_v40 = vpop.f32.mrf.mxu1 }
 0x47f   :  { %v3493_v10 = vadd.f32 %v3397_v27, %v3099_v61  ;;  %v2705_v12 = vadd.f32 %v2611_v40, %v6674_v52 }
 0x480   :  { %v3794_v14 = vpop.f32.mrf.mxu0 }
 0x481   :  { %v3887_v20 = vadd.f32 %v3791_v25, %v3493_v10  ;;  %2650 = vmatmul.bf16.gmra.mxu1 %v3607_v53  ;;  %3045 = vmatmul.bf16.gmra.mxu2 %v2820_v36 }
 0x482   :  { %3439 = vmatmul.bf16.gmra.mxu3 %v3214_v44 }
 0x483   :  { %v4972_v6 = vpack.c.bf16 %v3887_v20, %v3886_v42  ;;  %v4078_v3 = vadd.f32 %v4077_v8, %v3887_v20  ;;  %v4149_v38 = vmul.f32 %v3887_v20, %v3887_v20  ;;  %3833 = vmatmul.bf16.gmra.mxu0 %v3608_v63  ;;  %v6678_v20 = vld [vmem:[#allocation26_spill] sm:$0xff] }
 0x484   :  { %v3006_v16 = vpop.f32.mrf.mxu2 }
 0x485   :  { %5075 = vst [vmem:[%s6558_s3 + $0xa8] sm:$0xff] %v4972_v6   ;;  %v4212_v1 = vadd.f32 %v4211_v11, %v4149_v38  ;;  %v3100_v51 = vadd.f32 %v3006_v16, %v2705_v12  ;;  %v3400_v30 = vpop.f32.mrf.mxu3 }
 0x486   :  { %v2613_v45 = vpop.f32.mrf.mxu1 }
 0x487   :  { %v3494_v31 = vadd.f32 %v3400_v30, %v3100_v51  ;;  %v2706_v48 = vadd.f32 %v2613_v45, %v6675_v33 }
 0x488   :  { %v3796_v18 = vpop.f32.mrf.mxu0 }
 0x489   :  { %v3888_v39 = vadd.f32 %v3794_v14, %v3494_v31  ;;  %v6679_v31 = vld [vmem:[#allocation3_spill] sm:$0xff] }
 0x48b   :  { %v4079_v47 = vadd.f32 %v4078_v3, %v3888_v39  ;;  %v4150_v24 = vmul.f32 %v3888_v39, %v3888_v39 }
 0x48c   :  { %v3008_v58 = vpop.f32.mrf.mxu2 }
 0x48d   :  { %v4213_v46 = vadd.f32 %v4212_v1, %v4150_v24  ;;  %v3101_v17 = vadd.f32 %v3008_v58, %v2706_v48  ;;  %v3402_v32 = vpop.f32.mrf.mxu3 }
 0x48e   :  { %v2616_v53 = vpop.f32.mrf.mxu1 }
 0x48f   :  { %v3495_v43 = vadd.f32 %v3402_v32, %v3101_v17  ;;  %v2707_v28 = vadd.f32 %v2616_v53, %v6676_v2 }
 0x490   :  { %v3799_v59 = vpop.f32.mrf.mxu0 }
 0x491   :  { %v3889_v29 = vadd.f32 %v3796_v18, %v3495_v43  ;;  %2655 = vmatmul.bf16.gmra.mxu1 %v3608_v63  ;;  %3050 = vmatmul.bf16.gmra.mxu2 %v2821_v9 }
 0x492   :  { %3444 = vmatmul.bf16.gmra.mxu3 %v3215_v7 }
 0x493   :  { %v4977_v57 = vpack.c.bf16 %v3889_v29, %v3888_v39  ;;  %v4080_v4 = vadd.f32 %v4079_v47, %v3889_v29  ;;  %v4151_v15 = vmul.f32 %v3889_v29, %v3889_v29  ;;  %3838 = vmatmul.bf16.gmra.mxu0 %v3609_v62 }
 0x494   :  { %v3011_v13 = vpop.f32.mrf.mxu2 }
 0x495   :  { %5076 = vst [vmem:[%s6558_s3 + $0xb0] sm:$0xff] %v4977_v57   ;;  %v4214_v55 = vadd.f32 %v4213_v46, %v4151_v15  ;;  %v3102_v21 = vadd.f32 %v3011_v13, %v2707_v28  ;;  %v3405_v42 = vpop.f32.mrf.mxu3 }
 0x496   :  { %v2618_v25 = vpop.f32.mrf.mxu1 }
 0x497   :  { %v3496_v49 = vadd.f32 %v3405_v42, %v3102_v21  ;;  %v2708_v35 = vadd.f32 %v2618_v25, %v6677_v54 }
 0x498   :  { %v3801_v8 = vpop.f32.mrf.mxu0 }
 0x499   :  { %v3890_v23 = vadd.f32 %v3799_v59, %v3496_v49 }
 0x49b   :  { %v4081_v41 = vadd.f32 %v4080_v4, %v3890_v23  ;;  %v4152_v26 = vmul.f32 %v3890_v23, %v3890_v23  ;;  %v6681_v4 = vld [vmem:[#allocation5_spill] sm:$0xff] }
 0x49c   :  { %v3013_v0 = vpop.f32.mrf.mxu2 }
 0x49d   :  { %v4215_v11 = vadd.f32 %v4214_v55, %v4152_v26  ;;  %v3103_v61 = vadd.f32 %v3013_v0, %v2708_v35  ;;  %v3407_v36 = vpop.f32.mrf.mxu3  ;;  %v6682_v26 = vld [vmem:[#allocation6_spill] sm:$0xff] }
 0x49e   :  { %v2621_v56 = vpop.f32.mrf.mxu1 }
 0x49f   :  { %v3497_v5 = vadd.f32 %v3407_v36, %v3103_v61  ;;  %v2709_v14 = vadd.f32 %v2621_v56, %v6678_v20 }
 0x4a0   :  { %v3804_v40 = vpop.f32.mrf.mxu0 }
 0x4a1   :  { %v3891_v27 = vadd.f32 %v3801_v8, %v3497_v5 }
 0x4a3   :  { %v4982_v10 = vpack.c.bf16 %v3891_v27, %v3890_v23  ;;  %v4082_v44 = vadd.f32 %v4081_v41, %v3891_v27  ;;  %v4153_v63 = vmul.f32 %v3891_v27, %v3891_v27 }
 0x4a4   :  { %v3016_v6 = vpop.f32.mrf.mxu2 }
 0x4a5   :  { %5077 = vst [vmem:[%s6558_s3 + $0xb8] sm:$0xff] %v4982_v10   ;;  %v4216_v3 = vadd.f32 %v4215_v11, %v4153_v63  ;;  %v3104_v38 = vadd.f32 %v3016_v6, %v2709_v14  ;;  %v3410_v52 = vpop.f32.mrf.mxu3 }
 0x4a6   :  { %v2623_v12 = vpop.f32.mrf.mxu1 }
 0x4a7   :  { %v3498_v16 = vadd.f32 %v3410_v52, %v3104_v38  ;;  %v2710_v39 = vadd.f32 %v2623_v12, %v6679_v31 }
 0x4a8   :  { %v3806_v51 = vpop.f32.mrf.mxu0 }
 0x4a9   :  { %v3892_v1 = vadd.f32 %v3804_v40, %v3498_v16 }
 0x4ab   :  { %v4083_v30 = vadd.f32 %v4082_v44, %v3892_v1  ;;  %v4154_v45 = vmul.f32 %v3892_v1, %v3892_v1  ;;  %v6683_v44 = vld [vmem:[#allocation7_spill] sm:$0xff] }
 0x4ac   :  { %v3018_v18 = vpop.f32.mrf.mxu2 }
 0x4ad   :  { %v4217_v37 = vadd.f32 %v4216_v3, %v4154_v45  ;;  %v3105_v47 = vadd.f32 %v3018_v18, %v2710_v39  ;;  %v3412_v24 = vpop.f32.mrf.mxu3  ;;  %v6684_v45 = vld [vmem:[#allocation8_spill] sm:$0xff] }
 0x4ae   :  { %v2626_v33 = vpop.f32.mrf.mxu1 }
 0x4af   :  { %v3499_v48 = vadd.f32 %v3412_v24, %v3105_v47  ;;  %v2711_v9 = vadd.f32 %v2626_v33, %v6680_v22 }
 0x4b0   :  { %v3809_v34 = vpop.f32.mrf.mxu0 }
 0x4b1   :  { %v3893_v58 = vadd.f32 %v3806_v51, %v3499_v48 }
 0x4b3   :  { %v4987_v60 = vpack.c.bf16 %v3893_v58, %v3892_v1  ;;  %v4084_v46 = vadd.f32 %v4083_v30, %v3893_v58  ;;  %v4155_v17 = vmul.f32 %v3893_v58, %v3893_v58 }
 0x4b4   :  { %v3021_v50 = vpop.f32.mrf.mxu2 }
 0x4b5   :  { %5078 = vst [vmem:[%s6558_s3 + $0xc0] sm:$0xff] %v4987_v60   ;;  %v4218_v19 = vadd.f32 %v4217_v37, %v4155_v17  ;;  %v3106_v32 = vadd.f32 %v3021_v50, %v2711_v9  ;;  %v3415_v53 = vpop.f32.mrf.mxu3 }
 0x4b6   :  { %v2628_v43 = vpop.f32.mrf.mxu1 }
 0x4b7   :  { %v3500_v7 = vadd.f32 %v3415_v53, %v3106_v32  ;;  %v2712_v15 = vadd.f32 %v2628_v43, %v6681_v4 }
 0x4b8   :  { %v3811_v29 = vpop.f32.mrf.mxu0 }
 0x4b9   :  { %v3894_v62 = vadd.f32 %v3809_v34, %v3500_v7 }
 0x4bb   :  { %v4085_v59 = vadd.f32 %v4084_v46, %v3894_v62  ;;  %v4156_v57 = vmul.f32 %v3894_v62, %v3894_v62  ;;  %v6685_v46 = vld [vmem:[#allocation9_spill] sm:$0xff] }
 0x4bc   :  { %v3023_v2 = vpop.f32.mrf.mxu2 }
 0x4bd   :  { %v4219_v28 = vadd.f32 %v4218_v19, %v4156_v57  ;;  %v3107_v13 = vadd.f32 %v3023_v2, %v2712_v15  ;;  %v3417_v55 = vpop.f32.mrf.mxu3  ;;  %v6686_v57 = vld [vmem:[#allocation11_spill] sm:$0xff] }
 0x4be   :  { %v2631_v21 = vpop.f32.mrf.mxu1 }
 0x4bf   :  { %v3501_v42 = vadd.f32 %v3417_v55, %v3107_v13  ;;  %v2713_v54 = vadd.f32 %v2631_v21, %v6682_v26 }
 0x4c0   :  { %v3814_v49 = vpop.f32.mrf.mxu0 }
 0x4c1   :  { %v3895_v25 = vadd.f32 %v3811_v29, %v3501_v42 }
 0x4c3   :  { %v4992_v23 = vpack.c.bf16 %v3895_v25, %v3894_v62  ;;  %v4086_v8 = vadd.f32 %v4085_v59, %v3895_v25  ;;  %v4157_v41 = vmul.f32 %v3895_v25, %v3895_v25 }
 0x4c4   :  { %v3026_v35 = vpop.f32.mrf.mxu2 }
 0x4c5   :  { %5079 = vst [vmem:[%s6558_s3 + $0xc8] sm:$0xff] %v4992_v23   ;;  %v4220_v0 = vadd.f32 %v4219_v28, %v4157_v41  ;;  %v3108_v11 = vadd.f32 %v3026_v35, %v2713_v54  ;;  %v3420_v61 = vpop.f32.mrf.mxu3 }
 0x4c6   :  { %v2633_v36 = vpop.f32.mrf.mxu1 }
 0x4c7   :  { %v3502_v56 = vadd.f32 %v3420_v61, %v3108_v11  ;;  %v2714_v63 = vadd.f32 %v2633_v36, %v6683_v44 }
 0x4c8   :  { %v3816_v27 = vpop.f32.mrf.mxu0 }
 0x4c9   :  { %v3896_v5 = vadd.f32 %v3814_v49, %v3502_v56 }
 0x4cb   :  { %v4087_v40 = vadd.f32 %v4086_v8, %v3896_v5  ;;  %v4158_v10 = vmul.f32 %v3896_v5, %v3896_v5  ;;  %v6687_v8 = vld [vmem:[#allocation13_spill] sm:$0xff] }
 0x4cc   :  { %v3028_v20 = vpop.f32.mrf.mxu2 }
 0x4cd   :  { %v4221_v14 = vadd.f32 %v4220_v0, %v4158_v10  ;;  %v3109_v6 = vadd.f32 %v3028_v20, %v2714_v63  ;;  %v3422_v3 = vpop.f32.mrf.mxu3  ;;  %v6688_v10 = vld [vmem:[#allocation15_spill] sm:$0xff] }
 0x4ce   :  { %v2636_v38 = vpop.f32.mrf.mxu1 }
 0x4cf   :  { %v3503_v52 = vadd.f32 %v3422_v3, %v3109_v6  ;;  %v2715_v31 = vadd.f32 %v2636_v38, %v6684_v45 }
 0x4d0   :  { %v3819_v16 = vpop.f32.mrf.mxu0 }
 0x4d1   :  { %v3897_v12 = vadd.f32 %v3816_v27, %v3503_v52 }
 0x4d3   :  { %v4997_v1 = vpack.c.bf16 %v3897_v12, %v3896_v5  ;;  %v4088_v51 = vadd.f32 %v4087_v40, %v3897_v12  ;;  %v4159_v30 = vmul.f32 %v3897_v12, %v3897_v12 }
 0x4d4   :  { %v3031_v39 = vpop.f32.mrf.mxu2 }
 0x4d5   :  { %5080 = vst [vmem:[%s6558_s3 + $0xd0] sm:$0xff] %v4997_v1   ;;  %v4222_v18 = vadd.f32 %v4221_v14, %v4159_v30  ;;  %v3110_v37 = vadd.f32 %v3031_v39, %v2715_v31  ;;  %v3425_v47 = vpop.f32.mrf.mxu3 }
 0x4d6   :  { %v2638_v24 = vpop.f32.mrf.mxu1 }
 0x4d7   :  { %v3504_v33 = vadd.f32 %v3425_v47, %v3110_v37  ;;  %v2716_v17 = vadd.f32 %v2638_v24, %v6685_v46 }
 0x4d8   :  { %v3821_v58 = vpop.f32.mrf.mxu0 }
 0x4d9   :  { %v3898_v48 = vadd.f32 %v3819_v16, %v3504_v33 }
 0x4db   :  { %v4089_v34 = vadd.f32 %v4088_v51, %v3898_v48  ;;  %v4160_v60 = vmul.f32 %v3898_v48, %v3898_v48  ;;  %v6689_v51 = vld [vmem:[#allocation17_spill] sm:$0xff] }
 0x4dc   :  { %v3033_v22 = vpop.f32.mrf.mxu2 }
 0x4dd   :  { %v4223_v9 = vadd.f32 %v4222_v18, %v4160_v60  ;;  %v3111_v50 = vadd.f32 %v3033_v22, %v2716_v17  ;;  %v3427_v19 = vpop.f32.mrf.mxu3  ;;  %v6690_v60 = vld [vmem:[#allocation19_spill] sm:$0xff] }
 0x4de   :  { %v2641_v32 = vpop.f32.mrf.mxu1 }
 0x4df   :  { %v3505_v53 = vadd.f32 %v3427_v19, %v3111_v50  ;;  %v2717_v4 = vadd.f32 %v2641_v32, %v6686_v57 }
 0x4e0   :  { %v3824_v7 = vpop.f32.mrf.mxu0 }
 0x4e1   :  { %v3899_v43 = vadd.f32 %v3821_v58, %v3505_v53 }
 0x4e3   :  { %v5002_v62 = vpack.c.bf16 %v3899_v43, %v3898_v48  ;;  %v4090_v29 = vadd.f32 %v4089_v34, %v3899_v43  ;;  %v4161_v59 = vmul.f32 %v3899_v43, %v3899_v43 }
 0x4e4   :  { %v3036_v15 = vpop.f32.mrf.mxu2 }
 0x4e5   :  { %5081 = vst [vmem:[%s6558_s3 + $0xd8] sm:$0xff] %v5002_v62   ;;  %v4224_v2 = vadd.f32 %v4223_v9, %v4161_v59  ;;  %v3112_v28 = vadd.f32 %v3036_v15, %v2717_v4  ;;  %v3430_v13 = vpop.f32.mrf.mxu3  ;;  %v6691_v62 = vld [vmem:[#allocation21_spill] sm:$0xff] }
 0x4e6   :  { %v2643_v55 = vpop.f32.mrf.mxu1 }
 0x4e7   :  { %v3506_v21 = vadd.f32 %v3430_v13, %v3112_v28  ;;  %v2718_v41 = vadd.f32 %v2643_v55, %v6687_v8 }
 0x4e8   :  { %v3826_v25 = vpop.f32.mrf.mxu0 }
 0x4e9   :  { %v3900_v42 = vadd.f32 %v3824_v7, %v3506_v21 }
 0x4eb   :  { %v4091_v49 = vadd.f32 %v4090_v29, %v3900_v42  ;;  %v4162_v23 = vmul.f32 %v3900_v42, %v3900_v42 }
 0x4ec   :  { %v3038_v26 = vpop.f32.mrf.mxu2 }
 0x4ed   :  { %v4225_v54 = vadd.f32 %v4224_v2, %v4162_v23  ;;  %v3113_v35 = vadd.f32 %v3038_v26, %v2718_v41  ;;  %v3432_v0 = vpop.f32.mrf.mxu3 }
 0x4ee   :  { %v2646_v11 = vpop.f32.mrf.mxu1 }
 0x4ef   :  { %v3507_v61 = vadd.f32 %v3432_v0, %v3113_v35  ;;  %v2719_v44 = vadd.f32 %v2646_v11, %v6688_v10 }
 0x4f0   :  { %v3829_v56 = vpop.f32.mrf.mxu0 }
 0x4f1   :  { %v3901_v36 = vadd.f32 %v3826_v25, %v3507_v61 }
 0x4f3   :  { %v5007_v5 = vpack.c.bf16 %v3901_v36, %v3900_v42  ;;  %v4092_v27 = vadd.f32 %v4091_v49, %v3901_v36  ;;  %v4163_v40 = vmul.f32 %v3901_v36, %v3901_v36  ;;  %v6692_v49 = vld [vmem:[#allocation23_spill] sm:$0xff] }
 0x4f4   :  { %v3041_v63 = vpop.f32.mrf.mxu2 }
 0x4f5   :  { %5082 = vst [vmem:[%s6558_s3 + $0xe0] sm:$0xff] %v5007_v5   ;;  %v4226_v20 = vadd.f32 %v4225_v54, %v4163_v40  ;;  %v3114_v14 = vadd.f32 %v3041_v63, %v2719_v44  ;;  %v3435_v6 = vpop.f32.mrf.mxu3  ;;  %v6693_v5 = vld [vmem:[#allocation25_spill] sm:$0xff] }
 0x4f6   :  { %v2648_v3 = vpop.f32.mrf.mxu1 }
 0x4f7   :  { %v3508_v38 = vadd.f32 %v3435_v6, %v3114_v14  ;;  %v2720_v30 = vadd.f32 %v2648_v3, %v6689_v51 }
 0x4f8   :  { %v3831_v12 = vpop.f32.mrf.mxu0 }
 0x4f9   :  { %v3902_v52 = vadd.f32 %v3829_v56, %v3508_v38 }
 0x4fb   :  { %v4093_v16 = vadd.f32 %v4092_v27, %v3902_v52  ;;  %v4164_v1 = vmul.f32 %v3902_v52, %v3902_v52 }
 0x4fc   :  { %v3043_v45 = vpop.f32.mrf.mxu2 }
 0x4fd   :  { %v4227_v31 = vadd.f32 %v4226_v20, %v4164_v1  ;;  %v3115_v39 = vadd.f32 %v3043_v45, %v2720_v30  ;;  %v3437_v18 = vpop.f32.mrf.mxu3 }
 0x4fe   :  { %v2651_v37 = vpop.f32.mrf.mxu1 }
 0x4ff   :  { %v3509_v47 = vadd.f32 %v3437_v18, %v3115_v39  ;;  %v2721_v46 = vadd.f32 %v2651_v37, %v6690_v60 }
 0x500   :  { %v3834_v33 = vpop.f32.mrf.mxu0 }
 0x501   :  { %v3903_v24 = vadd.f32 %v3831_v12, %v3509_v47 }
 0x503   :  { %v5012_v48 = vpack.c.bf16 %v3903_v24, %v3902_v52  ;;  %v4094_v58 = vadd.f32 %v4093_v16, %v3903_v24  ;;  %v4165_v34 = vmul.f32 %v3903_v24, %v3903_v24 }
 0x504   :  { %v3046_v17 = vpop.f32.mrf.mxu2 }
 0x505   :  { %5083 = vst [vmem:[%s6558_s3 + $0xe8] sm:$0xff] %v5012_v48   ;;  %v4228_v22 = vadd.f32 %v4227_v31, %v4165_v34  ;;  %v3116_v9 = vadd.f32 %v3046_v17, %v2721_v46  ;;  %v3440_v50 = vpop.f32.mrf.mxu3 }
 0x506   :  { %v2653_v19 = vpop.f32.mrf.mxu1 }
 0x507   :  { %v3510_v32 = vadd.f32 %v3440_v50, %v3116_v9  ;;  %v2722_v29 = vadd.f32 %v2653_v19, %v6691_v62 }
 0x508   :  { %v3836_v59 = vpop.f32.mrf.mxu0 }
 0x509   :  { %v3904_v53 = vadd.f32 %v3834_v33, %v3510_v32 }
 0x50b   :  { %v4095_v43 = vadd.f32 %v4094_v58, %v3904_v53  ;;  %v4166_v7 = vmul.f32 %v3904_v53, %v3904_v53 }
 0x50c   :  { %v3048_v57 = vpop.f32.mrf.mxu2 }
 0x50d   :  { %v4229_v4 = vadd.f32 %v4228_v22, %v4166_v7  ;;  %v3117_v15 = vadd.f32 %v3048_v57, %v2722_v29  ;;  %v3442_v2 = vpop.f32.mrf.mxu3 }
 0x50e   :  { %v2656_v28 = vpop.f32.mrf.mxu1 }
 0x50f   :  { %v3511_v13 = vadd.f32 %v3442_v2, %v3117_v15  ;;  %v2723_v23 = vadd.f32 %v2656_v28, %v6692_v49 }
 0x510   :  { %v3839_v54 = vpop.f32.mrf.mxu0 }
 0x511   :  { %v3905_v55 = vadd.f32 %v3836_v59, %v3511_v13 }
 0x513   :  { %v5017_v21 = vpack.c.bf16 %v3905_v55, %v3904_v53  ;;  %v4096_v42 = vadd.f32 %v4095_v43, %v3905_v55  ;;  %v4167_v25 = vmul.f32 %v3905_v55, %v3905_v55 }
 0x514   :  { %v3051_v8 = vpop.f32.mrf.mxu2 }
 0x515   :  { %5084 = vst [vmem:[%s6558_s3 + $0xf0] sm:$0xff] %v5017_v21   ;;  %v4230_v41 = vadd.f32 %v4229_v4, %v4167_v25  ;;  %v3118_v26 = vadd.f32 %v3051_v8, %v2723_v23  ;;  %v3445_v35 = vpop.f32.mrf.mxu3 }
 0x516   :  { %v2658_v11 = vpop.f32.mrf.mxu1 }
 0x517   :  { %v3512_v0 = vadd.f32 %v3445_v35, %v3118_v26  ;;  %v2724_v27 = vadd.f32 %v2658_v11, %v6693_v5 }
 0x518   :  { %v3841_v14 = vpop.f32.mrf.mxu0 }
 0x519   :  { %v3906_v61 = vadd.f32 %v3839_v54, %v3512_v0 }
 0x51b   :  { %v4097_v36 = vadd.f32 %v4096_v42, %v3906_v61  ;;  %v4168_v56 = vmul.f32 %v3906_v61, %v3906_v61 }
 0x51c   :  { %v3053_v40 = vpop.f32.mrf.mxu2 }
 0x51d   :  { %v4231_v10 = vadd.f32 %v4230_v41, %v4168_v56  ;;  %v3119_v44 = vadd.f32 %v3053_v40, %v2724_v27  ;;  %v3447_v63 = vpop.f32.mrf.mxu3 }
 0x51f   :  { %v3513_v20 = vadd.f32 %v3447_v63, %v3119_v44 }
 0x521   :  { %v3907_v6 = vadd.f32 %v3841_v14, %v3513_v20 }
 0x523   :  { %v5022_v3 = vpack.c.bf16 %v3907_v6, %v3906_v61  ;;  %v4098_v38 = vadd.f32 %v4097_v36, %v3907_v6  ;;  %v4169_v52 = vmul.f32 %v3907_v6, %v3907_v6 }
 0x525   :  { %5085 = vst [vmem:[%s6558_s3 + $0xf8] sm:$0xff] %v5022_v3   ;;  %v4099_v12 = vrot.slane %v4098_v38, 4  ;;  %v4232_v16 = vadd.f32 %v4231_v10, %v4169_v52 }
 0x527   :  { %v4100_v1 = vadd.f32 %v4099_v12, %v4098_v38  ;;  %v4233_v51 = vrot.slane %v4232_v16, 4 }
 0x529   :  { %v4101_v30 = vrot.slane %v4100_v1, 2  ;;  %v4234_v45 = vadd.f32 %v4233_v51, %v4232_v16 }
 0x52b   :  { %v4102_v31 = vadd.f32 %v4101_v30, %v4100_v1  ;;  %v4235_v39 = vrot.slane %v4234_v45, 2 }
 0x52d   :  { %v4103_v18 = vrot.slane %v4102_v31, 1  ;;  %v4236_v37 = vadd.f32 %v4235_v39, %v4234_v45 }
 0x52f   :  { %v4104_v47 = vadd.f32 %v4103_v18, %v4102_v31  ;;  %v4237_v24 = vrot.slane %v4236_v37, 1 }
 0x531   :  { %4105 = vst [vmem:[%s6559_s4] sm:$0x1] %v4104_v47  ;;  %v4238_v33 = vadd.f32 %v4237_v24, %v4236_v37 }
 0x533   :  { %4239 = vst [vmem:[%s6559_s4 + $0x1] sm:$0x1] %v4238_v33 }

</bundles_post_ra>
